<compile_context>
chip_gen: v5e
topology: v5e:2x2
jax: 0.10.0
libtpu: 0.0.40
codegen_flags: <defaults>
</compile_context>

<pallas_src>
import functools

import jax
import jax.numpy as jnp
from jax.experimental import pallas as pl
from jax.experimental.pallas import tpu as pltpu


def _round_up(x, m):
    return ((x + m - 1) // m) * m


# --------- kernel 1: edge ccorr -> messages -> scatter-add -> pre-BN activations ---------
def _main_kernel(dst_ref, srcft_ref, eft_ref, ft_ref, w_in_ref, w_loop_ref,
                 x_ref, stats_ref, acc_ref, deg_ref,
                 *, d_in, n_valid, tn):
    i = pl.program_id(0)          # node tile (parallel)
    j = pl.program_id(1)          # edge tile (reduction, last grid axis)

    @pl.when(j == 0)
    def _init():
        acc_ref[...] = jnp.zeros_like(acc_ref)
        deg_ref[...] = jnp.zeros_like(deg_ref)

    # --- circular correlation of (source node, edge relation) features, f32 on VPU ---
    #   ccorr(a, b)[n, m] = sum_k a[n, k] * b[n, (k + m) % d_in]
    # The edge features are doubled once so every shifted term is a static lane slice
    # (no per-iteration concatenate / rolled temporaries).
    src = srcft_ref[...]                                          # (te, d_in) f32
    e2 = jnp.concatenate([eft_ref[...], eft_ref[...]], axis=-1)   # (te, 2*d_in)
    cc = jnp.zeros_like(src)
    for k in range(d_in):                                         # static unroll (small d_in)
        cc = cc + src[:, k:k + 1] * e2[:, k:k + d_in]

    # per-edge messages on the MXU (bf16 operands, f32 accumulation)
    msg = jnp.dot(cc.astype(jnp.bfloat16), w_in_ref[...],
                  preferred_element_type=jnp.float32)             # (te, dp_out)

    # --- scatter-add onto the destination nodes of this node tile --------------------
    te = dst_ref.shape[1]
    row_ids = i * tn + jax.lax.broadcasted_iota(jnp.int32, (tn, te), 0)
    onehot = (row_ids == dst_ref[...]).astype(jnp.float32)        # (tn, te); 0/1 exact in bf16
    acc_ref[...] += jnp.dot(onehot.astype(jnp.bfloat16), msg.astype(jnp.bfloat16),
                            preferred_element_type=jnp.float32)
    deg_ref[...] += jnp.sum(onehot, axis=1, keepdims=True)        # in-degree accumulator

    # --- finalize after the last edge tile -------------------------------------------
    @pl.when(j == pl.num_programs(1) - 1)
    def _finalize():
        deg = deg_ref[...]
        norm = jnp.where(deg > 0.0,
                         pl.reciprocal(jnp.maximum(deg, 1.0), approx=False), 0.0)
        # self-loop message + bias: ccorr(ft, loop_rel) @ w_loop (+ bias row) was folded
        # into one precomputed matrix -> a single MXU matmul here.
        loop_msg = jnp.dot(ft_ref[...].astype(jnp.bfloat16), w_loop_ref[...],
                           preferred_element_type=jnp.float32)
        x = acc_ref[...] * norm + loop_msg
        x_ref[...] = x

        # per-tile partial sums for BatchNorm batch statistics (padded rows masked out)
        rmask = ((i * tn + jax.lax.broadcasted_iota(jnp.int32, (tn, 1), 0))
                 < n_valid).astype(jnp.float32)
        xm = x * rmask
        s0 = jnp.sum(xm, axis=0, keepdims=True)
        s1 = jnp.sum(xm * xm, axis=0, keepdims=True)
        pad = jnp.zeros((6, x.shape[1]), jnp.float32)
        stats_ref[...] = jnp.concatenate([s0, s1, pad], axis=0)   # (8, dp_out)


# --------- kernel 2: BatchNorm affine + tanh (lane-dense elementwise pass) ---------------
def _bn_act_kernel(x_ref, scale_ref, shift_ref, o_ref):
    o_ref[...] = jnp.tanh(x_ref[...] * scale_ref[...] + shift_ref[...])


def compgcn_layer(ft, edge_ft, src_idx, dst_idx, params, eps=1e-5):
    f32 = jnp.float32
    n, d_in = ft.shape
    e = edge_ft.shape[0]
    d_out = params["w_in"].shape[1]

    # ---- tile sizes: (8,128)-aligned, lane-dense; small problems collapse to 1 tile ----
    tn = min(256, _round_up(n, 8))
    te = min(512, _round_up(e, 128))
    n_pad = _round_up(n, tn)
    e_pad = _round_up(e, te)
    n_tiles = n_pad // tn
    e_tiles = e_pad // te
    dp_in = _round_up(d_in + 1, 128)      # +1 column carries the bias trick
    dp_out = _round_up(d_out, 128)

    # ---- fold ccorr(ft, loop_rel) @ w_loop + bias into one matrix ----------------------
    #   ccorr(ft, loop_rel) = ft @ C with C[i, k] = loop_rel[(i + k) % d_in]
    ar = jnp.arange(d_in)
    circ = params["loop_rel"][0, (ar[:, None] + ar[None, :]) % d_in]          # (d_in, d_in)
    w_loop_eff = circ.astype(f32) @ params["w_loop"].astype(f32)              # (d_in, d_out)
    w_loop_eff = (jnp.zeros((dp_in, dp_out), f32)
                  .at[:d_in, :d_out].set(w_loop_eff)
                  .at[d_in, :d_out].set(params["w_bias"].astype(f32)))        # bias row
    w_loop_eff = w_loop_eff.astype(jnp.bfloat16)

    w_in_p = (jnp.zeros((d_in, dp_out), f32)
              .at[:, :d_out].set(params["w_in"].astype(f32))).astype(jnp.bfloat16)

    # node features padded to dp_in lanes; column d_in holds 1.0 so the bias row of
    # w_loop_eff is added by the same matmul (no separate (1, Dout) broadcast input)
    ft_p = (jnp.zeros((n_pad, dp_in), f32)
            .at[:n, :d_in].set(ft.astype(f32))
            .at[:n, d_in].set(1.0))

    # per-edge streams stay at native d_in width (ccorr wraps mod d_in, so padding the
    # feature axis would change the semantics)
    # TODO(synk): the src-row gather could move in-kernel (manual DMA gather driven by
    # scalar-prefetched src_idx); kept as wrapper glue here.
    src_ft = jnp.zeros((e_pad, d_in), f32).at[:e, :].set(ft.astype(f32)[src_idx])
    eft_p = jnp.zeros((e_pad, d_in), f32).at[:e, :].set(edge_ft.astype(f32))
    dst_p = jnp.full((1, e_pad), -1, jnp.int32).at[0, :e].set(dst_idx.astype(jnp.int32))

    kern = functools.partial(_main_kernel, d_in=d_in, n_valid=n, tn=tn)
    x, stats = pl.pallas_call(
        kern,
        grid=(n_tiles, e_tiles),
        in_specs=[
            pl.BlockSpec((1, te), lambda i, j: (0, j)),           # dst node ids (int32)
            pl.BlockSpec((te, d_in), lambda i, j: (j, 0)),        # gathered src features
            pl.BlockSpec((te, d_in), lambda i, j: (j, 0)),        # edge features
            pl.BlockSpec((tn, dp_in), lambda i, j: (i, 0)),       # node features (+1 col)
            pl.BlockSpec((d_in, dp_out), lambda i, j: (0, 0)),    # w_in (bf16)
            pl.BlockSpec((dp_in, dp_out), lambda i, j: (0, 0)),   # w_loop_eff + bias (bf16)
        ],
        out_specs=(
            pl.BlockSpec((tn, dp_out), lambda i, j: (i, 0)),      # pre-BN activations
            pl.BlockSpec((8, dp_out), lambda i, j: (i, 0)),       # per-tile BN partials
        ),
        out_shape=(
            jax.ShapeDtypeStruct((n_pad, dp_out), jnp.float32),
            jax.ShapeDtypeStruct((n_tiles * 8, dp_out), jnp.float32),
        ),
        scratch_shapes=[
            pltpu.VMEM((tn, dp_out), jnp.float32),                # agg accumulator
            pltpu.VMEM((tn, 1), jnp.float32),                     # in-degree accumulator
        ],
        compiler_params=pltpu.CompilerParams(
            dimension_semantics=("parallel", "arbitrary"),
            vmem_limit_bytes=32 * 1024 * 1024),
    )(dst_p, src_ft, eft_p, ft_p, w_in_p, w_loop_eff)

    # ---- combine per-tile partials into batch statistics (tiny (n_tiles, Dout) reduce) ----
    stats = stats.reshape(n_tiles, 8, dp_out)
    total = jnp.sum(stats[:, 0, :], axis=0)
    total_sq = jnp.sum(stats[:, 1, :], axis=0)
    mean = total / n
    var = jnp.maximum(total_sq / n - mean * mean, 0.0)            # biased, training-mode
    gamma = jnp.zeros((dp_out,), f32).at[:d_out].set(params["bn_gamma"].astype(f32))
    beta = jnp.zeros((dp_out,), f32).at[:d_out].set(params["bn_beta"].astype(f32))
    scale = gamma * jax.lax.rsqrt(var + eps)
    shift = beta - mean * scale
    # TODO(synk): BatchNorm running-mean/var buffer updates are not produced (forward only).

    y = pl.pallas_call(
        _bn_act_kernel,
        grid=(n_tiles,),
        in_specs=[
            pl.BlockSpec((tn, dp_out), lambda i: (i, 0)),
            pl.BlockSpec((1, dp_out), lambda i: (0, 0)),
            pl.BlockSpec((1, dp_out), lambda i: (0, 0)),
        ],
        out_specs=pl.BlockSpec((tn, dp_out), lambda i: (i, 0)),
        out_shape=jax.ShapeDtypeStruct((n_pad, dp_out), jnp.float32),
        compiler_params=pltpu.CompilerParams(dimension_semantics=("parallel",)),
    )(x, scale[None, :], shift[None, :])

    # TODO(synk): dropout omitted — module default dropout=0.0 is a forward no-op.
    return y[:n, :d_out]


# ------------------------- pure-JAX reference (for verification) -------------------------
def _ccorr_ref(a, b):
    d = a.shape[-1]
    idx = (jnp.arange(d)[:, None] + jnp.arange(d)[None, :]) % d          # [i, k]
    b_full = jnp.broadcast_to(b, (a.shape[0], d))
    return jnp.einsum("ni,nik->nk", a, b_full[:, idx])


def _reference(ft, edge_ft, src_idx, dst_idx, params):
    n = ft.shape[0]
    loop_msg = _ccorr_ref(ft, params["loop_rel"]) @ params["w_loop"]
    msg = _ccorr_ref(ft[src_idx], edge_ft) @ params["w_in"]
    agg = jnp.zeros((n, msg.shape[1]), jnp.float32).at[dst_idx].add(msg)
    indeg = jnp.zeros((n,), jnp.float32).at[dst_idx].add(1.0)
    norm = jnp.where(indeg > 0, 1.0 / jnp.maximum(indeg, 1.0), 0.0)[:, None]
    x = agg * norm + params["w_bias"][None, :] + loop_msg
    mean = x.mean(axis=0, keepdims=True)
    var = ((x - mean) ** 2).mean(axis=0, keepdims=True)
    xn = (x - mean) / jnp.sqrt(var + 1e-5)
    return jnp.tanh(xn * params["bn_gamma"][None, :] + params["bn_beta"][None, :])


def _xavier_normal(key, shape, gain):
    fan_in, fan_out = shape
    std = gain * (2.0 / (fan_in + fan_out)) ** 0.5
    return std * jax.random.normal(key, shape, jnp.float32)


if __name__ == "__main__":
    key = jax.random.PRNGKey(0)
    N, E, D_IN, D_OUT = 8, 16, 32, 32
    ks = jax.random.split(key, 7)

    ft = jax.random.normal(ks[0], (N, D_IN), jnp.float32)        # graph.ndata['ft']
    edge_ft = jax.random.normal(ks[1], (E, D_IN), jnp.float32)   # graph.edata['ft']
    src_idx = jax.random.randint(ks[2], (E,), 0, N)
    dst_idx = jax.random.randint(ks[3], (E,), 0, N)

    gain = 2.0 ** 0.5                                            # calculate_gain('relu')
    params = dict(
        w_loop=_xavier_normal(ks[4], (D_IN, D_OUT), gain),
        w_in=_xavier_normal(ks[5], (D_IN, D_OUT), gain),
        loop_rel=_xavier_normal(ks[6], (1, D_IN), gain),
        w_bias=jnp.zeros((D_OUT,), jnp.float32),                 # zeros_
        bn_gamma=jnp.ones((D_OUT,), jnp.float32),                # BatchNorm1d affine init
        bn_beta=jnp.zeros((D_OUT,), jnp.float32),
    )

    out = jax.block_until_ready(compgcn_layer(ft, edge_ft, src_idx, dst_idx, params))
    ref = jax.block_until_ready(_reference(ft, edge_ft, src_idx, dst_idx, params))

    assert out.shape == (N, D_OUT) and out.dtype == jnp.float32
    assert jnp.allclose(out, ref, rtol=2e-2, atol=2e-2), (
        f"mismatch vs reference, max abs err {jnp.max(jnp.abs(out - ref))}")
    print("KERNEL_OK")
</pallas_src>

<mosaic_0001>
module attributes {stable_mosaic.version = 11 : i64} {
  func.func @_main_kernel(%arg0: i32, %arg1: i32, %arg2: memref<1x128xi32, #tpu.memory_space<vmem>>, %arg3: memref<128x32xf32, #tpu.memory_space<vmem>>, %arg4: memref<128x32xf32, #tpu.memory_space<vmem>>, %arg5: memref<8x128xf32, #tpu.memory_space<vmem>>, %arg6: memref<32x128xbf16, #tpu.memory_space<vmem>>, %arg7: memref<128x128xbf16, #tpu.memory_space<vmem>>, %arg8: memref<8x128xf32, #tpu.memory_space<vmem>>, %arg9: memref<8x128xf32, #tpu.memory_space<vmem>>, %arg10: memref<8x128xf32, #tpu.memory_space<vmem>>, %arg11: memref<8x1xf32, #tpu.memory_space<vmem>>) attributes {dimension_semantics = [#tpu.dimension_semantics<parallel>, #tpu.dimension_semantics<arbitrary>], iteration_bounds = array<i64: 1, 1>, scalar_prefetch = 0 : i64, scratch_operands = 2 : i64, tpu.core_type = #tpu.core_type<tc>, window_params = [{transform_indices = @transform_0, window_bounds = array<i64: 1, 128>}, {transform_indices = @transform_1, window_bounds = array<i64: 128, 32>}, {transform_indices = @transform_2, window_bounds = array<i64: 128, 32>}, {transform_indices = @transform_3, window_bounds = array<i64: 8, 128>}, {pipeline_mode = #tpu.pipeline_mode<synchronous>, transform_indices = @transform_4, window_bounds = array<i64: 32, 128>}, {pipeline_mode = #tpu.pipeline_mode<synchronous>, transform_indices = @transform_5, window_bounds = array<i64: 128, 128>}, {transform_indices = @transform_6, window_bounds = array<i64: 8, 128>}, {transform_indices = @transform_7, window_bounds = array<i64: 8, 128>}]} {
    %c0_i32 = arith.constant 0 : i32
    %0 = arith.cmpi eq, %arg1, %c0_i32 : i32
    %1 = arith.extui %0 : i1 to i32
    %c0_i32_0 = arith.constant 0 : i32
    %2 = arith.cmpi ne, %1, %c0_i32_0 : i32
    scf.if %2 {
      %cst_23 = arith.constant 0.000000e+00 : f32
      %194 = vector.broadcast %cst_23 : f32 to vector<8x128xf32>
      %c0_24 = arith.constant 0 : index
      %c0_25 = arith.constant 0 : index
      %195 = vector.load %arg10[%c0_24, %c0_25] : memref<8x128xf32, #tpu.memory_space<vmem>>, vector<8x128xf32>
      tpu.vector_store %arg10[%c0_24, %c0_25], %194 {strides = array<i32>} : memref<8x128xf32, #tpu.memory_space<vmem>>, vector<8x128xf32>,
      %cst_26 = arith.constant 0.000000e+00 : f32
      %196 = vector.broadcast %cst_26 : f32 to vector<8x1xf32>
      %c0_27 = arith.constant 0 : index
      %c0_28 = arith.constant 0 : index
      %197 = vector.load %arg11[%c0_27, %c0_28] : memref<8x1xf32, #tpu.memory_space<vmem>>, vector<8x1xf32>
      tpu.vector_store %arg11[%c0_27, %c0_28], %196 {strides = array<i32>} : memref<8x1xf32, #tpu.memory_space<vmem>>, vector<8x1xf32>,
    } else {
    }
    %c0 = arith.constant 0 : index
    %c0_1 = arith.constant 0 : index
    %3 = vector.load %arg3[%c0, %c0_1] : memref<128x32xf32, #tpu.memory_space<vmem>>, vector<128x32xf32>
    %c0_2 = arith.constant 0 : index
    %c0_3 = arith.constant 0 : index
    %4 = vector.load %arg4[%c0_2, %c0_3] : memref<128x32xf32, #tpu.memory_space<vmem>>, vector<128x32xf32>
    %c0_4 = arith.constant 0 : index
    %c0_5 = arith.constant 0 : index
    %5 = vector.load %arg4[%c0_4, %c0_5] : memref<128x32xf32, #tpu.memory_space<vmem>>, vector<128x32xf32>
    %6 = tpu.concatenate %4, %5 in 1 : vector<128x32xf32>, vector<128x32xf32> -> vector<128x64xf32>
    %cst = arith.constant 0.000000e+00 : f32
    %7 = vector.broadcast %cst : f32 to vector<128x32xf32>
    %8 = vector.extract_strided_slice %3 {offsets = [0, 0], sizes = [128, 1], strides = [1, 1]} : vector<128x32xf32> to vector<128x1xf32>
    %9 = vector.extract_strided_slice %6 {offsets = [0, 0], sizes = [128, 32], strides = [1, 1]} : vector<128x64xf32> to vector<128x32xf32>
    %10 = vector.broadcast %8 : vector<128x1xf32> to vector<128x32xf32>
    %11 = arith.mulf %10, %9 : vector<128x32xf32>
    %12 = arith.addf %7, %11 : vector<128x32xf32>
    %13 = vector.extract_strided_slice %3 {offsets = [0, 1], sizes = [128, 1], strides = [1, 1]} : vector<128x32xf32> to vector<128x1xf32>
    %14 = vector.extract_strided_slice %6 {offsets = [0, 1], sizes = [128, 32], strides = [1, 1]} : vector<128x64xf32> to vector<128x32xf32>
    %15 = vector.broadcast %13 : vector<128x1xf32> to vector<128x32xf32>
    %16 = arith.mulf %15, %14 : vector<128x32xf32>
    %17 = arith.addf %12, %16 : vector<128x32xf32>
    %18 = vector.extract_strided_slice %3 {offsets = [0, 2], sizes = [128, 1], strides = [1, 1]} : vector<128x32xf32> to vector<128x1xf32>
    %19 = vector.extract_strided_slice %6 {offsets = [0, 2], sizes = [128, 32], strides = [1, 1]} : vector<128x64xf32> to vector<128x32xf32>
    %20 = vector.broadcast %18 : vector<128x1xf32> to vector<128x32xf32>
    %21 = arith.mulf %20, %19 : vector<128x32xf32>
    %22 = arith.addf %17, %21 : vector<128x32xf32>
    %23 = vector.extract_strided_slice %3 {offsets = [0, 3], sizes = [128, 1], strides = [1, 1]} : vector<128x32xf32> to vector<128x1xf32>
    %24 = vector.extract_strided_slice %6 {offsets = [0, 3], sizes = [128, 32], strides = [1, 1]} : vector<128x64xf32> to vector<128x32xf32>
    %25 = vector.broadcast %23 : vector<128x1xf32> to vector<128x32xf32>
    %26 = arith.mulf %25, %24 : vector<128x32xf32>
    %27 = arith.addf %22, %26 : vector<128x32xf32>
    %28 = vector.extract_strided_slice %3 {offsets = [0, 4], sizes = [128, 1], strides = [1, 1]} : vector<128x32xf32> to vector<128x1xf32>
    %29 = vector.extract_strided_slice %6 {offsets = [0, 4], sizes = [128, 32], strides = [1, 1]} : vector<128x64xf32> to vector<128x32xf32>
    %30 = vector.broadcast %28 : vector<128x1xf32> to vector<128x32xf32>
    %31 = arith.mulf %30, %29 : vector<128x32xf32>
    %32 = arith.addf %27, %31 : vector<128x32xf32>
    %33 = vector.extract_strided_slice %3 {offsets = [0, 5], sizes = [128, 1], strides = [1, 1]} : vector<128x32xf32> to vector<128x1xf32>
    %34 = vector.extract_strided_slice %6 {offsets = [0, 5], sizes = [128, 32], strides = [1, 1]} : vector<128x64xf32> to vector<128x32xf32>
    %35 = vector.broadcast %33 : vector<128x1xf32> to vector<128x32xf32>
    %36 = arith.mulf %35, %34 : vector<128x32xf32>
    %37 = arith.addf %32, %36 : vector<128x32xf32>
    %38 = vector.extract_strided_slice %3 {offsets = [0, 6], sizes = [128, 1], strides = [1, 1]} : vector<128x32xf32> to vector<128x1xf32>
    %39 = vector.extract_strided_slice %6 {offsets = [0, 6], sizes = [128, 32], strides = [1, 1]} : vector<128x64xf32> to vector<128x32xf32>
    %40 = vector.broadcast %38 : vector<128x1xf32> to vector<128x32xf32>
    %41 = arith.mulf %40, %39 : vector<128x32xf32>
    %42 = arith.addf %37, %41 : vector<128x32xf32>
    %43 = vector.extract_strided_slice %3 {offsets = [0, 7], sizes = [128, 1], strides = [1, 1]} : vector<128x32xf32> to vector<128x1xf32>
    %44 = vector.extract_strided_slice %6 {offsets = [0, 7], sizes = [128, 32], strides = [1, 1]} : vector<128x64xf32> to vector<128x32xf32>
    %45 = vector.broadcast %43 : vector<128x1xf32> to vector<128x32xf32>
    %46 = arith.mulf %45, %44 : vector<128x32xf32>
    %47 = arith.addf %42, %46 : vector<128x32xf32>
    %48 = vector.extract_strided_slice %3 {offsets = [0, 8], sizes = [128, 1], strides = [1, 1]} : vector<128x32xf32> to vector<128x1xf32>
    %49 = vector.extract_strided_slice %6 {offsets = [0, 8], sizes = [128, 32], strides = [1, 1]} : vector<128x64xf32> to vector<128x32xf32>
    %50 = vector.broadcast %48 : vector<128x1xf32> to vector<128x32xf32>
    %51 = arith.mulf %50, %49 : vector<128x32xf32>
    %52 = arith.addf %47, %51 : vector<128x32xf32>
    %53 = vector.extract_strided_slice %3 {offsets = [0, 9], sizes = [128, 1], strides = [1, 1]} : vector<128x32xf32> to vector<128x1xf32>
    %54 = vector.extract_strided_slice %6 {offsets = [0, 9], sizes = [128, 32], strides = [1, 1]} : vector<128x64xf32> to vector<128x32xf32>
    %55 = vector.broadcast %53 : vector<128x1xf32> to vector<128x32xf32>
    %56 = arith.mulf %55, %54 : vector<128x32xf32>
    %57 = arith.addf %52, %56 : vector<128x32xf32>
    %58 = vector.extract_strided_slice %3 {offsets = [0, 10], sizes = [128, 1], strides = [1, 1]} : vector<128x32xf32> to vector<128x1xf32>
    %59 = vector.extract_strided_slice %6 {offsets = [0, 10], sizes = [128, 32], strides = [1, 1]} : vector<128x64xf32> to vector<128x32xf32>
    %60 = vector.broadcast %58 : vector<128x1xf32> to vector<128x32xf32>
    %61 = arith.mulf %60, %59 : vector<128x32xf32>
    %62 = arith.addf %57, %61 : vector<128x32xf32>
    %63 = vector.extract_strided_slice %3 {offsets = [0, 11], sizes = [128, 1], strides = [1, 1]} : vector<128x32xf32> to vector<128x1xf32>
    %64 = vector.extract_strided_slice %6 {offsets = [0, 11], sizes = [128, 32], strides = [1, 1]} : vector<128x64xf32> to vector<128x32xf32>
    %65 = vector.broadcast %63 : vector<128x1xf32> to vector<128x32xf32>
    %66 = arith.mulf %65, %64 : vector<128x32xf32>
    %67 = arith.addf %62, %66 : vector<128x32xf32>
    %68 = vector.extract_strided_slice %3 {offsets = [0, 12], sizes = [128, 1], strides = [1, 1]} : vector<128x32xf32> to vector<128x1xf32>
    %69 = vector.extract_strided_slice %6 {offsets = [0, 12], sizes = [128, 32], strides = [1, 1]} : vector<128x64xf32> to vector<128x32xf32>
    %70 = vector.broadcast %68 : vector<128x1xf32> to vector<128x32xf32>
    %71 = arith.mulf %70, %69 : vector<128x32xf32>
    %72 = arith.addf %67, %71 : vector<128x32xf32>
    %73 = vector.extract_strided_slice %3 {offsets = [0, 13], sizes = [128, 1], strides = [1, 1]} : vector<128x32xf32> to vector<128x1xf32>
    %74 = vector.extract_strided_slice %6 {offsets = [0, 13], sizes = [128, 32], strides = [1, 1]} : vector<128x64xf32> to vector<128x32xf32>
    %75 = vector.broadcast %73 : vector<128x1xf32> to vector<128x32xf32>
    %76 = arith.mulf %75, %74 : vector<128x32xf32>
    %77 = arith.addf %72, %76 : vector<128x32xf32>
    %78 = vector.extract_strided_slice %3 {offsets = [0, 14], sizes = [128, 1], strides = [1, 1]} : vector<128x32xf32> to vector<128x1xf32>
    %79 = vector.extract_strided_slice %6 {offsets = [0, 14], sizes = [128, 32], strides = [1, 1]} : vector<128x64xf32> to vector<128x32xf32>
    %80 = vector.broadcast %78 : vector<128x1xf32> to vector<128x32xf32>
    %81 = arith.mulf %80, %79 : vector<128x32xf32>
    %82 = arith.addf %77, %81 : vector<128x32xf32>
    %83 = vector.extract_strided_slice %3 {offsets = [0, 15], sizes = [128, 1], strides = [1, 1]} : vector<128x32xf32> to vector<128x1xf32>
    %84 = vector.extract_strided_slice %6 {offsets = [0, 15], sizes = [128, 32], strides = [1, 1]} : vector<128x64xf32> to vector<128x32xf32>
    %85 = vector.broadcast %83 : vector<128x1xf32> to vector<128x32xf32>
    %86 = arith.mulf %85, %84 : vector<128x32xf32>
    %87 = arith.addf %82, %86 : vector<128x32xf32>
    %88 = vector.extract_strided_slice %3 {offsets = [0, 16], sizes = [128, 1], strides = [1, 1]} : vector<128x32xf32> to vector<128x1xf32>
    %89 = vector.extract_strided_slice %6 {offsets = [0, 16], sizes = [128, 32], strides = [1, 1]} : vector<128x64xf32> to vector<128x32xf32>
    %90 = vector.broadcast %88 : vector<128x1xf32> to vector<128x32xf32>
    %91 = arith.mulf %90, %89 : vector<128x32xf32>
    %92 = arith.addf %87, %91 : vector<128x32xf32>
    %93 = vector.extract_strided_slice %3 {offsets = [0, 17], sizes = [128, 1], strides = [1, 1]} : vector<128x32xf32> to vector<128x1xf32>
    %94 = vector.extract_strided_slice %6 {offsets = [0, 17], sizes = [128, 32], strides = [1, 1]} : vector<128x64xf32> to vector<128x32xf32>
    %95 = vector.broadcast %93 : vector<128x1xf32> to vector<128x32xf32>
    %96 = arith.mulf %95, %94 : vector<128x32xf32>
    %97 = arith.addf %92, %96 : vector<128x32xf32>
    %98 = vector.extract_strided_slice %3 {offsets = [0, 18], sizes = [128, 1], strides = [1, 1]} : vector<128x32xf32> to vector<128x1xf32>
    %99 = vector.extract_strided_slice %6 {offsets = [0, 18], sizes = [128, 32], strides = [1, 1]} : vector<128x64xf32> to vector<128x32xf32>
    %100 = vector.broadcast %98 : vector<128x1xf32> to vector<128x32xf32>
    %101 = arith.mulf %100, %99 : vector<128x32xf32>
    %102 = arith.addf %97, %101 : vector<128x32xf32>
    %103 = vector.extract_strided_slice %3 {offsets = [0, 19], sizes = [128, 1], strides = [1, 1]} : vector<128x32xf32> to vector<128x1xf32>
    %104 = vector.extract_strided_slice %6 {offsets = [0, 19], sizes = [128, 32], strides = [1, 1]} : vector<128x64xf32> to vector<128x32xf32>
    %105 = vector.broadcast %103 : vector<128x1xf32> to vector<128x32xf32>
    %106 = arith.mulf %105, %104 : vector<128x32xf32>
    %107 = arith.addf %102, %106 : vector<128x32xf32>
    %108 = vector.extract_strided_slice %3 {offsets = [0, 20], sizes = [128, 1], strides = [1, 1]} : vector<128x32xf32> to vector<128x1xf32>
    %109 = vector.extract_strided_slice %6 {offsets = [0, 20], sizes = [128, 32], strides = [1, 1]} : vector<128x64xf32> to vector<128x32xf32>
    %110 = vector.broadcast %108 : vector<128x1xf32> to vector<128x32xf32>
    %111 = arith.mulf %110, %109 : vector<128x32xf32>
    %112 = arith.addf %107, %111 : vector<128x32xf32>
    %113 = vector.extract_strided_slice %3 {offsets = [0, 21], sizes = [128, 1], strides = [1, 1]} : vector<128x32xf32> to vector<128x1xf32>
    %114 = vector.extract_strided_slice %6 {offsets = [0, 21], sizes = [128, 32], strides = [1, 1]} : vector<128x64xf32> to vector<128x32xf32>
    %115 = vector.broadcast %113 : vector<128x1xf32> to vector<128x32xf32>
    %116 = arith.mulf %115, %114 : vector<128x32xf32>
    %117 = arith.addf %112, %116 : vector<128x32xf32>
    %118 = vector.extract_strided_slice %3 {offsets = [0, 22], sizes = [128, 1], strides = [1, 1]} : vector<128x32xf32> to vector<128x1xf32>
    %119 = vector.extract_strided_slice %6 {offsets = [0, 22], sizes = [128, 32], strides = [1, 1]} : vector<128x64xf32> to vector<128x32xf32>
    %120 = vector.broadcast %118 : vector<128x1xf32> to vector<128x32xf32>
    %121 = arith.mulf %120, %119 : vector<128x32xf32>
    %122 = arith.addf %117, %121 : vector<128x32xf32>
    %123 = vector.extract_strided_slice %3 {offsets = [0, 23], sizes = [128, 1], strides = [1, 1]} : vector<128x32xf32> to vector<128x1xf32>
    %124 = vector.extract_strided_slice %6 {offsets = [0, 23], sizes = [128, 32], strides = [1, 1]} : vector<128x64xf32> to vector<128x32xf32>
    %125 = vector.broadcast %123 : vector<128x1xf32> to vector<128x32xf32>
    %126 = arith.mulf %125, %124 : vector<128x32xf32>
    %127 = arith.addf %122, %126 : vector<128x32xf32>
    %128 = vector.extract_strided_slice %3 {offsets = [0, 24], sizes = [128, 1], strides = [1, 1]} : vector<128x32xf32> to vector<128x1xf32>
    %129 = vector.extract_strided_slice %6 {offsets = [0, 24], sizes = [128, 32], strides = [1, 1]} : vector<128x64xf32> to vector<128x32xf32>
    %130 = vector.broadcast %128 : vector<128x1xf32> to vector<128x32xf32>
    %131 = arith.mulf %130, %129 : vector<128x32xf32>
    %132 = arith.addf %127, %131 : vector<128x32xf32>
    %133 = vector.extract_strided_slice %3 {offsets = [0, 25], sizes = [128, 1], strides = [1, 1]} : vector<128x32xf32> to vector<128x1xf32>
    %134 = vector.extract_strided_slice %6 {offsets = [0, 25], sizes = [128, 32], strides = [1, 1]} : vector<128x64xf32> to vector<128x32xf32>
    %135 = vector.broadcast %133 : vector<128x1xf32> to vector<128x32xf32>
    %136 = arith.mulf %135, %134 : vector<128x32xf32>
    %137 = arith.addf %132, %136 : vector<128x32xf32>
    %138 = vector.extract_strided_slice %3 {offsets = [0, 26], sizes = [128, 1], strides = [1, 1]} : vector<128x32xf32> to vector<128x1xf32>
    %139 = vector.extract_strided_slice %6 {offsets = [0, 26], sizes = [128, 32], strides = [1, 1]} : vector<128x64xf32> to vector<128x32xf32>
    %140 = vector.broadcast %138 : vector<128x1xf32> to vector<128x32xf32>
    %141 = arith.mulf %140, %139 : vector<128x32xf32>
    %142 = arith.addf %137, %141 : vector<128x32xf32>
    %143 = vector.extract_strided_slice %3 {offsets = [0, 27], sizes = [128, 1], strides = [1, 1]} : vector<128x32xf32> to vector<128x1xf32>
    %144 = vector.extract_strided_slice %6 {offsets = [0, 27], sizes = [128, 32], strides = [1, 1]} : vector<128x64xf32> to vector<128x32xf32>
    %145 = vector.broadcast %143 : vector<128x1xf32> to vector<128x32xf32>
    %146 = arith.mulf %145, %144 : vector<128x32xf32>
    %147 = arith.addf %142, %146 : vector<128x32xf32>
    %148 = vector.extract_strided_slice %3 {offsets = [0, 28], sizes = [128, 1], strides = [1, 1]} : vector<128x32xf32> to vector<128x1xf32>
    %149 = vector.extract_strided_slice %6 {offsets = [0, 28], sizes = [128, 32], strides = [1, 1]} : vector<128x64xf32> to vector<128x32xf32>
    %150 = vector.broadcast %148 : vector<128x1xf32> to vector<128x32xf32>
    %151 = arith.mulf %150, %149 : vector<128x32xf32>
    %152 = arith.addf %147, %151 : vector<128x32xf32>
    %153 = vector.extract_strided_slice %3 {offsets = [0, 29], sizes = [128, 1], strides = [1, 1]} : vector<128x32xf32> to vector<128x1xf32>
    %154 = vector.extract_strided_slice %6 {offsets = [0, 29], sizes = [128, 32], strides = [1, 1]} : vector<128x64xf32> to vector<128x32xf32>
    %155 = vector.broadcast %153 : vector<128x1xf32> to vector<128x32xf32>
    %156 = arith.mulf %155, %154 : vector<128x32xf32>
    %157 = arith.addf %152, %156 : vector<128x32xf32>
    %158 = vector.extract_strided_slice %3 {offsets = [0, 30], sizes = [128, 1], strides = [1, 1]} : vector<128x32xf32> to vector<128x1xf32>
    %159 = vector.extract_strided_slice %6 {offsets = [0, 30], sizes = [128, 32], strides = [1, 1]} : vector<128x64xf32> to vector<128x32xf32>
    %160 = vector.broadcast %158 : vector<128x1xf32> to vector<128x32xf32>
    %161 = arith.mulf %160, %159 : vector<128x32xf32>
    %162 = arith.addf %157, %161 : vector<128x32xf32>
    %163 = vector.extract_strided_slice %3 {offsets = [0, 31], sizes = [128, 1], strides = [1, 1]} : vector<128x32xf32> to vector<128x1xf32>
    %164 = vector.extract_strided_slice %6 {offsets = [0, 31], sizes = [128, 32], strides = [1, 1]} : vector<128x64xf32> to vector<128x32xf32>
    %165 = vector.broadcast %163 : vector<128x1xf32> to vector<128x32xf32>
    %166 = arith.mulf %165, %164 : vector<128x32xf32>
    %167 = arith.addf %162, %166 : vector<128x32xf32>
    %168 = arith.truncf %167 : vector<128x32xf32> to vector<128x32xbf16>
    %c0_6 = arith.constant 0 : index
    %c0_7 = arith.constant 0 : index
    %169 = vector.load %arg6[%c0_6, %c0_7] : memref<32x128xbf16, #tpu.memory_space<vmem>>, vector<32x128xbf16>
    %cst_8 = arith.constant dense<0.000000e+00> : vector<128x128xf32>
    %170 = tpu.matmul %168, %169, %cst_8 {dimension_numbers = #tpu.dot_dimension_numbers<[1], [0], [0], [1], [0, 0, 1, 1], [], []>} : vector<128x32xbf16>, vector<32x128xbf16>, vector<128x128xf32> -> vector<128x128xf32>
    %c8_i32 = arith.constant 8 : i32
    %171 = arith.muli %arg0, %c8_i32 : i32
    %172 = tpu.iota {dimensions = array<i32: 0>} : vector<8x128xi32>
    %173 = vector.broadcast %171 : i32 to vector<8x128xi32>
    %174 = arith.addi %173, %172 : vector<8x128xi32>
    %c0_9 = arith.constant 0 : index
    %c0_10 = arith.constant 0 : index
    %175 = vector.load %arg2[%c0_9, %c0_10] : memref<1x128xi32, #tpu.memory_space<vmem>>, vector<1x128xi32>
    %176 = vector.broadcast %175 : vector<1x128xi32> to vector<8x128xi32>
    %177 = arith.cmpi eq, %174, %176 : vector<8x128xi32>
    %178 = arith.extui %177 : vector<8x128xi1> to vector<8x128xi32>
    %179 = arith.sitofp %178 : vector<8x128xi32> to vector<8x128xf32>
    %c0_11 = arith.constant 0 : index
    %c0_12 = arith.constant 0 : index
    %180 = vector.load %arg10[%c0_11, %c0_12] : memref<8x128xf32, #tpu.memory_space<vmem>>, vector<8x128xf32>
    %181 = arith.truncf %179 : vector<8x128xf32> to vector<8x128xbf16>
    %182 = arith.truncf %170 : vector<128x128xf32> to vector<128x128xbf16>
    %cst_13 = arith.constant dense<0.000000e+00> : vector<8x128xf32>
    %183 = tpu.matmul %181, %182, %cst_13 {dimension_numbers = #tpu.dot_dimension_numbers<[1], [0], [0], [1], [0, 0, 1, 1], [], []>} : vector<8x128xbf16>, vector<128x128xbf16>, vector<8x128xf32> -> vector<8x128xf32>
    %184 = arith.addf %180, %183 : vector<8x128xf32>
    %c0_14 = arith.constant 0 : index
    %c0_15 = arith.constant 0 : index
    %185 = vector.load %arg10[%c0_14, %c0_15] : memref<8x128xf32, #tpu.memory_space<vmem>>, vector<8x128xf32>
    tpu.vector_store %arg10[%c0_14, %c0_15], %184 {strides = array<i32>} : memref<8x128xf32, #tpu.memory_space<vmem>>, vector<8x128xf32>,
    %c0_16 = arith.constant 0 : index
    %c0_17 = arith.constant 0 : index
    %186 = vector.load %arg11[%c0_16, %c0_17] : memref<8x1xf32, #tpu.memory_space<vmem>>, vector<8x1xf32>
    %cst_18 = arith.constant dense<0.000000e+00> : vector<8xf32>
    %187 = vector.multi_reduction <add>, %179, %cst_18 [1] : vector<8x128xf32> to vector<8xf32>
    %188 = vector.shape_cast %187 : vector<8xf32> to vector<8x1xf32>
    %189 = arith.addf %186, %188 : vector<8x1xf32>
    %c0_19 = arith.constant 0 : index
    %c0_20 = arith.constant 0 : index
    %190 = vector.load %arg11[%c0_19, %c0_20] : memref<8x1xf32, #tpu.memory_space<vmem>>, vector<8x1xf32>
    tpu.vector_store %arg11[%c0_19, %c0_20], %189 {strides = array<i32>} : memref<8x1xf32, #tpu.memory_space<vmem>>, vector<8x1xf32>,
    %c0_i32_21 = arith.constant 0 : i32
    %191 = arith.cmpi eq, %arg1, %c0_i32_21 : i32
    %192 = arith.extui %191 : i1 to i32
    %c0_i32_22 = arith.constant 0 : i32
    %193 = arith.cmpi ne, %192, %c0_i32_22 : i32
    scf.if %193 {
      %c0_23 = arith.constant 0 : index
      %c0_24 = arith.constant 0 : index
      %194 = vector.load %arg11[%c0_23, %c0_24] : memref<8x1xf32, #tpu.memory_space<vmem>>, vector<8x1xf32>
      %cst_25 = arith.constant 0.000000e+00 : f32
      %195 = vector.broadcast %cst_25 : f32 to vector<8x1xf32>
      %196 = arith.cmpf ogt, %194, %195 : vector<8x1xf32>
      %cst_26 = arith.constant 1.000000e+00 : f32
      %197 = vector.broadcast %cst_26 : f32 to vector<8x1xf32>
      %198 = arith.maximumf %194, %197 : vector<8x1xf32>
      %199 = tpu.reciprocal %198 : vector<8x1xf32> -> vector<8x1xf32>
      %cst_27 = arith.constant 0.000000e+00 : f32
      %200 = vector.broadcast %cst_27 : f32 to vector<8x1xf32>
      %201 = arith.select %196, %199, %200 : vector<8x1xi1>, vector<8x1xf32>
      %c0_28 = arith.constant 0 : index
      %c0_29 = arith.constant 0 : index
      %202 = vector.load %arg5[%c0_28, %c0_29] : memref<8x128xf32, #tpu.memory_space<vmem>>, vector<8x128xf32>
      %203 = arith.truncf %202 : vector<8x128xf32> to vector<8x128xbf16>
      %c0_30 = arith.constant 0 : index
      %c0_31 = arith.constant 0 : index
      %204 = vector.load %arg7[%c0_30, %c0_31] : memref<128x128xbf16, #tpu.memory_space<vmem>>, vector<128x128xbf16>
      %cst_32 = arith.constant dense<0.000000e+00> : vector<8x128xf32>
      %205 = tpu.matmul %203, %204, %cst_32 {dimension_numbers = #tpu.dot_dimension_numbers<[1], [0], [0], [1], [0, 0, 1, 1], [], []>} : vector<8x128xbf16>, vector<128x128xbf16>, vector<8x128xf32> -> vector<8x128xf32>
      %c0_33 = arith.constant 0 : index
      %c0_34 = arith.constant 0 : index
      %206 = vector.load %arg10[%c0_33, %c0_34] : memref<8x128xf32, #tpu.memory_space<vmem>>, vector<8x128xf32>
      %207 = vector.broadcast %201 : vector<8x1xf32> to vector<8x128xf32>
      %208 = arith.mulf %206, %207 : vector<8x128xf32>
      %209 = arith.addf %208, %205 : vector<8x128xf32>
      %c0_35 = arith.constant 0 : index
      %c0_36 = arith.constant 0 : index
      %210 = vector.load %arg8[%c0_35, %c0_36] : memref<8x128xf32, #tpu.memory_space<vmem>>, vector<8x128xf32>
      tpu.vector_store %arg8[%c0_35, %c0_36], %209 {strides = array<i32>} : memref<8x128xf32, #tpu.memory_space<vmem>>, vector<8x128xf32>,
      %c8_i32_37 = arith.constant 8 : i32
      %211 = arith.muli %arg0, %c8_i32_37 : i32
      %212 = tpu.iota {dimensions = array<i32: 0>} : vector<8x1xi32>
      %213 = vector.broadcast %211 : i32 to vector<8x1xi32>
      %214 = arith.addi %213, %212 : vector<8x1xi32>
      %c8_i32_38 = arith.constant 8 : i32
      %215 = vector.broadcast %c8_i32_38 : i32 to vector<8x1xi32>
      %216 = arith.cmpi slt, %214, %215 : vector<8x1xi32>
      %217 = arith.extui %216 : vector<8x1xi1> to vector<8x1xi32>
      %218 = arith.sitofp %217 : vector<8x1xi32> to vector<8x1xf32>
      %219 = vector.broadcast %218 : vector<8x1xf32> to vector<8x128xf32>
      %220 = arith.mulf %209, %219 : vector<8x128xf32>
      %cst_39 = arith.constant dense<0.000000e+00> : vector<128xf32>
      %221 = vector.multi_reduction <add>, %220, %cst_39 [0] : vector<8x128xf32> to vector<128xf32>
      %222 = vector.shape_cast %221 : vector<128xf32> to vector<1x128xf32>
      %223 = arith.mulf %220, %220 : vector<8x128xf32>
      %cst_40 = arith.constant dense<0.000000e+00> : vector<128xf32>
      %224 = vector.multi_reduction <add>, %223, %cst_40 [0] : vector<8x128xf32> to vector<128xf32>
      %225 = vector.shape_cast %224 : vector<128xf32> to vector<1x128xf32>
      %cst_41 = arith.constant 0.000000e+00 : f32
      %226 = vector.broadcast %cst_41 : f32 to vector<6x128xf32>
      %227 = tpu.concatenate %222, %225, %226 in 0 : vector<1x128xf32>, vector<1x128xf32>, vector<6x128xf32> -> vector<8x128xf32>
      %c0_42 = arith.constant 0 : index
      %c0_43 = arith.constant 0 : index
      %228 = vector.load %arg9[%c0_42, %c0_43] : memref<8x128xf32, #tpu.memory_space<vmem>>, vector<8x128xf32>
      tpu.vector_store %arg9[%c0_42, %c0_43], %227 {strides = array<i32>} : memref<8x128xf32, #tpu.memory_space<vmem>>, vector<8x128xf32>,
    } else {
    }
    return
  }
  func.func @transform_0(%arg0: i32, %arg1: i32) -> (i32, i32) {
    %c0_i32 = arith.constant 0 : i32
    %c0_i32_0 = arith.constant 0 : i32
    return %c0_i32, %arg1 : i32, i32
  }
  func.func @transform_1(%arg0: i32, %arg1: i32) -> (i32, i32) {
    %c0_i32 = arith.constant 0 : i32
    %c0_i32_0 = arith.constant 0 : i32
    return %arg1, %c0_i32 : i32, i32
  }
  func.func @transform_2(%arg0: i32, %arg1: i32) -> (i32, i32) {
    %c0_i32 = arith.constant 0 : i32
    %c0_i32_0 = arith.constant 0 : i32
    return %arg1, %c0_i32 : i32, i32
  }
  func.func @transform_3(%arg0: i32, %arg1: i32) -> (i32, i32) {
    %c0_i32 = arith.constant 0 : i32
    %c0_i32_0 = arith.constant 0 : i32
    return %arg0, %c0_i32 : i32, i32
  }
  func.func @transform_4(%arg0: i32, %arg1: i32) -> (i32, i32) {
    %c0_i32 = arith.constant 0 : i32
    %c0_i32_0 = arith.constant 0 : i32
    %c0_i32_1 = arith.constant 0 : i32
    return %c0_i32, %c0_i32_0 : i32, i32
  }
  func.func @transform_5(%arg0: i32, %arg1: i32) -> (i32, i32) {
    %c0_i32 = arith.constant 0 : i32
    %c0_i32_0 = arith.constant 0 : i32
    %c0_i32_1 = arith.constant 0 : i32
    return %c0_i32, %c0_i32_0 : i32, i32
  }
  func.func @transform_6(%arg0: i32, %arg1: i32) -> (i32, i32) {
    %c0_i32 = arith.constant 0 : i32
    %c0_i32_0 = arith.constant 0 : i32
    return %arg0, %c0_i32 : i32, i32
  }
  func.func @transform_7(%arg0: i32, %arg1: i32) -> (i32, i32) {
    %c0_i32 = arith.constant 0 : i32
    %c0_i32_0 = arith.constant 0 : i32
    return %arg0, %c0_i32 : i32, i32
  }
}

</mosaic_0001>

<bundles_post_ra>
// kernel: tpu_custom_call.1
= control target key start
LH: loop header
LB: loop body
LE: loop exit
PB: predicated region body
PF: predicated region fallthrough
CT: control target
= control target key end

     0   :  { %13 = vsyncpa [#allocation5], 0  ;;  %s5905_s30 = smov 32   ;;  %v9706_v3 = vmov 0   ;;  %s9698_s0 = inlined_call_operand.vmem [shape: s32[1,128], index: 0, kind: input, shape index: {}]   ;;  %s9699_s1 = inlined_call_operand.vmem [shape: f32[128,32], index: 1, kind: input, shape index: {}]   ;;  %s9700_s2 = inlined_call_operand.vmem [shape: f32[128,32], index: 2, kind: input, shape index: {}]   ;;  %s9701_s3 = inlined_call_operand.vmem [shape: f32[8,128], index: 3, kind: input, shape index: {}]   ;;  %s9702_s4 = inlined_call_operand.vmem [shape: bf16[32,128], index: 4, kind: input, shape index: {}]   ;;  %s9703_s5 = inlined_call_operand.vmem [shape: bf16[128,128], index: 5, kind: input, shape index: {}]   ;;  %s9704_s6 = inlined_call_operand.hbm [shape: f32[8,128], index: 6, kind: output, shape index: {0}]   ;;  %s9705_s7 = inlined_call_operand.hbm [shape: f32[8,128], index: 7, kind: output, shape index: {1}]  }
   0x1   :  { %v6016_v0 = vld [vmem:[%s9700_s2 + $0x20] sm:$0xff]  ;;  %v6021_v1 = vld [vmem:[%s9700_s2 + $0x10] sm:$0xff]  ;;  %5653 = vset.pattern.permute.xlu2 %v9706_v3  ;;  %5652 = vset.pattern.permute.xlu1 %v9706_v3  ;;  %v6040_v4 = vld [vmem:[%s9700_s2 + $0x28] sm:$0xff] }
   0x2   :  { %v6026_v2 = vld [vmem:[%s9700_s2] sm:$0xff]  ;;  %91 = vrot.lane.b32.xlu2 %v6016_v0, %s5905_s30  ;;  %87 = vrot.lane.b32.xlu1 %v6021_v1, %s5905_s30  ;;  %v6045_v5 = vld [vmem:[%s9700_s2 + $0x18] sm:$0xff] }
   0x3   :  { %83 = vrot.lane.b32.xlu0 %v6026_v2, %s5905_s30 }
   0x4   :  { %5654 = vset.pattern.permute.xlu0 %v9706_v3 }
   0x5   :  { %14 = vsyncpa [#allocation7], 0  ;;  %v6050_v6 = vld [vmem:[%s9700_s2 + $0x8] sm:$0xff]  ;;  %v6061_v7 = vld [vmem:[%s9700_s2 + $0x40] sm:$0xff]  ;;  %v5907_v33 = vmov 1   ;;  %vm131_vm0 = vcmask 261120  }
   0x6   :  { %v6066_v8 = vld [vmem:[%s9700_s2 + $0x38] sm:$0xff]  ;;  %v6071_v9 = vld [vmem:[%s9700_s2 + $0x30] sm:$0xff]  ;;  %v6092_v12 = vld [vmem:[%s9700_s2 + $0x48] sm:$0xff]  ;;  %s5908_s20 = smov 127   ;;  %s5914_s21 = smov 124   ;;  %vm33_vm1 = vcmask 7168  }
   0x7   :  { %v6082_v10 = vld [vmem:[%s9700_s2 + $0x58] sm:$0xff]  ;;  %v6087_v11 = vld [vmem:[%s9700_s2 + $0x50] sm:$0xff]  ;;  %v6108_v14 = vld [vmem:[%s9700_s2 + $0x68] sm:$0xff]  ;;  %s5916_s22 = smov 123   ;;  %s5918_s23 = smov 122   ;;  %vm5484_vm9 = vcmask 1040384  }
   0x8   :  { %v6103_v13 = vld [vmem:[%s9700_s2 + $0x70] sm:$0xff]  ;;  %v6113_v15 = vld [vmem:[%s9700_s2 + $0x60] sm:$0xff]  ;;  %v6124_v16 = vld [vmem:[%s9699_s1 + $0x8] sm:$0xff]  ;;  %s5920_s10 = smov 121   ;;  %s5922_s11 = smov 120   ;;  %vm5486_vm10 = vcmask 1041408  }
   0x9   :  { %v6129_v17 = vld [vmem:[%s9699_s1] sm:$0xff]  ;;  %v6134_v18 = vld [vmem:[%s9700_s2 + $0x78] sm:$0xff]  ;;  %v6153_v21 = vld [vmem:[%s9699_s1 + $0x10] sm:$0xff]  ;;  %s5910_s2 = smov 126   ;;  %s5924_s12 = smov 119  }
   0xa   :  { %93 = vrot.lane.b32.xlu2 %v6040_v4, %s5905_s30  ;;  %89 = vrot.lane.b32.xlu1 %v6045_v5, %s5905_s30  ;;  %v6143_v19 = vld [vmem:[%s9699_s1 + $0x20] sm:$0xff]  ;;  %v6148_v20 = vld [vmem:[%s9699_s1 + $0x18] sm:$0xff]  ;;  %s5926_s13 = smov 118   ;;  %s5928_s14 = smov 117  }
   0xb   :  { %85 = vrot.lane.b32.xlu0 %v6050_v6, %s5905_s30  ;;  %v6161_v22 = vld [vmem:[%s9699_s1 + $0x30] sm:$0xff]  ;;  %v6166_v23 = vld [vmem:[%s9699_s1 + $0x28] sm:$0xff]  ;;  %v6171_v24 = vld [vmem:[%s9699_s1 + $0x38] sm:$0xff]  ;;  %s5930_s15 = smov 116   ;;  %s5932_s16 = smov 115  }
   0xc   :  { %v6179_v25 = vld [vmem:[%s9699_s1 + $0x48] sm:$0xff]  ;;  %v6184_v26 = vld [vmem:[%s9699_s1 + $0x40] sm:$0xff]  ;;  %v6189_v27 = vld [vmem:[%s9699_s1 + $0x50] sm:$0xff]  ;;  %s5936_s24 = smov 113   ;;  %s5938_s25 = smov 112  }
   0xd   :  { %v6197_v28 = vld [vmem:[%s9699_s1 + $0x60] sm:$0xff]  ;;  %v6202_v29 = vld [vmem:[%s9699_s1 + $0x58] sm:$0xff]  ;;  %v6207_v30 = vld [vmem:[%s9699_s1 + $0x68] sm:$0xff]  ;;  %s5940_s26 = smov 111   ;;  %s5942_s27 = smov 110  }
   0xe   :  { %v6215_v31 = vld [vmem:[%s9699_s1 + $0x78] sm:$0xff]  ;;  %v6220_v32 = vld [vmem:[%s9699_s1 + $0x70] sm:$0xff]  ;;  %s5944_s28 = smov 109   ;;  %s5946_s29 = smov 108  }
   0xf   :  { %s5950_s17 = smov 106   ;;  %s5952_s18 = smov 105  }
  0x10   :  { %s5954_s19 = smov 104   ;;  %s5966_s8 = smov 99  }
  0x11   :  { %s5967_s9 = smov 98  }
  0x12   :  { %99 = vrot.lane.b32.xlu2 %v6061_v7, %s5905_s30  ;;  %97 = vrot.lane.b32.xlu1 %v6066_v8, %s5905_s30 }
  0x13   :  { %95 = vrot.lane.b32.xlu0 %v6071_v9, %s5905_s30 }
  0x1a   :  { %105 = vrot.lane.b32.xlu2 %v6082_v10, %s5905_s30  ;;  %103 = vrot.lane.b32.xlu1 %v6087_v11, %s5905_s30 }
  0x1b   :  { %101 = vrot.lane.b32.xlu0 %v6092_v12, %s5905_s30 }
  0x22   :  { %111 = vrot.lane.b32.xlu2 %v6103_v13, %s5905_s30  ;;  %109 = vrot.lane.b32.xlu1 %v6108_v14, %s5905_s30 }
  0x23   :  { %107 = vrot.lane.b32.xlu0 %v6113_v15, %s5905_s30 }
  0x2a   :  { %155 = vperm.xlu2 %5653, %v6124_v16   ;;  %150 = vperm.xlu1 %5652, %v6129_v17  }
  0x2b   :  { %113 = vrot.lane.b32.xlu0 %v6134_v18, %s5905_s30  ;;  %s5912_s30 = smov 125  }
  0x32   :  { %170 = vperm.xlu2 %5653, %v6143_v19   ;;  %165 = vperm.xlu1 %5652, %v6148_v20  }
  0x33   :  { %160 = vperm.xlu0 %5654, %v6153_v21  }
  0x3a   :  { %180 = vperm.xlu2 %5653, %v6161_v22   ;;  %175 = vperm.xlu1 %5652, %v6166_v23  }
  0x3b   :  { %185 = vperm.xlu0 %5654, %v6171_v24  }
  0x42   :  { %195 = vperm.xlu2 %5653, %v6179_v25   ;;  %190 = vperm.xlu1 %5652, %v6184_v26  }
  0x43   :  { %200 = vperm.xlu0 %5654, %v6189_v27  }
  0x4a   :  { %210 = vperm.xlu2 %5653, %v6197_v28   ;;  %205 = vperm.xlu1 %5652, %v6202_v29  }
  0x4b   :  { %215 = vperm.xlu0 %5654, %v6207_v30  }
  0x52   :  { %225 = vperm.xlu2 %5653, %v6215_v31   ;;  %220 = vperm.xlu1 %5652, %v6220_v32  }
  0x53   :  { %5655 = vset.pattern.permute.xlu0 %v5907_v33 }
  0x54   :  { %261 = vperm.xlu0 %5655, %v6129_v17  }
  0x5a   :  { %5657 = vset.pattern.permute.xlu2 %v5907_v33  ;;  %5656 = vset.pattern.permute.xlu1 %v5907_v33 }
  0x5b   :  { %269 = vperm.xlu2 %5657, %v6153_v21   ;;  %265 = vperm.xlu1 %5656, %v6124_v16  }
  0x5c   :  { %281 = vperm.xlu0 %5655, %v6166_v23   ;;  %v6228_v34 = vpop.permute.xlu2 %91 }
  0x63   :  { %277 = vperm.xlu2 %5657, %v6143_v19   ;;  %273 = vperm.xlu1 %5656, %v6148_v20  }
  0x64   :  { %293 = vperm.xlu0 %5655, %v6184_v26   ;;  %v94_v35 = vpop.permute.xlu2 %93 }
  0x6b   :  { %289 = vperm.xlu2 %5657, %v6171_v24   ;;  %285 = vperm.xlu1 %5656, %v6161_v22  }
  0x6c   :  { %305 = vperm.xlu0 %5655, %v6202_v29   ;;  %v6236_v36 = vpop.permute.xlu2 %99 }
  0x73   :  { %301 = vperm.xlu2 %5657, %v6189_v27   ;;  %297 = vperm.xlu1 %5656, %v6179_v25  }
  0x74   :  { %317 = vperm.xlu0 %5655, %v6220_v32   ;;  %v6241_v37 = vpop.permute.xlu2 %105  ;;  %v88_v38 = vpop.permute.xlu1 %87 }
  0x75   :  { %v84_v39 = vpop.permute.xlu0 %83  ;;  %v6284_v62 = vsel %vm131_vm0, %v6021_v1, %v88_v38 }
  0x76   :  { %9754 = vst [vmem:[#allocation22_spill] sm:$0xff] %v6284_v62 }
  0x7b   :  { %313 = vperm.xlu2 %5657, %v6207_v30   ;;  %309 = vperm.xlu1 %5656, %v6197_v28  }
  0x7c   :  { %v6245_v40 = vpop.permute.xlu2 %111  ;;  %v90_v41 = vpop.permute.xlu1 %89 }
  0x7d   :  { %v86_v42 = vpop.permute.xlu0 %85 }
  0x83   :  { %321 = vperm.xlu1 %5656, %v6215_v31  }
  0x84   :  { %v98_v43 = vpop.permute.xlu1 %97  ;;  %v6248_v44 = vpop.permute.xlu2 %155 }
  0x85   :  { %9742 = vst [vmem:[#allocation10_spill] sm:$0xff] %v6248_v44  ;;  %v96_v45 = vpop.permute.xlu0 %95  ;;  %v5949_v44 = vmov 22  }
  0x8c   :  { %v6250_v46 = vpop.permute.xlu1 %103  ;;  %v6252_v47 = vpop.permute.xlu2 %170 }
  0x8d   :  { %9743 = vst [vmem:[#allocation11_spill] sm:$0xff] %v6252_v47  ;;  %v6254_v48 = vpop.permute.xlu0 %101 }
  0x94   :  { %v6256_v49 = vpop.permute.xlu1 %109  ;;  %v6258_v50 = vpop.permute.xlu2 %180 }
  0x95   :  { %9744 = vst [vmem:[#allocation12_spill] sm:$0xff] %v6258_v50  ;;  %v6260_v51 = vpop.permute.xlu0 %107 }
  0x9c   :  { %v6262_v52 = vpop.permute.xlu2 %195  ;;  %v6264_v53 = vpop.permute.xlu1 %150 }
  0x9d   :  { %9745 = vst [vmem:[#allocation13_spill] sm:$0xff] %v6262_v52  ;;  %v6266_v54 = vpop.permute.xlu0 %113 }
  0x9e   :  { %9746 = vst [vmem:[#allocation14_spill] sm:$0xff] %v6264_v53 }
  0xa4   :  { %v6268_v55 = vpop.permute.xlu2 %210  ;;  %v6270_v56 = vpop.permute.xlu1 %165 }
  0xa5   :  { %9747 = vst [vmem:[#allocation15_spill] sm:$0xff] %v6268_v55  ;;  %v6272_v57 = vpop.permute.xlu0 %160 }
  0xa6   :  { %9748 = vst [vmem:[#allocation16_spill] sm:$0xff] %v6270_v56 }
  0xa7   :  { %9749 = vst [vmem:[#allocation17_spill] sm:$0xff] %v6272_v57  ;;  %v6298_v57 = vsel %vm131_vm0, %v6026_v2, %v84_v39  ;;  %v5909_v39 = vmov 2  }
  0xa8   :  { %5659 = vset.pattern.permute.xlu1 %v5909_v39  ;;  %5658 = vset.pattern.permute.xlu0 %v5909_v39 }
  0xa9   :  { %5660 = vset.pattern.permute.xlu2 %v5909_v39 }
  0xac   :  { %v6274_v58 = vpop.permute.xlu2 %225  ;;  %v6276_v59 = vpop.permute.xlu1 %175 }
  0xad   :  { %9750 = vst [vmem:[#allocation18_spill] sm:$0xff] %v6274_v58  ;;  %v6278_v60 = vpop.permute.xlu0 %185 }
  0xae   :  { %9751 = vst [vmem:[#allocation19_spill] sm:$0xff] %v6276_v59 }
  0xaf   :  { %9752 = vst [vmem:[#allocation20_spill] sm:$0xff] %v6278_v60 }
  0xb4   :  { %v6280_v61 = vpop.permute.xlu1 %190 }
  0xb5   :  { %9753 = vst [vmem:[#allocation21_spill] sm:$0xff] %v6280_v61  ;;  %v6286_v63 = vpop.permute.xlu0 %200  ;;  %v270_v33 = vpop.permute.xlu2 %269 }
  0xb6   :  { %9755 = vst [vmem:[#allocation23_spill] sm:$0xff] %v6286_v63  ;;  %v326_v3 = vmul.f32 %v270_v33, %v6284_v62  ;;  %v6304_v33 = vsel %vm131_vm0, %v6050_v6, %v86_v42  ;;  %v6317_v6 = vsel %vm131_vm0, %v6016_v0, %v6228_v34  ;;  %v6326_v42 = vsel %vm131_vm0, %v6061_v7, %v6236_v36 }
  0xb7   :  { %9759 = vst [vmem:[#allocation27_spill] sm:$0xff] %v6317_v6  ;;  %v6336_v0 = vsel %vm131_vm0, %v6066_v8, %v98_v43  ;;  %v6345_v34 = vsel %vm131_vm0, %v6082_v10, %v6241_v37  ;;  %v6361_v10 = vsel %vm131_vm0, %v6092_v12, %v6254_v48  ;;  %v6366_v43 = vsel %vm131_vm0, %v6103_v13, %v6245_v40 }
  0xb8   :  { %360 = vrot.lane.b32.xlu1 %v326_v3, %s5908_s20  ;;  %9761 = vst [vmem:[#allocation29_spill] sm:$0xff] %v6336_v0  ;;  %v6377_v12 = vsel %vm131_vm0, %v6108_v14, %v6256_v49  ;;  %v6382_v13 = vsel %vm131_vm0, %v6113_v15, %v6260_v51  ;;  %v6392_v14 = vsel %vm131_vm0, %v6134_v18, %v6266_v54 }
  0xb9   :  { %9763 = vst [vmem:[#allocation31_spill] sm:$0xff] %v6366_v43 }
  0xba   :  { %9764 = vst [vmem:[#allocation32_spill] sm:$0xff] %v6377_v12 }
  0xbb   :  { %9765 = vst [vmem:[#allocation33_spill] sm:$0xff] %v6382_v13 }
  0xbc   :  { %v6290_v50 = vpop.permute.xlu1 %205  ;;  %9766 = vst [vmem:[#allocation34_spill] sm:$0xff] %v6392_v14 }
  0xbd   :  { %9756 = vst [vmem:[#allocation24_spill] sm:$0xff] %v6290_v50  ;;  %v6292_v59 = vpop.permute.xlu0 %215  ;;  %v278_v3 = vpop.permute.xlu2 %277  ;;  %v6308_v50 = vsel %vm131_vm0, %v6040_v4, %v94_v35  ;;  %v6321_v4 = vsel %vm131_vm0, %v6045_v5, %v90_v41  ;;  %v6340_v5 = vsel %vm131_vm0, %v6071_v9, %v96_v45  ;;  %v6356_v9 = vsel %vm131_vm0, %v6087_v11, %v6250_v46 }
  0xbe   :  { %9758 = vst [vmem:[#allocation26_spill] sm:$0xff] %v6308_v50 }
  0xbf   :  { %9760 = vst [vmem:[#allocation28_spill] sm:$0xff] %v6321_v4 }
  0xc0   :  { %9762 = vst [vmem:[#allocation30_spill] sm:$0xff] %v6340_v5 }
  0xc4   :  { %v6294_v56 = vpop.permute.xlu1 %220 }
  0xc5   :  { %9757 = vst [vmem:[#allocation25_spill] sm:$0xff] %v6294_v56 }
  0xc6   :  { %v262_v1 = vpop.permute.xlu0 %261 }
  0xc7   :  { %v324_v38 = vmul.f32 %v262_v1, %v6298_v57  ;;  %v290_v1 = vpop.permute.xlu2 %289 }
  0xc8   :  { %v331_v36 = vmul.f32 %v290_v1, %v6336_v0 }
  0xc9   :  { %356 = vrot.lane.b32.xlu2 %v324_v38, %s5908_s20 }
  0xcd   :  { %v266_v53 = vpop.permute.xlu1 %265 }
  0xce   :  { %v282_v56 = vpop.permute.xlu0 %281  ;;  %v325_v61 = vmul.f32 %v266_v53, %v6304_v33  ;;  %v328_v53 = vmul.f32 %v278_v3, %v6317_v6 }
  0xcf   :  { %v329_v2 = vmul.f32 %v282_v56, %v6308_v50  ;;  %v302_v8 = vpop.permute.xlu2 %301 }
  0xd0   :  { %358 = vrot.lane.b32.xlu0 %v325_v61, %s5908_s20  ;;  %v334_v45 = vmul.f32 %v302_v8, %v6356_v9 }
  0xd1   :  { %366 = vrot.lane.b32.xlu1 %v329_v2, %s5908_s20 }
  0xd5   :  { %v274_v35 = vpop.permute.xlu1 %273 }
  0xd6   :  { %v294_v56 = vpop.permute.xlu0 %293  ;;  %v327_v61 = vmul.f32 %v274_v35, %v6321_v4 }
  0xd7   :  { %v332_v38 = vmul.f32 %v294_v56, %v6326_v42  ;;  %v314_v11 = vpop.permute.xlu2 %313 }
  0xd8   :  { %364 = vrot.lane.b32.xlu0 %v328_v53, %s5908_s20  ;;  %362 = vrot.lane.b32.xlu2 %v327_v61, %s5908_s20  ;;  %v337_v46 = vmul.f32 %v314_v11, %v6377_v12 }
  0xd9   :  { %372 = vrot.lane.b32.xlu1 %v332_v38, %s5908_s20 }
  0xdd   :  { %v286_v7 = vpop.permute.xlu1 %285 }
  0xde   :  { %v306_v41 = vpop.permute.xlu0 %305  ;;  %v330_v3 = vmul.f32 %v286_v7, %v6340_v5 }
  0xdf   :  { %v335_v2 = vmul.f32 %v306_v41, %v6345_v34 }
  0xe0   :  { %370 = vrot.lane.b32.xlu0 %v331_v36, %s5908_s20  ;;  %368 = vrot.lane.b32.xlu2 %v330_v3, %s5908_s20 }
  0xe1   :  { %378 = vrot.lane.b32.xlu1 %v335_v2, %s5908_s20 }
  0xe5   :  { %v298_v37 = vpop.permute.xlu1 %297 }
  0xe6   :  { %v318_v39 = vpop.permute.xlu0 %317  ;;  %v333_v35 = vmul.f32 %v298_v37, %v6361_v10 }
  0xe7   :  { %v338_v53 = vmul.f32 %v318_v39, %v6366_v43 }
  0xe8   :  { %376 = vrot.lane.b32.xlu0 %v334_v45, %s5908_s20  ;;  %374 = vrot.lane.b32.xlu2 %v333_v35, %s5908_s20 }
  0xe9   :  { %384 = vrot.lane.b32.xlu1 %v338_v53, %s5908_s20 }
  0xed   :  { %v310_v40 = vpop.permute.xlu1 %309 }
  0xee   :  { %v336_v48 = vmul.f32 %v310_v40, %v6382_v13 }
  0xf0   :  { %382 = vrot.lane.b32.xlu0 %v337_v46, %s5908_s20  ;;  %380 = vrot.lane.b32.xlu2 %v336_v48, %s5908_s20 }
  0xf1   :  { %425 = vperm.xlu1 %5659, %v6124_v16  }
  0xf5   :  { %v322_v49 = vpop.permute.xlu1 %321 }
  0xf6   :  { %v339_v15 = vmul.f32 %v322_v49, %v6392_v14 }
  0xf8   :  { %421 = vperm.xlu0 %5658, %v6129_v17   ;;  %386 = vrot.lane.b32.xlu2 %v339_v15, %s5908_s20  ;;  %s5956_s20 = smov 103  }
  0xf9   :  { %433 = vperm.xlu1 %5659, %v6148_v20  }
 0x100   :  { %441 = vperm.xlu0 %5658, %v6166_v23   ;;  %429 = vperm.xlu2 %5660, %v6153_v21  }
 0x101   :  { %445 = vperm.xlu1 %5659, %v6161_v22  }
 0x108   :  { %453 = vperm.xlu0 %5658, %v6184_v26   ;;  %437 = vperm.xlu2 %5660, %v6143_v19  }
 0x109   :  { %457 = vperm.xlu1 %5659, %v6179_v25  }
 0x110   :  { %465 = vperm.xlu0 %5658, %v6202_v29   ;;  %449 = vperm.xlu2 %5660, %v6171_v24  }
 0x111   :  { %469 = vperm.xlu1 %5659, %v6197_v28  }
 0x118   :  { %477 = vperm.xlu0 %5658, %v6220_v32   ;;  %461 = vperm.xlu2 %5660, %v6189_v27  }
 0x119   :  { %481 = vperm.xlu1 %5659, %v6215_v31  }
 0x120   :  { %473 = vperm.xlu2 %5660, %v6207_v30  }
 0x123   :  { %v6411_v18 = vpop.permute.xlu2 %356 }
 0x124   :  { %9767 = vst [vmem:[#allocation35_spill] sm:$0xff] %v6411_v18 }
 0x12a   :  { %v6417_v56 = vpop.permute.xlu1 %360 }
 0x12b   :  { %9770 = vst [vmem:[#allocation38_spill] sm:$0xff] %v6417_v56 }
 0x132   :  { %v6413_v51 = vpop.permute.xlu2 %362 }
 0x133   :  { %9768 = vst [vmem:[#allocation36_spill] sm:$0xff] %v6413_v51 }
 0x13a   :  { %v6415_v54 = vpop.permute.xlu2 %368 }
 0x13b   :  { %9769 = vst [vmem:[#allocation37_spill] sm:$0xff] %v6415_v54 }
 0x142   :  { %v6419_v61 = vpop.permute.xlu0 %358  ;;  %v6421_v1 = vpop.permute.xlu2 %374 }
 0x143   :  { %9771 = vst [vmem:[#allocation39_spill] sm:$0xff] %v6419_v61  ;;  %v6423_v38 = vpop.permute.xlu1 %366 }
 0x144   :  { %9772 = vst [vmem:[#allocation40_spill] sm:$0xff] %v6421_v1 }
 0x145   :  { %9773 = vst [vmem:[#allocation41_spill] sm:$0xff] %v6423_v38  ;;  %v5911_v38 = vmov 3  }
 0x146   :  { %5661 = vset.pattern.permute.xlu0 %v5911_v38  ;;  %5662 = vset.pattern.permute.xlu1 %v5911_v38 }
 0x147   :  { %5663 = vset.pattern.permute.xlu2 %v5911_v38 }
 0x14a   :  { %v6425_v7 = vpop.permute.xlu0 %364  ;;  %v6427_v36 = vpop.permute.xlu2 %380 }
 0x14b   :  { %9774 = vst [vmem:[#allocation42_spill] sm:$0xff] %v6425_v7  ;;  %v6429_v41 = vpop.permute.xlu1 %372 }
 0x14c   :  { %9775 = vst [vmem:[#allocation43_spill] sm:$0xff] %v6427_v36 }
 0x14d   :  { %9776 = vst [vmem:[#allocation44_spill] sm:$0xff] %v6429_v41  ;;  %v5921_v41 = vmov 8  }
 0x152   :  { %v6431_v3 = vpop.permute.xlu0 %370  ;;  %v6433_v2 = vpop.permute.xlu2 %386 }
 0x153   :  { %9777 = vst [vmem:[#allocation45_spill] sm:$0xff] %v6431_v3  ;;  %v6435_v8 = vpop.permute.xlu1 %378 }
 0x154   :  { %9778 = vst [vmem:[#allocation46_spill] sm:$0xff] %v6433_v2  ;;  %v5917_v2 = vmov 6  }
 0x155   :  { %9779 = vst [vmem:[#allocation47_spill] sm:$0xff] %v6435_v8 }
 0x15a   :  { %v6437_v37 = vpop.permute.xlu0 %376  ;;  %v430_v45 = vpop.permute.xlu2 %429 }
 0x15b   :  { %9780 = vst [vmem:[#allocation48_spill] sm:$0xff] %v6437_v37  ;;  %v486_v39 = vmul.f32 %v430_v45, %v6284_v62  ;;  %v6440_v35 = vpop.permute.xlu1 %384 }
 0x15c   :  { %9781 = vst [vmem:[#allocation49_spill] sm:$0xff] %v6440_v35 }
 0x15d   :  { %520 = vrot.lane.b32.xlu1 %v486_v39, %s5910_s2 }
 0x162   :  { %v6443_v53 = vpop.permute.xlu0 %382  ;;  %v438_v11 = vpop.permute.xlu2 %437 }
 0x163   :  { %v426_v40 = vpop.permute.xlu1 %425  ;;  %v488_v54 = vmul.f32 %v438_v11, %v6317_v6 }
 0x164   :  { %v485_v46 = vmul.f32 %v426_v40, %v6304_v33 }
 0x166   :  { %518 = vrot.lane.b32.xlu0 %v485_v46, %s5910_s2 }
 0x16a   :  { %v422_v48 = vpop.permute.xlu0 %421  ;;  %v450_v45 = vpop.permute.xlu2 %449 }
 0x16b   :  { %v484_v49 = vmul.f32 %v422_v48, %v6298_v57  ;;  %v434_v15 = vpop.permute.xlu1 %433  ;;  %v491_v48 = vmul.f32 %v450_v45, %v6336_v0 }
 0x16c   :  { %v487_v40 = vmul.f32 %v434_v15, %v6321_v4 }
 0x16d   :  { %516 = vrot.lane.b32.xlu2 %v484_v49, %s5910_s2 }
 0x16e   :  { %524 = vrot.lane.b32.xlu0 %v488_v54, %s5910_s2 }
 0x172   :  { %v442_v39 = vpop.permute.xlu0 %441  ;;  %v462_v11 = vpop.permute.xlu2 %461 }
 0x173   :  { %v489_v46 = vmul.f32 %v442_v39, %v6308_v50  ;;  %v446_v51 = vpop.permute.xlu1 %445  ;;  %v494_v56 = vmul.f32 %v462_v11, %v6356_v9 }
 0x174   :  { %v490_v54 = vmul.f32 %v446_v51, %v6340_v5 }
 0x175   :  { %526 = vrot.lane.b32.xlu1 %v489_v46, %s5910_s2  ;;  %522 = vrot.lane.b32.xlu2 %v487_v40, %s5910_s2 }
 0x176   :  { %530 = vrot.lane.b32.xlu0 %v491_v48, %s5910_s2 }
 0x17a   :  { %v454_v49 = vpop.permute.xlu0 %453  ;;  %v474_v45 = vpop.permute.xlu2 %473 }
 0x17b   :  { %v492_v38 = vmul.f32 %v454_v49, %v6326_v42  ;;  %v458_v15 = vpop.permute.xlu1 %457  ;;  %v497_v48 = vmul.f32 %v474_v45, %v6377_v12 }
 0x17c   :  { %v493_v40 = vmul.f32 %v458_v15, %v6361_v10 }
 0x17d   :  { %532 = vrot.lane.b32.xlu1 %v492_v38, %s5910_s2  ;;  %528 = vrot.lane.b32.xlu2 %v490_v54, %s5910_s2 }
 0x17e   :  { %536 = vrot.lane.b32.xlu0 %v494_v56, %s5910_s2 }
 0x182   :  { %v466_v39 = vpop.permute.xlu0 %465 }
 0x183   :  { %v495_v46 = vmul.f32 %v466_v39, %v6345_v34  ;;  %v470_v51 = vpop.permute.xlu1 %469 }
 0x184   :  { %v496_v49 = vmul.f32 %v470_v51, %v6382_v13 }
 0x185   :  { %538 = vrot.lane.b32.xlu1 %v495_v46, %s5910_s2  ;;  %534 = vrot.lane.b32.xlu2 %v493_v40, %s5910_s2 }
 0x186   :  { %542 = vrot.lane.b32.xlu0 %v497_v48, %s5910_s2 }
 0x18a   :  { %v478_v11 = vpop.permute.xlu0 %477 }
 0x18b   :  { %v498_v56 = vmul.f32 %v478_v11, %v6366_v43  ;;  %v482_v54 = vpop.permute.xlu1 %481 }
 0x18c   :  { %v499_v38 = vmul.f32 %v482_v54, %v6392_v14 }
 0x18d   :  { %544 = vrot.lane.b32.xlu1 %v498_v56, %s5910_s2  ;;  %540 = vrot.lane.b32.xlu2 %v496_v49, %s5910_s2 }
 0x18e   :  { %581 = vperm.xlu0 %5661, %v6129_v17  }
 0x195   :  { %585 = vperm.xlu1 %5662, %v6124_v16   ;;  %546 = vrot.lane.b32.xlu2 %v499_v38, %s5910_s2  ;;  %s5958_s2 = smov 102  }
 0x196   :  { %601 = vperm.xlu0 %5661, %v6166_v23  }
 0x19d   :  { %593 = vperm.xlu1 %5662, %v6148_v20   ;;  %589 = vperm.xlu2 %5663, %v6153_v21  }
 0x19e   :  { %613 = vperm.xlu0 %5661, %v6184_v26  }
 0x1a5   :  { %605 = vperm.xlu1 %5662, %v6161_v22   ;;  %597 = vperm.xlu2 %5663, %v6143_v19  }
 0x1a6   :  { %625 = vperm.xlu0 %5661, %v6202_v29  }
 0x1ad   :  { %617 = vperm.xlu1 %5662, %v6179_v25   ;;  %609 = vperm.xlu2 %5663, %v6171_v24  }
 0x1ae   :  { %637 = vperm.xlu0 %5661, %v6220_v32  }
 0x1b5   :  { %629 = vperm.xlu1 %5662, %v6197_v28   ;;  %621 = vperm.xlu2 %5663, %v6189_v27  }
 0x1bd   :  { %641 = vperm.xlu1 %5662, %v6215_v31   ;;  %633 = vperm.xlu2 %5663, %v6207_v30  }
 0x1c7   :  { %v6491_v15 = vpop.permute.xlu2 %516 }
 0x1c8   :  { %9782 = vst [vmem:[#allocation50_spill] sm:$0xff] %v6491_v15 }
 0x1cf   :  { %v6493_v45 = vpop.permute.xlu2 %522  ;;  %v6499_v46 = vpop.permute.xlu1 %520 }
 0x1d0   :  { %9783 = vst [vmem:[#allocation51_spill] sm:$0xff] %v6493_v45 }
 0x1d1   :  { %9786 = vst [vmem:[#allocation54_spill] sm:$0xff] %v6499_v46 }
 0x1d7   :  { %v6495_v39 = vpop.permute.xlu2 %528 }
 0x1d8   :  { %9784 = vst [vmem:[#allocation52_spill] sm:$0xff] %v6495_v39  ;;  %v6497_v40 = vpop.permute.xlu0 %518 }
 0x1d9   :  { %9785 = vst [vmem:[#allocation53_spill] sm:$0xff] %v6497_v40 }
 0x1df   :  { %v6501_v48 = vpop.permute.xlu2 %534 }
 0x1e0   :  { %9787 = vst [vmem:[#allocation55_spill] sm:$0xff] %v6501_v48  ;;  %v6503_v51 = vpop.permute.xlu0 %524  ;;  %v5913_v48 = vmov 4  }
 0x1e1   :  { %9788 = vst [vmem:[#allocation56_spill] sm:$0xff] %v6503_v51  ;;  %5665 = vset.pattern.permute.xlu1 %v5913_v48  ;;  %5664 = vset.pattern.permute.xlu0 %v5913_v48 }
 0x1e2   :  { %5666 = vset.pattern.permute.xlu2 %v5913_v48 }
 0x1e7   :  { %v6505_v11 = vpop.permute.xlu2 %540  ;;  %v6507_v49 = vpop.permute.xlu1 %526 }
 0x1e8   :  { %9789 = vst [vmem:[#allocation57_spill] sm:$0xff] %v6505_v11  ;;  %v6509_v56 = vpop.permute.xlu0 %530 }
 0x1e9   :  { %9790 = vst [vmem:[#allocation58_spill] sm:$0xff] %v6507_v49 }
 0x1ea   :  { %9791 = vst [vmem:[#allocation59_spill] sm:$0xff] %v6509_v56 }
 0x1ef   :  { %v6511_v54 = vpop.permute.xlu2 %546  ;;  %v6513_v38 = vpop.permute.xlu1 %532 }
 0x1f0   :  { %9792 = vst [vmem:[#allocation60_spill] sm:$0xff] %v6511_v54  ;;  %v6515_v45 = vpop.permute.xlu0 %536 }
 0x1f1   :  { %9793 = vst [vmem:[#allocation61_spill] sm:$0xff] %v6513_v38 }
 0x1f2   :  { %9794 = vst [vmem:[#allocation62_spill] sm:$0xff] %v6515_v45 }
 0x1f7   :  { %v590_v39 = vpop.permute.xlu2 %589  ;;  %v6517_v15 = vpop.permute.xlu1 %538 }
 0x1f8   :  { %9795 = vst [vmem:[#allocation63_spill] sm:$0xff] %v6517_v15  ;;  %v6519_v46 = vpop.permute.xlu0 %542  ;;  %v646_v18 = vmul.f32 %v590_v39, %v6284_v62 }
 0x1fa   :  { %680 = vrot.lane.b32.xlu1 %v646_v18, %s5912_s30 }
 0x1ff   :  { %v6523_v11 = vpop.permute.xlu1 %544  ;;  %v598_v38 = vpop.permute.xlu2 %597 }
 0x200   :  { %9796 = vst [vmem:[#allocation64_spill] sm:$0xff] %v6523_v11  ;;  %v582_v49 = vpop.permute.xlu0 %581  ;;  %v648_v39 = vmul.f32 %v598_v38, %v6317_v6 }
 0x201   :  { %v644_v56 = vmul.f32 %v582_v49, %v6298_v57 }
 0x203   :  { %676 = vrot.lane.b32.xlu2 %v644_v56, %s5912_s30 }
 0x207   :  { %v586_v54 = vpop.permute.xlu1 %585  ;;  %v610_v11 = vpop.permute.xlu2 %609 }
 0x208   :  { %v602_v45 = vpop.permute.xlu0 %601  ;;  %v645_v51 = vmul.f32 %v586_v54, %v6304_v33  ;;  %v651_v48 = vmul.f32 %v610_v11, %v6336_v0 }
 0x209   :  { %v649_v15 = vmul.f32 %v602_v45, %v6308_v50 }
 0x20a   :  { %678 = vrot.lane.b32.xlu0 %v645_v51, %s5912_s30 }
 0x20b   :  { %686 = vrot.lane.b32.xlu1 %v649_v15, %s5912_s30 }
 0x20f   :  { %v594_v18 = vpop.permute.xlu1 %593  ;;  %v622_v38 = vpop.permute.xlu2 %621 }
 0x210   :  { %v614_v49 = vpop.permute.xlu0 %613  ;;  %v647_v56 = vmul.f32 %v594_v18, %v6321_v4 }
 0x211   :  { %v652_v35 = vmul.f32 %v614_v49, %v6326_v42 }
 0x212   :  { %684 = vrot.lane.b32.xlu0 %v648_v39, %s5912_s30  ;;  %682 = vrot.lane.b32.xlu2 %v647_v56, %s5912_s30  ;;  %v654_v39 = vmul.f32 %v622_v38, %v6356_v9 }
 0x213   :  { %692 = vrot.lane.b32.xlu1 %v652_v35, %s5912_s30 }
 0x217   :  { %v606_v45 = vpop.permute.xlu1 %605  ;;  %v634_v56 = vpop.permute.xlu2 %633 }
 0x218   :  { %v626_v51 = vpop.permute.xlu0 %625  ;;  %v650_v15 = vmul.f32 %v606_v45, %v6340_v5 }
 0x219   :  { %v655_v54 = vmul.f32 %v626_v51, %v6345_v34 }
 0x21a   :  { %690 = vrot.lane.b32.xlu0 %v651_v48, %s5912_s30  ;;  %688 = vrot.lane.b32.xlu2 %v650_v15, %s5912_s30  ;;  %v657_v48 = vmul.f32 %v634_v56, %v6377_v12 }
 0x21b   :  { %698 = vrot.lane.b32.xlu1 %v655_v54, %s5912_s30 }
 0x21f   :  { %v618_v18 = vpop.permute.xlu1 %617 }
 0x220   :  { %v638_v49 = vpop.permute.xlu0 %637  ;;  %v653_v35 = vmul.f32 %v618_v18, %v6361_v10 }
 0x221   :  { %v658_v11 = vmul.f32 %v638_v49, %v6366_v43 }
 0x222   :  { %696 = vrot.lane.b32.xlu0 %v654_v39, %s5912_s30  ;;  %694 = vrot.lane.b32.xlu2 %v653_v35, %s5912_s30 }
 0x223   :  { %704 = vrot.lane.b32.xlu1 %v658_v11, %s5912_s30 }
 0x227   :  { %v630_v45 = vpop.permute.xlu1 %629 }
 0x228   :  { %v656_v51 = vmul.f32 %v630_v45, %v6382_v13 }
 0x22a   :  { %702 = vrot.lane.b32.xlu0 %v657_v48, %s5912_s30  ;;  %700 = vrot.lane.b32.xlu2 %v656_v51, %s5912_s30 }
 0x22b   :  { %745 = vperm.xlu1 %5665, %v6124_v16  }
 0x22f   :  { %v642_v15 = vpop.permute.xlu1 %641 }
 0x230   :  { %v659_v54 = vmul.f32 %v642_v15, %v6392_v14 }
 0x232   :  { %741 = vperm.xlu0 %5664, %v6129_v17   ;;  %706 = vrot.lane.b32.xlu2 %v659_v54, %s5912_s30  ;;  %s5960_s30 = smov 101  }
 0x233   :  { %753 = vperm.xlu1 %5665, %v6148_v20  }
 0x23a   :  { %761 = vperm.xlu0 %5664, %v6166_v23   ;;  %749 = vperm.xlu2 %5666, %v6153_v21  }
 0x23b   :  { %765 = vperm.xlu1 %5665, %v6161_v22  }
 0x242   :  { %773 = vperm.xlu0 %5664, %v6184_v26   ;;  %757 = vperm.xlu2 %5666, %v6143_v19  }
 0x243   :  { %777 = vperm.xlu1 %5665, %v6179_v25  }
 0x24a   :  { %785 = vperm.xlu0 %5664, %v6202_v29   ;;  %769 = vperm.xlu2 %5666, %v6171_v24  }
 0x24b   :  { %789 = vperm.xlu1 %5665, %v6197_v28  }
 0x252   :  { %797 = vperm.xlu0 %5664, %v6220_v32   ;;  %781 = vperm.xlu2 %5666, %v6189_v27  }
 0x253   :  { %801 = vperm.xlu1 %5665, %v6215_v31  }
 0x25a   :  { %793 = vperm.xlu2 %5666, %v6207_v30  }
 0x25d   :  { %v6571_v38 = vpop.permute.xlu2 %676 }
 0x25e   :  { %9797 = vst [vmem:[#allocation65_spill] sm:$0xff] %v6571_v38 }
 0x26c   :  { %v6573_v18 = vpop.permute.xlu2 %682  ;;  %v6577_v49 = vpop.permute.xlu1 %680 }
 0x26d   :  { %9798 = vst [vmem:[#allocation66_spill] sm:$0xff] %v6573_v18 }
 0x26e   :  { %9800 = vst [vmem:[#allocation68_spill] sm:$0xff] %v6577_v49 }
 0x274   :  { %v6575_v39 = vpop.permute.xlu2 %688 }
 0x275   :  { %9799 = vst [vmem:[#allocation67_spill] sm:$0xff] %v6575_v39 }
 0x27c   :  { %v6579_v35 = vpop.permute.xlu0 %678  ;;  %v6581_v11 = vpop.permute.xlu2 %694 }
 0x27d   :  { %9801 = vst [vmem:[#allocation69_spill] sm:$0xff] %v6579_v35  ;;  %v6583_v56 = vpop.permute.xlu1 %686 }
 0x27e   :  { %9802 = vst [vmem:[#allocation70_spill] sm:$0xff] %v6581_v11 }
 0x27f   :  { %9803 = vst [vmem:[#allocation71_spill] sm:$0xff] %v6583_v56 }
 0x284   :  { %v6585_v45 = vpop.permute.xlu0 %684  ;;  %v6587_v48 = vpop.permute.xlu2 %700 }
 0x285   :  { %9804 = vst [vmem:[#allocation72_spill] sm:$0xff] %v6585_v45  ;;  %v6589_v51 = vpop.permute.xlu1 %692 }
 0x286   :  { %9805 = vst [vmem:[#allocation73_spill] sm:$0xff] %v6587_v48 }
 0x287   :  { %9806 = vst [vmem:[#allocation74_spill] sm:$0xff] %v6589_v51 }
 0x28c   :  { %v6591_v15 = vpop.permute.xlu0 %690  ;;  %v6593_v54 = vpop.permute.xlu2 %706 }
 0x28d   :  { %9807 = vst [vmem:[#allocation75_spill] sm:$0xff] %v6591_v15  ;;  %v6595_v18 = vpop.permute.xlu1 %698 }
 0x28e   :  { %9808 = vst [vmem:[#allocation76_spill] sm:$0xff] %v6593_v54 }
 0x28f   :  { %9809 = vst [vmem:[#allocation77_spill] sm:$0xff] %v6595_v18 }
 0x294   :  { %v6597_v39 = vpop.permute.xlu0 %696  ;;  %v750_v49 = vpop.permute.xlu2 %749 }
 0x295   :  { %9810 = vst [vmem:[#allocation78_spill] sm:$0xff] %v6597_v39  ;;  %v806_v38 = vmul.f32 %v750_v49, %v6284_v62  ;;  %v6600_v11 = vpop.permute.xlu1 %704 }
 0x296   :  { %9811 = vst [vmem:[#allocation79_spill] sm:$0xff] %v6600_v11  ;;  %v5915_v11 = vmov 5  }
 0x297   :  { %840 = vrot.lane.b32.xlu1 %v806_v38, %s5914_s21  ;;  %5667 = vset.pattern.permute.xlu0 %v5915_v11 }
 0x298   :  { %5668 = vset.pattern.permute.xlu1 %v5915_v11  ;;  %5669 = vset.pattern.permute.xlu2 %v5915_v11 }
 0x29c   :  { %v6603_v56 = vpop.permute.xlu0 %702  ;;  %v758_v48 = vpop.permute.xlu2 %757 }
 0x29d   :  { %v746_v51 = vpop.permute.xlu1 %745  ;;  %v808_v45 = vmul.f32 %v758_v48, %v6317_v6 }
 0x29e   :  { %v805_v15 = vmul.f32 %v746_v51, %v6304_v33 }
 0x2a0   :  { %838 = vrot.lane.b32.xlu0 %v805_v15, %s5914_s21 }
 0x2a4   :  { %v742_v54 = vpop.permute.xlu0 %741  ;;  %v770_v49 = vpop.permute.xlu2 %769 }
 0x2a5   :  { %v804_v18 = vmul.f32 %v742_v54, %v6298_v57  ;;  %v754_v39 = vpop.permute.xlu1 %753  ;;  %v811_v54 = vmul.f32 %v770_v49, %v6336_v0 }
 0x2a6   :  { %v807_v51 = vmul.f32 %v754_v39, %v6321_v4 }
 0x2a7   :  { %836 = vrot.lane.b32.xlu2 %v804_v18, %s5914_s21 }
 0x2a8   :  { %844 = vrot.lane.b32.xlu0 %v808_v45, %s5914_s21 }
 0x2ac   :  { %v762_v38 = vpop.permute.xlu0 %761  ;;  %v782_v18 = vpop.permute.xlu2 %781 }
 0x2ad   :  { %v809_v15 = vmul.f32 %v762_v38, %v6308_v50  ;;  %v766_v37 = vpop.permute.xlu1 %765  ;;  %v814_v8 = vmul.f32 %v782_v18, %v6356_v9 }
 0x2ae   :  { %v810_v45 = vmul.f32 %v766_v37, %v6340_v5 }
 0x2af   :  { %846 = vrot.lane.b32.xlu1 %v809_v15, %s5914_s21  ;;  %842 = vrot.lane.b32.xlu2 %v807_v51, %s5914_s21 }
 0x2b0   :  { %850 = vrot.lane.b32.xlu0 %v811_v54, %s5914_s21 }
 0x2b4   :  { %v774_v48 = vpop.permute.xlu0 %773  ;;  %v794_v49 = vpop.permute.xlu2 %793 }
 0x2b5   :  { %v812_v11 = vmul.f32 %v774_v48, %v6326_v42  ;;  %v778_v39 = vpop.permute.xlu1 %777  ;;  %v817_v54 = vmul.f32 %v794_v49, %v6377_v12 }
 0x2b6   :  { %v813_v51 = vmul.f32 %v778_v39, %v6361_v10 }
 0x2b7   :  { %852 = vrot.lane.b32.xlu1 %v812_v11, %s5914_s21  ;;  %848 = vrot.lane.b32.xlu2 %v810_v45, %s5914_s21 }
 0x2b8   :  { %856 = vrot.lane.b32.xlu0 %v814_v8, %s5914_s21 }
 0x2bc   :  { %v786_v38 = vpop.permute.xlu0 %785 }
 0x2bd   :  { %v815_v15 = vmul.f32 %v786_v38, %v6345_v34  ;;  %v790_v37 = vpop.permute.xlu1 %789 }
 0x2be   :  { %v816_v48 = vmul.f32 %v790_v37, %v6382_v13 }
 0x2bf   :  { %858 = vrot.lane.b32.xlu1 %v815_v15, %s5914_s21  ;;  %854 = vrot.lane.b32.xlu2 %v813_v51, %s5914_s21 }
 0x2c0   :  { %862 = vrot.lane.b32.xlu0 %v817_v54, %s5914_s21 }
 0x2c4   :  { %v798_v18 = vpop.permute.xlu0 %797 }
 0x2c5   :  { %v818_v8 = vmul.f32 %v798_v18, %v6366_v43  ;;  %v802_v45 = vpop.permute.xlu1 %801 }
 0x2c6   :  { %v819_v11 = vmul.f32 %v802_v45, %v6392_v14 }
 0x2c7   :  { %864 = vrot.lane.b32.xlu1 %v818_v8, %s5914_s21  ;;  %860 = vrot.lane.b32.xlu2 %v816_v48, %s5914_s21 }
 0x2c8   :  { %901 = vperm.xlu0 %5667, %v6129_v17  }
 0x2cf   :  { %905 = vperm.xlu1 %5668, %v6124_v16   ;;  %866 = vrot.lane.b32.xlu2 %v819_v11, %s5914_s21 }
 0x2d0   :  { %921 = vperm.xlu0 %5667, %v6166_v23  }
 0x2d7   :  { %913 = vperm.xlu1 %5668, %v6148_v20   ;;  %909 = vperm.xlu2 %5669, %v6153_v21  }
 0x2d8   :  { %933 = vperm.xlu0 %5667, %v6184_v26  }
 0x2df   :  { %925 = vperm.xlu1 %5668, %v6161_v22   ;;  %917 = vperm.xlu2 %5669, %v6143_v19  }
 0x2e0   :  { %945 = vperm.xlu0 %5667, %v6202_v29  }
 0x2e7   :  { %937 = vperm.xlu1 %5668, %v6179_v25   ;;  %929 = vperm.xlu2 %5669, %v6171_v24  }
 0x2e8   :  { %957 = vperm.xlu0 %5667, %v6220_v32  }
 0x2ef   :  { %949 = vperm.xlu1 %5668, %v6197_v28   ;;  %941 = vperm.xlu2 %5669, %v6189_v27  }
 0x2f0   :  { %5670 = vset.pattern.permute.xlu0 %v5917_v2 }
 0x2f7   :  { %961 = vperm.xlu1 %5668, %v6215_v31   ;;  %953 = vperm.xlu2 %5669, %v6207_v30  }
 0x2ff   :  { %5671 = vset.pattern.permute.xlu1 %v5917_v2  ;;  %5672 = vset.pattern.permute.xlu2 %v5917_v2 }
 0x301   :  { %v6651_v39 = vpop.permute.xlu2 %836 }
 0x302   :  { %9812 = vst [vmem:[#allocation80_spill] sm:$0xff] %v6651_v39 }
 0x309   :  { %v6653_v49 = vpop.permute.xlu2 %842  ;;  %v6659_v15 = vpop.permute.xlu1 %840 }
 0x30a   :  { %9813 = vst [vmem:[#allocation81_spill] sm:$0xff] %v6653_v49 }
 0x30b   :  { %9816 = vst [vmem:[#allocation84_spill] sm:$0xff] %v6659_v15 }
 0x311   :  { %v6655_v38 = vpop.permute.xlu2 %848 }
 0x312   :  { %9814 = vst [vmem:[#allocation82_spill] sm:$0xff] %v6655_v38  ;;  %v6657_v51 = vpop.permute.xlu0 %838 }
 0x313   :  { %9815 = vst [vmem:[#allocation83_spill] sm:$0xff] %v6657_v51 }
 0x319   :  { %v6661_v54 = vpop.permute.xlu2 %854 }
 0x31a   :  { %9817 = vst [vmem:[#allocation85_spill] sm:$0xff] %v6661_v54  ;;  %v6663_v37 = vpop.permute.xlu0 %844 }
 0x31b   :  { %9818 = vst [vmem:[#allocation86_spill] sm:$0xff] %v6663_v37 }
 0x321   :  { %v6665_v18 = vpop.permute.xlu2 %860  ;;  %v6667_v48 = vpop.permute.xlu1 %846 }
 0x322   :  { %9819 = vst [vmem:[#allocation87_spill] sm:$0xff] %v6665_v18  ;;  %v6669_v8 = vpop.permute.xlu0 %850 }
 0x323   :  { %9820 = vst [vmem:[#allocation88_spill] sm:$0xff] %v6667_v48 }
 0x324   :  { %9821 = vst [vmem:[#allocation89_spill] sm:$0xff] %v6669_v8 }
 0x329   :  { %v6671_v45 = vpop.permute.xlu2 %866  ;;  %v6673_v11 = vpop.permute.xlu1 %852 }
 0x32a   :  { %9822 = vst [vmem:[#allocation90_spill] sm:$0xff] %v6671_v45  ;;  %v6675_v49 = vpop.permute.xlu0 %856 }
 0x32b   :  { %9823 = vst [vmem:[#allocation91_spill] sm:$0xff] %v6673_v11 }
 0x32c   :  { %9824 = vst [vmem:[#allocation92_spill] sm:$0xff] %v6675_v49 }
 0x331   :  { %v910_v38 = vpop.permute.xlu2 %909  ;;  %v6677_v39 = vpop.permute.xlu1 %858 }
 0x332   :  { %9825 = vst [vmem:[#allocation93_spill] sm:$0xff] %v6677_v39  ;;  %v6679_v15 = vpop.permute.xlu0 %862  ;;  %v966_v54 = vmul.f32 %v910_v38, %v6284_v62 }
 0x334   :  { %1000 = vrot.lane.b32.xlu1 %v966_v54, %s5916_s22 }
 0x339   :  { %v6683_v18 = vpop.permute.xlu1 %864  ;;  %v918_v11 = vpop.permute.xlu2 %917 }
 0x33a   :  { %9826 = vst [vmem:[#allocation94_spill] sm:$0xff] %v6683_v18  ;;  %v902_v48 = vpop.permute.xlu0 %901  ;;  %v968_v54 = vmul.f32 %v918_v11, %v6317_v6 }
 0x33b   :  { %v964_v8 = vmul.f32 %v902_v48, %v6298_v57 }
 0x33d   :  { %996 = vrot.lane.b32.xlu2 %v964_v8, %s5916_s22 }
 0x341   :  { %v906_v45 = vpop.permute.xlu1 %905  ;;  %v930_v18 = vpop.permute.xlu2 %929 }
 0x342   :  { %v922_v49 = vpop.permute.xlu0 %921  ;;  %v965_v37 = vmul.f32 %v906_v45, %v6304_v33  ;;  %v971_v2 = vmul.f32 %v930_v18, %v6336_v0 }
 0x343   :  { %v969_v39 = vmul.f32 %v922_v49, %v6308_v50 }
 0x344   :  { %998 = vrot.lane.b32.xlu0 %v965_v37, %s5916_s22 }
 0x345   :  { %1006 = vrot.lane.b32.xlu1 %v969_v39, %s5916_s22 }
 0x349   :  { %v914_v38 = vpop.permute.xlu1 %913  ;;  %v942_v11 = vpop.permute.xlu2 %941 }
 0x34a   :  { %v934_v48 = vpop.permute.xlu0 %933  ;;  %v967_v8 = vmul.f32 %v914_v38, %v6321_v4 }
 0x34b   :  { %v972_v3 = vmul.f32 %v934_v48, %v6326_v42 }
 0x34c   :  { %1004 = vrot.lane.b32.xlu0 %v968_v54, %s5916_s22  ;;  %1002 = vrot.lane.b32.xlu2 %v967_v8, %s5916_s22  ;;  %v974_v54 = vmul.f32 %v942_v11, %v6356_v9 }
 0x34d   :  { %1012 = vrot.lane.b32.xlu1 %v972_v3, %s5916_s22 }
 0x351   :  { %v926_v49 = vpop.permute.xlu1 %925  ;;  %v954_v8 = vpop.permute.xlu2 %953 }
 0x352   :  { %v946_v37 = vpop.permute.xlu0 %945  ;;  %v970_v39 = vmul.f32 %v926_v49, %v6340_v5 }
 0x353   :  { %v975_v45 = vmul.f32 %v946_v37, %v6345_v34 }
 0x354   :  { %1010 = vrot.lane.b32.xlu0 %v971_v2, %s5916_s22  ;;  %1008 = vrot.lane.b32.xlu2 %v970_v39, %s5916_s22  ;;  %v977_v2 = vmul.f32 %v954_v8, %v6377_v12 }
 0x355   :  { %1018 = vrot.lane.b32.xlu1 %v975_v45, %s5916_s22 }
 0x359   :  { %v938_v38 = vpop.permute.xlu1 %937 }
 0x35a   :  { %v958_v48 = vpop.permute.xlu0 %957  ;;  %v973_v3 = vmul.f32 %v938_v38, %v6361_v10 }
 0x35b   :  { %v978_v18 = vmul.f32 %v958_v48, %v6366_v43 }
 0x35c   :  { %1016 = vrot.lane.b32.xlu0 %v974_v54, %s5916_s22  ;;  %1014 = vrot.lane.b32.xlu2 %v973_v3, %s5916_s22 }
 0x35d   :  { %1024 = vrot.lane.b32.xlu1 %v978_v18, %s5916_s22 }
 0x361   :  { %v950_v49 = vpop.permute.xlu1 %949 }
 0x362   :  { %v976_v37 = vmul.f32 %v950_v49, %v6382_v13 }
 0x364   :  { %1022 = vrot.lane.b32.xlu0 %v977_v2, %s5916_s22  ;;  %1020 = vrot.lane.b32.xlu2 %v976_v37, %s5916_s22 }
 0x365   :  { %1065 = vperm.xlu1 %5671, %v6124_v16  }
 0x369   :  { %v962_v39 = vpop.permute.xlu1 %961 }
 0x36a   :  { %v979_v45 = vmul.f32 %v962_v39, %v6392_v14  ;;  %v5919_v39 = vmov 7  }
 0x36c   :  { %1061 = vperm.xlu0 %5670, %v6129_v17   ;;  %1026 = vrot.lane.b32.xlu2 %v979_v45, %s5916_s22 }
 0x36d   :  { %1073 = vperm.xlu1 %5671, %v6148_v20  }
 0x374   :  { %1081 = vperm.xlu0 %5670, %v6166_v23   ;;  %1069 = vperm.xlu2 %5672, %v6153_v21  }
 0x375   :  { %1085 = vperm.xlu1 %5671, %v6161_v22  }
 0x37c   :  { %1093 = vperm.xlu0 %5670, %v6184_v26   ;;  %1077 = vperm.xlu2 %5672, %v6143_v19  }
 0x37d   :  { %1097 = vperm.xlu1 %5671, %v6179_v25  }
 0x384   :  { %1105 = vperm.xlu0 %5670, %v6202_v29   ;;  %1089 = vperm.xlu2 %5672, %v6171_v24  }
 0x385   :  { %1109 = vperm.xlu1 %5671, %v6197_v28  }
 0x38c   :  { %1117 = vperm.xlu0 %5670, %v6220_v32   ;;  %1101 = vperm.xlu2 %5672, %v6189_v27  }
 0x38d   :  { %1121 = vperm.xlu1 %5671, %v6215_v31  }
 0x394   :  { %1113 = vperm.xlu2 %5672, %v6207_v30   ;;  %5673 = vset.pattern.permute.xlu0 %v5919_v39 }
 0x395   :  { %5674 = vset.pattern.permute.xlu1 %v5919_v39 }
 0x397   :  { %v6731_v16 = vpop.permute.xlu2 %996 }
 0x398   :  { %9827 = vst [vmem:[#allocation95_spill] sm:$0xff] %v6731_v16 }
 0x39c   :  { %5675 = vset.pattern.permute.xlu2 %v5919_v39 }
 0x3a6   :  { %v6733_v17 = vpop.permute.xlu2 %1002  ;;  %v6737_v20 = vpop.permute.xlu1 %1000 }
 0x3a7   :  { %9828 = vst [vmem:[#allocation96_spill] sm:$0xff] %v6733_v17  ;;  %v6882_v17 = vld [vmem:[%s9699_s1 + $0x78] sm:$0xff] }
 0x3a8   :  { %9830 = vst [vmem:[#allocation98_spill] sm:$0xff] %v6737_v20  ;;  %v6888_v20 = vld [vmem:[%s9699_s1 + $0x68] sm:$0xff] }
 0x3ae   :  { %v6735_v19 = vpop.permute.xlu2 %1008 }
 0x3af   :  { %9829 = vst [vmem:[#allocation97_spill] sm:$0xff] %v6735_v19  ;;  %v6870_v19 = vld [vmem:[%s9699_s1 + $0x60] sm:$0xff] }
 0x3b6   :  { %v6739_v21 = vpop.permute.xlu0 %998  ;;  %v6741_v22 = vpop.permute.xlu2 %1014 }
 0x3b7   :  { %9831 = vst [vmem:[#allocation99_spill] sm:$0xff] %v6739_v21  ;;  %v6743_v23 = vpop.permute.xlu1 %1006 }
 0x3b8   :  { %9832 = vst [vmem:[#allocation100_spill] sm:$0xff] %v6741_v22 }
 0x3b9   :  { %9833 = vst [vmem:[#allocation101_spill] sm:$0xff] %v6743_v23  ;;  %v6876_v23 = vld [vmem:[%s9699_s1 + $0x50] sm:$0xff] }
 0x3be   :  { %v6745_v24 = vpop.permute.xlu0 %1004  ;;  %v6747_v25 = vpop.permute.xlu2 %1020 }
 0x3bf   :  { %9834 = vst [vmem:[#allocation102_spill] sm:$0xff] %v6745_v24  ;;  %v6749_v26 = vpop.permute.xlu1 %1012 }
 0x3c0   :  { %9835 = vst [vmem:[#allocation103_spill] sm:$0xff] %v6747_v25 }
 0x3c1   :  { %9836 = vst [vmem:[#allocation104_spill] sm:$0xff] %v6749_v26 }
 0x3c6   :  { %v6751_v27 = vpop.permute.xlu0 %1010  ;;  %v6753_v28 = vpop.permute.xlu2 %1026 }
 0x3c7   :  { %9837 = vst [vmem:[#allocation105_spill] sm:$0xff] %v6751_v27  ;;  %v6755_v29 = vpop.permute.xlu1 %1018 }
 0x3c8   :  { %9838 = vst [vmem:[#allocation106_spill] sm:$0xff] %v6753_v28 }
 0x3c9   :  { %9839 = vst [vmem:[#allocation107_spill] sm:$0xff] %v6755_v29 }
 0x3ce   :  { %v6757_v30 = vpop.permute.xlu0 %1016  ;;  %v1070_v31 = vpop.permute.xlu2 %1069 }
 0x3cf   :  { %9840 = vst [vmem:[#allocation108_spill] sm:$0xff] %v6757_v30  ;;  %v1126_v32 = vmul.f32 %v1070_v31, %v6284_v62  ;;  %v6760_v11 = vpop.permute.xlu1 %1024 }
 0x3d0   :  { %9841 = vst [vmem:[#allocation109_spill] sm:$0xff] %v6760_v11 }
 0x3d1   :  { %1160 = vrot.lane.b32.xlu1 %v1126_v32, %s5918_s23 }
 0x3d6   :  { %v6763_v38 = vpop.permute.xlu0 %1022  ;;  %v1078_v54 = vpop.permute.xlu2 %1077 }
 0x3d7   :  { %v1066_v48 = vpop.permute.xlu1 %1065  ;;  %v1128_v2 = vmul.f32 %v1078_v54, %v6317_v6 }
 0x3d8   :  { %v1125_v3 = vmul.f32 %v1066_v48, %v6304_v33 }
 0x3da   :  { %1158 = vrot.lane.b32.xlu0 %v1125_v3, %s5918_s23 }
 0x3de   :  { %v1062_v18 = vpop.permute.xlu0 %1061  ;;  %v1090_v37 = vpop.permute.xlu2 %1089 }
 0x3df   :  { %v1124_v8 = vmul.f32 %v1062_v18, %v6298_v57  ;;  %v1074_v49 = vpop.permute.xlu1 %1073  ;;  %v1131_v3 = vmul.f32 %v1090_v37, %v6336_v0 }
 0x3e0   :  { %v1127_v31 = vmul.f32 %v1074_v49, %v6321_v4 }
 0x3e1   :  { %1156 = vrot.lane.b32.xlu2 %v1124_v8, %s5918_s23 }
 0x3e2   :  { %1164 = vrot.lane.b32.xlu0 %v1128_v2, %s5918_s23 }
 0x3e6   :  { %v1082_v45 = vpop.permute.xlu0 %1081  ;;  %v1102_v54 = vpop.permute.xlu2 %1101 }
 0x3e7   :  { %v1129_v32 = vmul.f32 %v1082_v45, %v6308_v50  ;;  %v1086_v48 = vpop.permute.xlu1 %1085  ;;  %v1134_v39 = vmul.f32 %v1102_v54, %v6356_v9 }
 0x3e8   :  { %v1130_v8 = vmul.f32 %v1086_v48, %v6340_v5 }
 0x3e9   :  { %1166 = vrot.lane.b32.xlu1 %v1129_v32, %s5918_s23  ;;  %1162 = vrot.lane.b32.xlu2 %v1127_v31, %s5918_s23 }
 0x3ea   :  { %1170 = vrot.lane.b32.xlu0 %v1131_v3, %s5918_s23 }
 0x3ee   :  { %v1094_v18 = vpop.permute.xlu0 %1093  ;;  %v1114_v37 = vpop.permute.xlu2 %1113 }
 0x3ef   :  { %v1132_v2 = vmul.f32 %v1094_v18, %v6326_v42  ;;  %v1098_v49 = vpop.permute.xlu1 %1097  ;;  %v1137_v3 = vmul.f32 %v1114_v37, %v6377_v12  ;;  %v6803_v37 = vld [vmem:[%s9699_s1 + $0x8] sm:$0xff] }
 0x3f0   :  { %v1133_v31 = vmul.f32 %v1098_v49, %v6361_v10 }
 0x3f1   :  { %1172 = vrot.lane.b32.xlu1 %v1132_v2, %s5918_s23  ;;  %1168 = vrot.lane.b32.xlu2 %v1130_v8, %s5918_s23  ;;  %v6796_v2 = vld [vmem:[%s9699_s1] sm:$0xff] }
 0x3f2   :  { %1176 = vrot.lane.b32.xlu0 %v1134_v39, %s5918_s23 }
 0x3f6   :  { %v1106_v45 = vpop.permute.xlu0 %1105 }
 0x3f7   :  { %v1135_v32 = vmul.f32 %v1106_v45, %v6345_v34  ;;  %v1110_v48 = vpop.permute.xlu1 %1109  ;;  %v6810_v45 = vld [vmem:[%s9699_s1 + $0x28] sm:$0xff] }
 0x3f8   :  { %v1136_v18 = vmul.f32 %v1110_v48, %v6382_v13  ;;  %v6834_v48 = vld [vmem:[%s9699_s1 + $0x30] sm:$0xff] }
 0x3f9   :  { %1178 = vrot.lane.b32.xlu1 %v1135_v32, %s5918_s23  ;;  %1174 = vrot.lane.b32.xlu2 %v1133_v31, %s5918_s23  ;;  %v6816_v31 = vld [vmem:[%s9699_s1 + $0x18] sm:$0xff]  ;;  %v6822_v32 = vld [vmem:[%s9699_s1 + $0x10] sm:$0xff] }
 0x3fa   :  { %1182 = vrot.lane.b32.xlu0 %v1137_v3, %s5918_s23  ;;  %v6828_v3 = vld [vmem:[%s9699_s1 + $0x40] sm:$0xff] }
 0x3fe   :  { %v1118_v54 = vpop.permute.xlu0 %1117 }
 0x3ff   :  { %v1138_v8 = vmul.f32 %v1118_v54, %v6366_v43  ;;  %v1122_v39 = vpop.permute.xlu1 %1121  ;;  %v6840_v54 = vld [vmem:[%s9699_s1 + $0x20] sm:$0xff] }
 0x400   :  { %v1139_v49 = vmul.f32 %v1122_v39, %v6392_v14  ;;  %v6858_v39 = vld [vmem:[%s9699_s1 + $0x38] sm:$0xff] }
 0x401   :  { %1184 = vrot.lane.b32.xlu1 %v1138_v8, %s5918_s23  ;;  %1180 = vrot.lane.b32.xlu2 %v1136_v18, %s5918_s23  ;;  %v6846_v18 = vld [vmem:[%s9699_s1 + $0x58] sm:$0xff]  ;;  %v6852_v8 = vld [vmem:[%s9699_s1 + $0x48] sm:$0xff] }
 0x402   :  { %1221 = vperm.xlu0 %5673, %v6796_v2  }
 0x409   :  { %1225 = vperm.xlu1 %5674, %v6803_v37   ;;  %1186 = vrot.lane.b32.xlu2 %v1139_v49, %s5918_s23  ;;  %v6864_v49 = vld [vmem:[%s9699_s1 + $0x70] sm:$0xff]  ;;  %s5934_s23 = smov 114  }
 0x40a   :  { %1241 = vperm.xlu0 %5673, %v6810_v45  }
 0x411   :  { %1233 = vperm.xlu1 %5674, %v6816_v31   ;;  %1229 = vperm.xlu2 %5675, %v6822_v32  }
 0x412   :  { %1253 = vperm.xlu0 %5673, %v6828_v3  }
 0x419   :  { %1245 = vperm.xlu1 %5674, %v6834_v48   ;;  %1237 = vperm.xlu2 %5675, %v6840_v54  }
 0x41a   :  { %1265 = vperm.xlu0 %5673, %v6846_v18  }
 0x421   :  { %1257 = vperm.xlu1 %5674, %v6852_v8   ;;  %1249 = vperm.xlu2 %5675, %v6858_v39  }
 0x422   :  { %1277 = vperm.xlu0 %5673, %v6864_v49  }
 0x429   :  { %1269 = vperm.xlu1 %5674, %v6870_v19   ;;  %1261 = vperm.xlu2 %5675, %v6876_v23  }
 0x42a   :  { %5676 = vset.pattern.permute.xlu0 %v5921_v41 }
 0x431   :  { %1281 = vperm.xlu1 %5674, %v6882_v17   ;;  %1273 = vperm.xlu2 %5675, %v6888_v20  }
 0x439   :  { %5677 = vset.pattern.permute.xlu1 %v5921_v41  ;;  %5678 = vset.pattern.permute.xlu2 %v5921_v41 }
 0x43b   :  { %v6891_v16 = vpop.permute.xlu2 %1156 }
 0x43c   :  { %9842 = vst [vmem:[#allocation110_spill] sm:$0xff] %v6891_v16 }
 0x443   :  { %v6893_v11 = vpop.permute.xlu2 %1162  ;;  %v6899_v28 = vpop.permute.xlu1 %1160 }
 0x444   :  { %9843 = vst [vmem:[#allocation111_spill] sm:$0xff] %v6893_v11 }
 0x445   :  { %9846 = vst [vmem:[#allocation114_spill] sm:$0xff] %v6899_v28 }
 0x44b   :  { %v6895_v30 = vpop.permute.xlu2 %1168 }
 0x44c   :  { %9844 = vst [vmem:[#allocation112_spill] sm:$0xff] %v6895_v30  ;;  %v6897_v29 = vpop.permute.xlu0 %1158 }
 0x44d   :  { %9845 = vst [vmem:[#allocation113_spill] sm:$0xff] %v6897_v29 }
 0x453   :  { %v6901_v27 = vpop.permute.xlu2 %1174 }
 0x454   :  { %9847 = vst [vmem:[#allocation115_spill] sm:$0xff] %v6901_v27  ;;  %v6903_v26 = vpop.permute.xlu0 %1164 }
 0x455   :  { %9848 = vst [vmem:[#allocation116_spill] sm:$0xff] %v6903_v26 }
 0x45b   :  { %v6905_v25 = vpop.permute.xlu2 %1180  ;;  %v6907_v24 = vpop.permute.xlu1 %1166 }
 0x45c   :  { %9849 = vst [vmem:[#allocation117_spill] sm:$0xff] %v6905_v25  ;;  %v6909_v22 = vpop.permute.xlu0 %1170 }
 0x45d   :  { %9850 = vst [vmem:[#allocation118_spill] sm:$0xff] %v6907_v24 }
 0x45e   :  { %9851 = vst [vmem:[#allocation119_spill] sm:$0xff] %v6909_v22 }
 0x463   :  { %v6911_v21 = vpop.permute.xlu2 %1186  ;;  %v6913_v16 = vpop.permute.xlu1 %1172 }
 0x464   :  { %9852 = vst [vmem:[#allocation120_spill] sm:$0xff] %v6911_v21  ;;  %v6915_v11 = vpop.permute.xlu0 %1176 }
 0x465   :  { %9853 = vst [vmem:[#allocation121_spill] sm:$0xff] %v6913_v16 }
 0x466   :  { %9854 = vst [vmem:[#allocation122_spill] sm:$0xff] %v6915_v11 }
 0x46b   :  { %v1230_v30 = vpop.permute.xlu2 %1229  ;;  %v6917_v29 = vpop.permute.xlu1 %1178 }
 0x46c   :  { %9855 = vst [vmem:[#allocation123_spill] sm:$0xff] %v6917_v29  ;;  %v6919_v28 = vpop.permute.xlu0 %1182  ;;  %v1286_v27 = vmul.f32 %v1230_v30, %v6284_v62 }
 0x46e   :  { %1320 = vrot.lane.b32.xlu1 %v1286_v27, %s5920_s10 }
 0x473   :  { %v6923_v25 = vpop.permute.xlu1 %1184  ;;  %v1238_v16 = vpop.permute.xlu2 %1237 }
 0x474   :  { %9856 = vst [vmem:[#allocation124_spill] sm:$0xff] %v6923_v25  ;;  %v1222_v24 = vpop.permute.xlu0 %1221 }
 0x475   :  { %v1284_v22 = vmul.f32 %v1222_v24, %v6298_v57  ;;  %v1288_v24 = vmul.f32 %v1238_v16, %v6317_v6 }
 0x477   :  { %1316 = vrot.lane.b32.xlu2 %v1284_v22, %s5920_s10 }
 0x47b   :  { %v1226_v21 = vpop.permute.xlu1 %1225  ;;  %v1250_v25 = vpop.permute.xlu2 %1249 }
 0x47c   :  { %v1242_v11 = vpop.permute.xlu0 %1241  ;;  %v1285_v26 = vmul.f32 %v1226_v21, %v6304_v33  ;;  %v1291_v41 = vmul.f32 %v1250_v25, %v6336_v0 }
 0x47d   :  { %v1289_v29 = vmul.f32 %v1242_v11, %v6308_v50 }
 0x47e   :  { %1318 = vrot.lane.b32.xlu0 %v1285_v26, %s5920_s10 }
 0x47f   :  { %1326 = vrot.lane.b32.xlu1 %v1289_v29, %s5920_s10 }
 0x483   :  { %v1234_v27 = vpop.permute.xlu1 %1233  ;;  %v1262_v11 = vpop.permute.xlu2 %1261 }
 0x484   :  { %v1254_v30 = vpop.permute.xlu0 %1253  ;;  %v1287_v22 = vmul.f32 %v1234_v27, %v6321_v4 }
 0x485   :  { %v1292_v36 = vmul.f32 %v1254_v30, %v6326_v42 }
 0x486   :  { %1324 = vrot.lane.b32.xlu0 %v1288_v24, %s5920_s10  ;;  %1322 = vrot.lane.b32.xlu2 %v1287_v22, %s5920_s10  ;;  %v1294_v24 = vmul.f32 %v1262_v11, %v6356_v9 }
 0x487   :  { %1332 = vrot.lane.b32.xlu1 %v1292_v36, %s5920_s10 }
 0x48b   :  { %v1246_v21 = vpop.permute.xlu1 %1245  ;;  %v1274_v22 = vpop.permute.xlu2 %1273 }
 0x48c   :  { %v1266_v26 = vpop.permute.xlu0 %1265  ;;  %v1290_v29 = vmul.f32 %v1246_v21, %v6340_v5 }
 0x48d   :  { %v1295_v16 = vmul.f32 %v1266_v26, %v6345_v34 }
 0x48e   :  { %1330 = vrot.lane.b32.xlu0 %v1291_v41, %s5920_s10  ;;  %1328 = vrot.lane.b32.xlu2 %v1290_v29, %s5920_s10  ;;  %v1297_v41 = vmul.f32 %v1274_v22, %v6377_v12 }
 0x48f   :  { %1338 = vrot.lane.b32.xlu1 %v1295_v16, %s5920_s10 }
 0x493   :  { %v1258_v27 = vpop.permute.xlu1 %1257 }
 0x494   :  { %v1278_v30 = vpop.permute.xlu0 %1277  ;;  %v1293_v36 = vmul.f32 %v1258_v27, %v6361_v10 }
 0x495   :  { %v1298_v25 = vmul.f32 %v1278_v30, %v6366_v43 }
 0x496   :  { %1336 = vrot.lane.b32.xlu0 %v1294_v24, %s5920_s10  ;;  %1334 = vrot.lane.b32.xlu2 %v1293_v36, %s5920_s10 }
 0x497   :  { %1344 = vrot.lane.b32.xlu1 %v1298_v25, %s5920_s10 }
 0x49b   :  { %v1270_v21 = vpop.permute.xlu1 %1269 }
 0x49c   :  { %v1296_v26 = vmul.f32 %v1270_v21, %v6382_v13 }
 0x49e   :  { %1342 = vrot.lane.b32.xlu0 %v1297_v41, %s5920_s10  ;;  %1340 = vrot.lane.b32.xlu2 %v1296_v26, %s5920_s10 }
 0x49f   :  { %1385 = vperm.xlu1 %5677, %v6803_v37  }
 0x4a3   :  { %v1282_v29 = vpop.permute.xlu1 %1281 }
 0x4a4   :  { %v1299_v16 = vmul.f32 %v1282_v29, %v6392_v14 }
 0x4a6   :  { %1381 = vperm.xlu0 %5676, %v6796_v2   ;;  %1346 = vrot.lane.b32.xlu2 %v1299_v16, %s5920_s10  ;;  %s5968_s10 = smov 97  }
 0x4a7   :  { %1393 = vperm.xlu1 %5677, %v6816_v31  }
 0x4ae   :  { %1401 = vperm.xlu0 %5676, %v6810_v45   ;;  %1389 = vperm.xlu2 %5678, %v6822_v32  }
 0x4af   :  { %1405 = vperm.xlu1 %5677, %v6834_v48  }
 0x4b6   :  { %1413 = vperm.xlu0 %5676, %v6828_v3   ;;  %1397 = vperm.xlu2 %5678, %v6840_v54  }
 0x4b7   :  { %1417 = vperm.xlu1 %5677, %v6852_v8  }
 0x4be   :  { %1425 = vperm.xlu0 %5676, %v6846_v18   ;;  %1409 = vperm.xlu2 %5678, %v6858_v39  }
 0x4bf   :  { %1429 = vperm.xlu1 %5677, %v6870_v19  }
 0x4c6   :  { %1437 = vperm.xlu0 %5676, %v6864_v49   ;;  %1421 = vperm.xlu2 %5678, %v6876_v23  }
 0x4c7   :  { %1441 = vperm.xlu1 %5677, %v6882_v17  }
 0x4ce   :  { %1433 = vperm.xlu2 %5678, %v6888_v20  }
 0x4d1   :  { %v6971_v11 = vpop.permute.xlu2 %1316 }
 0x4d2   :  { %9857 = vst [vmem:[#allocation125_spill] sm:$0xff] %v6971_v11 }
 0x4e0   :  { %v6973_v27 = vpop.permute.xlu2 %1322  ;;  %v6977_v30 = vpop.permute.xlu1 %1320 }
 0x4e1   :  { %9858 = vst [vmem:[#allocation126_spill] sm:$0xff] %v6973_v27 }
 0x4e2   :  { %9860 = vst [vmem:[#allocation128_spill] sm:$0xff] %v6977_v30 }
 0x4e8   :  { %v6975_v24 = vpop.permute.xlu2 %1328 }
 0x4e9   :  { %9859 = vst [vmem:[#allocation127_spill] sm:$0xff] %v6975_v24 }
 0x4f0   :  { %v6979_v36 = vpop.permute.xlu0 %1318  ;;  %v6981_v25 = vpop.permute.xlu2 %1334 }
 0x4f1   :  { %9861 = vst [vmem:[#allocation129_spill] sm:$0xff] %v6979_v36  ;;  %v6983_v22 = vpop.permute.xlu1 %1326 }
 0x4f2   :  { %9862 = vst [vmem:[#allocation130_spill] sm:$0xff] %v6981_v25 }
 0x4f3   :  { %9863 = vst [vmem:[#allocation131_spill] sm:$0xff] %v6983_v22 }
 0x4f8   :  { %v6985_v21 = vpop.permute.xlu0 %1324  ;;  %v6987_v41 = vpop.permute.xlu2 %1340 }
 0x4f9   :  { %9864 = vst [vmem:[#allocation132_spill] sm:$0xff] %v6985_v21  ;;  %v6989_v26 = vpop.permute.xlu1 %1332 }
 0x4fa   :  { %9865 = vst [vmem:[#allocation133_spill] sm:$0xff] %v6987_v41 }
 0x4fb   :  { %9866 = vst [vmem:[#allocation134_spill] sm:$0xff] %v6989_v26 }
 0x500   :  { %v6991_v29 = vpop.permute.xlu0 %1330  ;;  %v6993_v16 = vpop.permute.xlu2 %1346 }
 0x501   :  { %9867 = vst [vmem:[#allocation135_spill] sm:$0xff] %v6991_v29  ;;  %v6995_v27 = vpop.permute.xlu1 %1338 }
 0x502   :  { %9868 = vst [vmem:[#allocation136_spill] sm:$0xff] %v6993_v16 }
 0x503   :  { %9869 = vst [vmem:[#allocation137_spill] sm:$0xff] %v6995_v27 }
 0x508   :  { %v6997_v24 = vpop.permute.xlu0 %1336  ;;  %v1390_v30 = vpop.permute.xlu2 %1389 }
 0x509   :  { %9870 = vst [vmem:[#allocation138_spill] sm:$0xff] %v6997_v24  ;;  %v1446_v11 = vmul.f32 %v1390_v30, %v6284_v62  ;;  %v7000_v25 = vpop.permute.xlu1 %1344 }
 0x50a   :  { %9871 = vst [vmem:[#allocation139_spill] sm:$0xff] %v7000_v25  ;;  %v5923_v25 = vmov 9  }
 0x50b   :  { %1480 = vrot.lane.b32.xlu1 %v1446_v11, %s5922_s11  ;;  %5679 = vset.pattern.permute.xlu0 %v5923_v25 }
 0x50c   :  { %5680 = vset.pattern.permute.xlu1 %v5923_v25  ;;  %5681 = vset.pattern.permute.xlu2 %v5923_v25 }
 0x510   :  { %v7003_v22 = vpop.permute.xlu0 %1342  ;;  %v1398_v41 = vpop.permute.xlu2 %1397 }
 0x511   :  { %v1386_v26 = vpop.permute.xlu1 %1385  ;;  %v1448_v21 = vmul.f32 %v1398_v41, %v6317_v6 }
 0x512   :  { %v1445_v29 = vmul.f32 %v1386_v26, %v6304_v33 }
 0x514   :  { %1478 = vrot.lane.b32.xlu0 %v1445_v29, %s5922_s11 }
 0x518   :  { %v1382_v16 = vpop.permute.xlu0 %1381  ;;  %v1410_v30 = vpop.permute.xlu2 %1409 }
 0x519   :  { %v1444_v27 = vmul.f32 %v1382_v16, %v6298_v57  ;;  %v1394_v24 = vpop.permute.xlu1 %1393  ;;  %v1451_v16 = vmul.f32 %v1410_v30, %v6336_v0 }
 0x51a   :  { %v1447_v26 = vmul.f32 %v1394_v24, %v6321_v4 }
 0x51b   :  { %1476 = vrot.lane.b32.xlu2 %v1444_v27, %s5922_s11 }
 0x51c   :  { %1484 = vrot.lane.b32.xlu0 %v1448_v21, %s5922_s11 }
 0x520   :  { %v1402_v11 = vpop.permute.xlu0 %1401  ;;  %v1422_v27 = vpop.permute.xlu2 %1421 }
 0x521   :  { %v1449_v29 = vmul.f32 %v1402_v11, %v6308_v50  ;;  %v1406_v36 = vpop.permute.xlu1 %1405  ;;  %v1454_v7 = vmul.f32 %v1422_v27, %v6356_v9 }
 0x522   :  { %v1450_v21 = vmul.f32 %v1406_v36, %v6340_v5 }
 0x523   :  { %1486 = vrot.lane.b32.xlu1 %v1449_v29, %s5922_s11  ;;  %1482 = vrot.lane.b32.xlu2 %v1447_v26, %s5922_s11 }
 0x524   :  { %1490 = vrot.lane.b32.xlu0 %v1451_v16, %s5922_s11 }
 0x528   :  { %v1414_v41 = vpop.permute.xlu0 %1413  ;;  %v1434_v30 = vpop.permute.xlu2 %1433 }
 0x529   :  { %v1452_v25 = vmul.f32 %v1414_v41, %v6326_v42  ;;  %v1418_v24 = vpop.permute.xlu1 %1417  ;;  %v1457_v16 = vmul.f32 %v1434_v30, %v6377_v12 }
 0x52a   :  { %v1453_v26 = vmul.f32 %v1418_v24, %v6361_v10 }
 0x52b   :  { %1492 = vrot.lane.b32.xlu1 %v1452_v25, %s5922_s11  ;;  %1488 = vrot.lane.b32.xlu2 %v1450_v21, %s5922_s11 }
 0x52c   :  { %1496 = vrot.lane.b32.xlu0 %v1454_v7, %s5922_s11 }
 0x530   :  { %v1426_v11 = vpop.permute.xlu0 %1425 }
 0x531   :  { %v1455_v29 = vmul.f32 %v1426_v11, %v6345_v34  ;;  %v1430_v36 = vpop.permute.xlu1 %1429 }
 0x532   :  { %v1456_v41 = vmul.f32 %v1430_v36, %v6382_v13 }
 0x533   :  { %1498 = vrot.lane.b32.xlu1 %v1455_v29, %s5922_s11  ;;  %1494 = vrot.lane.b32.xlu2 %v1453_v26, %s5922_s11 }
 0x534   :  { %1502 = vrot.lane.b32.xlu0 %v1457_v16, %s5922_s11 }
 0x538   :  { %v1438_v27 = vpop.permute.xlu0 %1437 }
 0x539   :  { %v1458_v7 = vmul.f32 %v1438_v27, %v6366_v43  ;;  %v1442_v21 = vpop.permute.xlu1 %1441 }
 0x53a   :  { %v1459_v25 = vmul.f32 %v1442_v21, %v6392_v14 }
 0x53b   :  { %1504 = vrot.lane.b32.xlu1 %v1458_v7, %s5922_s11  ;;  %1500 = vrot.lane.b32.xlu2 %v1456_v41, %s5922_s11 }
 0x53c   :  { %1541 = vperm.xlu0 %5679, %v6796_v2  }
 0x543   :  { %1545 = vperm.xlu1 %5680, %v6803_v37   ;;  %1506 = vrot.lane.b32.xlu2 %v1459_v25, %s5922_s11 }
 0x544   :  { %1561 = vperm.xlu0 %5679, %v6810_v45  }
 0x54b   :  { %1553 = vperm.xlu1 %5680, %v6816_v31   ;;  %1549 = vperm.xlu2 %5681, %v6822_v32  }
 0x54c   :  { %1573 = vperm.xlu0 %5679, %v6828_v3  }
 0x553   :  { %1565 = vperm.xlu1 %5680, %v6834_v48   ;;  %1557 = vperm.xlu2 %5681, %v6840_v54  }
 0x554   :  { %1585 = vperm.xlu0 %5679, %v6846_v18  }
 0x55b   :  { %1577 = vperm.xlu1 %5680, %v6852_v8   ;;  %1569 = vperm.xlu2 %5681, %v6858_v39  }
 0x55c   :  { %1597 = vperm.xlu0 %5679, %v6864_v49  }
 0x563   :  { %1589 = vperm.xlu1 %5680, %v6870_v19   ;;  %1581 = vperm.xlu2 %5681, %v6876_v23  }
 0x56b   :  { %1601 = vperm.xlu1 %5680, %v6882_v17   ;;  %1593 = vperm.xlu2 %5681, %v6888_v20  }
 0x575   :  { %v7051_v24 = vpop.permute.xlu2 %1476 }
 0x576   :  { %9872 = vst [vmem:[#allocation140_spill] sm:$0xff] %v7051_v24 }
 0x57d   :  { %v7053_v30 = vpop.permute.xlu2 %1482  ;;  %v7059_v29 = vpop.permute.xlu1 %1480 }
 0x57e   :  { %9873 = vst [vmem:[#allocation141_spill] sm:$0xff] %v7053_v30 }
 0x57f   :  { %9876 = vst [vmem:[#allocation144_spill] sm:$0xff] %v7059_v29 }
 0x585   :  { %v7055_v11 = vpop.permute.xlu2 %1488 }
 0x586   :  { %9874 = vst [vmem:[#allocation142_spill] sm:$0xff] %v7055_v11  ;;  %v7057_v26 = vpop.permute.xlu0 %1478 }
 0x587   :  { %9875 = vst [vmem:[#allocation143_spill] sm:$0xff] %v7057_v26  ;;  %v5925_v26 = vmov 10  }
 0x588   :  { %5683 = vset.pattern.permute.xlu1 %v5925_v26  ;;  %5682 = vset.pattern.permute.xlu0 %v5925_v26 }
 0x589   :  { %5684 = vset.pattern.permute.xlu2 %v5925_v26 }
 0x58d   :  { %v7061_v16 = vpop.permute.xlu2 %1494 }
 0x58e   :  { %9877 = vst [vmem:[#allocation145_spill] sm:$0xff] %v7061_v16  ;;  %v7063_v36 = vpop.permute.xlu0 %1484 }
 0x58f   :  { %9878 = vst [vmem:[#allocation146_spill] sm:$0xff] %v7063_v36 }
 0x595   :  { %v7065_v27 = vpop.permute.xlu2 %1500  ;;  %v7067_v41 = vpop.permute.xlu1 %1486 }
 0x596   :  { %9879 = vst [vmem:[#allocation147_spill] sm:$0xff] %v7065_v27  ;;  %v7069_v7 = vpop.permute.xlu0 %1490 }
 0x597   :  { %9880 = vst [vmem:[#allocation148_spill] sm:$0xff] %v7067_v41 }
 0x598   :  { %9881 = vst [vmem:[#allocation149_spill] sm:$0xff] %v7069_v7 }
 0x59d   :  { %v7071_v21 = vpop.permute.xlu2 %1506  ;;  %v7073_v25 = vpop.permute.xlu1 %1492 }
 0x59e   :  { %9882 = vst [vmem:[#allocation150_spill] sm:$0xff] %v7071_v21  ;;  %v7075_v30 = vpop.permute.xlu0 %1496 }
 0x59f   :  { %9883 = vst [vmem:[#allocation151_spill] sm:$0xff] %v7073_v25 }
 0x5a0   :  { %9884 = vst [vmem:[#allocation152_spill] sm:$0xff] %v7075_v30 }
 0x5a5   :  { %v1550_v11 = vpop.permute.xlu2 %1549  ;;  %v7077_v24 = vpop.permute.xlu1 %1498 }
 0x5a6   :  { %9885 = vst [vmem:[#allocation153_spill] sm:$0xff] %v7077_v24  ;;  %v7079_v29 = vpop.permute.xlu0 %1502  ;;  %v1606_v16 = vmul.f32 %v1550_v11, %v6284_v62 }
 0x5a8   :  { %1640 = vrot.lane.b32.xlu1 %v1606_v16, %s5924_s12 }
 0x5ad   :  { %v7083_v27 = vpop.permute.xlu1 %1504  ;;  %v1558_v25 = vpop.permute.xlu2 %1557 }
 0x5ae   :  { %9886 = vst [vmem:[#allocation154_spill] sm:$0xff] %v7083_v27  ;;  %v1542_v41 = vpop.permute.xlu0 %1541  ;;  %v1608_v16 = vmul.f32 %v1558_v25, %v6317_v6 }
 0x5af   :  { %v1604_v7 = vmul.f32 %v1542_v41, %v6298_v57 }
 0x5b1   :  { %1636 = vrot.lane.b32.xlu2 %v1604_v7, %s5924_s12 }
 0x5b5   :  { %v1546_v21 = vpop.permute.xlu1 %1545  ;;  %v1570_v27 = vpop.permute.xlu2 %1569 }
 0x5b6   :  { %v1562_v30 = vpop.permute.xlu0 %1561  ;;  %v1605_v36 = vmul.f32 %v1546_v21, %v6304_v33  ;;  %v1611_v26 = vmul.f32 %v1570_v27, %v6336_v0 }
 0x5b7   :  { %v1609_v24 = vmul.f32 %v1562_v30, %v6308_v50 }
 0x5b8   :  { %1638 = vrot.lane.b32.xlu0 %v1605_v36, %s5924_s12 }
 0x5b9   :  { %1646 = vrot.lane.b32.xlu1 %v1609_v24, %s5924_s12 }
 0x5bd   :  { %v1554_v11 = vpop.permute.xlu1 %1553  ;;  %v1582_v25 = vpop.permute.xlu2 %1581 }
 0x5be   :  { %v1574_v41 = vpop.permute.xlu0 %1573  ;;  %v1607_v7 = vmul.f32 %v1554_v11, %v6321_v4 }
 0x5bf   :  { %v1612_v1 = vmul.f32 %v1574_v41, %v6326_v42 }
 0x5c0   :  { %1644 = vrot.lane.b32.xlu0 %v1608_v16, %s5924_s12  ;;  %1642 = vrot.lane.b32.xlu2 %v1607_v7, %s5924_s12  ;;  %v1614_v16 = vmul.f32 %v1582_v25, %v6356_v9 }
 0x5c1   :  { %1652 = vrot.lane.b32.xlu1 %v1612_v1, %s5924_s12 }
 0x5c5   :  { %v1566_v30 = vpop.permute.xlu1 %1565  ;;  %v1594_v7 = vpop.permute.xlu2 %1593 }
 0x5c6   :  { %v1586_v36 = vpop.permute.xlu0 %1585  ;;  %v1610_v24 = vmul.f32 %v1566_v30, %v6340_v5 }
 0x5c7   :  { %v1615_v21 = vmul.f32 %v1586_v36, %v6345_v34 }
 0x5c8   :  { %1650 = vrot.lane.b32.xlu0 %v1611_v26, %s5924_s12  ;;  %1648 = vrot.lane.b32.xlu2 %v1610_v24, %s5924_s12  ;;  %v1617_v26 = vmul.f32 %v1594_v7, %v6377_v12 }
 0x5c9   :  { %1658 = vrot.lane.b32.xlu1 %v1615_v21, %s5924_s12 }
 0x5cd   :  { %v1578_v11 = vpop.permute.xlu1 %1577 }
 0x5ce   :  { %v1598_v41 = vpop.permute.xlu0 %1597  ;;  %v1613_v1 = vmul.f32 %v1578_v11, %v6361_v10 }
 0x5cf   :  { %v1618_v27 = vmul.f32 %v1598_v41, %v6366_v43 }
 0x5d0   :  { %1656 = vrot.lane.b32.xlu0 %v1614_v16, %s5924_s12  ;;  %1654 = vrot.lane.b32.xlu2 %v1613_v1, %s5924_s12 }
 0x5d1   :  { %1664 = vrot.lane.b32.xlu1 %v1618_v27, %s5924_s12 }
 0x5d5   :  { %v1590_v30 = vpop.permute.xlu1 %1589 }
 0x5d6   :  { %v1616_v36 = vmul.f32 %v1590_v30, %v6382_v13 }
 0x5d8   :  { %1662 = vrot.lane.b32.xlu0 %v1617_v26, %s5924_s12  ;;  %1660 = vrot.lane.b32.xlu2 %v1616_v36, %s5924_s12 }
 0x5d9   :  { %1705 = vperm.xlu1 %5683, %v6803_v37  }
 0x5dd   :  { %v1602_v24 = vpop.permute.xlu1 %1601 }
 0x5de   :  { %v1619_v21 = vmul.f32 %v1602_v24, %v6392_v14 }
 0x5e0   :  { %1701 = vperm.xlu0 %5682, %v6796_v2   ;;  %1666 = vrot.lane.b32.xlu2 %v1619_v21, %s5924_s12 }
 0x5e1   :  { %1713 = vperm.xlu1 %5683, %v6816_v31  }
 0x5e8   :  { %1721 = vperm.xlu0 %5682, %v6810_v45   ;;  %1709 = vperm.xlu2 %5684, %v6822_v32  }
 0x5e9   :  { %1725 = vperm.xlu1 %5683, %v6834_v48  }
 0x5f0   :  { %1733 = vperm.xlu0 %5682, %v6828_v3   ;;  %1717 = vperm.xlu2 %5684, %v6840_v54  }
 0x5f1   :  { %1737 = vperm.xlu1 %5683, %v6852_v8  }
 0x5f8   :  { %1745 = vperm.xlu0 %5682, %v6846_v18   ;;  %1729 = vperm.xlu2 %5684, %v6858_v39  }
 0x5f9   :  { %1749 = vperm.xlu1 %5683, %v6870_v19  }
 0x600   :  { %1757 = vperm.xlu0 %5682, %v6864_v49   ;;  %1741 = vperm.xlu2 %5684, %v6876_v23  }
 0x601   :  { %1761 = vperm.xlu1 %5683, %v6882_v17  }
 0x608   :  { %1753 = vperm.xlu2 %5684, %v6888_v20  }
 0x60b   :  { %v7131_v25 = vpop.permute.xlu2 %1636 }
 0x60c   :  { %9887 = vst [vmem:[#allocation155_spill] sm:$0xff] %v7131_v25 }
 0x61a   :  { %v7133_v11 = vpop.permute.xlu2 %1642  ;;  %v7137_v41 = vpop.permute.xlu1 %1640 }
 0x61b   :  { %9888 = vst [vmem:[#allocation156_spill] sm:$0xff] %v7133_v11 }
 0x61c   :  { %9890 = vst [vmem:[#allocation158_spill] sm:$0xff] %v7137_v41 }
 0x622   :  { %v7135_v16 = vpop.permute.xlu2 %1648 }
 0x623   :  { %9889 = vst [vmem:[#allocation157_spill] sm:$0xff] %v7135_v16 }
 0x62a   :  { %v7139_v1 = vpop.permute.xlu0 %1638  ;;  %v7141_v27 = vpop.permute.xlu2 %1654 }
 0x62b   :  { %9891 = vst [vmem:[#allocation159_spill] sm:$0xff] %v7139_v1  ;;  %v7143_v7 = vpop.permute.xlu1 %1646 }
 0x62c   :  { %9892 = vst [vmem:[#allocation160_spill] sm:$0xff] %v7141_v27 }
 0x62d   :  { %9893 = vst [vmem:[#allocation161_spill] sm:$0xff] %v7143_v7 }
 0x632   :  { %v7145_v30 = vpop.permute.xlu0 %1644  ;;  %v7147_v26 = vpop.permute.xlu2 %1660 }
 0x633   :  { %9894 = vst [vmem:[#allocation162_spill] sm:$0xff] %v7145_v30  ;;  %v7149_v36 = vpop.permute.xlu1 %1652 }
 0x634   :  { %9895 = vst [vmem:[#allocation163_spill] sm:$0xff] %v7147_v26 }
 0x635   :  { %9896 = vst [vmem:[#allocation164_spill] sm:$0xff] %v7149_v36 }
 0x63a   :  { %v7151_v24 = vpop.permute.xlu0 %1650  ;;  %v7153_v21 = vpop.permute.xlu2 %1666 }
 0x63b   :  { %9897 = vst [vmem:[#allocation165_spill] sm:$0xff] %v7151_v24  ;;  %v7155_v11 = vpop.permute.xlu1 %1658 }
 0x63c   :  { %9898 = vst [vmem:[#allocation166_spill] sm:$0xff] %v7153_v21 }
 0x63d   :  { %9899 = vst [vmem:[#allocation167_spill] sm:$0xff] %v7155_v11 }
 0x642   :  { %v7157_v16 = vpop.permute.xlu0 %1656  ;;  %v1710_v41 = vpop.permute.xlu2 %1709 }
 0x643   :  { %9900 = vst [vmem:[#allocation168_spill] sm:$0xff] %v7157_v16  ;;  %v1766_v25 = vmul.f32 %v1710_v41, %v6284_v62  ;;  %v7160_v27 = vpop.permute.xlu1 %1664 }
 0x644   :  { %9901 = vst [vmem:[#allocation169_spill] sm:$0xff] %v7160_v27  ;;  %v5927_v27 = vmov 11  }
 0x645   :  { %1800 = vrot.lane.b32.xlu1 %v1766_v25, %s5926_s13  ;;  %5685 = vset.pattern.permute.xlu0 %v5927_v27 }
 0x646   :  { %5686 = vset.pattern.permute.xlu1 %v5927_v27  ;;  %5687 = vset.pattern.permute.xlu2 %v5927_v27 }
 0x64a   :  { %v7163_v7 = vpop.permute.xlu0 %1662  ;;  %v1718_v26 = vpop.permute.xlu2 %1717 }
 0x64b   :  { %v1706_v36 = vpop.permute.xlu1 %1705  ;;  %v1768_v30 = vmul.f32 %v1718_v26, %v6317_v6 }
 0x64c   :  { %v1765_v24 = vmul.f32 %v1706_v36, %v6304_v33 }
 0x64e   :  { %1798 = vrot.lane.b32.xlu0 %v1765_v24, %s5926_s13 }
 0x652   :  { %v1702_v21 = vpop.permute.xlu0 %1701  ;;  %v1730_v41 = vpop.permute.xlu2 %1729 }
 0x653   :  { %v1764_v11 = vmul.f32 %v1702_v21, %v6298_v57  ;;  %v1714_v16 = vpop.permute.xlu1 %1713  ;;  %v1771_v21 = vmul.f32 %v1730_v41, %v6336_v0 }
 0x654   :  { %v1767_v36 = vmul.f32 %v1714_v16, %v6321_v4 }
 0x655   :  { %1796 = vrot.lane.b32.xlu2 %v1764_v11, %s5926_s13 }
 0x656   :  { %1804 = vrot.lane.b32.xlu0 %v1768_v30, %s5926_s13 }
 0x65a   :  { %v1722_v25 = vpop.permute.xlu0 %1721  ;;  %v1742_v11 = vpop.permute.xlu2 %1741 }
 0x65b   :  { %v1769_v24 = vmul.f32 %v1722_v25, %v6308_v50  ;;  %v1726_v1 = vpop.permute.xlu1 %1725  ;;  %v1774_v51 = vmul.f32 %v1742_v11, %v6356_v9 }
 0x65c   :  { %v1770_v30 = vmul.f32 %v1726_v1, %v6340_v5 }
 0x65d   :  { %1806 = vrot.lane.b32.xlu1 %v1769_v24, %s5926_s13  ;;  %1802 = vrot.lane.b32.xlu2 %v1767_v36, %s5926_s13 }
 0x65e   :  { %1810 = vrot.lane.b32.xlu0 %v1771_v21, %s5926_s13 }
 0x662   :  { %v1734_v26 = vpop.permute.xlu0 %1733  ;;  %v1754_v41 = vpop.permute.xlu2 %1753 }
 0x663   :  { %v1772_v27 = vmul.f32 %v1734_v26, %v6326_v42  ;;  %v1738_v16 = vpop.permute.xlu1 %1737  ;;  %v1777_v21 = vmul.f32 %v1754_v41, %v6377_v12 }
 0x664   :  { %v1773_v36 = vmul.f32 %v1738_v16, %v6361_v10 }
 0x665   :  { %1812 = vrot.lane.b32.xlu1 %v1772_v27, %s5926_s13  ;;  %1808 = vrot.lane.b32.xlu2 %v1770_v30, %s5926_s13 }
 0x666   :  { %1816 = vrot.lane.b32.xlu0 %v1774_v51, %s5926_s13 }
 0x66a   :  { %v1746_v25 = vpop.permute.xlu0 %1745 }
 0x66b   :  { %v1775_v24 = vmul.f32 %v1746_v25, %v6345_v34  ;;  %v1750_v1 = vpop.permute.xlu1 %1749 }
 0x66c   :  { %v1776_v26 = vmul.f32 %v1750_v1, %v6382_v13 }
 0x66d   :  { %1818 = vrot.lane.b32.xlu1 %v1775_v24, %s5926_s13  ;;  %1814 = vrot.lane.b32.xlu2 %v1773_v36, %s5926_s13 }
 0x66e   :  { %1822 = vrot.lane.b32.xlu0 %v1777_v21, %s5926_s13 }
 0x672   :  { %v1758_v11 = vpop.permute.xlu0 %1757 }
 0x673   :  { %v1778_v51 = vmul.f32 %v1758_v11, %v6366_v43  ;;  %v1762_v30 = vpop.permute.xlu1 %1761 }
 0x674   :  { %v1779_v27 = vmul.f32 %v1762_v30, %v6392_v14 }
 0x675   :  { %1824 = vrot.lane.b32.xlu1 %v1778_v51, %s5926_s13  ;;  %1820 = vrot.lane.b32.xlu2 %v1776_v26, %s5926_s13 }
 0x676   :  { %1861 = vperm.xlu0 %5685, %v6796_v2  }
 0x67d   :  { %1865 = vperm.xlu1 %5686, %v6803_v37   ;;  %1826 = vrot.lane.b32.xlu2 %v1779_v27, %s5926_s13 }
 0x67e   :  { %1881 = vperm.xlu0 %5685, %v6810_v45  }
 0x685   :  { %1873 = vperm.xlu1 %5686, %v6816_v31   ;;  %1869 = vperm.xlu2 %5687, %v6822_v32  }
 0x686   :  { %1893 = vperm.xlu0 %5685, %v6828_v3  }
 0x68d   :  { %1885 = vperm.xlu1 %5686, %v6834_v48   ;;  %1877 = vperm.xlu2 %5687, %v6840_v54  }
 0x68e   :  { %1905 = vperm.xlu0 %5685, %v6846_v18  }
 0x695   :  { %1897 = vperm.xlu1 %5686, %v6852_v8   ;;  %1889 = vperm.xlu2 %5687, %v6858_v39  }
 0x696   :  { %1917 = vperm.xlu0 %5685, %v6864_v49  }
 0x69d   :  { %1909 = vperm.xlu1 %5686, %v6870_v19   ;;  %1901 = vperm.xlu2 %5687, %v6876_v23  }
 0x6a5   :  { %1921 = vperm.xlu1 %5686, %v6882_v17   ;;  %1913 = vperm.xlu2 %5687, %v6888_v20  }
 0x6af   :  { %v7211_v16 = vpop.permute.xlu2 %1796 }
 0x6b0   :  { %9902 = vst [vmem:[#allocation170_spill] sm:$0xff] %v7211_v16 }
 0x6b7   :  { %v7213_v41 = vpop.permute.xlu2 %1802  ;;  %v7219_v24 = vpop.permute.xlu1 %1800 }
 0x6b8   :  { %9903 = vst [vmem:[#allocation171_spill] sm:$0xff] %v7213_v41 }
 0x6b9   :  { %9906 = vst [vmem:[#allocation174_spill] sm:$0xff] %v7219_v24 }
 0x6bf   :  { %v7215_v25 = vpop.permute.xlu2 %1808 }
 0x6c0   :  { %9904 = vst [vmem:[#allocation172_spill] sm:$0xff] %v7215_v25  ;;  %v7217_v36 = vpop.permute.xlu0 %1798 }
 0x6c1   :  { %9905 = vst [vmem:[#allocation173_spill] sm:$0xff] %v7217_v36  ;;  %v5929_v36 = vmov 12  }
 0x6c2   :  { %5689 = vset.pattern.permute.xlu1 %v5929_v36  ;;  %5688 = vset.pattern.permute.xlu0 %v5929_v36 }
 0x6c3   :  { %5690 = vset.pattern.permute.xlu2 %v5929_v36 }
 0x6c7   :  { %v7221_v21 = vpop.permute.xlu2 %1814 }
 0x6c8   :  { %9907 = vst [vmem:[#allocation175_spill] sm:$0xff] %v7221_v21  ;;  %v7223_v1 = vpop.permute.xlu0 %1804 }
 0x6c9   :  { %9908 = vst [vmem:[#allocation176_spill] sm:$0xff] %v7223_v1 }
 0x6cf   :  { %v7225_v11 = vpop.permute.xlu2 %1820  ;;  %v7227_v26 = vpop.permute.xlu1 %1806 }
 0x6d0   :  { %9909 = vst [vmem:[#allocation177_spill] sm:$0xff] %v7225_v11  ;;  %v7229_v51 = vpop.permute.xlu0 %1810 }
 0x6d1   :  { %9910 = vst [vmem:[#allocation178_spill] sm:$0xff] %v7227_v26 }
 0x6d2   :  { %9911 = vst [vmem:[#allocation179_spill] sm:$0xff] %v7229_v51 }
 0x6d7   :  { %v7231_v30 = vpop.permute.xlu2 %1826  ;;  %v7233_v27 = vpop.permute.xlu1 %1812 }
 0x6d8   :  { %9912 = vst [vmem:[#allocation180_spill] sm:$0xff] %v7231_v30  ;;  %v7235_v41 = vpop.permute.xlu0 %1816 }
 0x6d9   :  { %9913 = vst [vmem:[#allocation181_spill] sm:$0xff] %v7233_v27 }
 0x6da   :  { %9914 = vst [vmem:[#allocation182_spill] sm:$0xff] %v7235_v41 }
 0x6df   :  { %v1870_v25 = vpop.permute.xlu2 %1869  ;;  %v7237_v16 = vpop.permute.xlu1 %1818 }
 0x6e0   :  { %9915 = vst [vmem:[#allocation183_spill] sm:$0xff] %v7237_v16  ;;  %v7239_v24 = vpop.permute.xlu0 %1822  ;;  %v1926_v21 = vmul.f32 %v1870_v25, %v6284_v62 }
 0x6e2   :  { %1960 = vrot.lane.b32.xlu1 %v1926_v21, %s5928_s14 }
 0x6e7   :  { %v7243_v11 = vpop.permute.xlu1 %1824  ;;  %v1878_v27 = vpop.permute.xlu2 %1877 }
 0x6e8   :  { %9916 = vst [vmem:[#allocation184_spill] sm:$0xff] %v7243_v11  ;;  %v1862_v26 = vpop.permute.xlu0 %1861  ;;  %v1928_v21 = vmul.f32 %v1878_v27, %v6317_v6 }
 0x6e9   :  { %v1924_v51 = vmul.f32 %v1862_v26, %v6298_v57 }
 0x6eb   :  { %1956 = vrot.lane.b32.xlu2 %v1924_v51, %s5928_s14 }
 0x6ef   :  { %v1866_v30 = vpop.permute.xlu1 %1865  ;;  %v1890_v11 = vpop.permute.xlu2 %1889 }
 0x6f0   :  { %v1882_v41 = vpop.permute.xlu0 %1881  ;;  %v1925_v1 = vmul.f32 %v1866_v30, %v6304_v33  ;;  %v1931_v36 = vmul.f32 %v1890_v11, %v6336_v0 }
 0x6f1   :  { %v1929_v16 = vmul.f32 %v1882_v41, %v6308_v50 }
 0x6f2   :  { %1958 = vrot.lane.b32.xlu0 %v1925_v1, %s5928_s14 }
 0x6f3   :  { %1966 = vrot.lane.b32.xlu1 %v1929_v16, %s5928_s14 }
 0x6f7   :  { %v1874_v25 = vpop.permute.xlu1 %1873  ;;  %v1902_v27 = vpop.permute.xlu2 %1901 }
 0x6f8   :  { %v1894_v26 = vpop.permute.xlu0 %1893  ;;  %v1927_v51 = vmul.f32 %v1874_v25, %v6321_v4 }
 0x6f9   :  { %v1932_v63 = vmul.f32 %v1894_v26, %v6326_v42 }
 0x6fa   :  { %1964 = vrot.lane.b32.xlu0 %v1928_v21, %s5928_s14  ;;  %1962 = vrot.lane.b32.xlu2 %v1927_v51, %s5928_s14  ;;  %v1934_v21 = vmul.f32 %v1902_v27, %v6356_v9 }
 0x6fb   :  { %1972 = vrot.lane.b32.xlu1 %v1932_v63, %s5928_s14 }
 0x6ff   :  { %v1886_v41 = vpop.permute.xlu1 %1885  ;;  %v1914_v51 = vpop.permute.xlu2 %1913 }
 0x700   :  { %v1906_v1 = vpop.permute.xlu0 %1905  ;;  %v1930_v16 = vmul.f32 %v1886_v41, %v6340_v5 }
 0x701   :  { %v1935_v30 = vmul.f32 %v1906_v1, %v6345_v34 }
 0x702   :  { %1970 = vrot.lane.b32.xlu0 %v1931_v36, %s5928_s14  ;;  %1968 = vrot.lane.b32.xlu2 %v1930_v16, %s5928_s14  ;;  %v1937_v36 = vmul.f32 %v1914_v51, %v6377_v12 }
 0x703   :  { %1978 = vrot.lane.b32.xlu1 %v1935_v30, %s5928_s14 }
 0x707   :  { %v1898_v25 = vpop.permute.xlu1 %1897 }
 0x708   :  { %v1918_v26 = vpop.permute.xlu0 %1917  ;;  %v1933_v63 = vmul.f32 %v1898_v25, %v6361_v10 }
 0x709   :  { %v1938_v11 = vmul.f32 %v1918_v26, %v6366_v43 }
 0x70a   :  { %1976 = vrot.lane.b32.xlu0 %v1934_v21, %s5928_s14  ;;  %1974 = vrot.lane.b32.xlu2 %v1933_v63, %s5928_s14 }
 0x70b   :  { %1984 = vrot.lane.b32.xlu1 %v1938_v11, %s5928_s14 }
 0x70f   :  { %v1910_v41 = vpop.permute.xlu1 %1909 }
 0x710   :  { %v1936_v1 = vmul.f32 %v1910_v41, %v6382_v13 }
 0x712   :  { %1982 = vrot.lane.b32.xlu0 %v1937_v36, %s5928_s14  ;;  %1980 = vrot.lane.b32.xlu2 %v1936_v1, %s5928_s14 }
 0x713   :  { %2025 = vperm.xlu1 %5689, %v6803_v37  }
 0x717   :  { %v1922_v16 = vpop.permute.xlu1 %1921 }
 0x718   :  { %v1939_v30 = vmul.f32 %v1922_v16, %v6392_v14 }
 0x71a   :  { %2021 = vperm.xlu0 %5688, %v6796_v2   ;;  %1986 = vrot.lane.b32.xlu2 %v1939_v30, %s5928_s14 }
 0x71b   :  { %2033 = vperm.xlu1 %5689, %v6816_v31  }
 0x722   :  { %2041 = vperm.xlu0 %5688, %v6810_v45   ;;  %2029 = vperm.xlu2 %5690, %v6822_v32  }
 0x723   :  { %2045 = vperm.xlu1 %5689, %v6834_v48  }
 0x72a   :  { %2053 = vperm.xlu0 %5688, %v6828_v3   ;;  %2037 = vperm.xlu2 %5690, %v6840_v54  }
 0x72b   :  { %2057 = vperm.xlu1 %5689, %v6852_v8  }
 0x732   :  { %2065 = vperm.xlu0 %5688, %v6846_v18   ;;  %2049 = vperm.xlu2 %5690, %v6858_v39  }
 0x733   :  { %2069 = vperm.xlu1 %5689, %v6870_v19  }
 0x73a   :  { %2077 = vperm.xlu0 %5688, %v6864_v49   ;;  %2061 = vperm.xlu2 %5690, %v6876_v23  }
 0x73b   :  { %2081 = vperm.xlu1 %5689, %v6882_v17  }
 0x742   :  { %2073 = vperm.xlu2 %5690, %v6888_v20  }
 0x745   :  { %v7291_v27 = vpop.permute.xlu2 %1956 }
 0x746   :  { %9917 = vst [vmem:[#allocation185_spill] sm:$0xff] %v7291_v27 }
 0x754   :  { %v7293_v25 = vpop.permute.xlu2 %1962  ;;  %v7297_v26 = vpop.permute.xlu1 %1960 }
 0x755   :  { %9918 = vst [vmem:[#allocation186_spill] sm:$0xff] %v7293_v25 }
 0x756   :  { %9920 = vst [vmem:[#allocation188_spill] sm:$0xff] %v7297_v26 }
 0x75c   :  { %v7295_v21 = vpop.permute.xlu2 %1968 }
 0x75d   :  { %9919 = vst [vmem:[#allocation187_spill] sm:$0xff] %v7295_v21 }
 0x764   :  { %v7299_v63 = vpop.permute.xlu0 %1958  ;;  %v7301_v11 = vpop.permute.xlu2 %1974 }
 0x765   :  { %9921 = vst [vmem:[#allocation189_spill] sm:$0xff] %v7299_v63  ;;  %v7303_v51 = vpop.permute.xlu1 %1966 }
 0x766   :  { %9922 = vst [vmem:[#allocation190_spill] sm:$0xff] %v7301_v11 }
 0x767   :  { %9923 = vst [vmem:[#allocation191_spill] sm:$0xff] %v7303_v51 }
 0x76c   :  { %v7305_v41 = vpop.permute.xlu0 %1964  ;;  %v7307_v36 = vpop.permute.xlu2 %1980 }
 0x76d   :  { %9924 = vst [vmem:[#allocation192_spill] sm:$0xff] %v7305_v41  ;;  %v7309_v1 = vpop.permute.xlu1 %1972 }
 0x76e   :  { %9925 = vst [vmem:[#allocation193_spill] sm:$0xff] %v7307_v36 }
 0x76f   :  { %9926 = vst [vmem:[#allocation194_spill] sm:$0xff] %v7309_v1 }
 0x774   :  { %v7311_v16 = vpop.permute.xlu0 %1970  ;;  %v7313_v30 = vpop.permute.xlu2 %1986 }
 0x775   :  { %9927 = vst [vmem:[#allocation195_spill] sm:$0xff] %v7311_v16  ;;  %v7315_v25 = vpop.permute.xlu1 %1978 }
 0x776   :  { %9928 = vst [vmem:[#allocation196_spill] sm:$0xff] %v7313_v30 }
 0x777   :  { %9929 = vst [vmem:[#allocation197_spill] sm:$0xff] %v7315_v25 }
 0x77c   :  { %v7317_v21 = vpop.permute.xlu0 %1976  ;;  %v2030_v26 = vpop.permute.xlu2 %2029 }
 0x77d   :  { %9930 = vst [vmem:[#allocation198_spill] sm:$0xff] %v7317_v21  ;;  %v2086_v27 = vmul.f32 %v2030_v26, %v6284_v62  ;;  %v7320_v11 = vpop.permute.xlu1 %1984 }
 0x77e   :  { %9931 = vst [vmem:[#allocation199_spill] sm:$0xff] %v7320_v11  ;;  %v5931_v11 = vmov 13  }
 0x77f   :  { %2120 = vrot.lane.b32.xlu1 %v2086_v27, %s5930_s15  ;;  %5691 = vset.pattern.permute.xlu0 %v5931_v11 }
 0x780   :  { %5692 = vset.pattern.permute.xlu1 %v5931_v11  ;;  %5693 = vset.pattern.permute.xlu2 %v5931_v11 }
 0x784   :  { %v7323_v51 = vpop.permute.xlu0 %1982  ;;  %v2038_v36 = vpop.permute.xlu2 %2037 }
 0x785   :  { %v2026_v1 = vpop.permute.xlu1 %2025  ;;  %v2088_v41 = vmul.f32 %v2038_v36, %v6317_v6 }
 0x786   :  { %v2085_v16 = vmul.f32 %v2026_v1, %v6304_v33 }
 0x788   :  { %2118 = vrot.lane.b32.xlu0 %v2085_v16, %s5930_s15 }
 0x78c   :  { %v2022_v30 = vpop.permute.xlu0 %2021  ;;  %v2050_v26 = vpop.permute.xlu2 %2049 }
 0x78d   :  { %v2084_v25 = vmul.f32 %v2022_v30, %v6298_v57  ;;  %v2034_v21 = vpop.permute.xlu1 %2033  ;;  %v2091_v30 = vmul.f32 %v2050_v26, %v6336_v0 }
 0x78e   :  { %v2087_v1 = vmul.f32 %v2034_v21, %v6321_v4 }
 0x78f   :  { %2116 = vrot.lane.b32.xlu2 %v2084_v25, %s5930_s15 }
 0x790   :  { %2124 = vrot.lane.b32.xlu0 %v2088_v41, %s5930_s15 }
 0x794   :  { %v2042_v27 = vpop.permute.xlu0 %2041  ;;  %v2062_v25 = vpop.permute.xlu2 %2061 }
 0x795   :  { %v2089_v16 = vmul.f32 %v2042_v27, %v6308_v50  ;;  %v2046_v63 = vpop.permute.xlu1 %2045  ;;  %v2094_v58 = vmul.f32 %v2062_v25, %v6356_v9 }
 0x796   :  { %v2090_v41 = vmul.f32 %v2046_v63, %v6340_v5 }
 0x797   :  { %2126 = vrot.lane.b32.xlu1 %v2089_v16, %s5930_s15  ;;  %2122 = vrot.lane.b32.xlu2 %v2087_v1, %s5930_s15 }
 0x798   :  { %2130 = vrot.lane.b32.xlu0 %v2091_v30, %s5930_s15 }
 0x79c   :  { %v2054_v36 = vpop.permute.xlu0 %2053  ;;  %v2074_v26 = vpop.permute.xlu2 %2073 }
 0x79d   :  { %v2092_v11 = vmul.f32 %v2054_v36, %v6326_v42  ;;  %v2058_v21 = vpop.permute.xlu1 %2057  ;;  %v2097_v30 = vmul.f32 %v2074_v26, %v6377_v12 }
 0x79e   :  { %v2093_v1 = vmul.f32 %v2058_v21, %v6361_v10 }
 0x79f   :  { %2132 = vrot.lane.b32.xlu1 %v2092_v11, %s5930_s15  ;;  %2128 = vrot.lane.b32.xlu2 %v2090_v41, %s5930_s15 }
 0x7a0   :  { %2136 = vrot.lane.b32.xlu0 %v2094_v58, %s5930_s15 }
 0x7a4   :  { %v2066_v27 = vpop.permute.xlu0 %2065 }
 0x7a5   :  { %v2095_v16 = vmul.f32 %v2066_v27, %v6345_v34  ;;  %v2070_v63 = vpop.permute.xlu1 %2069 }
 0x7a6   :  { %v2096_v36 = vmul.f32 %v2070_v63, %v6382_v13 }
 0x7a7   :  { %2138 = vrot.lane.b32.xlu1 %v2095_v16, %s5930_s15  ;;  %2134 = vrot.lane.b32.xlu2 %v2093_v1, %s5930_s15 }
 0x7a8   :  { %2142 = vrot.lane.b32.xlu0 %v2097_v30, %s5930_s15 }
 0x7ac   :  { %v2078_v25 = vpop.permute.xlu0 %2077 }
 0x7ad   :  { %v2098_v58 = vmul.f32 %v2078_v25, %v6366_v43  ;;  %v2082_v41 = vpop.permute.xlu1 %2081 }
 0x7ae   :  { %v2099_v11 = vmul.f32 %v2082_v41, %v6392_v14 }
 0x7af   :  { %2144 = vrot.lane.b32.xlu1 %v2098_v58, %s5930_s15  ;;  %2140 = vrot.lane.b32.xlu2 %v2096_v36, %s5930_s15  ;;  %v5933_v58 = vmov 14  }
 0x7b0   :  { %2181 = vperm.xlu0 %5691, %v6796_v2  }
 0x7b7   :  { %2185 = vperm.xlu1 %5692, %v6803_v37   ;;  %2146 = vrot.lane.b32.xlu2 %v2099_v11, %s5930_s15 }
 0x7b8   :  { %2201 = vperm.xlu0 %5691, %v6810_v45  }
 0x7bf   :  { %2193 = vperm.xlu1 %5692, %v6816_v31   ;;  %2189 = vperm.xlu2 %5693, %v6822_v32  }
 0x7c0   :  { %2213 = vperm.xlu0 %5691, %v6828_v3  }
 0x7c7   :  { %2205 = vperm.xlu1 %5692, %v6834_v48   ;;  %2197 = vperm.xlu2 %5693, %v6840_v54  }
 0x7c8   :  { %2225 = vperm.xlu0 %5691, %v6846_v18  }
 0x7cf   :  { %2217 = vperm.xlu1 %5692, %v6852_v8   ;;  %2209 = vperm.xlu2 %5693, %v6858_v39  }
 0x7d0   :  { %2237 = vperm.xlu0 %5691, %v6864_v49  }
 0x7d7   :  { %2229 = vperm.xlu1 %5692, %v6870_v19   ;;  %2221 = vperm.xlu2 %5693, %v6876_v23  }
 0x7d8   :  { %5694 = vset.pattern.permute.xlu0 %v5933_v58 }
 0x7df   :  { %2241 = vperm.xlu1 %5692, %v6882_v17   ;;  %2233 = vperm.xlu2 %5693, %v6888_v20  }
 0x7e7   :  { %5695 = vset.pattern.permute.xlu1 %v5933_v58  ;;  %5696 = vset.pattern.permute.xlu2 %v5933_v58 }
 0x7e9   :  { %v7371_v2 = vpop.permute.xlu2 %2116 }
 0x7ea   :  { %9932 = vst [vmem:[#allocation200_spill] sm:$0xff] %v7371_v2 }
 0x7f1   :  { %v7373_v37 = vpop.permute.xlu2 %2122  ;;  %v7379_v32 = vpop.permute.xlu1 %2120 }
 0x7f2   :  { %9933 = vst [vmem:[#allocation201_spill] sm:$0xff] %v7373_v37  ;;  %v7522_v37 = vld [vmem:[%s9699_s1 + $0x78] sm:$0xff] }
 0x7f3   :  { %9936 = vst [vmem:[#allocation204_spill] sm:$0xff] %v7379_v32  ;;  %v7528_v32 = vld [vmem:[%s9699_s1 + $0x68] sm:$0xff] }
 0x7f9   :  { %v7375_v45 = vpop.permute.xlu2 %2128 }
 0x7fa   :  { %9934 = vst [vmem:[#allocation202_spill] sm:$0xff] %v7375_v45  ;;  %v7377_v31 = vpop.permute.xlu0 %2118  ;;  %v7510_v45 = vld [vmem:[%s9699_s1 + $0x70] sm:$0xff] }
 0x7fb   :  { %9935 = vst [vmem:[#allocation203_spill] sm:$0xff] %v7377_v31 }
 0x801   :  { %v7381_v3 = vpop.permute.xlu2 %2134 }
 0x802   :  { %9937 = vst [vmem:[#allocation205_spill] sm:$0xff] %v7381_v3  ;;  %v7383_v48 = vpop.permute.xlu0 %2124 }
 0x803   :  { %9938 = vst [vmem:[#allocation206_spill] sm:$0xff] %v7383_v48 }
 0x809   :  { %v7385_v19 = vpop.permute.xlu2 %2140  ;;  %v7387_v23 = vpop.permute.xlu1 %2126 }
 0x80a   :  { %9939 = vst [vmem:[#allocation207_spill] sm:$0xff] %v7385_v19  ;;  %v7389_v17 = vpop.permute.xlu0 %2130 }
 0x80b   :  { %9940 = vst [vmem:[#allocation208_spill] sm:$0xff] %v7387_v23  ;;  %v7516_v23 = vld [vmem:[%s9699_s1 + $0x50] sm:$0xff] }
 0x80c   :  { %9941 = vst [vmem:[#allocation209_spill] sm:$0xff] %v7389_v17 }
 0x811   :  { %v7391_v20 = vpop.permute.xlu2 %2146  ;;  %v7393_v54 = vpop.permute.xlu1 %2132 }
 0x812   :  { %9942 = vst [vmem:[#allocation210_spill] sm:$0xff] %v7391_v20  ;;  %v7395_v18 = vpop.permute.xlu0 %2136 }
 0x813   :  { %9943 = vst [vmem:[#allocation211_spill] sm:$0xff] %v7393_v54 }
 0x814   :  { %9944 = vst [vmem:[#allocation212_spill] sm:$0xff] %v7395_v18 }
 0x819   :  { %v2190_v8 = vpop.permute.xlu2 %2189  ;;  %v7397_v39 = vpop.permute.xlu1 %2138 }
 0x81a   :  { %9945 = vst [vmem:[#allocation213_spill] sm:$0xff] %v7397_v39  ;;  %v7399_v49 = vpop.permute.xlu0 %2142  ;;  %v2246_v21 = vmul.f32 %v2190_v8, %v6284_v62 }
 0x81c   :  { %2280 = vrot.lane.b32.xlu1 %v2246_v21, %s5932_s16 }
 0x821   :  { %v7403_v26 = vpop.permute.xlu1 %2144  ;;  %v2198_v16 = vpop.permute.xlu2 %2197 }
 0x822   :  { %9946 = vst [vmem:[#allocation214_spill] sm:$0xff] %v7403_v26  ;;  %v2182_v27 = vpop.permute.xlu0 %2181  ;;  %v2248_v11 = vmul.f32 %v2198_v16, %v6317_v6 }
 0x823   :  { %v2244_v1 = vmul.f32 %v2182_v27, %v6298_v57 }
 0x825   :  { %2276 = vrot.lane.b32.xlu2 %v2244_v1, %s5932_s16 }
 0x829   :  { %v2186_v30 = vpop.permute.xlu1 %2185  ;;  %v2210_v27 = vpop.permute.xlu2 %2209 }
 0x82a   :  { %v2202_v63 = vpop.permute.xlu0 %2201  ;;  %v2245_v25 = vmul.f32 %v2186_v30, %v6304_v33 }
 0x82b   :  { %v2249_v36 = vmul.f32 %v2202_v63, %v6308_v50  ;;  %v2251_v63 = vmul.f32 %v2210_v27, %v6336_v0 }
 0x82c   :  { %2278 = vrot.lane.b32.xlu0 %v2245_v25, %s5932_s16 }
 0x82d   :  { %2286 = vrot.lane.b32.xlu1 %v2249_v36, %s5932_s16 }
 0x831   :  { %v2194_v41 = vpop.permute.xlu1 %2193  ;;  %v2222_v58 = vpop.permute.xlu2 %2221 }
 0x832   :  { %v2214_v8 = vpop.permute.xlu0 %2213  ;;  %v2247_v21 = vmul.f32 %v2194_v41, %v6321_v4 }
 0x833   :  { %v2252_v1 = vmul.f32 %v2214_v8, %v6326_v42 }
 0x834   :  { %2284 = vrot.lane.b32.xlu0 %v2248_v11, %s5932_s16  ;;  %2282 = vrot.lane.b32.xlu2 %v2247_v21, %s5932_s16  ;;  %v2254_v11 = vmul.f32 %v2222_v58, %v6356_v9 }
 0x835   :  { %2292 = vrot.lane.b32.xlu1 %v2252_v1, %s5932_s16 }
 0x839   :  { %v2206_v30 = vpop.permute.xlu1 %2205  ;;  %v2234_v1 = vpop.permute.xlu2 %2233 }
 0x83a   :  { %v2226_v25 = vpop.permute.xlu0 %2225  ;;  %v2250_v36 = vmul.f32 %v2206_v30, %v6340_v5 }
 0x83b   :  { %v2255_v16 = vmul.f32 %v2226_v25, %v6345_v34 }
 0x83c   :  { %2290 = vrot.lane.b32.xlu0 %v2251_v63, %s5932_s16  ;;  %2288 = vrot.lane.b32.xlu2 %v2250_v36, %s5932_s16  ;;  %v2257_v63 = vmul.f32 %v2234_v1, %v6377_v12  ;;  %v7436_v36 = vld [vmem:[%s9699_s1 + $0x8] sm:$0xff]  ;;  %v7474_v1 = vld [vmem:[%s9699_s1 + $0x40] sm:$0xff] }
 0x83d   :  { %2298 = vrot.lane.b32.xlu1 %v2255_v16, %s5932_s16 }
 0x841   :  { %v2218_v41 = vpop.permute.xlu1 %2217 }
 0x842   :  { %v2238_v8 = vpop.permute.xlu0 %2237  ;;  %v2253_v21 = vmul.f32 %v2218_v41, %v6361_v10  ;;  %v7443_v41 = vld [vmem:[%s9699_s1] sm:$0xff] }
 0x843   :  { %v2258_v27 = vmul.f32 %v2238_v8, %v6366_v43  ;;  %v7456_v8 = vld [vmem:[%s9699_s1 + $0x28] sm:$0xff] }
 0x844   :  { %2296 = vrot.lane.b32.xlu0 %v2254_v11, %s5932_s16  ;;  %2294 = vrot.lane.b32.xlu2 %v2253_v21, %s5932_s16  ;;  %v7450_v11 = vld [vmem:[%s9699_s1 + $0x18] sm:$0xff]  ;;  %v7462_v21 = vld [vmem:[%s9699_s1 + $0x10] sm:$0xff] }
 0x845   :  { %2304 = vrot.lane.b32.xlu1 %v2258_v27, %s5932_s16  ;;  %v7468_v27 = vld [vmem:[%s9699_s1 + $0x30] sm:$0xff] }
 0x849   :  { %v2230_v30 = vpop.permute.xlu1 %2229 }
 0x84a   :  { %v2256_v25 = vmul.f32 %v2230_v30, %v6382_v13  ;;  %v7480_v30 = vld [vmem:[%s9699_s1 + $0x20] sm:$0xff] }
 0x84c   :  { %2302 = vrot.lane.b32.xlu0 %v2257_v63, %s5932_s16  ;;  %2300 = vrot.lane.b32.xlu2 %v2256_v25, %s5932_s16  ;;  %v7486_v63 = vld [vmem:[%s9699_s1 + $0x48] sm:$0xff]  ;;  %v7492_v25 = vld [vmem:[%s9699_s1 + $0x58] sm:$0xff] }
 0x84d   :  { %2345 = vperm.xlu1 %5695, %v7436_v36  }
 0x851   :  { %v2242_v16 = vpop.permute.xlu1 %2241 }
 0x852   :  { %v2259_v58 = vmul.f32 %v2242_v16, %v6392_v14  ;;  %v7498_v16 = vld [vmem:[%s9699_s1 + $0x38] sm:$0xff] }
 0x854   :  { %2341 = vperm.xlu0 %5694, %v7443_v41   ;;  %2306 = vrot.lane.b32.xlu2 %v2259_v58, %s5932_s16  ;;  %v7504_v58 = vld [vmem:[%s9699_s1 + $0x60] sm:$0xff]  ;;  %s5948_s16 = smov 107  }
 0x855   :  { %2353 = vperm.xlu1 %5695, %v7450_v11  }
 0x85c   :  { %2361 = vperm.xlu0 %5694, %v7456_v8   ;;  %2349 = vperm.xlu2 %5696, %v7462_v21  }
 0x85d   :  { %2365 = vperm.xlu1 %5695, %v7468_v27  }
 0x864   :  { %2373 = vperm.xlu0 %5694, %v7474_v1   ;;  %2357 = vperm.xlu2 %5696, %v7480_v30  }
 0x865   :  { %2377 = vperm.xlu1 %5695, %v7486_v63  }
 0x86c   :  { %2385 = vperm.xlu0 %5694, %v7492_v25   ;;  %2369 = vperm.xlu2 %5696, %v7498_v16  }
 0x86d   :  { %2389 = vperm.xlu1 %5695, %v7504_v58  }
 0x874   :  { %2397 = vperm.xlu0 %5694, %v7510_v45   ;;  %2381 = vperm.xlu2 %5696, %v7516_v23  }
 0x875   :  { %2401 = vperm.xlu1 %5695, %v7522_v37  }
 0x87c   :  { %2393 = vperm.xlu2 %5696, %v7528_v32  }
 0x87f   :  { %v7531_v2 = vpop.permute.xlu2 %2276 }
 0x880   :  { %9947 = vst [vmem:[#allocation215_spill] sm:$0xff] %v7531_v2 }
 0x88e   :  { %v7533_v26 = vpop.permute.xlu2 %2282  ;;  %v7537_v18 = vpop.permute.xlu1 %2280 }
 0x88f   :  { %9948 = vst [vmem:[#allocation216_spill] sm:$0xff] %v7533_v26 }
 0x890   :  { %9950 = vst [vmem:[#allocation218_spill] sm:$0xff] %v7537_v18 }
 0x896   :  { %v7535_v39 = vpop.permute.xlu2 %2288 }
 0x897   :  { %9949 = vst [vmem:[#allocation217_spill] sm:$0xff] %v7535_v39 }
 0x89e   :  { %v7539_v54 = vpop.permute.xlu0 %2278  ;;  %v7541_v20 = vpop.permute.xlu2 %2294 }
 0x89f   :  { %9951 = vst [vmem:[#allocation219_spill] sm:$0xff] %v7539_v54  ;;  %v7543_v17 = vpop.permute.xlu1 %2286 }
 0x8a0   :  { %9952 = vst [vmem:[#allocation220_spill] sm:$0xff] %v7541_v20 }
 0x8a1   :  { %9953 = vst [vmem:[#allocation221_spill] sm:$0xff] %v7543_v17 }
 0x8a6   :  { %v7545_v19 = vpop.permute.xlu0 %2284  ;;  %v7547_v48 = vpop.permute.xlu2 %2300 }
 0x8a7   :  { %9954 = vst [vmem:[#allocation222_spill] sm:$0xff] %v7545_v19  ;;  %v7549_v3 = vpop.permute.xlu1 %2292 }
 0x8a8   :  { %9955 = vst [vmem:[#allocation223_spill] sm:$0xff] %v7547_v48 }
 0x8a9   :  { %9956 = vst [vmem:[#allocation224_spill] sm:$0xff] %v7549_v3 }
 0x8ae   :  { %v7551_v31 = vpop.permute.xlu0 %2290  ;;  %v7553_v2 = vpop.permute.xlu2 %2306 }
 0x8af   :  { %9957 = vst [vmem:[#allocation225_spill] sm:$0xff] %v7551_v31  ;;  %v7555_v26 = vpop.permute.xlu1 %2298 }
 0x8b0   :  { %9958 = vst [vmem:[#allocation226_spill] sm:$0xff] %v7553_v2 }
 0x8b1   :  { %9959 = vst [vmem:[#allocation227_spill] sm:$0xff] %v7555_v26 }
 0x8b6   :  { %v7557_v39 = vpop.permute.xlu0 %2296  ;;  %v2350_v18 = vpop.permute.xlu2 %2349 }
 0x8b7   :  { %9960 = vst [vmem:[#allocation228_spill] sm:$0xff] %v7557_v39  ;;  %v2406_v54 = vmul.f32 %v2350_v18, %v6284_v62  ;;  %v7560_v20 = vpop.permute.xlu1 %2304 }
 0x8b8   :  { %9961 = vst [vmem:[#allocation229_spill] sm:$0xff] %v7560_v20  ;;  %v5935_v20 = vmov 15  }
 0x8b9   :  { %2440 = vrot.lane.b32.xlu1 %v2406_v54, %s5934_s23  ;;  %5697 = vset.pattern.permute.xlu0 %v5935_v20 }
 0x8ba   :  { %5698 = vset.pattern.permute.xlu1 %v5935_v20  ;;  %5699 = vset.pattern.permute.xlu2 %v5935_v20 }
 0x8be   :  { %v7563_v17 = vpop.permute.xlu0 %2302  ;;  %v2358_v48 = vpop.permute.xlu2 %2357 }
 0x8bf   :  { %v2346_v3 = vpop.permute.xlu1 %2345  ;;  %v2408_v19 = vmul.f32 %v2358_v48, %v6317_v6 }
 0x8c0   :  { %v2405_v31 = vmul.f32 %v2346_v3, %v6304_v33 }
 0x8c2   :  { %2438 = vrot.lane.b32.xlu0 %v2405_v31, %s5934_s23 }
 0x8c6   :  { %v2342_v2 = vpop.permute.xlu0 %2341  ;;  %v2370_v18 = vpop.permute.xlu2 %2369 }
 0x8c7   :  { %v2404_v26 = vmul.f32 %v2342_v2, %v6298_v57  ;;  %v2354_v39 = vpop.permute.xlu1 %2353  ;;  %v2411_v2 = vmul.f32 %v2370_v18, %v6336_v0 }
 0x8c8   :  { %v2407_v3 = vmul.f32 %v2354_v39, %v6321_v4 }
 0x8c9   :  { %2436 = vrot.lane.b32.xlu2 %v2404_v26, %s5934_s23 }
 0x8ca   :  { %2444 = vrot.lane.b32.xlu0 %v2408_v19, %s5934_s23 }
 0x8ce   :  { %v2362_v54 = vpop.permute.xlu0 %2361  ;;  %v2382_v48 = vpop.permute.xlu2 %2381 }
 0x8cf   :  { %v2409_v31 = vmul.f32 %v2362_v54, %v6308_v50  ;;  %v2366_v60 = vpop.permute.xlu1 %2365  ;;  %v2414_v55 = vmul.f32 %v2382_v48, %v6356_v9 }
 0x8d0   :  { %v2410_v19 = vmul.f32 %v2366_v60, %v6340_v5 }
 0x8d1   :  { %2446 = vrot.lane.b32.xlu1 %v2409_v31, %s5934_s23  ;;  %2442 = vrot.lane.b32.xlu2 %v2407_v3, %s5934_s23 }
 0x8d2   :  { %2450 = vrot.lane.b32.xlu0 %v2411_v2, %s5934_s23 }
 0x8d6   :  { %v2374_v26 = vpop.permute.xlu0 %2373  ;;  %v2394_v18 = vpop.permute.xlu2 %2393 }
 0x8d7   :  { %v2412_v20 = vmul.f32 %v2374_v26, %v6326_v42  ;;  %v2378_v39 = vpop.permute.xlu1 %2377  ;;  %v2417_v2 = vmul.f32 %v2394_v18, %v6377_v12 }
 0x8d8   :  { %v2413_v3 = vmul.f32 %v2378_v39, %v6361_v10 }
 0x8d9   :  { %2452 = vrot.lane.b32.xlu1 %v2412_v20, %s5934_s23  ;;  %2448 = vrot.lane.b32.xlu2 %v2410_v19, %s5934_s23 }
 0x8da   :  { %2456 = vrot.lane.b32.xlu0 %v2414_v55, %s5934_s23 }
 0x8de   :  { %v2386_v54 = vpop.permute.xlu0 %2385 }
 0x8df   :  { %v2415_v31 = vmul.f32 %v2386_v54, %v6345_v34  ;;  %v2390_v60 = vpop.permute.xlu1 %2389 }
 0x8e0   :  { %v2416_v26 = vmul.f32 %v2390_v60, %v6382_v13 }
 0x8e1   :  { %2458 = vrot.lane.b32.xlu1 %v2415_v31, %s5934_s23  ;;  %2454 = vrot.lane.b32.xlu2 %v2413_v3, %s5934_s23 }
 0x8e2   :  { %2462 = vrot.lane.b32.xlu0 %v2417_v2, %s5934_s23 }
 0x8e6   :  { %v2398_v48 = vpop.permute.xlu0 %2397 }
 0x8e7   :  { %v2418_v55 = vmul.f32 %v2398_v48, %v6366_v43  ;;  %v2402_v19 = vpop.permute.xlu1 %2401 }
 0x8e8   :  { %v2419_v20 = vmul.f32 %v2402_v19, %v6392_v14 }
 0x8e9   :  { %2464 = vrot.lane.b32.xlu1 %v2418_v55, %s5934_s23  ;;  %2460 = vrot.lane.b32.xlu2 %v2416_v26, %s5934_s23 }
 0x8ea   :  { %2501 = vperm.xlu0 %5697, %v7443_v41  }
 0x8f1   :  { %2505 = vperm.xlu1 %5698, %v7436_v36   ;;  %2466 = vrot.lane.b32.xlu2 %v2419_v20, %s5934_s23 }
 0x8f2   :  { %2521 = vperm.xlu0 %5697, %v7456_v8  }
 0x8f9   :  { %2513 = vperm.xlu1 %5698, %v7450_v11   ;;  %2509 = vperm.xlu2 %5699, %v7462_v21  }
 0x8fa   :  { %2533 = vperm.xlu0 %5697, %v7474_v1  }
 0x901   :  { %2525 = vperm.xlu1 %5698, %v7468_v27   ;;  %2517 = vperm.xlu2 %5699, %v7480_v30  }
 0x902   :  { %2545 = vperm.xlu0 %5697, %v7492_v25  }
 0x909   :  { %2537 = vperm.xlu1 %5698, %v7486_v63   ;;  %2529 = vperm.xlu2 %5699, %v7498_v16  }
 0x90a   :  { %2557 = vperm.xlu0 %5697, %v7510_v45  }
 0x911   :  { %2549 = vperm.xlu1 %5698, %v7504_v58   ;;  %2541 = vperm.xlu2 %5699, %v7516_v23  }
 0x919   :  { %2561 = vperm.xlu1 %5698, %v7522_v37   ;;  %2553 = vperm.xlu2 %5699, %v7528_v32  }
 0x923   :  { %v7611_v39 = vpop.permute.xlu2 %2436 }
 0x924   :  { %9962 = vst [vmem:[#allocation230_spill] sm:$0xff] %v7611_v39 }
 0x92b   :  { %v7613_v18 = vpop.permute.xlu2 %2442  ;;  %v7619_v31 = vpop.permute.xlu1 %2440 }
 0x92c   :  { %9963 = vst [vmem:[#allocation231_spill] sm:$0xff] %v7613_v18 }
 0x92d   :  { %9966 = vst [vmem:[#allocation234_spill] sm:$0xff] %v7619_v31 }
 0x933   :  { %v7615_v54 = vpop.permute.xlu2 %2448 }
 0x934   :  { %9964 = vst [vmem:[#allocation232_spill] sm:$0xff] %v7615_v54  ;;  %v7617_v3 = vpop.permute.xlu0 %2438 }
 0x935   :  { %9965 = vst [vmem:[#allocation233_spill] sm:$0xff] %v7617_v3  ;;  %v5937_v3 = vmov 16  }
 0x936   :  { %5701 = vset.pattern.permute.xlu1 %v5937_v3  ;;  %5700 = vset.pattern.permute.xlu0 %v5937_v3 }
 0x937   :  { %5702 = vset.pattern.permute.xlu2 %v5937_v3 }
 0x93b   :  { %v7621_v2 = vpop.permute.xlu2 %2454 }
 0x93c   :  { %9967 = vst [vmem:[#allocation235_spill] sm:$0xff] %v7621_v2  ;;  %v7623_v60 = vpop.permute.xlu0 %2444 }
 0x93d   :  { %9968 = vst [vmem:[#allocation236_spill] sm:$0xff] %v7623_v60 }
 0x943   :  { %v7625_v48 = vpop.permute.xlu2 %2460  ;;  %v7627_v26 = vpop.permute.xlu1 %2446 }
 0x944   :  { %9969 = vst [vmem:[#allocation237_spill] sm:$0xff] %v7625_v48  ;;  %v7629_v55 = vpop.permute.xlu0 %2450 }
 0x945   :  { %9970 = vst [vmem:[#allocation238_spill] sm:$0xff] %v7627_v26 }
 0x946   :  { %9971 = vst [vmem:[#allocation239_spill] sm:$0xff] %v7629_v55 }
 0x94b   :  { %v7631_v19 = vpop.permute.xlu2 %2466  ;;  %v7633_v20 = vpop.permute.xlu1 %2452 }
 0x94c   :  { %9972 = vst [vmem:[#allocation240_spill] sm:$0xff] %v7631_v19  ;;  %v7635_v18 = vpop.permute.xlu0 %2456 }
 0x94d   :  { %9973 = vst [vmem:[#allocation241_spill] sm:$0xff] %v7633_v20 }
 0x94e   :  { %9974 = vst [vmem:[#allocation242_spill] sm:$0xff] %v7635_v18 }
 0x953   :  { %v2510_v54 = vpop.permute.xlu2 %2509  ;;  %v7637_v39 = vpop.permute.xlu1 %2458 }
 0x954   :  { %9975 = vst [vmem:[#allocation243_spill] sm:$0xff] %v7637_v39  ;;  %v7639_v31 = vpop.permute.xlu0 %2462  ;;  %v2566_v2 = vmul.f32 %v2510_v54, %v6284_v62 }
 0x956   :  { %2600 = vrot.lane.b32.xlu1 %v2566_v2, %s5936_s24 }
 0x95b   :  { %v7643_v48 = vpop.permute.xlu1 %2464  ;;  %v2518_v20 = vpop.permute.xlu2 %2517 }
 0x95c   :  { %9976 = vst [vmem:[#allocation244_spill] sm:$0xff] %v7643_v48  ;;  %v2502_v26 = vpop.permute.xlu0 %2501  ;;  %v2568_v2 = vmul.f32 %v2518_v20, %v6317_v6 }
 0x95d   :  { %v2564_v55 = vmul.f32 %v2502_v26, %v6298_v57 }
 0x95f   :  { %2596 = vrot.lane.b32.xlu2 %v2564_v55, %s5936_s24 }
 0x963   :  { %v2506_v19 = vpop.permute.xlu1 %2505  ;;  %v2530_v48 = vpop.permute.xlu2 %2529 }
 0x964   :  { %v2522_v18 = vpop.permute.xlu0 %2521  ;;  %v2565_v60 = vmul.f32 %v2506_v19, %v6304_v33  ;;  %v2571_v3 = vmul.f32 %v2530_v48, %v6336_v0 }
 0x965   :  { %v2569_v39 = vmul.f32 %v2522_v18, %v6308_v50 }
 0x966   :  { %2598 = vrot.lane.b32.xlu0 %v2565_v60, %s5936_s24 }
 0x967   :  { %2606 = vrot.lane.b32.xlu1 %v2569_v39, %s5936_s24 }
 0x96b   :  { %v2514_v54 = vpop.permute.xlu1 %2513  ;;  %v2542_v20 = vpop.permute.xlu2 %2541 }
 0x96c   :  { %v2534_v26 = vpop.permute.xlu0 %2533  ;;  %v2567_v55 = vmul.f32 %v2514_v54, %v6321_v4 }
 0x96d   :  { %v2572_v52 = vmul.f32 %v2534_v26, %v6326_v42 }
 0x96e   :  { %2604 = vrot.lane.b32.xlu0 %v2568_v2, %s5936_s24  ;;  %2602 = vrot.lane.b32.xlu2 %v2567_v55, %s5936_s24  ;;  %v2574_v2 = vmul.f32 %v2542_v20, %v6356_v9 }
 0x96f   :  { %2612 = vrot.lane.b32.xlu1 %v2572_v52, %s5936_s24 }
 0x973   :  { %v2526_v18 = vpop.permute.xlu1 %2525  ;;  %v2554_v55 = vpop.permute.xlu2 %2553 }
 0x974   :  { %v2546_v60 = vpop.permute.xlu0 %2545  ;;  %v2570_v39 = vmul.f32 %v2526_v18, %v6340_v5 }
 0x975   :  { %v2575_v19 = vmul.f32 %v2546_v60, %v6345_v34 }
 0x976   :  { %2610 = vrot.lane.b32.xlu0 %v2571_v3, %s5936_s24  ;;  %2608 = vrot.lane.b32.xlu2 %v2570_v39, %s5936_s24  ;;  %v2577_v3 = vmul.f32 %v2554_v55, %v6377_v12 }
 0x977   :  { %2618 = vrot.lane.b32.xlu1 %v2575_v19, %s5936_s24 }
 0x97b   :  { %v2538_v54 = vpop.permute.xlu1 %2537 }
 0x97c   :  { %v2558_v26 = vpop.permute.xlu0 %2557  ;;  %v2573_v52 = vmul.f32 %v2538_v54, %v6361_v10 }
 0x97d   :  { %v2578_v48 = vmul.f32 %v2558_v26, %v6366_v43 }
 0x97e   :  { %2616 = vrot.lane.b32.xlu0 %v2574_v2, %s5936_s24  ;;  %2614 = vrot.lane.b32.xlu2 %v2573_v52, %s5936_s24 }
 0x97f   :  { %2624 = vrot.lane.b32.xlu1 %v2578_v48, %s5936_s24 }
 0x983   :  { %v2550_v18 = vpop.permute.xlu1 %2549 }
 0x984   :  { %v2576_v60 = vmul.f32 %v2550_v18, %v6382_v13 }
 0x986   :  { %2622 = vrot.lane.b32.xlu0 %v2577_v3, %s5936_s24  ;;  %2620 = vrot.lane.b32.xlu2 %v2576_v60, %s5936_s24 }
 0x987   :  { %2665 = vperm.xlu1 %5701, %v7436_v36  }
 0x98b   :  { %v2562_v39 = vpop.permute.xlu1 %2561 }
 0x98c   :  { %v2579_v19 = vmul.f32 %v2562_v39, %v6392_v14 }
 0x98e   :  { %2661 = vperm.xlu0 %5700, %v7443_v41   ;;  %2626 = vrot.lane.b32.xlu2 %v2579_v19, %s5936_s24  ;;  %s5507_s24 = sshll.u32 %s9705_s7, 4  ;;  %s5508_s24 = int_to_ptr.hbm [resolvable:$true] %s5507_s24 }
 0x98f   :  { %2673 = vperm.xlu1 %5701, %v7450_v11  }
 0x996   :  { %2681 = vperm.xlu0 %5700, %v7456_v8   ;;  %2669 = vperm.xlu2 %5702, %v7462_v21  }
 0x997   :  { %2685 = vperm.xlu1 %5701, %v7468_v27  }
 0x99e   :  { %2693 = vperm.xlu0 %5700, %v7474_v1   ;;  %2677 = vperm.xlu2 %5702, %v7480_v30  }
 0x99f   :  { %2697 = vperm.xlu1 %5701, %v7486_v63  }
 0x9a6   :  { %2705 = vperm.xlu0 %5700, %v7492_v25   ;;  %2689 = vperm.xlu2 %5702, %v7498_v16  }
 0x9a7   :  { %2709 = vperm.xlu1 %5701, %v7504_v58  }
 0x9ae   :  { %2717 = vperm.xlu0 %5700, %v7510_v45   ;;  %2701 = vperm.xlu2 %5702, %v7516_v23  }
 0x9af   :  { %2721 = vperm.xlu1 %5701, %v7522_v37  }
 0x9b6   :  { %2713 = vperm.xlu2 %5702, %v7528_v32  }
 0x9b9   :  { %v7691_v20 = vpop.permute.xlu2 %2596 }
 0x9ba   :  { %9977 = vst [vmem:[#allocation245_spill] sm:$0xff] %v7691_v20 }
 0x9c8   :  { %v7693_v54 = vpop.permute.xlu2 %2602  ;;  %v7697_v26 = vpop.permute.xlu1 %2600 }
 0x9c9   :  { %9978 = vst [vmem:[#allocation246_spill] sm:$0xff] %v7693_v54 }
 0x9ca   :  { %9980 = vst [vmem:[#allocation248_spill] sm:$0xff] %v7697_v26 }
 0x9d0   :  { %v7695_v2 = vpop.permute.xlu2 %2608 }
 0x9d1   :  { %9979 = vst [vmem:[#allocation247_spill] sm:$0xff] %v7695_v2 }
 0x9d8   :  { %v7699_v52 = vpop.permute.xlu0 %2598  ;;  %v7701_v48 = vpop.permute.xlu2 %2614 }
 0x9d9   :  { %9981 = vst [vmem:[#allocation249_spill] sm:$0xff] %v7699_v52  ;;  %v7703_v55 = vpop.permute.xlu1 %2606 }
 0x9da   :  { %9982 = vst [vmem:[#allocation250_spill] sm:$0xff] %v7701_v48 }
 0x9db   :  { %9983 = vst [vmem:[#allocation251_spill] sm:$0xff] %v7703_v55 }
 0x9e0   :  { %v7705_v18 = vpop.permute.xlu0 %2604  ;;  %v7707_v3 = vpop.permute.xlu2 %2620 }
 0x9e1   :  { %9984 = vst [vmem:[#allocation252_spill] sm:$0xff] %v7705_v18  ;;  %v7709_v60 = vpop.permute.xlu1 %2612 }
 0x9e2   :  { %9985 = vst [vmem:[#allocation253_spill] sm:$0xff] %v7707_v3 }
 0x9e3   :  { %9986 = vst [vmem:[#allocation254_spill] sm:$0xff] %v7709_v60 }
 0x9e8   :  { %v7711_v39 = vpop.permute.xlu0 %2610  ;;  %v7713_v19 = vpop.permute.xlu2 %2626 }
 0x9e9   :  { %9987 = vst [vmem:[#allocation255_spill] sm:$0xff] %v7711_v39  ;;  %v7715_v54 = vpop.permute.xlu1 %2618 }
 0x9ea   :  { %9988 = vst [vmem:[#allocation256_spill] sm:$0xff] %v7713_v19 }
 0x9eb   :  { %9989 = vst [vmem:[#allocation257_spill] sm:$0xff] %v7715_v54 }
 0x9f0   :  { %v7717_v2 = vpop.permute.xlu0 %2616  ;;  %v2670_v26 = vpop.permute.xlu2 %2669 }
 0x9f1   :  { %9990 = vst [vmem:[#allocation258_spill] sm:$0xff] %v7717_v2  ;;  %v2726_v20 = vmul.f32 %v2670_v26, %v6284_v62  ;;  %v7720_v48 = vpop.permute.xlu1 %2624 }
 0x9f2   :  { %9991 = vst [vmem:[#allocation259_spill] sm:$0xff] %v7720_v48  ;;  %v5939_v48 = vmov 17  }
 0x9f3   :  { %2760 = vrot.lane.b32.xlu1 %v2726_v20, %s5938_s25  ;;  %5703 = vset.pattern.permute.xlu0 %v5939_v48 }
 0x9f4   :  { %5704 = vset.pattern.permute.xlu1 %v5939_v48  ;;  %5705 = vset.pattern.permute.xlu2 %v5939_v48 }
 0x9f8   :  { %v7723_v55 = vpop.permute.xlu0 %2622  ;;  %v2678_v3 = vpop.permute.xlu2 %2677 }
 0x9f9   :  { %v2666_v60 = vpop.permute.xlu1 %2665  ;;  %v2728_v18 = vmul.f32 %v2678_v3, %v6317_v6 }
 0x9fa   :  { %v2725_v39 = vmul.f32 %v2666_v60, %v6304_v33 }
 0x9fc   :  { %2758 = vrot.lane.b32.xlu0 %v2725_v39, %s5938_s25 }
 0xa00   :  { %v2662_v19 = vpop.permute.xlu0 %2661  ;;  %v2690_v26 = vpop.permute.xlu2 %2689 }
 0xa01   :  { %v2724_v54 = vmul.f32 %v2662_v19, %v6298_v57  ;;  %v2674_v2 = vpop.permute.xlu1 %2673  ;;  %v2731_v19 = vmul.f32 %v2690_v26, %v6336_v0 }
 0xa02   :  { %v2727_v60 = vmul.f32 %v2674_v2, %v6321_v4 }
 0xa03   :  { %2756 = vrot.lane.b32.xlu2 %v2724_v54, %s5938_s25 }
 0xa04   :  { %2764 = vrot.lane.b32.xlu0 %v2728_v18, %s5938_s25 }
 0xa08   :  { %v2682_v20 = vpop.permute.xlu0 %2681  ;;  %v2702_v54 = vpop.permute.xlu2 %2701 }
 0xa09   :  { %v2729_v39 = vmul.f32 %v2682_v20, %v6308_v50  ;;  %v2686_v52 = vpop.permute.xlu1 %2685  ;;  %v2734_v35 = vmul.f32 %v2702_v54, %v6356_v9 }
 0xa0a   :  { %v2730_v18 = vmul.f32 %v2686_v52, %v6340_v5 }
 0xa0b   :  { %2766 = vrot.lane.b32.xlu1 %v2729_v39, %s5938_s25  ;;  %2762 = vrot.lane.b32.xlu2 %v2727_v60, %s5938_s25 }
 0xa0c   :  { %2770 = vrot.lane.b32.xlu0 %v2731_v19, %s5938_s25 }
 0xa10   :  { %v2694_v3 = vpop.permute.xlu0 %2693  ;;  %v2714_v26 = vpop.permute.xlu2 %2713 }
 0xa11   :  { %v2732_v48 = vmul.f32 %v2694_v3, %v6326_v42  ;;  %v2698_v2 = vpop.permute.xlu1 %2697  ;;  %v2737_v19 = vmul.f32 %v2714_v26, %v6377_v12 }
 0xa12   :  { %v2733_v60 = vmul.f32 %v2698_v2, %v6361_v10 }
 0xa13   :  { %2772 = vrot.lane.b32.xlu1 %v2732_v48, %s5938_s25  ;;  %2768 = vrot.lane.b32.xlu2 %v2730_v18, %s5938_s25 }
 0xa14   :  { %2776 = vrot.lane.b32.xlu0 %v2734_v35, %s5938_s25 }
 0xa18   :  { %v2706_v20 = vpop.permute.xlu0 %2705 }
 0xa19   :  { %v2735_v39 = vmul.f32 %v2706_v20, %v6345_v34  ;;  %v2710_v52 = vpop.permute.xlu1 %2709 }
 0xa1a   :  { %v2736_v3 = vmul.f32 %v2710_v52, %v6382_v13 }
 0xa1b   :  { %2778 = vrot.lane.b32.xlu1 %v2735_v39, %s5938_s25  ;;  %2774 = vrot.lane.b32.xlu2 %v2733_v60, %s5938_s25 }
 0xa1c   :  { %2782 = vrot.lane.b32.xlu0 %v2737_v19, %s5938_s25 }
 0xa20   :  { %v2718_v54 = vpop.permute.xlu0 %2717 }
 0xa21   :  { %v2738_v35 = vmul.f32 %v2718_v54, %v6366_v43  ;;  %v2722_v18 = vpop.permute.xlu1 %2721 }
 0xa22   :  { %v2739_v48 = vmul.f32 %v2722_v18, %v6392_v14 }
 0xa23   :  { %2784 = vrot.lane.b32.xlu1 %v2738_v35, %s5938_s25  ;;  %2780 = vrot.lane.b32.xlu2 %v2736_v3, %s5938_s25 }
 0xa24   :  { %2821 = vperm.xlu0 %5703, %v7443_v41  }
 0xa2b   :  { %2825 = vperm.xlu1 %5704, %v7436_v36   ;;  %2786 = vrot.lane.b32.xlu2 %v2739_v48, %s5938_s25 }
 0xa2c   :  { %2841 = vperm.xlu0 %5703, %v7456_v8  }
 0xa33   :  { %2833 = vperm.xlu1 %5704, %v7450_v11   ;;  %2829 = vperm.xlu2 %5705, %v7462_v21  }
 0xa34   :  { %2853 = vperm.xlu0 %5703, %v7474_v1  }
 0xa3b   :  { %2845 = vperm.xlu1 %5704, %v7468_v27   ;;  %2837 = vperm.xlu2 %5705, %v7480_v30  }
 0xa3c   :  { %2865 = vperm.xlu0 %5703, %v7492_v25  }
 0xa43   :  { %2857 = vperm.xlu1 %5704, %v7486_v63   ;;  %2849 = vperm.xlu2 %5705, %v7498_v16  }
 0xa44   :  { %2877 = vperm.xlu0 %5703, %v7510_v45  }
 0xa4b   :  { %2869 = vperm.xlu1 %5704, %v7504_v58   ;;  %2861 = vperm.xlu2 %5705, %v7516_v23  }
 0xa53   :  { %2881 = vperm.xlu1 %5704, %v7522_v37   ;;  %2873 = vperm.xlu2 %5705, %v7528_v32  }
 0xa5d   :  { %v7771_v2 = vpop.permute.xlu2 %2756 }
 0xa5e   :  { %9992 = vst [vmem:[#allocation260_spill] sm:$0xff] %v7771_v2 }
 0xa65   :  { %v7773_v26 = vpop.permute.xlu2 %2762  ;;  %v7779_v39 = vpop.permute.xlu1 %2760 }
 0xa66   :  { %9993 = vst [vmem:[#allocation261_spill] sm:$0xff] %v7773_v26 }
 0xa67   :  { %9996 = vst [vmem:[#allocation264_spill] sm:$0xff] %v7779_v39 }
 0xa6d   :  { %v7775_v20 = vpop.permute.xlu2 %2768 }
 0xa6e   :  { %9994 = vst [vmem:[#allocation262_spill] sm:$0xff] %v7775_v20  ;;  %v7777_v60 = vpop.permute.xlu0 %2758 }
 0xa6f   :  { %9995 = vst [vmem:[#allocation263_spill] sm:$0xff] %v7777_v60  ;;  %v5941_v60 = vmov 18  }
 0xa70   :  { %5707 = vset.pattern.permute.xlu1 %v5941_v60  ;;  %5706 = vset.pattern.permute.xlu0 %v5941_v60 }
 0xa71   :  { %5708 = vset.pattern.permute.xlu2 %v5941_v60 }
 0xa75   :  { %v7781_v19 = vpop.permute.xlu2 %2774 }
 0xa76   :  { %9997 = vst [vmem:[#allocation265_spill] sm:$0xff] %v7781_v19  ;;  %v7783_v52 = vpop.permute.xlu0 %2764 }
 0xa77   :  { %9998 = vst [vmem:[#allocation266_spill] sm:$0xff] %v7783_v52 }
 0xa7d   :  { %v7785_v54 = vpop.permute.xlu2 %2780  ;;  %v7787_v3 = vpop.permute.xlu1 %2766 }
 0xa7e   :  { %9999 = vst [vmem:[#allocation267_spill] sm:$0xff] %v7785_v54  ;;  %v7789_v35 = vpop.permute.xlu0 %2770 }
 0xa7f   :  { %10000 = vst [vmem:[#allocation268_spill] sm:$0xff] %v7787_v3 }
 0xa80   :  { %10001 = vst [vmem:[#allocation269_spill] sm:$0xff] %v7789_v35 }
 0xa85   :  { %v7791_v18 = vpop.permute.xlu2 %2786  ;;  %v7793_v48 = vpop.permute.xlu1 %2772 }
 0xa86   :  { %10002 = vst [vmem:[#allocation270_spill] sm:$0xff] %v7791_v18  ;;  %v7795_v26 = vpop.permute.xlu0 %2776 }
 0xa87   :  { %10003 = vst [vmem:[#allocation271_spill] sm:$0xff] %v7793_v48 }
 0xa88   :  { %10004 = vst [vmem:[#allocation272_spill] sm:$0xff] %v7795_v26 }
 0xa8d   :  { %v2830_v20 = vpop.permute.xlu2 %2829  ;;  %v7797_v2 = vpop.permute.xlu1 %2778 }
 0xa8e   :  { %10005 = vst [vmem:[#allocation273_spill] sm:$0xff] %v7797_v2  ;;  %v7799_v39 = vpop.permute.xlu0 %2782  ;;  %v2886_v19 = vmul.f32 %v2830_v20, %v6284_v62 }
 0xa90   :  { %2920 = vrot.lane.b32.xlu1 %v2886_v19, %s5940_s26 }
 0xa95   :  { %v7803_v54 = vpop.permute.xlu1 %2784  ;;  %v2838_v48 = vpop.permute.xlu2 %2837 }
 0xa96   :  { %10006 = vst [vmem:[#allocation274_spill] sm:$0xff] %v7803_v54  ;;  %v2822_v3 = vpop.permute.xlu0 %2821  ;;  %v2888_v19 = vmul.f32 %v2838_v48, %v6317_v6 }
 0xa97   :  { %v2884_v35 = vmul.f32 %v2822_v3, %v6298_v57 }
 0xa99   :  { %2916 = vrot.lane.b32.xlu2 %v2884_v35, %s5940_s26 }
 0xa9d   :  { %v2826_v18 = vpop.permute.xlu1 %2825  ;;  %v2850_v54 = vpop.permute.xlu2 %2849 }
 0xa9e   :  { %v2842_v26 = vpop.permute.xlu0 %2841  ;;  %v2885_v52 = vmul.f32 %v2826_v18, %v6304_v33  ;;  %v2891_v60 = vmul.f32 %v2850_v54, %v6336_v0 }
 0xa9f   :  { %v2889_v2 = vmul.f32 %v2842_v26, %v6308_v50 }
 0xaa0   :  { %2918 = vrot.lane.b32.xlu0 %v2885_v52, %s5940_s26 }
 0xaa1   :  { %2926 = vrot.lane.b32.xlu1 %v2889_v2, %s5940_s26 }
 0xaa5   :  { %v2834_v20 = vpop.permute.xlu1 %2833  ;;  %v2862_v48 = vpop.permute.xlu2 %2861 }
 0xaa6   :  { %v2854_v3 = vpop.permute.xlu0 %2853  ;;  %v2887_v35 = vmul.f32 %v2834_v20, %v6321_v4 }
 0xaa7   :  { %v2892_v47 = vmul.f32 %v2854_v3, %v6326_v42 }
 0xaa8   :  { %2924 = vrot.lane.b32.xlu0 %v2888_v19, %s5940_s26  ;;  %2922 = vrot.lane.b32.xlu2 %v2887_v35, %s5940_s26  ;;  %v2894_v19 = vmul.f32 %v2862_v48, %v6356_v9 }
 0xaa9   :  { %2932 = vrot.lane.b32.xlu1 %v2892_v47, %s5940_s26 }
 0xaad   :  { %v2846_v26 = vpop.permute.xlu1 %2845  ;;  %v2874_v35 = vpop.permute.xlu2 %2873 }
 0xaae   :  { %v2866_v52 = vpop.permute.xlu0 %2865  ;;  %v2890_v2 = vmul.f32 %v2846_v26, %v6340_v5 }
 0xaaf   :  { %v2895_v18 = vmul.f32 %v2866_v52, %v6345_v34 }
 0xab0   :  { %2930 = vrot.lane.b32.xlu0 %v2891_v60, %s5940_s26  ;;  %2928 = vrot.lane.b32.xlu2 %v2890_v2, %s5940_s26  ;;  %v2897_v60 = vmul.f32 %v2874_v35, %v6377_v12 }
 0xab1   :  { %2938 = vrot.lane.b32.xlu1 %v2895_v18, %s5940_s26 }
 0xab5   :  { %v2858_v20 = vpop.permute.xlu1 %2857 }
 0xab6   :  { %v2878_v3 = vpop.permute.xlu0 %2877  ;;  %v2893_v47 = vmul.f32 %v2858_v20, %v6361_v10 }
 0xab7   :  { %v2898_v54 = vmul.f32 %v2878_v3, %v6366_v43 }
 0xab8   :  { %2936 = vrot.lane.b32.xlu0 %v2894_v19, %s5940_s26  ;;  %2934 = vrot.lane.b32.xlu2 %v2893_v47, %s5940_s26 }
 0xab9   :  { %2944 = vrot.lane.b32.xlu1 %v2898_v54, %s5940_s26 }
 0xabd   :  { %v2870_v26 = vpop.permute.xlu1 %2869 }
 0xabe   :  { %v2896_v52 = vmul.f32 %v2870_v26, %v6382_v13 }
 0xac0   :  { %2942 = vrot.lane.b32.xlu0 %v2897_v60, %s5940_s26  ;;  %2940 = vrot.lane.b32.xlu2 %v2896_v52, %s5940_s26 }
 0xac1   :  { %2985 = vperm.xlu1 %5707, %v7436_v36  }
 0xac5   :  { %v2882_v2 = vpop.permute.xlu1 %2881 }
 0xac6   :  { %v2899_v18 = vmul.f32 %v2882_v2, %v6392_v14 }
 0xac8   :  { %2981 = vperm.xlu0 %5706, %v7443_v41   ;;  %2946 = vrot.lane.b32.xlu2 %v2899_v18, %s5940_s26 }
 0xac9   :  { %2993 = vperm.xlu1 %5707, %v7450_v11  }
 0xad0   :  { %3001 = vperm.xlu0 %5706, %v7456_v8   ;;  %2989 = vperm.xlu2 %5708, %v7462_v21  }
 0xad1   :  { %3005 = vperm.xlu1 %5707, %v7468_v27  }
 0xad8   :  { %3013 = vperm.xlu0 %5706, %v7474_v1   ;;  %2997 = vperm.xlu2 %5708, %v7480_v30  }
 0xad9   :  { %3017 = vperm.xlu1 %5707, %v7486_v63  }
 0xae0   :  { %3025 = vperm.xlu0 %5706, %v7492_v25   ;;  %3009 = vperm.xlu2 %5708, %v7498_v16  }
 0xae1   :  { %3029 = vperm.xlu1 %5707, %v7504_v58  }
 0xae8   :  { %3037 = vperm.xlu0 %5706, %v7510_v45   ;;  %3021 = vperm.xlu2 %5708, %v7516_v23  }
 0xae9   :  { %3041 = vperm.xlu1 %5707, %v7522_v37  }
 0xaf0   :  { %3033 = vperm.xlu2 %5708, %v7528_v32  }
 0xaf3   :  { %v7851_v48 = vpop.permute.xlu2 %2916 }
 0xaf4   :  { %10007 = vst [vmem:[#allocation275_spill] sm:$0xff] %v7851_v48 }
 0xb02   :  { %v7853_v20 = vpop.permute.xlu2 %2922  ;;  %v7857_v3 = vpop.permute.xlu1 %2920 }
 0xb03   :  { %10008 = vst [vmem:[#allocation276_spill] sm:$0xff] %v7853_v20 }
 0xb04   :  { %10010 = vst [vmem:[#allocation278_spill] sm:$0xff] %v7857_v3 }
 0xb0a   :  { %v7855_v19 = vpop.permute.xlu2 %2928 }
 0xb0b   :  { %10009 = vst [vmem:[#allocation277_spill] sm:$0xff] %v7855_v19 }
 0xb12   :  { %v7859_v47 = vpop.permute.xlu0 %2918  ;;  %v7861_v54 = vpop.permute.xlu2 %2934 }
 0xb13   :  { %10011 = vst [vmem:[#allocation279_spill] sm:$0xff] %v7859_v47  ;;  %v7863_v35 = vpop.permute.xlu1 %2926 }
 0xb14   :  { %10012 = vst [vmem:[#allocation280_spill] sm:$0xff] %v7861_v54 }
 0xb15   :  { %10013 = vst [vmem:[#allocation281_spill] sm:$0xff] %v7863_v35 }
 0xb1a   :  { %v7865_v26 = vpop.permute.xlu0 %2924  ;;  %v7867_v60 = vpop.permute.xlu2 %2940 }
 0xb1b   :  { %10014 = vst [vmem:[#allocation282_spill] sm:$0xff] %v7865_v26  ;;  %v7869_v52 = vpop.permute.xlu1 %2932 }
 0xb1c   :  { %10015 = vst [vmem:[#allocation283_spill] sm:$0xff] %v7867_v60 }
 0xb1d   :  { %10016 = vst [vmem:[#allocation284_spill] sm:$0xff] %v7869_v52 }
 0xb22   :  { %v7871_v2 = vpop.permute.xlu0 %2930  ;;  %v7873_v18 = vpop.permute.xlu2 %2946 }
 0xb23   :  { %10017 = vst [vmem:[#allocation285_spill] sm:$0xff] %v7871_v2  ;;  %v7875_v20 = vpop.permute.xlu1 %2938 }
 0xb24   :  { %10018 = vst [vmem:[#allocation286_spill] sm:$0xff] %v7873_v18 }
 0xb25   :  { %10019 = vst [vmem:[#allocation287_spill] sm:$0xff] %v7875_v20 }
 0xb2a   :  { %v7877_v19 = vpop.permute.xlu0 %2936  ;;  %v2990_v3 = vpop.permute.xlu2 %2989 }
 0xb2b   :  { %10020 = vst [vmem:[#allocation288_spill] sm:$0xff] %v7877_v19  ;;  %v3046_v48 = vmul.f32 %v2990_v3, %v6284_v62  ;;  %v7880_v54 = vpop.permute.xlu1 %2944 }
 0xb2c   :  { %10021 = vst [vmem:[#allocation289_spill] sm:$0xff] %v7880_v54  ;;  %v5943_v54 = vmov 19  }
 0xb2d   :  { %3080 = vrot.lane.b32.xlu1 %v3046_v48, %s5942_s27  ;;  %5709 = vset.pattern.permute.xlu0 %v5943_v54 }
 0xb2e   :  { %5710 = vset.pattern.permute.xlu1 %v5943_v54  ;;  %5711 = vset.pattern.permute.xlu2 %v5943_v54 }
 0xb32   :  { %v7883_v35 = vpop.permute.xlu0 %2942  ;;  %v2998_v60 = vpop.permute.xlu2 %2997 }
 0xb33   :  { %v2986_v52 = vpop.permute.xlu1 %2985  ;;  %v3048_v26 = vmul.f32 %v2998_v60, %v6317_v6 }
 0xb34   :  { %v3045_v2 = vmul.f32 %v2986_v52, %v6304_v33 }
 0xb36   :  { %3078 = vrot.lane.b32.xlu0 %v3045_v2, %s5942_s27 }
 0xb3a   :  { %v2982_v18 = vpop.permute.xlu0 %2981  ;;  %v3010_v3 = vpop.permute.xlu2 %3009 }
 0xb3b   :  { %v3044_v20 = vmul.f32 %v2982_v18, %v6298_v57  ;;  %v2994_v19 = vpop.permute.xlu1 %2993  ;;  %v3051_v18 = vmul.f32 %v3010_v3, %v6336_v0 }
 0xb3c   :  { %v3047_v52 = vmul.f32 %v2994_v19, %v6321_v4 }
 0xb3d   :  { %3076 = vrot.lane.b32.xlu2 %v3044_v20, %s5942_s27 }
 0xb3e   :  { %3084 = vrot.lane.b32.xlu0 %v3048_v26, %s5942_s27 }
 0xb42   :  { %v3002_v48 = vpop.permute.xlu0 %3001  ;;  %v3022_v20 = vpop.permute.xlu2 %3021 }
 0xb43   :  { %v3049_v2 = vmul.f32 %v3002_v48, %v6308_v50  ;;  %v3006_v47 = vpop.permute.xlu1 %3005  ;;  %v3054_v40 = vmul.f32 %v3022_v20, %v6356_v9 }
 0xb44   :  { %v3050_v26 = vmul.f32 %v3006_v47, %v6340_v5 }
 0xb45   :  { %3086 = vrot.lane.b32.xlu1 %v3049_v2, %s5942_s27  ;;  %3082 = vrot.lane.b32.xlu2 %v3047_v52, %s5942_s27 }
 0xb46   :  { %3090 = vrot.lane.b32.xlu0 %v3051_v18, %s5942_s27 }
 0xb4a   :  { %v3014_v60 = vpop.permute.xlu0 %3013  ;;  %v3034_v3 = vpop.permute.xlu2 %3033 }
 0xb4b   :  { %v3052_v54 = vmul.f32 %v3014_v60, %v6326_v42  ;;  %v3018_v19 = vpop.permute.xlu1 %3017  ;;  %v3057_v18 = vmul.f32 %v3034_v3, %v6377_v12 }
 0xb4c   :  { %v3053_v52 = vmul.f32 %v3018_v19, %v6361_v10 }
 0xb4d   :  { %3092 = vrot.lane.b32.xlu1 %v3052_v54, %s5942_s27  ;;  %3088 = vrot.lane.b32.xlu2 %v3050_v26, %s5942_s27 }
 0xb4e   :  { %3096 = vrot.lane.b32.xlu0 %v3054_v40, %s5942_s27 }
 0xb52   :  { %v3026_v48 = vpop.permute.xlu0 %3025 }
 0xb53   :  { %v3055_v2 = vmul.f32 %v3026_v48, %v6345_v34  ;;  %v3030_v47 = vpop.permute.xlu1 %3029 }
 0xb54   :  { %v3056_v60 = vmul.f32 %v3030_v47, %v6382_v13 }
 0xb55   :  { %3098 = vrot.lane.b32.xlu1 %v3055_v2, %s5942_s27  ;;  %3094 = vrot.lane.b32.xlu2 %v3053_v52, %s5942_s27 }
 0xb56   :  { %3102 = vrot.lane.b32.xlu0 %v3057_v18, %s5942_s27 }
 0xb5a   :  { %v3038_v20 = vpop.permute.xlu0 %3037 }
 0xb5b   :  { %v3058_v40 = vmul.f32 %v3038_v20, %v6366_v43  ;;  %v3042_v26 = vpop.permute.xlu1 %3041 }
 0xb5c   :  { %v3059_v54 = vmul.f32 %v3042_v26, %v6392_v14 }
 0xb5d   :  { %3104 = vrot.lane.b32.xlu1 %v3058_v40, %s5942_s27  ;;  %3100 = vrot.lane.b32.xlu2 %v3056_v60, %s5942_s27 }
 0xb5e   :  { %3141 = vperm.xlu0 %5709, %v7443_v41  }
 0xb65   :  { %3145 = vperm.xlu1 %5710, %v7436_v36   ;;  %3106 = vrot.lane.b32.xlu2 %v3059_v54, %s5942_s27 }
 0xb66   :  { %3161 = vperm.xlu0 %5709, %v7456_v8  }
 0xb6d   :  { %3153 = vperm.xlu1 %5710, %v7450_v11   ;;  %3149 = vperm.xlu2 %5711, %v7462_v21  }
 0xb6e   :  { %3173 = vperm.xlu0 %5709, %v7474_v1  }
 0xb75   :  { %3165 = vperm.xlu1 %5710, %v7468_v27   ;;  %3157 = vperm.xlu2 %5711, %v7480_v30  }
 0xb76   :  { %3185 = vperm.xlu0 %5709, %v7492_v25  }
 0xb7d   :  { %3177 = vperm.xlu1 %5710, %v7486_v63   ;;  %3169 = vperm.xlu2 %5711, %v7498_v16  }
 0xb7e   :  { %3197 = vperm.xlu0 %5709, %v7510_v45  }
 0xb85   :  { %3189 = vperm.xlu1 %5710, %v7504_v58   ;;  %3181 = vperm.xlu2 %5711, %v7516_v23  }
 0xb8d   :  { %3201 = vperm.xlu1 %5710, %v7522_v37   ;;  %3193 = vperm.xlu2 %5711, %v7528_v32  }
 0xb97   :  { %v7931_v19 = vpop.permute.xlu2 %3076 }
 0xb98   :  { %10022 = vst [vmem:[#allocation290_spill] sm:$0xff] %v7931_v19 }
 0xb9f   :  { %v7933_v3 = vpop.permute.xlu2 %3082  ;;  %v7939_v2 = vpop.permute.xlu1 %3080 }
 0xba0   :  { %10023 = vst [vmem:[#allocation291_spill] sm:$0xff] %v7933_v3 }
 0xba1   :  { %10026 = vst [vmem:[#allocation294_spill] sm:$0xff] %v7939_v2 }
 0xba7   :  { %v7935_v48 = vpop.permute.xlu2 %3088 }
 0xba8   :  { %10024 = vst [vmem:[#allocation292_spill] sm:$0xff] %v7935_v48  ;;  %v7937_v52 = vpop.permute.xlu0 %3078 }
 0xba9   :  { %10025 = vst [vmem:[#allocation293_spill] sm:$0xff] %v7937_v52  ;;  %v5945_v52 = vmov 20  }
 0xbaa   :  { %5713 = vset.pattern.permute.xlu1 %v5945_v52  ;;  %5712 = vset.pattern.permute.xlu0 %v5945_v52 }
 0xbab   :  { %5714 = vset.pattern.permute.xlu2 %v5945_v52 }
 0xbaf   :  { %v7941_v18 = vpop.permute.xlu2 %3094 }
 0xbb0   :  { %10027 = vst [vmem:[#allocation295_spill] sm:$0xff] %v7941_v18  ;;  %v7943_v47 = vpop.permute.xlu0 %3084 }
 0xbb1   :  { %10028 = vst [vmem:[#allocation296_spill] sm:$0xff] %v7943_v47 }
 0xbb7   :  { %v7945_v20 = vpop.permute.xlu2 %3100  ;;  %v7947_v60 = vpop.permute.xlu1 %3086 }
 0xbb8   :  { %10029 = vst [vmem:[#allocation297_spill] sm:$0xff] %v7945_v20  ;;  %v7949_v40 = vpop.permute.xlu0 %3090 }
 0xbb9   :  { %10030 = vst [vmem:[#allocation298_spill] sm:$0xff] %v7947_v60 }
 0xbba   :  { %10031 = vst [vmem:[#allocation299_spill] sm:$0xff] %v7949_v40 }
 0xbbf   :  { %v7951_v26 = vpop.permute.xlu2 %3106  ;;  %v7953_v54 = vpop.permute.xlu1 %3092 }
 0xbc0   :  { %10032 = vst [vmem:[#allocation300_spill] sm:$0xff] %v7951_v26  ;;  %v7955_v3 = vpop.permute.xlu0 %3096 }
 0xbc1   :  { %10033 = vst [vmem:[#allocation301_spill] sm:$0xff] %v7953_v54 }
 0xbc2   :  { %10034 = vst [vmem:[#allocation302_spill] sm:$0xff] %v7955_v3 }
 0xbc7   :  { %v3150_v48 = vpop.permute.xlu2 %3149  ;;  %v7957_v19 = vpop.permute.xlu1 %3098 }
 0xbc8   :  { %10035 = vst [vmem:[#allocation303_spill] sm:$0xff] %v7957_v19  ;;  %v7959_v2 = vpop.permute.xlu0 %3102  ;;  %v3206_v18 = vmul.f32 %v3150_v48, %v6284_v62 }
 0xbca   :  { %3240 = vrot.lane.b32.xlu1 %v3206_v18, %s5944_s28 }
 0xbcf   :  { %v7963_v20 = vpop.permute.xlu1 %3104  ;;  %v3158_v54 = vpop.permute.xlu2 %3157 }
 0xbd0   :  { %10036 = vst [vmem:[#allocation304_spill] sm:$0xff] %v7963_v20  ;;  %v3142_v60 = vpop.permute.xlu0 %3141  ;;  %v3208_v18 = vmul.f32 %v3158_v54, %v6317_v6 }
 0xbd1   :  { %v3204_v40 = vmul.f32 %v3142_v60, %v6298_v57 }
 0xbd3   :  { %3236 = vrot.lane.b32.xlu2 %v3204_v40, %s5944_s28 }
 0xbd7   :  { %v3146_v26 = vpop.permute.xlu1 %3145  ;;  %v3170_v20 = vpop.permute.xlu2 %3169 }
 0xbd8   :  { %v3162_v3 = vpop.permute.xlu0 %3161  ;;  %v3205_v47 = vmul.f32 %v3146_v26, %v6304_v33  ;;  %v3211_v52 = vmul.f32 %v3170_v20, %v6336_v0 }
 0xbd9   :  { %v3209_v19 = vmul.f32 %v3162_v3, %v6308_v50 }
 0xbda   :  { %3238 = vrot.lane.b32.xlu0 %v3205_v47, %s5944_s28 }
 0xbdb   :  { %3246 = vrot.lane.b32.xlu1 %v3209_v19, %s5944_s28 }
 0xbdf   :  { %v3154_v48 = vpop.permute.xlu1 %3153  ;;  %v3182_v54 = vpop.permute.xlu2 %3181 }
 0xbe0   :  { %v3174_v60 = vpop.permute.xlu0 %3173  ;;  %v3207_v40 = vmul.f32 %v3154_v48, %v6321_v4 }
 0xbe1   :  { %v3212_v61 = vmul.f32 %v3174_v60, %v6326_v42 }
 0xbe2   :  { %3244 = vrot.lane.b32.xlu0 %v3208_v18, %s5944_s28  ;;  %3242 = vrot.lane.b32.xlu2 %v3207_v40, %s5944_s28  ;;  %v3214_v18 = vmul.f32 %v3182_v54, %v6356_v9 }
 0xbe3   :  { %3252 = vrot.lane.b32.xlu1 %v3212_v61, %s5944_s28 }
 0xbe7   :  { %v3166_v3 = vpop.permute.xlu1 %3165  ;;  %v3194_v40 = vpop.permute.xlu2 %3193 }
 0xbe8   :  { %v3186_v47 = vpop.permute.xlu0 %3185  ;;  %v3210_v19 = vmul.f32 %v3166_v3, %v6340_v5 }
 0xbe9   :  { %v3215_v26 = vmul.f32 %v3186_v47, %v6345_v34 }
 0xbea   :  { %3250 = vrot.lane.b32.xlu0 %v3211_v52, %s5944_s28  ;;  %3248 = vrot.lane.b32.xlu2 %v3210_v19, %s5944_s28  ;;  %v3217_v52 = vmul.f32 %v3194_v40, %v6377_v12 }
 0xbeb   :  { %3258 = vrot.lane.b32.xlu1 %v3215_v26, %s5944_s28 }
 0xbef   :  { %v3178_v48 = vpop.permute.xlu1 %3177 }
 0xbf0   :  { %v3198_v60 = vpop.permute.xlu0 %3197  ;;  %v3213_v61 = vmul.f32 %v3178_v48, %v6361_v10 }
 0xbf1   :  { %v3218_v20 = vmul.f32 %v3198_v60, %v6366_v43 }
 0xbf2   :  { %3256 = vrot.lane.b32.xlu0 %v3214_v18, %s5944_s28  ;;  %3254 = vrot.lane.b32.xlu2 %v3213_v61, %s5944_s28 }
 0xbf3   :  { %3264 = vrot.lane.b32.xlu1 %v3218_v20, %s5944_s28 }
 0xbf7   :  { %v3190_v3 = vpop.permute.xlu1 %3189 }
 0xbf8   :  { %v3216_v47 = vmul.f32 %v3190_v3, %v6382_v13 }
 0xbfa   :  { %3262 = vrot.lane.b32.xlu0 %v3217_v52, %s5944_s28  ;;  %3260 = vrot.lane.b32.xlu2 %v3216_v47, %s5944_s28 }
 0xbfb   :  { %3305 = vperm.xlu1 %5713, %v7436_v36  }
 0xbff   :  { %v3202_v19 = vpop.permute.xlu1 %3201 }
 0xc00   :  { %v3219_v26 = vmul.f32 %v3202_v19, %v6392_v14  ;;  %v5947_v19 = vmov 21  }
 0xc02   :  { %3301 = vperm.xlu0 %5712, %v7443_v41   ;;  %3266 = vrot.lane.b32.xlu2 %v3219_v26, %s5944_s28 }
 0xc03   :  { %3313 = vperm.xlu1 %5713, %v7450_v11  }
 0xc0a   :  { %3321 = vperm.xlu0 %5712, %v7456_v8   ;;  %3309 = vperm.xlu2 %5714, %v7462_v21  }
 0xc0b   :  { %3325 = vperm.xlu1 %5713, %v7468_v27  }
 0xc12   :  { %3333 = vperm.xlu0 %5712, %v7474_v1   ;;  %3317 = vperm.xlu2 %5714, %v7480_v30  }
 0xc13   :  { %3337 = vperm.xlu1 %5713, %v7486_v63  }
 0xc1a   :  { %3345 = vperm.xlu0 %5712, %v7492_v25   ;;  %3329 = vperm.xlu2 %5714, %v7498_v16  }
 0xc1b   :  { %3349 = vperm.xlu1 %5713, %v7504_v58  }
 0xc22   :  { %3357 = vperm.xlu0 %5712, %v7510_v45   ;;  %3341 = vperm.xlu2 %5714, %v7516_v23  }
 0xc23   :  { %3361 = vperm.xlu1 %5713, %v7522_v37  }
 0xc2a   :  { %3353 = vperm.xlu2 %5714, %v7528_v32   ;;  %5715 = vset.pattern.permute.xlu0 %v5947_v19 }
 0xc2b   :  { %5716 = vset.pattern.permute.xlu1 %v5947_v19 }
 0xc2d   :  { %v8011_v36 = vpop.permute.xlu2 %3236 }
 0xc2e   :  { %10037 = vst [vmem:[#allocation305_spill] sm:$0xff] %v8011_v36 }
 0xc32   :  { %5717 = vset.pattern.permute.xlu2 %v5947_v19 }
 0xc3c   :  { %v8013_v41 = vpop.permute.xlu2 %3242  ;;  %v8017_v8 = vpop.permute.xlu1 %3240 }
 0xc3d   :  { %10038 = vst [vmem:[#allocation306_spill] sm:$0xff] %v8013_v41  ;;  %v8162_v41 = vld [vmem:[%s9699_s1 + $0x78] sm:$0xff] }
 0xc3e   :  { %10040 = vst [vmem:[#allocation308_spill] sm:$0xff] %v8017_v8  ;;  %v8168_v8 = vld [vmem:[%s9699_s1 + $0x68] sm:$0xff] }
 0xc44   :  { %v8015_v11 = vpop.permute.xlu2 %3248 }
 0xc45   :  { %10039 = vst [vmem:[#allocation307_spill] sm:$0xff] %v8015_v11  ;;  %v8150_v11 = vld [vmem:[%s9699_s1 + $0x60] sm:$0xff] }
 0xc4c   :  { %v8019_v21 = vpop.permute.xlu0 %3238  ;;  %v8021_v27 = vpop.permute.xlu2 %3254 }
 0xc4d   :  { %10041 = vst [vmem:[#allocation309_spill] sm:$0xff] %v8019_v21  ;;  %v8023_v1 = vpop.permute.xlu1 %3246 }
 0xc4e   :  { %10042 = vst [vmem:[#allocation310_spill] sm:$0xff] %v8021_v27 }
 0xc4f   :  { %10043 = vst [vmem:[#allocation311_spill] sm:$0xff] %v8023_v1  ;;  %v8156_v1 = vld [vmem:[%s9699_s1 + $0x50] sm:$0xff] }
 0xc54   :  { %v8025_v45 = vpop.permute.xlu0 %3244  ;;  %v8027_v23 = vpop.permute.xlu2 %3260 }
 0xc55   :  { %10044 = vst [vmem:[#allocation312_spill] sm:$0xff] %v8025_v45  ;;  %v8029_v37 = vpop.permute.xlu1 %3252 }
 0xc56   :  { %10045 = vst [vmem:[#allocation313_spill] sm:$0xff] %v8027_v23 }
 0xc57   :  { %10046 = vst [vmem:[#allocation314_spill] sm:$0xff] %v8029_v37 }
 0xc5c   :  { %v8031_v32 = vpop.permute.xlu0 %3250  ;;  %v8033_v30 = vpop.permute.xlu2 %3266 }
 0xc5d   :  { %10047 = vst [vmem:[#allocation315_spill] sm:$0xff] %v8031_v32  ;;  %v8035_v63 = vpop.permute.xlu1 %3258 }
 0xc5e   :  { %10048 = vst [vmem:[#allocation316_spill] sm:$0xff] %v8033_v30 }
 0xc5f   :  { %10049 = vst [vmem:[#allocation317_spill] sm:$0xff] %v8035_v63 }
 0xc64   :  { %v8037_v25 = vpop.permute.xlu0 %3256  ;;  %v3310_v16 = vpop.permute.xlu2 %3309 }
 0xc65   :  { %10050 = vst [vmem:[#allocation318_spill] sm:$0xff] %v8037_v25  ;;  %v3366_v58 = vmul.f32 %v3310_v16, %v6284_v62  ;;  %v8040_v54 = vpop.permute.xlu1 %3264 }
 0xc66   :  { %10051 = vst [vmem:[#allocation319_spill] sm:$0xff] %v8040_v54 }
 0xc67   :  { %3400 = vrot.lane.b32.xlu1 %v3366_v58, %s5946_s29 }
 0xc6c   :  { %v8043_v48 = vpop.permute.xlu0 %3262  ;;  %v3318_v18 = vpop.permute.xlu2 %3317 }
 0xc6d   :  { %v3306_v60 = vpop.permute.xlu1 %3305  ;;  %v3368_v52 = vmul.f32 %v3318_v18, %v6317_v6 }
 0xc6e   :  { %v3365_v61 = vmul.f32 %v3306_v60, %v6304_v33 }
 0xc70   :  { %3398 = vrot.lane.b32.xlu0 %v3365_v61, %s5946_s29 }
 0xc74   :  { %v3302_v20 = vpop.permute.xlu0 %3301  ;;  %v3330_v47 = vpop.permute.xlu2 %3329 }
 0xc75   :  { %v3364_v40 = vmul.f32 %v3302_v20, %v6298_v57  ;;  %v3314_v3 = vpop.permute.xlu1 %3313  ;;  %v3371_v61 = vmul.f32 %v3330_v47, %v6336_v0 }
 0xc76   :  { %v3367_v16 = vmul.f32 %v3314_v3, %v6321_v4 }
 0xc77   :  { %3396 = vrot.lane.b32.xlu2 %v3364_v40, %s5946_s29 }
 0xc78   :  { %3404 = vrot.lane.b32.xlu0 %v3368_v52, %s5946_s29 }
 0xc7c   :  { %v3322_v26 = vpop.permute.xlu0 %3321  ;;  %v3342_v18 = vpop.permute.xlu2 %3341 }
 0xc7d   :  { %v3369_v58 = vmul.f32 %v3322_v26, %v6308_v50  ;;  %v3326_v60 = vpop.permute.xlu1 %3325  ;;  %v3374_v19 = vmul.f32 %v3342_v18, %v6356_v9 }
 0xc7e   :  { %v3370_v40 = vmul.f32 %v3326_v60, %v6340_v5 }
 0xc7f   :  { %3406 = vrot.lane.b32.xlu1 %v3369_v58, %s5946_s29  ;;  %3402 = vrot.lane.b32.xlu2 %v3367_v16, %s5946_s29 }
 0xc80   :  { %3410 = vrot.lane.b32.xlu0 %v3371_v61, %s5946_s29 }
 0xc84   :  { %v3334_v20 = vpop.permute.xlu0 %3333  ;;  %v3354_v47 = vpop.permute.xlu2 %3353 }
 0xc85   :  { %v3372_v52 = vmul.f32 %v3334_v20, %v6326_v42  ;;  %v3338_v3 = vpop.permute.xlu1 %3337  ;;  %v3377_v61 = vmul.f32 %v3354_v47, %v6377_v12  ;;  %v8083_v47 = vld [vmem:[%s9699_s1 + $0x8] sm:$0xff] }
 0xc86   :  { %v3373_v16 = vmul.f32 %v3338_v3, %v6361_v10 }
 0xc87   :  { %3412 = vrot.lane.b32.xlu1 %v3372_v52, %s5946_s29  ;;  %3408 = vrot.lane.b32.xlu2 %v3370_v40, %s5946_s29  ;;  %v8076_v52 = vld [vmem:[%s9699_s1] sm:$0xff] }
 0xc88   :  { %3416 = vrot.lane.b32.xlu0 %v3374_v19, %s5946_s29 }
 0xc8c   :  { %v3346_v26 = vpop.permute.xlu0 %3345 }
 0xc8d   :  { %v3375_v58 = vmul.f32 %v3346_v26, %v6345_v34  ;;  %v3350_v60 = vpop.permute.xlu1 %3349  ;;  %v8090_v26 = vld [vmem:[%s9699_s1 + $0x28] sm:$0xff] }
 0xc8e   :  { %v3376_v20 = vmul.f32 %v3350_v60, %v6382_v13  ;;  %v8114_v60 = vld [vmem:[%s9699_s1 + $0x30] sm:$0xff] }
 0xc8f   :  { %3418 = vrot.lane.b32.xlu1 %v3375_v58, %s5946_s29  ;;  %3414 = vrot.lane.b32.xlu2 %v3373_v16, %s5946_s29  ;;  %v8096_v16 = vld [vmem:[%s9699_s1 + $0x18] sm:$0xff]  ;;  %v8102_v58 = vld [vmem:[%s9699_s1 + $0x10] sm:$0xff] }
 0xc90   :  { %3422 = vrot.lane.b32.xlu0 %v3377_v61, %s5946_s29  ;;  %v8108_v61 = vld [vmem:[%s9699_s1 + $0x40] sm:$0xff] }
 0xc94   :  { %v3358_v18 = vpop.permute.xlu0 %3357 }
 0xc95   :  { %v3378_v40 = vmul.f32 %v3358_v18, %v6366_v43  ;;  %v3362_v19 = vpop.permute.xlu1 %3361  ;;  %v8120_v18 = vld [vmem:[%s9699_s1 + $0x20] sm:$0xff] }
 0xc96   :  { %v3379_v3 = vmul.f32 %v3362_v19, %v6392_v14  ;;  %v8138_v19 = vld [vmem:[%s9699_s1 + $0x38] sm:$0xff] }
 0xc97   :  { %3424 = vrot.lane.b32.xlu1 %v3378_v40, %s5946_s29  ;;  %3420 = vrot.lane.b32.xlu2 %v3376_v20, %s5946_s29  ;;  %v8126_v20 = vld [vmem:[%s9699_s1 + $0x58] sm:$0xff]  ;;  %v8132_v40 = vld [vmem:[%s9699_s1 + $0x48] sm:$0xff] }
 0xc98   :  { %3461 = vperm.xlu0 %5715, %v8076_v52  }
 0xc9f   :  { %3465 = vperm.xlu1 %5716, %v8083_v47   ;;  %3426 = vrot.lane.b32.xlu2 %v3379_v3, %s5946_s29  ;;  %v8144_v3 = vld [vmem:[%s9699_s1 + $0x70] sm:$0xff]  ;;  %s5962_s29 = smov 100  }
 0xca0   :  { %3481 = vperm.xlu0 %5715, %v8090_v26  }
 0xca7   :  { %3473 = vperm.xlu1 %5716, %v8096_v16   ;;  %3469 = vperm.xlu2 %5717, %v8102_v58  }
 0xca8   :  { %3493 = vperm.xlu0 %5715, %v8108_v61  }
 0xcaf   :  { %3485 = vperm.xlu1 %5716, %v8114_v60   ;;  %3477 = vperm.xlu2 %5717, %v8120_v18  }
 0xcb0   :  { %3505 = vperm.xlu0 %5715, %v8126_v20  }
 0xcb7   :  { %3497 = vperm.xlu1 %5716, %v8132_v40   ;;  %3489 = vperm.xlu2 %5717, %v8138_v19  }
 0xcb8   :  { %3517 = vperm.xlu0 %5715, %v8144_v3  }
 0xcbf   :  { %3509 = vperm.xlu1 %5716, %v8150_v11   ;;  %3501 = vperm.xlu2 %5717, %v8156_v1  }
 0xcc0   :  { %5718 = vset.pattern.permute.xlu0 %v5949_v44 }
 0xcc7   :  { %3521 = vperm.xlu1 %5716, %v8162_v41   ;;  %3513 = vperm.xlu2 %5717, %v8168_v8  }
 0xccf   :  { %5719 = vset.pattern.permute.xlu1 %v5949_v44  ;;  %5720 = vset.pattern.permute.xlu2 %v5949_v44 }
 0xcd1   :  { %v8171_v36 = vpop.permute.xlu2 %3396 }
 0xcd2   :  { %10052 = vst [vmem:[#allocation320_spill] sm:$0xff] %v8171_v36 }
 0xcd9   :  { %v8173_v54 = vpop.permute.xlu2 %3402  ;;  %v8179_v30 = vpop.permute.xlu1 %3400 }
 0xcda   :  { %10053 = vst [vmem:[#allocation321_spill] sm:$0xff] %v8173_v54 }
 0xcdb   :  { %10056 = vst [vmem:[#allocation324_spill] sm:$0xff] %v8179_v30 }
 0xce1   :  { %v8175_v63 = vpop.permute.xlu2 %3408 }
 0xce2   :  { %10054 = vst [vmem:[#allocation322_spill] sm:$0xff] %v8175_v63  ;;  %v8177_v25 = vpop.permute.xlu0 %3398 }
 0xce3   :  { %10055 = vst [vmem:[#allocation323_spill] sm:$0xff] %v8177_v25 }
 0xce9   :  { %v8181_v37 = vpop.permute.xlu2 %3414 }
 0xcea   :  { %10057 = vst [vmem:[#allocation325_spill] sm:$0xff] %v8181_v37  ;;  %v8183_v32 = vpop.permute.xlu0 %3404 }
 0xceb   :  { %10058 = vst [vmem:[#allocation326_spill] sm:$0xff] %v8183_v32 }
 0xcf1   :  { %v8185_v23 = vpop.permute.xlu2 %3420  ;;  %v8187_v45 = vpop.permute.xlu1 %3406 }
 0xcf2   :  { %10059 = vst [vmem:[#allocation327_spill] sm:$0xff] %v8185_v23  ;;  %v8189_v27 = vpop.permute.xlu0 %3410 }
 0xcf3   :  { %10060 = vst [vmem:[#allocation328_spill] sm:$0xff] %v8187_v45 }
 0xcf4   :  { %10061 = vst [vmem:[#allocation329_spill] sm:$0xff] %v8189_v27 }
 0xcf9   :  { %v8191_v21 = vpop.permute.xlu2 %3426  ;;  %v8193_v36 = vpop.permute.xlu1 %3412 }
 0xcfa   :  { %10062 = vst [vmem:[#allocation330_spill] sm:$0xff] %v8191_v21  ;;  %v8195_v54 = vpop.permute.xlu0 %3416 }
 0xcfb   :  { %10063 = vst [vmem:[#allocation331_spill] sm:$0xff] %v8193_v36 }
 0xcfc   :  { %10064 = vst [vmem:[#allocation332_spill] sm:$0xff] %v8195_v54 }
 0xd01   :  { %v3470_v63 = vpop.permute.xlu2 %3469  ;;  %v8197_v25 = vpop.permute.xlu1 %3418 }
 0xd02   :  { %10065 = vst [vmem:[#allocation333_spill] sm:$0xff] %v8197_v25  ;;  %v8199_v30 = vpop.permute.xlu0 %3422  ;;  %v3526_v37 = vmul.f32 %v3470_v63, %v6284_v62 }
 0xd03   :  { %10066 = vst [vmem:[#allocation334_spill] sm:$0xff] %v8199_v30 }
 0xd04   :  { %3560 = vrot.lane.b32.xlu1 %v3526_v37, %s5948_s16 }
 0xd09   :  { %v8203_v23 = vpop.permute.xlu1 %3424  ;;  %v3478_v36 = vpop.permute.xlu2 %3477 }
 0xd0a   :  { %10067 = vst [vmem:[#allocation335_spill] sm:$0xff] %v8203_v23  ;;  %v3462_v45 = vpop.permute.xlu0 %3461 }
 0xd0b   :  { %v3524_v27 = vmul.f32 %v3462_v45, %v6298_v57  ;;  %v3528_v45 = vmul.f32 %v3478_v36, %v6317_v6 }
 0xd0d   :  { %3556 = vrot.lane.b32.xlu2 %v3524_v27, %s5948_s16 }
 0xd11   :  { %v3466_v21 = vpop.permute.xlu1 %3465  ;;  %v3490_v23 = vpop.permute.xlu2 %3489 }
 0xd12   :  { %v3482_v54 = vpop.permute.xlu0 %3481  ;;  %v3525_v32 = vmul.f32 %v3466_v21, %v6304_v33  ;;  %v3531_v44 = vmul.f32 %v3490_v23, %v6336_v0 }
 0xd13   :  { %v3529_v25 = vmul.f32 %v3482_v54, %v6308_v50 }
 0xd14   :  { %3558 = vrot.lane.b32.xlu0 %v3525_v32, %s5948_s16 }
 0xd15   :  { %3566 = vrot.lane.b32.xlu1 %v3529_v25, %s5948_s16 }
 0xd19   :  { %v3474_v37 = vpop.permute.xlu1 %3473  ;;  %v3502_v54 = vpop.permute.xlu2 %3501 }
 0xd1a   :  { %v3494_v63 = vpop.permute.xlu0 %3493  ;;  %v3527_v27 = vmul.f32 %v3474_v37, %v6321_v4 }
 0xd1b   :  { %v3532_v30 = vmul.f32 %v3494_v63, %v6326_v42 }
 0xd1c   :  { %3564 = vrot.lane.b32.xlu0 %v3528_v45, %s5948_s16  ;;  %3562 = vrot.lane.b32.xlu2 %v3527_v27, %s5948_s16  ;;  %v3534_v45 = vmul.f32 %v3502_v54, %v6356_v9 }
 0xd1d   :  { %3572 = vrot.lane.b32.xlu1 %v3532_v30, %s5948_s16 }
 0xd21   :  { %v3486_v21 = vpop.permute.xlu1 %3485  ;;  %v3514_v27 = vpop.permute.xlu2 %3513 }
 0xd22   :  { %v3506_v32 = vpop.permute.xlu0 %3505  ;;  %v3530_v25 = vmul.f32 %v3486_v21, %v6340_v5 }
 0xd23   :  { %v3535_v36 = vmul.f32 %v3506_v32, %v6345_v34 }
 0xd24   :  { %3570 = vrot.lane.b32.xlu0 %v3531_v44, %s5948_s16  ;;  %3568 = vrot.lane.b32.xlu2 %v3530_v25, %s5948_s16  ;;  %v3537_v44 = vmul.f32 %v3514_v27, %v6377_v12 }
 0xd25   :  { %3578 = vrot.lane.b32.xlu1 %v3535_v36, %s5948_s16 }
 0xd29   :  { %v3498_v37 = vpop.permute.xlu1 %3497 }
 0xd2a   :  { %v3518_v63 = vpop.permute.xlu0 %3517  ;;  %v3533_v30 = vmul.f32 %v3498_v37, %v6361_v10 }
 0xd2b   :  { %v3538_v23 = vmul.f32 %v3518_v63, %v6366_v43 }
 0xd2c   :  { %3576 = vrot.lane.b32.xlu0 %v3534_v45, %s5948_s16  ;;  %3574 = vrot.lane.b32.xlu2 %v3533_v30, %s5948_s16 }
 0xd2d   :  { %3584 = vrot.lane.b32.xlu1 %v3538_v23, %s5948_s16 }
 0xd31   :  { %v3510_v21 = vpop.permute.xlu1 %3509 }
 0xd32   :  { %v3536_v32 = vmul.f32 %v3510_v21, %v6382_v13 }
 0xd34   :  { %3582 = vrot.lane.b32.xlu0 %v3537_v44, %s5948_s16  ;;  %3580 = vrot.lane.b32.xlu2 %v3536_v32, %s5948_s16 }
 0xd35   :  { %3625 = vperm.xlu1 %5719, %v8083_v47  }
 0xd39   :  { %v3522_v25 = vpop.permute.xlu1 %3521 }
 0xd3a   :  { %v3539_v36 = vmul.f32 %v3522_v25, %v6392_v14 }
 0xd3c   :  { %3621 = vperm.xlu0 %5718, %v8076_v52   ;;  %3586 = vrot.lane.b32.xlu2 %v3539_v36, %s5948_s16 }
 0xd3d   :  { %3633 = vperm.xlu1 %5719, %v8096_v16  }
 0xd44   :  { %3641 = vperm.xlu0 %5718, %v8090_v26   ;;  %3629 = vperm.xlu2 %5720, %v8102_v58  }
 0xd45   :  { %3645 = vperm.xlu1 %5719, %v8114_v60  }
 0xd4c   :  { %3653 = vperm.xlu0 %5718, %v8108_v61   ;;  %3637 = vperm.xlu2 %5720, %v8120_v18  }
 0xd4d   :  { %3657 = vperm.xlu1 %5719, %v8132_v40  }
 0xd54   :  { %3665 = vperm.xlu0 %5718, %v8126_v20   ;;  %3649 = vperm.xlu2 %5720, %v8138_v19  }
 0xd55   :  { %3669 = vperm.xlu1 %5719, %v8150_v11  }
 0xd5c   :  { %3677 = vperm.xlu0 %5718, %v8144_v3   ;;  %3661 = vperm.xlu2 %5720, %v8156_v1  }
 0xd5d   :  { %3681 = vperm.xlu1 %5719, %v8162_v41  }
 0xd64   :  { %3673 = vperm.xlu2 %5720, %v8168_v8  }
 0xd67   :  { %v8251_v54 = vpop.permute.xlu2 %3556 }
 0xd68   :  { %10068 = vst [vmem:[#allocation336_spill] sm:$0xff] %v8251_v54 }
 0xd76   :  { %v8253_v37 = vpop.permute.xlu2 %3562  ;;  %v8257_v63 = vpop.permute.xlu1 %3560 }
 0xd77   :  { %10069 = vst [vmem:[#allocation337_spill] sm:$0xff] %v8253_v37 }
 0xd78   :  { %10071 = vst [vmem:[#allocation339_spill] sm:$0xff] %v8257_v63 }
 0xd7e   :  { %v8255_v45 = vpop.permute.xlu2 %3568 }
 0xd7f   :  { %10070 = vst [vmem:[#allocation338_spill] sm:$0xff] %v8255_v45 }
 0xd86   :  { %v8259_v30 = vpop.permute.xlu0 %3558  ;;  %v8261_v23 = vpop.permute.xlu2 %3574 }
 0xd87   :  { %10072 = vst [vmem:[#allocation340_spill] sm:$0xff] %v8259_v30  ;;  %v8263_v27 = vpop.permute.xlu1 %3566 }
 0xd88   :  { %10073 = vst [vmem:[#allocation341_spill] sm:$0xff] %v8261_v23 }
 0xd89   :  { %10074 = vst [vmem:[#allocation342_spill] sm:$0xff] %v8263_v27 }
 0xd8e   :  { %v8265_v21 = vpop.permute.xlu0 %3564  ;;  %v8267_v44 = vpop.permute.xlu2 %3580 }
 0xd8f   :  { %10075 = vst [vmem:[#allocation343_spill] sm:$0xff] %v8265_v21  ;;  %v8269_v32 = vpop.permute.xlu1 %3572 }
 0xd90   :  { %10076 = vst [vmem:[#allocation344_spill] sm:$0xff] %v8267_v44 }
 0xd91   :  { %10077 = vst [vmem:[#allocation345_spill] sm:$0xff] %v8269_v32 }
 0xd96   :  { %v8271_v25 = vpop.permute.xlu0 %3570  ;;  %v8273_v36 = vpop.permute.xlu2 %3586 }
 0xd97   :  { %10078 = vst [vmem:[#allocation346_spill] sm:$0xff] %v8271_v25  ;;  %v8275_v37 = vpop.permute.xlu1 %3578 }
 0xd98   :  { %10079 = vst [vmem:[#allocation347_spill] sm:$0xff] %v8273_v36 }
 0xd99   :  { %10080 = vst [vmem:[#allocation348_spill] sm:$0xff] %v8275_v37 }
 0xd9e   :  { %v8277_v45 = vpop.permute.xlu0 %3576  ;;  %v3630_v63 = vpop.permute.xlu2 %3629 }
 0xd9f   :  { %10081 = vst [vmem:[#allocation349_spill] sm:$0xff] %v8277_v45  ;;  %v3686_v54 = vmul.f32 %v3630_v63, %v6284_v62  ;;  %v8280_v23 = vpop.permute.xlu1 %3584 }
 0xda0   :  { %10082 = vst [vmem:[#allocation350_spill] sm:$0xff] %v8280_v23  ;;  %v5951_v23 = vmov 23  }
 0xda1   :  { %3720 = vrot.lane.b32.xlu1 %v3686_v54, %s5950_s17  ;;  %5721 = vset.pattern.permute.xlu0 %v5951_v23 }
 0xda2   :  { %5722 = vset.pattern.permute.xlu1 %v5951_v23  ;;  %5723 = vset.pattern.permute.xlu2 %v5951_v23 }
 0xda6   :  { %v8283_v27 = vpop.permute.xlu0 %3582  ;;  %v3638_v44 = vpop.permute.xlu2 %3637 }
 0xda7   :  { %10083 = vst [vmem:[#allocation351_spill] sm:$0xff] %v8283_v27  ;;  %v3626_v32 = vpop.permute.xlu1 %3625  ;;  %v3688_v21 = vmul.f32 %v3638_v44, %v6317_v6 }
 0xda8   :  { %v3685_v25 = vmul.f32 %v3626_v32, %v6304_v33 }
 0xdaa   :  { %3718 = vrot.lane.b32.xlu0 %v3685_v25, %s5950_s17 }
 0xdae   :  { %v3622_v36 = vpop.permute.xlu0 %3621  ;;  %v3650_v63 = vpop.permute.xlu2 %3649 }
 0xdaf   :  { %v3684_v37 = vmul.f32 %v3622_v36, %v6298_v57  ;;  %v3634_v45 = vpop.permute.xlu1 %3633  ;;  %v3691_v36 = vmul.f32 %v3650_v63, %v6336_v0 }
 0xdb0   :  { %v3687_v32 = vmul.f32 %v3634_v45, %v6321_v4 }
 0xdb1   :  { %3716 = vrot.lane.b32.xlu2 %v3684_v37, %s5950_s17 }
 0xdb2   :  { %3724 = vrot.lane.b32.xlu0 %v3688_v21, %s5950_s17 }
 0xdb6   :  { %v3642_v54 = vpop.permute.xlu0 %3641  ;;  %v3662_v37 = vpop.permute.xlu2 %3661 }
 0xdb7   :  { %v3689_v25 = vmul.f32 %v3642_v54, %v6308_v50  ;;  %v3646_v30 = vpop.permute.xlu1 %3645  ;;  %v3694_v27 = vmul.f32 %v3662_v37, %v6356_v9 }
 0xdb8   :  { %v3690_v21 = vmul.f32 %v3646_v30, %v6340_v5 }
 0xdb9   :  { %3726 = vrot.lane.b32.xlu1 %v3689_v25, %s5950_s17  ;;  %3722 = vrot.lane.b32.xlu2 %v3687_v32, %s5950_s17 }
 0xdba   :  { %3730 = vrot.lane.b32.xlu0 %v3691_v36, %s5950_s17 }
 0xdbe   :  { %v3654_v44 = vpop.permute.xlu0 %3653  ;;  %v3674_v63 = vpop.permute.xlu2 %3673 }
 0xdbf   :  { %v3692_v23 = vmul.f32 %v3654_v44, %v6326_v42  ;;  %v3658_v45 = vpop.permute.xlu1 %3657  ;;  %v3697_v36 = vmul.f32 %v3674_v63, %v6377_v12 }
 0xdc0   :  { %v3693_v32 = vmul.f32 %v3658_v45, %v6361_v10 }
 0xdc1   :  { %3732 = vrot.lane.b32.xlu1 %v3692_v23, %s5950_s17  ;;  %3728 = vrot.lane.b32.xlu2 %v3690_v21, %s5950_s17 }
 0xdc2   :  { %3736 = vrot.lane.b32.xlu0 %v3694_v27, %s5950_s17 }
 0xdc6   :  { %v3666_v54 = vpop.permute.xlu0 %3665 }
 0xdc7   :  { %v3695_v25 = vmul.f32 %v3666_v54, %v6345_v34  ;;  %v3670_v30 = vpop.permute.xlu1 %3669 }
 0xdc8   :  { %v3696_v44 = vmul.f32 %v3670_v30, %v6382_v13 }
 0xdc9   :  { %3738 = vrot.lane.b32.xlu1 %v3695_v25, %s5950_s17  ;;  %3734 = vrot.lane.b32.xlu2 %v3693_v32, %s5950_s17 }
 0xdca   :  { %3742 = vrot.lane.b32.xlu0 %v3697_v36, %s5950_s17 }
 0xdce   :  { %v3678_v37 = vpop.permute.xlu0 %3677 }
 0xdcf   :  { %v3698_v27 = vmul.f32 %v3678_v37, %v6366_v43  ;;  %v3682_v21 = vpop.permute.xlu1 %3681 }
 0xdd0   :  { %v3699_v23 = vmul.f32 %v3682_v21, %v6392_v14 }
 0xdd1   :  { %3744 = vrot.lane.b32.xlu1 %v3698_v27, %s5950_s17  ;;  %3740 = vrot.lane.b32.xlu2 %v3696_v44, %s5950_s17 }
 0xdd2   :  { %3781 = vperm.xlu0 %5721, %v8076_v52  }
 0xdd9   :  { %3785 = vperm.xlu1 %5722, %v8083_v47   ;;  %3746 = vrot.lane.b32.xlu2 %v3699_v23, %s5950_s17 }
 0xdda   :  { %3801 = vperm.xlu0 %5721, %v8090_v26  }
 0xde1   :  { %3793 = vperm.xlu1 %5722, %v8096_v16   ;;  %3789 = vperm.xlu2 %5723, %v8102_v58  }
 0xde2   :  { %3813 = vperm.xlu0 %5721, %v8108_v61  }
 0xde9   :  { %3805 = vperm.xlu1 %5722, %v8114_v60   ;;  %3797 = vperm.xlu2 %5723, %v8120_v18  }
 0xdea   :  { %3825 = vperm.xlu0 %5721, %v8126_v20  }
 0xdf1   :  { %3817 = vperm.xlu1 %5722, %v8132_v40   ;;  %3809 = vperm.xlu2 %5723, %v8138_v19  }
 0xdf2   :  { %3837 = vperm.xlu0 %5721, %v8144_v3  }
 0xdf9   :  { %3829 = vperm.xlu1 %5722, %v8150_v11   ;;  %3821 = vperm.xlu2 %5723, %v8156_v1  }
 0xe01   :  { %3841 = vperm.xlu1 %5722, %v8162_v41   ;;  %3833 = vperm.xlu2 %5723, %v8168_v8  }
 0xe0b   :  { %v8331_v45 = vpop.permute.xlu2 %3716 }
 0xe0c   :  { %10084 = vst [vmem:[#allocation352_spill] sm:$0xff] %v8331_v45 }
 0xe13   :  { %v8333_v63 = vpop.permute.xlu2 %3722  ;;  %v8339_v25 = vpop.permute.xlu1 %3720 }
 0xe14   :  { %10085 = vst [vmem:[#allocation353_spill] sm:$0xff] %v8333_v63 }
 0xe15   :  { %10088 = vst [vmem:[#allocation356_spill] sm:$0xff] %v8339_v25 }
 0xe1b   :  { %v8335_v54 = vpop.permute.xlu2 %3728 }
 0xe1c   :  { %10086 = vst [vmem:[#allocation354_spill] sm:$0xff] %v8335_v54  ;;  %v8337_v32 = vpop.permute.xlu0 %3718 }
 0xe1d   :  { %10087 = vst [vmem:[#allocation355_spill] sm:$0xff] %v8337_v32  ;;  %v5953_v32 = vmov 24  }
 0xe1e   :  { %5725 = vset.pattern.permute.xlu1 %v5953_v32  ;;  %5724 = vset.pattern.permute.xlu0 %v5953_v32 }
 0xe1f   :  { %5726 = vset.pattern.permute.xlu2 %v5953_v32 }
 0xe23   :  { %v8341_v36 = vpop.permute.xlu2 %3734 }
 0xe24   :  { %10089 = vst [vmem:[#allocation357_spill] sm:$0xff] %v8341_v36  ;;  %v8343_v30 = vpop.permute.xlu0 %3724 }
 0xe25   :  { %10090 = vst [vmem:[#allocation358_spill] sm:$0xff] %v8343_v30 }
 0xe2b   :  { %v8345_v37 = vpop.permute.xlu2 %3740  ;;  %v8347_v44 = vpop.permute.xlu1 %3726 }
 0xe2c   :  { %10091 = vst [vmem:[#allocation359_spill] sm:$0xff] %v8345_v37  ;;  %v8349_v27 = vpop.permute.xlu0 %3730 }
 0xe2d   :  { %10092 = vst [vmem:[#allocation360_spill] sm:$0xff] %v8347_v44 }
 0xe2e   :  { %10093 = vst [vmem:[#allocation361_spill] sm:$0xff] %v8349_v27 }
 0xe33   :  { %v8351_v21 = vpop.permute.xlu2 %3746  ;;  %v8353_v23 = vpop.permute.xlu1 %3732 }
 0xe34   :  { %10094 = vst [vmem:[#allocation362_spill] sm:$0xff] %v8351_v21  ;;  %v8355_v63 = vpop.permute.xlu0 %3736 }
 0xe35   :  { %10095 = vst [vmem:[#allocation363_spill] sm:$0xff] %v8353_v23 }
 0xe36   :  { %10096 = vst [vmem:[#allocation364_spill] sm:$0xff] %v8355_v63 }
 0xe3b   :  { %v3790_v54 = vpop.permute.xlu2 %3789  ;;  %v8357_v45 = vpop.permute.xlu1 %3738 }
 0xe3c   :  { %10097 = vst [vmem:[#allocation365_spill] sm:$0xff] %v8357_v45  ;;  %v8359_v25 = vpop.permute.xlu0 %3742  ;;  %v3846_v36 = vmul.f32 %v3790_v54, %v6284_v62 }
 0xe3d   :  { %10098 = vst [vmem:[#allocation366_spill] sm:$0xff] %v8359_v25 }
 0xe3e   :  { %3880 = vrot.lane.b32.xlu1 %v3846_v36, %s5952_s18 }
 0xe43   :  { %v8363_v37 = vpop.permute.xlu1 %3744  ;;  %v3798_v23 = vpop.permute.xlu2 %3797 }
 0xe44   :  { %10099 = vst [vmem:[#allocation367_spill] sm:$0xff] %v8363_v37  ;;  %v3782_v44 = vpop.permute.xlu0 %3781  ;;  %v3848_v36 = vmul.f32 %v3798_v23, %v6317_v6 }
 0xe45   :  { %v3844_v27 = vmul.f32 %v3782_v44, %v6298_v57 }
 0xe47   :  { %3876 = vrot.lane.b32.xlu2 %v3844_v27, %s5952_s18 }
 0xe4b   :  { %v3786_v21 = vpop.permute.xlu1 %3785  ;;  %v3810_v37 = vpop.permute.xlu2 %3809 }
 0xe4c   :  { %v3802_v63 = vpop.permute.xlu0 %3801  ;;  %v3845_v30 = vmul.f32 %v3786_v21, %v6304_v33  ;;  %v3851_v32 = vmul.f32 %v3810_v37, %v6336_v0 }
 0xe4d   :  { %v3849_v45 = vmul.f32 %v3802_v63, %v6308_v50 }
 0xe4e   :  { %3878 = vrot.lane.b32.xlu0 %v3845_v30, %s5952_s18 }
 0xe4f   :  { %3886 = vrot.lane.b32.xlu1 %v3849_v45, %s5952_s18 }
 0xe53   :  { %v3794_v54 = vpop.permute.xlu1 %3793  ;;  %v3822_v23 = vpop.permute.xlu2 %3821 }
 0xe54   :  { %v3814_v44 = vpop.permute.xlu0 %3813  ;;  %v3847_v27 = vmul.f32 %v3794_v54, %v6321_v4 }
 0xe55   :  { %v3852_v25 = vmul.f32 %v3814_v44, %v6326_v42 }
 0xe56   :  { %3884 = vrot.lane.b32.xlu0 %v3848_v36, %s5952_s18  ;;  %3882 = vrot.lane.b32.xlu2 %v3847_v27, %s5952_s18  ;;  %v3854_v36 = vmul.f32 %v3822_v23, %v6356_v9 }
 0xe57   :  { %3892 = vrot.lane.b32.xlu1 %v3852_v25, %s5952_s18 }
 0xe5b   :  { %v3806_v63 = vpop.permute.xlu1 %3805  ;;  %v3834_v27 = vpop.permute.xlu2 %3833 }
 0xe5c   :  { %v3826_v30 = vpop.permute.xlu0 %3825  ;;  %v3850_v45 = vmul.f32 %v3806_v63, %v6340_v5 }
 0xe5d   :  { %v3855_v21 = vmul.f32 %v3826_v30, %v6345_v34 }
 0xe5e   :  { %3890 = vrot.lane.b32.xlu0 %v3851_v32, %s5952_s18  ;;  %3888 = vrot.lane.b32.xlu2 %v3850_v45, %s5952_s18  ;;  %v3857_v32 = vmul.f32 %v3834_v27, %v6377_v12 }
 0xe5f   :  { %3898 = vrot.lane.b32.xlu1 %v3855_v21, %s5952_s18 }
 0xe63   :  { %v3818_v54 = vpop.permute.xlu1 %3817 }
 0xe64   :  { %v3838_v44 = vpop.permute.xlu0 %3837  ;;  %v3853_v25 = vmul.f32 %v3818_v54, %v6361_v10 }
 0xe65   :  { %v3858_v37 = vmul.f32 %v3838_v44, %v6366_v43 }
 0xe66   :  { %3896 = vrot.lane.b32.xlu0 %v3854_v36, %s5952_s18  ;;  %3894 = vrot.lane.b32.xlu2 %v3853_v25, %s5952_s18 }
 0xe67   :  { %3904 = vrot.lane.b32.xlu1 %v3858_v37, %s5952_s18 }
 0xe6b   :  { %v3830_v63 = vpop.permute.xlu1 %3829 }
 0xe6c   :  { %v3856_v30 = vmul.f32 %v3830_v63, %v6382_v13 }
 0xe6e   :  { %3902 = vrot.lane.b32.xlu0 %v3857_v32, %s5952_s18  ;;  %3900 = vrot.lane.b32.xlu2 %v3856_v30, %s5952_s18 }
 0xe6f   :  { %3945 = vperm.xlu1 %5725, %v8083_v47  }
 0xe73   :  { %v3842_v45 = vpop.permute.xlu1 %3841 }
 0xe74   :  { %v3859_v21 = vmul.f32 %v3842_v45, %v6392_v14 }
 0xe76   :  { %3941 = vperm.xlu0 %5724, %v8076_v52   ;;  %3906 = vrot.lane.b32.xlu2 %v3859_v21, %s5952_s18 }
 0xe77   :  { %3953 = vperm.xlu1 %5725, %v8096_v16  }
 0xe7e   :  { %3961 = vperm.xlu0 %5724, %v8090_v26   ;;  %3949 = vperm.xlu2 %5726, %v8102_v58  }
 0xe7f   :  { %3965 = vperm.xlu1 %5725, %v8114_v60  }
 0xe86   :  { %3973 = vperm.xlu0 %5724, %v8108_v61   ;;  %3957 = vperm.xlu2 %5726, %v8120_v18  }
 0xe87   :  { %3977 = vperm.xlu1 %5725, %v8132_v40  }
 0xe8e   :  { %3985 = vperm.xlu0 %5724, %v8126_v20   ;;  %3969 = vperm.xlu2 %5726, %v8138_v19  }
 0xe8f   :  { %3989 = vperm.xlu1 %5725, %v8150_v11  }
 0xe96   :  { %3997 = vperm.xlu0 %5724, %v8144_v3   ;;  %3981 = vperm.xlu2 %5726, %v8156_v1  }
 0xe97   :  { %4001 = vperm.xlu1 %5725, %v8162_v41  }
 0xe9e   :  { %3993 = vperm.xlu2 %5726, %v8168_v8  }
 0xea1   :  { %v8411_v23 = vpop.permute.xlu2 %3876 }
 0xea2   :  { %10100 = vst [vmem:[#allocation368_spill] sm:$0xff] %v8411_v23 }
 0xeb0   :  { %v8413_v54 = vpop.permute.xlu2 %3882  ;;  %v8417_v44 = vpop.permute.xlu1 %3880 }
 0xeb1   :  { %10101 = vst [vmem:[#allocation369_spill] sm:$0xff] %v8413_v54 }
 0xeb2   :  { %10103 = vst [vmem:[#allocation371_spill] sm:$0xff] %v8417_v44 }
 0xeb8   :  { %v8415_v36 = vpop.permute.xlu2 %3888 }
 0xeb9   :  { %10102 = vst [vmem:[#allocation370_spill] sm:$0xff] %v8415_v36 }
 0xec0   :  { %v8419_v25 = vpop.permute.xlu0 %3878  ;;  %v8421_v37 = vpop.permute.xlu2 %3894 }
 0xec1   :  { %10104 = vst [vmem:[#allocation372_spill] sm:$0xff] %v8419_v25  ;;  %v8423_v27 = vpop.permute.xlu1 %3886 }
 0xec2   :  { %10105 = vst [vmem:[#allocation373_spill] sm:$0xff] %v8421_v37 }
 0xec3   :  { %10106 = vst [vmem:[#allocation374_spill] sm:$0xff] %v8423_v27 }
 0xec8   :  { %v8425_v63 = vpop.permute.xlu0 %3884  ;;  %v8427_v32 = vpop.permute.xlu2 %3900 }
 0xec9   :  { %10107 = vst [vmem:[#allocation375_spill] sm:$0xff] %v8425_v63  ;;  %v8429_v30 = vpop.permute.xlu1 %3892 }
 0xeca   :  { %10108 = vst [vmem:[#allocation376_spill] sm:$0xff] %v8427_v32 }
 0xecb   :  { %10109 = vst [vmem:[#allocation377_spill] sm:$0xff] %v8429_v30 }
 0xed0   :  { %v8431_v45 = vpop.permute.xlu0 %3890  ;;  %v8433_v21 = vpop.permute.xlu2 %3906 }
 0xed1   :  { %10110 = vst [vmem:[#allocation378_spill] sm:$0xff] %v8431_v45  ;;  %v8435_v54 = vpop.permute.xlu1 %3898 }
 0xed2   :  { %10111 = vst [vmem:[#allocation379_spill] sm:$0xff] %v8433_v21 }
 0xed3   :  { %10112 = vst [vmem:[#allocation380_spill] sm:$0xff] %v8435_v54 }
 0xed8   :  { %v8437_v36 = vpop.permute.xlu0 %3896  ;;  %v3950_v44 = vpop.permute.xlu2 %3949 }
 0xed9   :  { %10113 = vst [vmem:[#allocation381_spill] sm:$0xff] %v8437_v36  ;;  %v4006_v23 = vmul.f32 %v3950_v44, %v6284_v62  ;;  %v8440_v37 = vpop.permute.xlu1 %3904 }
 0xeda   :  { %10114 = vst [vmem:[#allocation382_spill] sm:$0xff] %v8440_v37  ;;  %v5955_v37 = vmov 25  }
 0xedb   :  { %4040 = vrot.lane.b32.xlu1 %v4006_v23, %s5954_s19  ;;  %5727 = vset.pattern.permute.xlu0 %v5955_v37 }
 0xedc   :  { %5728 = vset.pattern.permute.xlu1 %v5955_v37  ;;  %5729 = vset.pattern.permute.xlu2 %v5955_v37 }
 0xee0   :  { %v8443_v27 = vpop.permute.xlu0 %3902  ;;  %v3958_v32 = vpop.permute.xlu2 %3957 }
 0xee1   :  { %10115 = vst [vmem:[#allocation383_spill] sm:$0xff] %v8443_v27  ;;  %v3946_v30 = vpop.permute.xlu1 %3945  ;;  %v4008_v63 = vmul.f32 %v3958_v32, %v6317_v6 }
 0xee2   :  { %v4005_v45 = vmul.f32 %v3946_v30, %v6304_v33 }
 0xee4   :  { %4038 = vrot.lane.b32.xlu0 %v4005_v45, %s5954_s19 }
 0xee8   :  { %v3942_v21 = vpop.permute.xlu0 %3941  ;;  %v3970_v44 = vpop.permute.xlu2 %3969 }
 0xee9   :  { %v4004_v54 = vmul.f32 %v3942_v21, %v6298_v57  ;;  %v3954_v36 = vpop.permute.xlu1 %3953  ;;  %v4011_v21 = vmul.f32 %v3970_v44, %v6336_v0 }
 0xeea   :  { %v4007_v30 = vmul.f32 %v3954_v36, %v6321_v4 }
 0xeeb   :  { %4036 = vrot.lane.b32.xlu2 %v4004_v54, %s5954_s19 }
 0xeec   :  { %4044 = vrot.lane.b32.xlu0 %v4008_v63, %s5954_s19 }
 0xef0   :  { %v3962_v23 = vpop.permute.xlu0 %3961  ;;  %v3982_v54 = vpop.permute.xlu2 %3981 }
 0xef1   :  { %v4009_v45 = vmul.f32 %v3962_v23, %v6308_v50  ;;  %v3966_v25 = vpop.permute.xlu1 %3965  ;;  %v4014_v27 = vmul.f32 %v3982_v54, %v6356_v9 }
 0xef2   :  { %v4010_v63 = vmul.f32 %v3966_v25, %v6340_v5 }
 0xef3   :  { %4046 = vrot.lane.b32.xlu1 %v4009_v45, %s5954_s19  ;;  %4042 = vrot.lane.b32.xlu2 %v4007_v30, %s5954_s19 }
 0xef4   :  { %4050 = vrot.lane.b32.xlu0 %v4011_v21, %s5954_s19 }
 0xef8   :  { %v3974_v32 = vpop.permute.xlu0 %3973  ;;  %v3994_v44 = vpop.permute.xlu2 %3993 }
 0xef9   :  { %v4012_v37 = vmul.f32 %v3974_v32, %v6326_v42  ;;  %v3978_v36 = vpop.permute.xlu1 %3977  ;;  %v4017_v21 = vmul.f32 %v3994_v44, %v6377_v12 }
 0xefa   :  { %v4013_v30 = vmul.f32 %v3978_v36, %v6361_v10 }
 0xefb   :  { %4052 = vrot.lane.b32.xlu1 %v4012_v37, %s5954_s19  ;;  %4048 = vrot.lane.b32.xlu2 %v4010_v63, %s5954_s19 }
 0xefc   :  { %4056 = vrot.lane.b32.xlu0 %v4014_v27, %s5954_s19 }
 0xf00   :  { %v3986_v23 = vpop.permute.xlu0 %3985 }
 0xf01   :  { %v4015_v45 = vmul.f32 %v3986_v23, %v6345_v34  ;;  %v3990_v25 = vpop.permute.xlu1 %3989 }
 0xf02   :  { %v4016_v32 = vmul.f32 %v3990_v25, %v6382_v13 }
 0xf03   :  { %4058 = vrot.lane.b32.xlu1 %v4015_v45, %s5954_s19  ;;  %4054 = vrot.lane.b32.xlu2 %v4013_v30, %s5954_s19 }
 0xf04   :  { %4062 = vrot.lane.b32.xlu0 %v4017_v21, %s5954_s19 }
 0xf08   :  { %v3998_v54 = vpop.permute.xlu0 %3997 }
 0xf09   :  { %v4018_v27 = vmul.f32 %v3998_v54, %v6366_v43  ;;  %v4002_v63 = vpop.permute.xlu1 %4001 }
 0xf0a   :  { %v4019_v37 = vmul.f32 %v4002_v63, %v6392_v14 }
 0xf0b   :  { %4064 = vrot.lane.b32.xlu1 %v4018_v27, %s5954_s19  ;;  %4060 = vrot.lane.b32.xlu2 %v4016_v32, %s5954_s19 }
 0xf0c   :  { %4101 = vperm.xlu0 %5727, %v8076_v52  }
 0xf13   :  { %4105 = vperm.xlu1 %5728, %v8083_v47   ;;  %4066 = vrot.lane.b32.xlu2 %v4019_v37, %s5954_s19 }
 0xf14   :  { %4121 = vperm.xlu0 %5727, %v8090_v26  }
 0xf1b   :  { %4113 = vperm.xlu1 %5728, %v8096_v16   ;;  %4109 = vperm.xlu2 %5729, %v8102_v58  }
 0xf1c   :  { %4133 = vperm.xlu0 %5727, %v8108_v61  }
 0xf23   :  { %4125 = vperm.xlu1 %5728, %v8114_v60   ;;  %4117 = vperm.xlu2 %5729, %v8120_v18  }
 0xf24   :  { %4145 = vperm.xlu0 %5727, %v8126_v20  }
 0xf2b   :  { %4137 = vperm.xlu1 %5728, %v8132_v40   ;;  %4129 = vperm.xlu2 %5729, %v8138_v19  }
 0xf2c   :  { %4157 = vperm.xlu0 %5727, %v8144_v3  }
 0xf33   :  { %4149 = vperm.xlu1 %5728, %v8150_v11   ;;  %4141 = vperm.xlu2 %5729, %v8156_v1  }
 0xf3b   :  { %4161 = vperm.xlu1 %5728, %v8162_v41   ;;  %4153 = vperm.xlu2 %5729, %v8168_v8  }
 0xf45   :  { %v8491_v36 = vpop.permute.xlu2 %4036 }
 0xf46   :  { %10116 = vst [vmem:[#allocation384_spill] sm:$0xff] %v8491_v36 }
 0xf4d   :  { %v8493_v44 = vpop.permute.xlu2 %4042  ;;  %v8499_v45 = vpop.permute.xlu1 %4040 }
 0xf4e   :  { %10117 = vst [vmem:[#allocation385_spill] sm:$0xff] %v8493_v44 }
 0xf4f   :  { %10120 = vst [vmem:[#allocation388_spill] sm:$0xff] %v8499_v45 }
 0xf55   :  { %v8495_v23 = vpop.permute.xlu2 %4048 }
 0xf56   :  { %10118 = vst [vmem:[#allocation386_spill] sm:$0xff] %v8495_v23  ;;  %v8497_v30 = vpop.permute.xlu0 %4038 }
 0xf57   :  { %10119 = vst [vmem:[#allocation387_spill] sm:$0xff] %v8497_v30  ;;  %v5957_v30 = vmov 26  }
 0xf58   :  { %5731 = vset.pattern.permute.xlu1 %v5957_v30  ;;  %5730 = vset.pattern.permute.xlu0 %v5957_v30 }
 0xf59   :  { %5732 = vset.pattern.permute.xlu2 %v5957_v30 }
 0xf5d   :  { %v8501_v21 = vpop.permute.xlu2 %4054 }
 0xf5e   :  { %10121 = vst [vmem:[#allocation389_spill] sm:$0xff] %v8501_v21  ;;  %v8503_v25 = vpop.permute.xlu0 %4044 }
 0xf5f   :  { %10122 = vst [vmem:[#allocation390_spill] sm:$0xff] %v8503_v25 }
 0xf65   :  { %v8505_v54 = vpop.permute.xlu2 %4060  ;;  %v8507_v32 = vpop.permute.xlu1 %4046 }
 0xf66   :  { %10123 = vst [vmem:[#allocation391_spill] sm:$0xff] %v8505_v54  ;;  %v8509_v27 = vpop.permute.xlu0 %4050 }
 0xf67   :  { %10124 = vst [vmem:[#allocation392_spill] sm:$0xff] %v8507_v32 }
 0xf68   :  { %10125 = vst [vmem:[#allocation393_spill] sm:$0xff] %v8509_v27 }
 0xf6d   :  { %v8511_v63 = vpop.permute.xlu2 %4066  ;;  %v8513_v37 = vpop.permute.xlu1 %4052 }
 0xf6e   :  { %10126 = vst [vmem:[#allocation394_spill] sm:$0xff] %v8511_v63  ;;  %v8515_v44 = vpop.permute.xlu0 %4056 }
 0xf6f   :  { %10127 = vst [vmem:[#allocation395_spill] sm:$0xff] %v8513_v37 }
 0xf70   :  { %10128 = vst [vmem:[#allocation396_spill] sm:$0xff] %v8515_v44 }
 0xf75   :  { %v4110_v23 = vpop.permute.xlu2 %4109  ;;  %v8517_v36 = vpop.permute.xlu1 %4058 }
 0xf76   :  { %10129 = vst [vmem:[#allocation397_spill] sm:$0xff] %v8517_v36  ;;  %v8519_v45 = vpop.permute.xlu0 %4062  ;;  %v4166_v21 = vmul.f32 %v4110_v23, %v6284_v62 }
 0xf77   :  { %10130 = vst [vmem:[#allocation398_spill] sm:$0xff] %v8519_v45 }
 0xf78   :  { %4200 = vrot.lane.b32.xlu1 %v4166_v21, %s5956_s20 }
 0xf7d   :  { %v8523_v54 = vpop.permute.xlu1 %4064  ;;  %v4118_v37 = vpop.permute.xlu2 %4117 }
 0xf7e   :  { %10131 = vst [vmem:[#allocation399_spill] sm:$0xff] %v8523_v54  ;;  %v4102_v32 = vpop.permute.xlu0 %4101  ;;  %v4168_v21 = vmul.f32 %v4118_v37, %v6317_v6 }
 0xf7f   :  { %v4164_v27 = vmul.f32 %v4102_v32, %v6298_v57 }
 0xf81   :  { %4196 = vrot.lane.b32.xlu2 %v4164_v27, %s5956_s20 }
 0xf85   :  { %v4106_v63 = vpop.permute.xlu1 %4105  ;;  %v4130_v54 = vpop.permute.xlu2 %4129 }
 0xf86   :  { %v4122_v44 = vpop.permute.xlu0 %4121  ;;  %v4165_v25 = vmul.f32 %v4106_v63, %v6304_v33  ;;  %v4171_v30 = vmul.f32 %v4130_v54, %v6336_v0 }
 0xf87   :  { %v4169_v36 = vmul.f32 %v4122_v44, %v6308_v50 }
 0xf88   :  { %4198 = vrot.lane.b32.xlu0 %v4165_v25, %s5956_s20 }
 0xf89   :  { %4206 = vrot.lane.b32.xlu1 %v4169_v36, %s5956_s20 }
 0xf8d   :  { %v4114_v23 = vpop.permute.xlu1 %4113  ;;  %v4142_v37 = vpop.permute.xlu2 %4141 }
 0xf8e   :  { %v4134_v32 = vpop.permute.xlu0 %4133  ;;  %v4167_v27 = vmul.f32 %v4114_v23, %v6321_v4 }
 0xf8f   :  { %v4172_v45 = vmul.f32 %v4134_v32, %v6326_v42 }
 0xf90   :  { %4204 = vrot.lane.b32.xlu0 %v4168_v21, %s5956_s20  ;;  %4202 = vrot.lane.b32.xlu2 %v4167_v27, %s5956_s20  ;;  %v4174_v21 = vmul.f32 %v4142_v37, %v6356_v9 }
 0xf91   :  { %4212 = vrot.lane.b32.xlu1 %v4172_v45, %s5956_s20 }
 0xf95   :  { %v4126_v44 = vpop.permute.xlu1 %4125  ;;  %v4154_v27 = vpop.permute.xlu2 %4153 }
 0xf96   :  { %v4146_v25 = vpop.permute.xlu0 %4145  ;;  %v4170_v36 = vmul.f32 %v4126_v44, %v6340_v5 }
 0xf97   :  { %v4175_v63 = vmul.f32 %v4146_v25, %v6345_v34 }
 0xf98   :  { %4210 = vrot.lane.b32.xlu0 %v4171_v30, %s5956_s20  ;;  %4208 = vrot.lane.b32.xlu2 %v4170_v36, %s5956_s20  ;;  %v4177_v30 = vmul.f32 %v4154_v27, %v6377_v12 }
 0xf99   :  { %4218 = vrot.lane.b32.xlu1 %v4175_v63, %s5956_s20 }
 0xf9d   :  { %v4138_v23 = vpop.permute.xlu1 %4137 }
 0xf9e   :  { %v4158_v32 = vpop.permute.xlu0 %4157  ;;  %v4173_v45 = vmul.f32 %v4138_v23, %v6361_v10 }
 0xf9f   :  { %v4178_v54 = vmul.f32 %v4158_v32, %v6366_v43 }
 0xfa0   :  { %4216 = vrot.lane.b32.xlu0 %v4174_v21, %s5956_s20  ;;  %4214 = vrot.lane.b32.xlu2 %v4173_v45, %s5956_s20 }
 0xfa1   :  { %4224 = vrot.lane.b32.xlu1 %v4178_v54, %s5956_s20 }
 0xfa5   :  { %v4150_v44 = vpop.permute.xlu1 %4149 }
 0xfa6   :  { %v4176_v25 = vmul.f32 %v4150_v44, %v6382_v13 }
 0xfa8   :  { %4222 = vrot.lane.b32.xlu0 %v4177_v30, %s5956_s20  ;;  %4220 = vrot.lane.b32.xlu2 %v4176_v25, %s5956_s20 }
 0xfa9   :  { %4265 = vperm.xlu1 %5731, %v8083_v47  }
 0xfad   :  { %v4162_v36 = vpop.permute.xlu1 %4161 }
 0xfae   :  { %v4179_v63 = vmul.f32 %v4162_v36, %v6392_v14 }
 0xfb0   :  { %4261 = vperm.xlu0 %5730, %v8076_v52   ;;  %4226 = vrot.lane.b32.xlu2 %v4179_v63, %s5956_s20 }
 0xfb1   :  { %4273 = vperm.xlu1 %5731, %v8096_v16  }
 0xfb8   :  { %4281 = vperm.xlu0 %5730, %v8090_v26   ;;  %4269 = vperm.xlu2 %5732, %v8102_v58  }
 0xfb9   :  { %4285 = vperm.xlu1 %5731, %v8114_v60  }
 0xfc0   :  { %4293 = vperm.xlu0 %5730, %v8108_v61   ;;  %4277 = vperm.xlu2 %5732, %v8120_v18  }
 0xfc1   :  { %4297 = vperm.xlu1 %5731, %v8132_v40  }
 0xfc8   :  { %4305 = vperm.xlu0 %5730, %v8126_v20   ;;  %4289 = vperm.xlu2 %5732, %v8138_v19  }
 0xfc9   :  { %4309 = vperm.xlu1 %5731, %v8150_v11  }
 0xfd0   :  { %4317 = vperm.xlu0 %5730, %v8144_v3   ;;  %4301 = vperm.xlu2 %5732, %v8156_v1  }
 0xfd1   :  { %4321 = vperm.xlu1 %5731, %v8162_v41  }
 0xfd8   :  { %4313 = vperm.xlu2 %5732, %v8168_v8  }
 0xfdb   :  { %v8571_v37 = vpop.permute.xlu2 %4196 }
 0xfdc   :  { %10132 = vst [vmem:[#allocation400_spill] sm:$0xff] %v8571_v37 }
 0xfea   :  { %v8573_v23 = vpop.permute.xlu2 %4202  ;;  %v8577_v32 = vpop.permute.xlu1 %4200 }
 0xfeb   :  { %10133 = vst [vmem:[#allocation401_spill] sm:$0xff] %v8573_v23 }
 0xfec   :  { %10135 = vst [vmem:[#allocation403_spill] sm:$0xff] %v8577_v32 }
 0xff2   :  { %v8575_v21 = vpop.permute.xlu2 %4208 }
 0xff3   :  { %10134 = vst [vmem:[#allocation402_spill] sm:$0xff] %v8575_v21 }
 0xffa   :  { %v8579_v45 = vpop.permute.xlu0 %4198  ;;  %v8581_v54 = vpop.permute.xlu2 %4214 }
 0xffb   :  { %10136 = vst [vmem:[#allocation404_spill] sm:$0xff] %v8579_v45  ;;  %v8583_v27 = vpop.permute.xlu1 %4206 }
 0xffc   :  { %10137 = vst [vmem:[#allocation405_spill] sm:$0xff] %v8581_v54 }
 0xffd   :  { %10138 = vst [vmem:[#allocation406_spill] sm:$0xff] %v8583_v27 }
0x1002   :  { %v8585_v44 = vpop.permute.xlu0 %4204  ;;  %v8587_v30 = vpop.permute.xlu2 %4220 }
0x1003   :  { %10139 = vst [vmem:[#allocation407_spill] sm:$0xff] %v8585_v44  ;;  %v8589_v25 = vpop.permute.xlu1 %4212 }
0x1004   :  { %10140 = vst [vmem:[#allocation408_spill] sm:$0xff] %v8587_v30 }
0x1005   :  { %10141 = vst [vmem:[#allocation409_spill] sm:$0xff] %v8589_v25 }
0x100a   :  { %v8591_v36 = vpop.permute.xlu0 %4210  ;;  %v8593_v63 = vpop.permute.xlu2 %4226 }
0x100b   :  { %10142 = vst [vmem:[#allocation410_spill] sm:$0xff] %v8591_v36  ;;  %v8595_v23 = vpop.permute.xlu1 %4218 }
0x100c   :  { %10143 = vst [vmem:[#allocation411_spill] sm:$0xff] %v8593_v63 }
0x100d   :  { %10144 = vst [vmem:[#allocation412_spill] sm:$0xff] %v8595_v23 }
0x1012   :  { %v8597_v21 = vpop.permute.xlu0 %4216  ;;  %v4270_v32 = vpop.permute.xlu2 %4269 }
0x1013   :  { %10145 = vst [vmem:[#allocation413_spill] sm:$0xff] %v8597_v21  ;;  %v4326_v37 = vmul.f32 %v4270_v32, %v6284_v62  ;;  %v8600_v54 = vpop.permute.xlu1 %4224 }
0x1014   :  { %10146 = vst [vmem:[#allocation414_spill] sm:$0xff] %v8600_v54  ;;  %v5959_v54 = vmov 27  }
0x1015   :  { %4360 = vrot.lane.b32.xlu1 %v4326_v37, %s5958_s2  ;;  %5733 = vset.pattern.permute.xlu0 %v5959_v54 }
0x1016   :  { %5734 = vset.pattern.permute.xlu1 %v5959_v54  ;;  %5735 = vset.pattern.permute.xlu2 %v5959_v54 }
0x101a   :  { %v8603_v27 = vpop.permute.xlu0 %4222  ;;  %v4278_v30 = vpop.permute.xlu2 %4277 }
0x101b   :  { %10147 = vst [vmem:[#allocation415_spill] sm:$0xff] %v8603_v27  ;;  %v4266_v25 = vpop.permute.xlu1 %4265  ;;  %v4328_v44 = vmul.f32 %v4278_v30, %v6317_v6 }
0x101c   :  { %v4325_v36 = vmul.f32 %v4266_v25, %v6304_v33 }
0x101e   :  { %4358 = vrot.lane.b32.xlu0 %v4325_v36, %s5958_s2 }
0x1022   :  { %v4262_v63 = vpop.permute.xlu0 %4261  ;;  %v4290_v32 = vpop.permute.xlu2 %4289 }
0x1023   :  { %v4324_v23 = vmul.f32 %v4262_v63, %v6298_v57  ;;  %v4274_v21 = vpop.permute.xlu1 %4273  ;;  %v4331_v63 = vmul.f32 %v4290_v32, %v6336_v0 }
0x1024   :  { %v4327_v25 = vmul.f32 %v4274_v21, %v6321_v4 }
0x1025   :  { %4356 = vrot.lane.b32.xlu2 %v4324_v23, %s5958_s2 }
0x1026   :  { %4364 = vrot.lane.b32.xlu0 %v4328_v44, %s5958_s2 }
0x102a   :  { %v4282_v37 = vpop.permute.xlu0 %4281  ;;  %v4302_v23 = vpop.permute.xlu2 %4301 }
0x102b   :  { %v4329_v36 = vmul.f32 %v4282_v37, %v6308_v50  ;;  %v4286_v45 = vpop.permute.xlu1 %4285  ;;  %v4334_v27 = vmul.f32 %v4302_v23, %v6356_v9 }
0x102c   :  { %v4330_v44 = vmul.f32 %v4286_v45, %v6340_v5 }
0x102d   :  { %4366 = vrot.lane.b32.xlu1 %v4329_v36, %s5958_s2  ;;  %4362 = vrot.lane.b32.xlu2 %v4327_v25, %s5958_s2 }
0x102e   :  { %4370 = vrot.lane.b32.xlu0 %v4331_v63, %s5958_s2 }
0x1032   :  { %v4294_v30 = vpop.permute.xlu0 %4293  ;;  %v4314_v32 = vpop.permute.xlu2 %4313 }
0x1033   :  { %v4332_v54 = vmul.f32 %v4294_v30, %v6326_v42  ;;  %v4298_v21 = vpop.permute.xlu1 %4297  ;;  %v4337_v63 = vmul.f32 %v4314_v32, %v6377_v12 }
0x1034   :  { %v4333_v25 = vmul.f32 %v4298_v21, %v6361_v10 }
0x1035   :  { %4372 = vrot.lane.b32.xlu1 %v4332_v54, %s5958_s2  ;;  %4368 = vrot.lane.b32.xlu2 %v4330_v44, %s5958_s2 }
0x1036   :  { %4376 = vrot.lane.b32.xlu0 %v4334_v27, %s5958_s2 }
0x103a   :  { %v4306_v37 = vpop.permute.xlu0 %4305 }
0x103b   :  { %v4335_v36 = vmul.f32 %v4306_v37, %v6345_v34  ;;  %v4310_v45 = vpop.permute.xlu1 %4309 }
0x103c   :  { %v4336_v30 = vmul.f32 %v4310_v45, %v6382_v13 }
0x103d   :  { %4378 = vrot.lane.b32.xlu1 %v4335_v36, %s5958_s2  ;;  %4374 = vrot.lane.b32.xlu2 %v4333_v25, %s5958_s2 }
0x103e   :  { %4382 = vrot.lane.b32.xlu0 %v4337_v63, %s5958_s2 }
0x1042   :  { %v4318_v23 = vpop.permute.xlu0 %4317 }
0x1043   :  { %v4338_v27 = vmul.f32 %v4318_v23, %v6366_v43  ;;  %v4322_v44 = vpop.permute.xlu1 %4321 }
0x1044   :  { %v4339_v54 = vmul.f32 %v4322_v44, %v6392_v14 }
0x1045   :  { %4384 = vrot.lane.b32.xlu1 %v4338_v27, %s5958_s2  ;;  %4380 = vrot.lane.b32.xlu2 %v4336_v30, %s5958_s2  ;;  %v5961_v27 = vmov 28  }
0x1046   :  { %4421 = vperm.xlu0 %5733, %v8076_v52  }
0x104d   :  { %4425 = vperm.xlu1 %5734, %v8083_v47   ;;  %4386 = vrot.lane.b32.xlu2 %v4339_v54, %s5958_s2 }
0x104e   :  { %4441 = vperm.xlu0 %5733, %v8090_v26  }
0x1055   :  { %4433 = vperm.xlu1 %5734, %v8096_v16   ;;  %4429 = vperm.xlu2 %5735, %v8102_v58  }
0x1056   :  { %4453 = vperm.xlu0 %5733, %v8108_v61  }
0x105d   :  { %4445 = vperm.xlu1 %5734, %v8114_v60   ;;  %4437 = vperm.xlu2 %5735, %v8120_v18  }
0x105e   :  { %4465 = vperm.xlu0 %5733, %v8126_v20  }
0x1065   :  { %4457 = vperm.xlu1 %5734, %v8132_v40   ;;  %4449 = vperm.xlu2 %5735, %v8138_v19  }
0x1066   :  { %4477 = vperm.xlu0 %5733, %v8144_v3  }
0x106d   :  { %4469 = vperm.xlu1 %5734, %v8150_v11   ;;  %4461 = vperm.xlu2 %5735, %v8156_v1  }
0x106e   :  { %5736 = vset.pattern.permute.xlu0 %v5961_v27 }
0x1075   :  { %4481 = vperm.xlu1 %5734, %v8162_v41   ;;  %4473 = vperm.xlu2 %5735, %v8168_v8  }
0x107d   :  { %5737 = vset.pattern.permute.xlu1 %v5961_v27  ;;  %5738 = vset.pattern.permute.xlu2 %v5961_v27 }
0x107f   :  { %v8651_v52 = vpop.permute.xlu2 %4356 }
0x1080   :  { %10148 = vst [vmem:[#allocation416_spill] sm:$0xff] %v8651_v52 }
0x1087   :  { %v8653_v47 = vpop.permute.xlu2 %4362  ;;  %v8659_v58 = vpop.permute.xlu1 %4360 }
0x1088   :  { %10149 = vst [vmem:[#allocation417_spill] sm:$0xff] %v8653_v47  ;;  %v241_v47 = vmul.f32 %v6292_v59, %v6377_v12 }
0x1089   :  { %10151 = vst [vmem:[#allocation419_spill] sm:$0xff] %v8659_v58 }
0x108a   :  { %v417_v58 = vadd.f32 %v6443_v53, %v241_v47 }
0x108c   :  { %v577_v52 = vadd.f32 %v6519_v46, %v417_v58 }
0x108f   :  { %v8655_v26 = vpop.permute.xlu2 %4368 }
0x1090   :  { %10150 = vst [vmem:[#allocation418_spill] sm:$0xff] %v8655_v26  ;;  %v8657_v16 = vpop.permute.xlu0 %4358  ;;  %v8799_v26 = vld [vmem:[%s9699_s1 + $0x68] sm:$0xff] }
0x1097   :  { %v8661_v61 = vpop.permute.xlu2 %4374 }
0x1098   :  { %v8663_v60 = vpop.permute.xlu0 %4364 }
0x109f   :  { %v8665_v11 = vpop.permute.xlu2 %4380  ;;  %v8667_v1 = vpop.permute.xlu1 %4366 }
0x10a0   :  { %10152 = vst [vmem:[#allocation420_spill] sm:$0xff] %v8667_v1  ;;  %v8669_v41 = vpop.permute.xlu0 %4370 }
0x10a7   :  { %v8671_v8 = vpop.permute.xlu2 %4386  ;;  %v8673_v18 = vpop.permute.xlu1 %4372 }
0x10a8   :  { %v8675_v20 = vpop.permute.xlu0 %4376 }
0x10a9   :  { %10153 = vst [vmem:[#allocation421_spill] sm:$0xff] %v8675_v20 }
0x10af   :  { %v4430_v40 = vpop.permute.xlu2 %4429  ;;  %v8677_v19 = vpop.permute.xlu1 %4378 }
0x10b0   :  { %10154 = vst [vmem:[#allocation422_spill] sm:$0xff] %v8677_v19  ;;  %v8679_v3 = vpop.permute.xlu0 %4382  ;;  %v4486_v21 = vmul.f32 %v4430_v40, %v6284_v62 }
0x10b2   :  { %4520 = vrot.lane.b32.xlu1 %v4486_v21, %s5960_s30 }
0x10b7   :  { %v8683_v32 = vpop.permute.xlu1 %4384  ;;  %v4438_v36 = vpop.permute.xlu2 %4437 }
0x10b8   :  { %10155 = vst [vmem:[#allocation423_spill] sm:$0xff] %v8683_v32  ;;  %v4422_v37 = vpop.permute.xlu0 %4421  ;;  %v4488_v54 = vmul.f32 %v4438_v36, %v6317_v6 }
0x10b9   :  { %v4484_v25 = vmul.f32 %v4422_v37, %v6298_v57 }
0x10bb   :  { %4516 = vrot.lane.b32.xlu2 %v4484_v25, %s5960_s30 }
0x10bf   :  { %v4426_v63 = vpop.permute.xlu1 %4425  ;;  %v4450_v37 = vpop.permute.xlu2 %4449 }
0x10c0   :  { %v4442_v45 = vpop.permute.xlu0 %4441  ;;  %v4485_v23 = vmul.f32 %v4426_v63, %v6304_v33 }
0x10c1   :  { %v4489_v30 = vmul.f32 %v4442_v45, %v6308_v50  ;;  %v4491_v45 = vmul.f32 %v4450_v37, %v6336_v0 }
0x10c2   :  { %4518 = vrot.lane.b32.xlu0 %v4485_v23, %s5960_s30 }
0x10c3   :  { %4526 = vrot.lane.b32.xlu1 %v4489_v30, %s5960_s30 }
0x10c7   :  { %v4434_v44 = vpop.permute.xlu1 %4433  ;;  %v4462_v27 = vpop.permute.xlu2 %4461 }
0x10c8   :  { %v4454_v40 = vpop.permute.xlu0 %4453  ;;  %v4487_v21 = vmul.f32 %v4434_v44, %v6321_v4 }
0x10c9   :  { %v4492_v25 = vmul.f32 %v4454_v40, %v6326_v42 }
0x10ca   :  { %4524 = vrot.lane.b32.xlu0 %v4488_v54, %s5960_s30  ;;  %4522 = vrot.lane.b32.xlu2 %v4487_v21, %s5960_s30  ;;  %v4494_v54 = vmul.f32 %v4462_v27, %v6356_v9 }
0x10cb   :  { %4532 = vrot.lane.b32.xlu1 %v4492_v25, %s5960_s30 }
0x10cf   :  { %v4446_v63 = vpop.permute.xlu1 %4445  ;;  %v4474_v25 = vpop.permute.xlu2 %4473 }
0x10d0   :  { %v4466_v23 = vpop.permute.xlu0 %4465  ;;  %v4490_v30 = vmul.f32 %v4446_v63, %v6340_v5 }
0x10d1   :  { %v4495_v36 = vmul.f32 %v4466_v23, %v6345_v34 }
0x10d2   :  { %4530 = vrot.lane.b32.xlu0 %v4491_v45, %s5960_s30  ;;  %4528 = vrot.lane.b32.xlu2 %v4490_v30, %s5960_s30  ;;  %v4497_v45 = vmul.f32 %v4474_v25, %v6377_v12  ;;  %v8716_v30 = vld [vmem:[%s9699_s1 + $0x8] sm:$0xff]  ;;  %v8748_v25 = vld [vmem:[%s9699_s1 + $0x40] sm:$0xff] }
0x10d3   :  { %4538 = vrot.lane.b32.xlu1 %v4495_v36, %s5960_s30 }
0x10d7   :  { %v4458_v44 = vpop.permute.xlu1 %4457 }
0x10d8   :  { %v4478_v40 = vpop.permute.xlu0 %4477  ;;  %v4493_v21 = vmul.f32 %v4458_v44, %v6361_v10  ;;  %v8723_v44 = vld [vmem:[%s9699_s1] sm:$0xff] }
0x10d9   :  { %v4498_v37 = vmul.f32 %v4478_v40, %v6366_v43  ;;  %v5834_v40 = vld [vmem:[%s9699_s1 + $0x28] sm:$0xff] }
0x10da   :  { %4536 = vrot.lane.b32.xlu0 %v4494_v54, %s5960_s30  ;;  %4534 = vrot.lane.b32.xlu2 %v4493_v21, %s5960_s30  ;;  %v8730_v54 = vld [vmem:[%s9699_s1 + $0x18] sm:$0xff]  ;;  %v8739_v21 = vld [vmem:[%s9699_s1 + $0x10] sm:$0xff] }
0x10db   :  { %4544 = vrot.lane.b32.xlu1 %v4498_v37, %s5960_s30  ;;  %10156 = vst [vmem:[#allocation424_spill] sm:$0xff] %v8730_v54  ;;  %v5836_v37 = vld [vmem:[%s9699_s1 + $0x30] sm:$0xff] }
0x10df   :  { %v4470_v63 = vpop.permute.xlu1 %4469 }
0x10e0   :  { %v4496_v23 = vmul.f32 %v4470_v63, %v6382_v13  ;;  %v8754_v63 = vld [vmem:[%s9699_s1 + $0x20] sm:$0xff] }
0x10e1   :  { %10157 = vst [vmem:[#allocation425_spill] sm:$0xff] %v8754_v63 }
0x10e2   :  { %4542 = vrot.lane.b32.xlu0 %v4497_v45, %s5960_s30  ;;  %4540 = vrot.lane.b32.xlu2 %v4496_v23, %s5960_s30  ;;  %v8760_v45 = vld [vmem:[%s9699_s1 + $0x48] sm:$0xff]  ;;  %v8766_v23 = vld [vmem:[%s9699_s1 + $0x58] sm:$0xff] }
0x10e3   :  { %4585 = vperm.xlu1 %5737, %v8716_v30  }
0x10e7   :  { %v4482_v36 = vpop.permute.xlu1 %4481 }
0x10e8   :  { %v4499_v27 = vmul.f32 %v4482_v36, %v6392_v14  ;;  %v5841_v36 = vld [vmem:[%s9699_s1 + $0x38] sm:$0xff] }
0x10ea   :  { %4581 = vperm.xlu0 %5736, %v8723_v44   ;;  %4546 = vrot.lane.b32.xlu2 %v4499_v27, %s5960_s30  ;;  %v8775_v27 = vld [vmem:[%s9699_s1 + $0x60] sm:$0xff]  ;;  %s5496_s30 = sshll.u32 %s9704_s6, 4  ;;  %s5972_s6 = smov [#allocation6]   ;;  %s5497_s30 = int_to_ptr.hbm [resolvable:$true] %s5496_s30 }
0x10eb   :  { %4593 = vperm.xlu1 %5737, %v8730_v54   ;;  %s5505_s21 = sshll.u32 %s5972_s6, 4  ;;  %s5506_s21 = int_to_ptr.vmem [resolvable:$true] %s5505_s21 }
0x10f2   :  { %4601 = vperm.xlu0 %5736, %v5834_v40   ;;  %4589 = vperm.xlu2 %5738, %v8739_v21   ;;  %v8781_v40 = vld [vmem:[%s9699_s1 + $0x70] sm:$0xff] }
0x10f3   :  { %4605 = vperm.xlu1 %5737, %v5836_v37   ;;  %10158 = vst [vmem:[#allocation426_spill] sm:$0xff] %v8781_v40  ;;  %v8787_v37 = vld [vmem:[%s9699_s1 + $0x50] sm:$0xff] }
0x10fa   :  { %4613 = vperm.xlu0 %5736, %v8748_v25   ;;  %4597 = vperm.xlu2 %5738, %v8754_v63  }
0x10fb   :  { %4617 = vperm.xlu1 %5737, %v8760_v45  }
0x1102   :  { %4625 = vperm.xlu0 %5736, %v8766_v23   ;;  %4609 = vperm.xlu2 %5738, %v5841_v36   ;;  %v8793_v36 = vld [vmem:[%s9699_s1 + $0x78] sm:$0xff] }
0x1103   :  { %4629 = vperm.xlu1 %5737, %v8775_v27   ;;  %10159 = vst [vmem:[#allocation427_spill] sm:$0xff] %v8793_v36 }
0x110a   :  { %4637 = vperm.xlu0 %5736, %v8781_v40   ;;  %4621 = vperm.xlu2 %5738, %v8787_v37  }
0x110b   :  { %4641 = vperm.xlu1 %5737, %v8793_v36   ;;  %v737_v36 = vadd.f32 %v6603_v56, %v577_v52 }
0x110d   :  { %v897_v40 = vadd.f32 %v6679_v15, %v737_v36 }
0x110f   :  { %v1057_v32 = vadd.f32 %v6763_v38, %v897_v40  ;;  %v10165_v40 = vld [vmem:[#allocation334_spill] sm:$0xff] }
0x1111   :  { %v1217_v19 = vadd.f32 %v6919_v28, %v1057_v32 }
0x1112   :  { %4633 = vperm.xlu2 %5738, %v8799_v26  }
0x1115   :  { %v8802_v1 = vpop.permute.xlu2 %4516 }
0x1116   :  { %10160 = vst [vmem:[#allocation428_spill] sm:$0xff] %v8802_v1  ;;  %v1377_v1 = vadd.f32 %v7003_v22, %v1217_v19 }
0x1118   :  { %v1537_v59 = vadd.f32 %v7079_v29, %v1377_v1 }
0x111a   :  { %v1697_v53 = vadd.f32 %v7163_v7, %v1537_v59  ;;  %v10166_v59 = vld [vmem:[#allocation351_spill] sm:$0xff] }
0x111c   :  { %v1857_v46 = vadd.f32 %v7239_v24, %v1697_v53  ;;  %v10167_v53 = vld [vmem:[#allocation366_spill] sm:$0xff] }
0x111e   :  { %v2017_v15 = vadd.f32 %v7323_v51, %v1857_v46 }
0x1120   :  { %v2177_v28 = vadd.f32 %v7399_v49, %v2017_v15 }
0x1122   :  { %v2337_v22 = vadd.f32 %v7563_v17, %v2177_v28 }
0x1124   :  { %v8808_v63 = vpop.permute.xlu2 %4522  ;;  %v8817_v20 = vpop.permute.xlu1 %4520  ;;  %v2497_v52 = vadd.f32 %v7639_v31, %v2337_v22 }
0x1125   :  { %10161 = vst [vmem:[#allocation429_spill] sm:$0xff] %v8808_v63  ;;  %v10187_v63 = vld [vmem:[#allocation43_spill] sm:$0xff] }
0x1126   :  { %10163 = vst [vmem:[#allocation431_spill] sm:$0xff] %v8817_v20  ;;  %v2657_v7 = vadd.f32 %v7723_v55, %v2497_v52  ;;  %v10169_v52 = vld [vmem:[#allocation398_spill] sm:$0xff]  ;;  %v10188_v20 = vld [vmem:[#allocation44_spill] sm:$0xff] }
0x1128   :  { %v2817_v1 = vadd.f32 %v7799_v39, %v2657_v7 }
0x112a   :  { %v2977_v51 = vadd.f32 %v7883_v35, %v2817_v1  ;;  %v10168_v35 = vld [vmem:[#allocation383_spill] sm:$0xff] }
0x112c   :  { %v8814_v54 = vpop.permute.xlu2 %4528  ;;  %v3137_v19 = vadd.f32 %v7959_v2, %v2977_v51 }
0x112d   :  { %10162 = vst [vmem:[#allocation430_spill] sm:$0xff] %v8814_v54 }
0x112e   :  { %v3297_v17 = vadd.f32 %v8043_v48, %v3137_v19  ;;  %v10170_v48 = vld [vmem:[#allocation415_spill] sm:$0xff] }
0x1130   :  { %v3457_v36 = vadd.f32 %v10165_v40, %v3297_v17 }
0x1132   :  { %v3617_v55 = vadd.f32 %v10166_v59, %v3457_v36 }
0x1134   :  { %v8822_v47 = vpop.permute.xlu0 %4518  ;;  %v8824_v56 = vpop.permute.xlu2 %4534  ;;  %v3777_v46 = vadd.f32 %v10167_v53, %v3617_v55 }
0x1135   :  { %v8827_v38 = vpop.permute.xlu1 %4526 }
0x1136   :  { %10164 = vst [vmem:[#allocation432_spill] sm:$0xff] %v8827_v38  ;;  %v3937_v28 = vadd.f32 %v10168_v35, %v3777_v46 }
0x1138   :  { %v4097_v7 = vadd.f32 %v10169_v52, %v3937_v28  ;;  %v9716_v28 = vmov 31  }
0x1139   :  { %5743 = vset.pattern.permute.xlu0 %v9716_v28 }
0x113a   :  { %v4257_v1 = vadd.f32 %v10170_v48, %v4097_v7 }
0x113c   :  { %v8832_v58 = vpop.permute.xlu0 %4524  ;;  %v8834_v29 = vpop.permute.xlu2 %4540  ;;  %v4417_v51 = vadd.f32 %v8679_v3, %v4257_v1  ;;  %v9720_v3 = vmov 29  }
0x113d   :  { %v8837_v24 = vpop.permute.xlu1 %4532  ;;  %5739 = vset.pattern.permute.xlu1 %v9720_v3  ;;  %5740 = vset.pattern.permute.xlu2 %v9720_v3  ;;  %v10185_v3 = vld [vmem:[#allocation40_spill] sm:$0xff] }
0x1144   :  { %v8842_v32 = vpop.permute.xlu0 %4530  ;;  %v8844_v49 = vpop.permute.xlu2 %4546 }
0x1145   :  { %v8847_v31 = vpop.permute.xlu1 %4538 }
0x114c   :  { %v8852_v15 = vpop.permute.xlu0 %4536  ;;  %v4590_v39 = vpop.permute.xlu2 %4589 }
0x114d   :  { %v4646_v2 = vmul.f32 %v4590_v39, %v6284_v62  ;;  %v8856_v22 = vpop.permute.xlu1 %4544  ;;  %v10194_v62 = vld [vmem:[#allocation49_spill] sm:$0xff] }
0x114f   :  { %4680 = vrot.lane.b32.xlu1 %v4646_v2, %s5962_s29 }
0x1154   :  { %v4543_v19 = vpop.permute.xlu0 %4542  ;;  %v4598_v40 = vpop.permute.xlu2 %4597 }
0x1155   :  { %v8862_v17 = vadd.f32 %v4543_v19, %v4417_v51  ;;  %v4586_v36 = vpop.permute.xlu1 %4585  ;;  %v4648_v39 = vmul.f32 %v4598_v40, %v6317_v6 }
0x1156   :  { %v4645_v59 = vmul.f32 %v4586_v36, %v6304_v33 }
0x1158   :  { %4678 = vrot.lane.b32.xlu0 %v4645_v59, %s5962_s29 }
0x115c   :  { %v4582_v55 = vpop.permute.xlu0 %4581  ;;  %v4610_v35 = vpop.permute.xlu2 %4609 }
0x115d   :  { %v4644_v53 = vmul.f32 %v4582_v55, %v6298_v57  ;;  %v4594_v46 = vpop.permute.xlu1 %4593  ;;  %v4651_v1 = vmul.f32 %v4610_v35, %v6336_v0 }
0x115e   :  { %v4647_v52 = vmul.f32 %v4594_v46, %v6321_v4 }
0x115f   :  { %4676 = vrot.lane.b32.xlu2 %v4644_v53, %s5962_s29 }
0x1160   :  { %4684 = vrot.lane.b32.xlu0 %v4648_v39, %s5962_s29 }
0x1164   :  { %v4602_v2 = vpop.permute.xlu0 %4601  ;;  %v4622_v51 = vpop.permute.xlu2 %4621 }
0x1165   :  { %v4649_v7 = vmul.f32 %v4602_v2, %v6308_v50  ;;  %v4606_v48 = vpop.permute.xlu1 %4605  ;;  %v4654_v59 = vmul.f32 %v4622_v51, %v6356_v9  ;;  %v10190_v50 = vld [vmem:[#allocation46_spill] sm:$0xff] }
0x1166   :  { %v4650_v40 = vmul.f32 %v4606_v48, %v6340_v5 }
0x1167   :  { %4686 = vrot.lane.b32.xlu1 %v4649_v7, %s5962_s29  ;;  %4682 = vrot.lane.b32.xlu2 %v4647_v52, %s5962_s29 }
0x1168   :  { %4690 = vrot.lane.b32.xlu0 %v4651_v1, %s5962_s29 }
0x116c   :  { %v4614_v19 = vpop.permute.xlu0 %4613  ;;  %v4634_v53 = vpop.permute.xlu2 %4633 }
0x116d   :  { %v4652_v36 = vmul.f32 %v4614_v19, %v6326_v42  ;;  %v4618_v55 = vpop.permute.xlu1 %4617  ;;  %v4657_v2 = vmul.f32 %v4634_v53, %v6377_v12  ;;  %v10259_v12 = vld [vmem:[#allocation135_spill] sm:$0xff] }
0x116e   :  { %v4653_v39 = vmul.f32 %v4618_v55, %v6361_v10  ;;  %v10172_v55 = vld [vmem:[#allocation39_spill] sm:$0xff] }
0x116f   :  { %4692 = vrot.lane.b32.xlu1 %v4652_v36, %s5962_s29  ;;  %4688 = vrot.lane.b32.xlu2 %v4650_v40, %s5962_s29  ;;  %v9718_v40 = vmov 30   ;;  %v10171_v36 = vld [vmem:[#allocation10_spill] sm:$0xff] }
0x1170   :  { %4696 = vrot.lane.b32.xlu0 %v4654_v59, %s5962_s29  ;;  %v229_v59 = vmul.f32 %v10171_v36, %v6304_v33 }
0x1172   :  { %v405_v53 = vadd.f32 %v10172_v55, %v229_v59  ;;  %v10179_v59 = vld [vmem:[#allocation18_spill] sm:$0xff] }
0x1173   :  { %v243_v55 = vmul.f32 %v10179_v59, %v6392_v14 }
0x1174   :  { %v4626_v46 = vpop.permute.xlu0 %4625 }
0x1175   :  { %v4655_v35 = vmul.f32 %v4626_v46, %v6345_v34  ;;  %v4630_v52 = vpop.permute.xlu1 %4629  ;;  %v10173_v46 = vld [vmem:[#allocation53_spill] sm:$0xff] }
0x1176   :  { %v4656_v48 = vmul.f32 %v4630_v52, %v6382_v13  ;;  %v10175_v52 = vld [vmem:[#allocation69_spill] sm:$0xff] }
0x1177   :  { %4698 = vrot.lane.b32.xlu1 %v4655_v35, %s5962_s29  ;;  %4694 = vrot.lane.b32.xlu2 %v4653_v39, %s5962_s29  ;;  %v565_v39 = vadd.f32 %v10173_v46, %v405_v53  ;;  %v10174_v35 = vld [vmem:[#allocation11_spill] sm:$0xff] }
0x1178   :  { %4702 = vrot.lane.b32.xlu0 %v4657_v2, %s5962_s29  ;;  %v232_v2 = vmul.f32 %v10174_v35, %v6317_v6  ;;  %v10180_v53 = vld [vmem:[#allocation23_spill] sm:$0xff]  ;;  %v10181_v35 = vld [vmem:[#allocation21_spill] sm:$0xff] }
0x1179   :  { %v238_v46 = vmul.f32 %v10180_v53, %v6356_v9  ;;  %v10189_v53 = vld [vmem:[#allocation45_spill] sm:$0xff]  ;;  %v10191_v6 = vld [vmem:[#allocation99_spill] sm:$0xff] }
0x117c   :  { %v4638_v7 = vpop.permute.xlu0 %4637 }
0x117d   :  { %v4658_v1 = vmul.f32 %v4638_v7, %v6366_v43  ;;  %v4642_v51 = vpop.permute.xlu1 %4641  ;;  %v725_v7 = vadd.f32 %v10175_v52, %v565_v39  ;;  %v236_v39 = vmul.f32 %v10181_v35, %v6326_v42  ;;  %v419_v35 = vadd.f32 %v10190_v50, %v243_v55  ;;  %v10201_v55 = vld [vmem:[#allocation60_spill] sm:$0xff] }
0x117e   :  { %v4659_v19 = vmul.f32 %v4642_v51, %v6392_v14 }
0x117f   :  { %4704 = vrot.lane.b32.xlu1 %v4658_v1, %s5962_s29  ;;  %4700 = vrot.lane.b32.xlu2 %v4656_v48, %s5962_s29  ;;  %v10177_v1 = vld [vmem:[#allocation15_spill] sm:$0xff]  ;;  %v412_v5 = vadd.f32 %v10188_v20, %v236_v39  ;;  %v10199_v39 = vld [vmem:[#allocation113_spill] sm:$0xff] }
0x1180   :  { %5093 = vperm.xlu0 %5743, %v8748_v25   ;;  %v240_v51 = vmul.f32 %v10177_v1, %v6382_v13  ;;  %v10222_v13 = vld [vmem:[#allocation102_spill] sm:$0xff] }
0x1182   :  { %v416_v59 = vadd.f32 %v10187_v63, %v240_v51  ;;  %v10198_v51 = vld [vmem:[#allocation57_spill] sm:$0xff] }
0x1184   :  { %v576_v20 = vadd.f32 %v10198_v51, %v416_v59  ;;  %v10212_v51 = vld [vmem:[#allocation75_spill] sm:$0xff] }
0x1187   :  { %4773 = vperm.xlu1 %5739, %v8748_v25   ;;  %4706 = vrot.lane.b32.xlu2 %v4659_v19, %s5962_s29  ;;  %v10178_v19 = vld [vmem:[#allocation20_spill] sm:$0xff] }
0x1188   :  { %5113 = vperm.xlu0 %5743, %v8799_v26   ;;  %v235_v36 = vmul.f32 %v10178_v19, %v6336_v0  ;;  %v10186_v19 = vld [vmem:[#allocation42_spill] sm:$0xff] }
0x1189   :  { %v408_v38 = vadd.f32 %v10186_v19, %v232_v2  ;;  %v10197_v19 = vld [vmem:[#allocation59_spill] sm:$0xff] }
0x118a   :  { %v411_v0 = vadd.f32 %v10189_v53, %v235_v36  ;;  %v10200_v53 = vld [vmem:[#allocation62_spill] sm:$0xff] }
0x118c   :  { %v571_v63 = vadd.f32 %v10197_v19, %v411_v0  ;;  %v10211_v19 = vld [vmem:[#allocation85_spill] sm:$0xff] }
0x118f   :  { %5741 = vset.pattern.permute.xlu1 %v9718_v40  ;;  %4777 = vperm.xlu2 %5740, %v8760_v45  }
0x1190   :  { %4933 = vperm.xlu1 %5741, %v8748_v25   ;;  %v10176_v25 = vld [vmem:[#allocation13_spill] sm:$0xff] }
0x1191   :  { %v237_v48 = vmul.f32 %v10176_v25, %v6361_v10 }
0x1193   :  { %v413_v54 = vadd.f32 %v10185_v3, %v237_v48  ;;  %v10196_v48 = vld [vmem:[#allocation56_spill] sm:$0xff] }
0x1194   :  { %v568_v2 = vadd.f32 %v10196_v48, %v408_v38  ;;  %v10210_v48 = vld [vmem:[#allocation74_spill] sm:$0xff] }
0x1197   :  { %5742 = vset.pattern.permute.xlu2 %v9718_v40  ;;  %v10184_v40 = vld [vmem:[#allocation25_spill] sm:$0xff] }
0x1198   :  { %5744 = vset.pattern.permute.xlu1 %v9716_v28  ;;  %4937 = vperm.xlu2 %5742, %v8760_v45   ;;  %v10183_v28 = vld [vmem:[#allocation83_spill] sm:$0xff]  ;;  %v242_v1 = vmul.f32 %v10184_v40, %v6366_v43 }
0x1199   :  { %5097 = vperm.xlu1 %5744, %v8760_v45   ;;  %v10182_v45 = vld [vmem:[#allocation24_spill] sm:$0xff]  ;;  %v885_v25 = vadd.f32 %v10183_v28, %v725_v7  ;;  %v10195_v43 = vld [vmem:[#allocation55_spill] sm:$0xff] }
0x119a   :  { %v239_v52 = vmul.f32 %v10182_v45, %v6345_v34  ;;  %v10192_v45 = vld [vmem:[#allocation47_spill] sm:$0xff]  ;;  %v10193_v28 = vld [vmem:[#allocation48_spill] sm:$0xff]  ;;  %v418_v40 = vadd.f32 %v10194_v62, %v242_v1  ;;  %v573_v3 = vadd.f32 %v10195_v43, %v413_v54  ;;  %v10207_v1 = vld [vmem:[#allocation129_spill] sm:$0xff] }
0x119b   :  { %v1045_v14 = vadd.f32 %v10191_v6, %v885_v25  ;;  %v414_v7 = vadd.f32 %v10193_v28, %v238_v46  ;;  %v579_v6 = vadd.f32 %v10201_v55, %v419_v35  ;;  %v10202_v25 = vld [vmem:[#allocation61_spill] sm:$0xff]  ;;  %v10204_v28 = vmov 29   ;;  %v10205_v62 = vld [vmem:[#allocation63_spill] sm:$0xff]  ;;  %v10206_v54 = vld [vmem:[#allocation72_spill] sm:$0xff] }
0x119c   :  { %v415_v4 = vadd.f32 %v10192_v45, %v239_v52  ;;  %v572_v52 = vadd.f32 %v10202_v25, %v412_v5  ;;  %v10203_v45 = vld [vmem:[#allocation70_spill] sm:$0xff]  ;;  %v728_v38 = vadd.f32 %v10206_v54, %v568_v2  ;;  %v10215_v55 = vld [vmem:[#allocation143_spill] sm:$0xff] }
0x119d   :  { %v1205_v36 = vadd.f32 %v10199_v39, %v1045_v14  ;;  %v574_v50 = vadd.f32 %v10200_v53, %v414_v7  ;;  %v733_v46 = vadd.f32 %v10203_v45, %v573_v3  ;;  %v10208_v14 = vld [vmem:[#allocation64_spill] sm:$0xff]  ;;  %v10209_v7 = vld [vmem:[#allocation73_spill] sm:$0xff]  ;;  %v10214_v53 = vld [vmem:[#allocation86_spill] sm:$0xff] }
0x119e   :  { %v575_v43 = vadd.f32 %v10205_v62, %v415_v4  ;;  %v578_v59 = vadd.f32 %v10208_v14, %v418_v40  ;;  %v736_v35 = vadd.f32 %v10209_v7, %v576_v20  ;;  %v732_v5 = vadd.f32 %v10210_v48, %v572_v52  ;;  %v10213_v39 = vld [vmem:[#allocation76_spill] sm:$0xff]  ;;  %v10216_v45 = vld [vmem:[#allocation77_spill] sm:$0xff]  ;;  %v10217_v54 = vld [vmem:[#allocation78_spill] sm:$0xff] }
0x119f   :  { %v1365_v0 = vadd.f32 %v10207_v1, %v1205_v36  ;;  %v893_v3 = vadd.f32 %v10211_v19, %v733_v46  ;;  %v731_v4 = vadd.f32 %v10212_v51, %v571_v63  ;;  %v739_v2 = vadd.f32 %v10213_v39, %v579_v6  ;;  %v10218_v1 = vld [vmem:[#allocation79_spill] sm:$0xff]  ;;  %v10219_v14 = vld [vmem:[#allocation100_spill] sm:$0xff]  ;;  %v10220_v7 = vld [vmem:[#allocation89_spill] sm:$0xff] }
0x11a0   :  { %5745 = vset.pattern.permute.xlu2 %v10204_v28  ;;  %v888_v36 = vadd.f32 %v10214_v53, %v728_v38  ;;  %v735_v62 = vadd.f32 %v10216_v45, %v575_v43  ;;  %v734_v40 = vadd.f32 %v10217_v54, %v574_v50  ;;  %v738_v20 = vadd.f32 %v10218_v1, %v578_v59  ;;  %v10221_v48 = vld [vmem:[#allocation87_spill] sm:$0xff]  ;;  %v10224_v39 = vld [vmem:[#allocation92_spill] sm:$0xff]  ;;  %v10225_v53 = vld [vmem:[#allocation90_spill] sm:$0xff] }
0x11a1   :  { %5746 = vset.pattern.permute.xlu1 %v10204_v28  ;;  %4781 = vperm.xlu2 %5745, %v8787_v37   ;;  %v1525_v25 = vadd.f32 %v10215_v55, %v1365_v0  ;;  %v1053_v52 = vadd.f32 %v10219_v14, %v893_v3  ;;  %v891_v46 = vadd.f32 %v10220_v7, %v731_v4  ;;  %v10223_v51 = vld [vmem:[#allocation159_spill] sm:$0xff]  ;;  %v10228_v54 = vld [vmem:[#allocation93_spill] sm:$0xff]  ;;  %v10229_v1 = vld [vmem:[#allocation94_spill] sm:$0xff] }
0x11a2   :  { %4785 = vperm.xlu1 %5746, %v8766_v23   ;;  %v896_v19 = vadd.f32 %v10221_v48, %v736_v35  ;;  %v1048_v63 = vadd.f32 %v10222_v13, %v888_v36  ;;  %v894_v38 = vadd.f32 %v10224_v39, %v734_v40  ;;  %v899_v0 = vadd.f32 %v10225_v53, %v739_v2  ;;  %v10226_v55 = vld [vmem:[#allocation91_spill] sm:$0xff]  ;;  %v10230_v14 = vld [vmem:[#allocation116_spill] sm:$0xff]  ;;  %v10231_v7 = vld [vmem:[#allocation173_spill] sm:$0xff] }
0x11a3   :  { %v1685_v6 = vadd.f32 %v10223_v51, %v1525_v25  ;;  %v892_v43 = vadd.f32 %v10226_v55, %v732_v5  ;;  %v10227_v45 = vld [vmem:[#allocation115_spill] sm:$0xff]  ;;  %v895_v59 = vadd.f32 %v10228_v54, %v735_v62  ;;  %v898_v3 = vadd.f32 %v10229_v1, %v738_v20  ;;  %v10233_v36 = vld [vmem:[#allocation104_spill] sm:$0xff]  ;;  %v10234_v51 = vld [vmem:[#allocation105_spill] sm:$0xff] }
0x11a4   :  { %v1213_v50 = vadd.f32 %v10227_v45, %v1053_v52  ;;  %v1208_v4 = vadd.f32 %v10230_v14, %v1048_v63  ;;  %v10232_v48 = vld [vmem:[#allocation103_spill] sm:$0xff]  ;;  %v1051_v40 = vadd.f32 %v10234_v51, %v891_v46  ;;  %v10235_v39 = vld [vmem:[#allocation130_spill] sm:$0xff]  ;;  %v10238_v45 = vld [vmem:[#allocation132_spill] sm:$0xff]  ;;  %v10240_v1 = vmov 30  }
0x11a5   :  { %v1845_v35 = vadd.f32 %v10231_v7, %v1685_v6  ;;  %v1056_v13 = vadd.f32 %v10232_v48, %v896_v19  ;;  %v1052_v25 = vadd.f32 %v10233_v36, %v892_v43  ;;  %v10236_v53 = vld [vmem:[#allocation106_spill] sm:$0xff]  ;;  %v10237_v55 = vld [vmem:[#allocation107_spill] sm:$0xff]  ;;  %v10239_v54 = vld [vmem:[#allocation189_spill] sm:$0xff]  ;;  %v10244_v48 = vmov 31  }
0x11a6   :  { %v1373_v2 = vadd.f32 %v10235_v39, %v1213_v50  ;;  %v1059_v5 = vadd.f32 %v10236_v53, %v899_v0  ;;  %v1055_v52 = vadd.f32 %v10237_v55, %v895_v59  ;;  %v1368_v62 = vadd.f32 %v10238_v45, %v1208_v4  ;;  %v10241_v63 = vld [vmem:[#allocation108_spill] sm:$0xff]  ;;  %v10242_v14 = vld [vmem:[#allocation109_spill] sm:$0xff]  ;;  %v10245_v46 = vld [vmem:[#allocation119_spill] sm:$0xff] }
0x11a7   :  { %v2005_v20 = vadd.f32 %v10239_v54, %v1845_v35  ;;  %v1054_v6 = vadd.f32 %v10241_v63, %v894_v38  ;;  %v1058_v19 = vadd.f32 %v10242_v14, %v898_v3  ;;  %v10243_v7 = vld [vmem:[#allocation145_spill] sm:$0xff]  ;;  %v1211_v0 = vadd.f32 %v10245_v46, %v1051_v40  ;;  %v10247_v36 = vld [vmem:[#allocation146_spill] sm:$0xff]  ;;  %v10248_v51 = vld [vmem:[#allocation203_spill] sm:$0xff] }
0x11a8   :  { %v1533_v43 = vadd.f32 %v10243_v7, %v1373_v2  ;;  %v10246_v50 = vld [vmem:[#allocation117_spill] sm:$0xff]  ;;  %v1528_v4 = vadd.f32 %v10247_v36, %v1368_v62  ;;  %v10249_v39 = vld [vmem:[#allocation122_spill] sm:$0xff]  ;;  %v10250_v53 = vld [vmem:[#allocation120_spill] sm:$0xff] }
0x11a9   :  { %5747 = vset.pattern.permute.xlu2 %v10240_v1  ;;  %v1216_v59 = vadd.f32 %v10246_v50, %v1056_v13  ;;  %v2165_v35 = vadd.f32 %v10248_v51, %v2005_v20  ;;  %v1214_v38 = vadd.f32 %v10249_v39, %v1054_v6  ;;  %v1219_v3 = vadd.f32 %v10250_v53, %v1059_v5  ;;  %v10251_v55 = vld [vmem:[#allocation121_spill] sm:$0xff]  ;;  %v10252_v45 = vld [vmem:[#allocation160_spill] sm:$0xff]  ;;  %v10253_v63 = vld [vmem:[#allocation123_spill] sm:$0xff] }
0x11aa   :  { %5748 = vset.pattern.permute.xlu1 %v10244_v48  ;;  %4941 = vperm.xlu2 %5747, %v8787_v37   ;;  %v1212_v2 = vadd.f32 %v10251_v55, %v1052_v25  ;;  %v1693_v54 = vadd.f32 %v10252_v45, %v1533_v43  ;;  %v1215_v14 = vadd.f32 %v10253_v63, %v1055_v52  ;;  %v10254_v7 = vld [vmem:[#allocation124_spill] sm:$0xff]  ;;  %v10255_v46 = vld [vmem:[#allocation162_spill] sm:$0xff]  ;;  %v10256_v50 = vld [vmem:[#allocation219_spill] sm:$0xff] }
0x11ab   :  { %5101 = vperm.xlu1 %5748, %v8787_v37   ;;  %v1218_v40 = vadd.f32 %v10254_v7, %v1058_v19  ;;  %v1688_v13 = vadd.f32 %v10255_v46, %v1528_v4  ;;  %v2325_v62 = vadd.f32 %v10256_v50, %v2165_v35  ;;  %v10257_v36 = vld [vmem:[#allocation133_spill] sm:$0xff]  ;;  %v10258_v51 = vld [vmem:[#allocation134_spill] sm:$0xff]  ;;  %v1371_v6 = vadd.f32 %v10259_v12, %v1211_v0  ;;  %v10260_v39 = vld [vmem:[#allocation175_spill] sm:$0xff] }
0x11ac   :  { %v1376_v20 = vadd.f32 %v10257_v36, %v1216_v59  ;;  %v1372_v37 = vadd.f32 %v10258_v51, %v1212_v2  ;;  %v1853_v5 = vadd.f32 %v10260_v39, %v1693_v54  ;;  %v10261_v53 = vld [vmem:[#allocation136_spill] sm:$0xff]  ;;  %v10262_v55 = vld [vmem:[#allocation137_spill] sm:$0xff]  ;;  %v10265_v7 = vld [vmem:[#allocation138_spill] sm:$0xff] }
0x11ad   :  { %v1379_v25 = vadd.f32 %v10261_v53, %v1219_v3  ;;  %v1375_v43 = vadd.f32 %v10262_v55, %v1215_v14  ;;  %v10263_v45 = vld [vmem:[#allocation176_spill] sm:$0xff]  ;;  %v10264_v63 = vld [vmem:[#allocation233_spill] sm:$0xff]  ;;  %v1374_v4 = vadd.f32 %v10265_v7, %v1214_v38  ;;  %v10266_v46 = vld [vmem:[#allocation139_spill] sm:$0xff] }
0x11ae   :  { %v1848_v52 = vadd.f32 %v10263_v45, %v1688_v13  ;;  %v2485_v19 = vadd.f32 %v10264_v63, %v2325_v62  ;;  %v1378_v35 = vadd.f32 %v10266_v46, %v1218_v40  ;;  %v10267_v50 = vld [vmem:[#allocation147_spill] sm:$0xff]  ;;  %v10268_v36 = vld [vmem:[#allocation190_spill] sm:$0xff]  ;;  %v10269_v51 = vld [vmem:[#allocation149_spill] sm:$0xff] }
0x11af   :  { %v1536_v59 = vadd.f32 %v10267_v50, %v1376_v20  ;;  %v2013_v2 = vadd.f32 %v10268_v36, %v1853_v5  ;;  %v1531_v12 = vadd.f32 %v10269_v51, %v1371_v6  ;;  %v10270_v0 = vld [vmem:[#allocation150_spill] sm:$0xff]  ;;  %v10271_v39 = vld [vmem:[#allocation192_spill] sm:$0xff]  ;;  %v10272_v53 = vld [vmem:[#allocation249_spill] sm:$0xff] }
0x11b0   :  { %v1539_v54 = vadd.f32 %v10270_v0, %v1379_v25  ;;  %v2008_v3 = vadd.f32 %v10271_v39, %v1848_v52  ;;  %v2645_v14 = vadd.f32 %v10272_v53, %v2485_v19  ;;  %v10273_v55 = vld [vmem:[#allocation152_spill] sm:$0xff]  ;;  %v10274_v45 = vld [vmem:[#allocation151_spill] sm:$0xff]  ;;  %v10275_v63 = vld [vmem:[#allocation153_spill] sm:$0xff] }
0x11b1   :  { %v1534_v13 = vadd.f32 %v10273_v55, %v1374_v4  ;;  %v1532_v62 = vadd.f32 %v10274_v45, %v1372_v37  ;;  %v1535_v38 = vadd.f32 %v10275_v63, %v1375_v43  ;;  %v10276_v7 = vld [vmem:[#allocation205_spill] sm:$0xff]  ;;  %v10277_v20 = vld [vmem:[#allocation154_spill] sm:$0xff]  ;;  %v10279_v50 = vld [vmem:[#allocation263_spill] sm:$0xff] }
0x11b2   :  { %v2173_v40 = vadd.f32 %v10276_v7, %v2013_v2  ;;  %5749 = vset.pattern.permute.xlu2 %v10244_v48  ;;  %v1538_v5 = vadd.f32 %v10277_v20, %v1378_v35  ;;  %v10278_v46 = vld [vmem:[#allocation206_spill] sm:$0xff]  ;;  %v2805_v25 = vadd.f32 %v10279_v50, %v2645_v14  ;;  %v10280_v52 = vld [vmem:[#allocation163_spill] sm:$0xff]  ;;  %v10281_v4 = vld [vmem:[#allocation164_spill] sm:$0xff] }
0x11b3   :  { %v2168_v6 = vadd.f32 %v10278_v46, %v2008_v3  ;;  %5750 = vset.pattern.permute.xlu1 %v10204_v28  ;;  %5105 = vperm.xlu2 %5749, %v8766_v23   ;;  %v1696_v19 = vadd.f32 %v10280_v52, %v1536_v59  ;;  %v1692_v37 = vadd.f32 %v10281_v4, %v1532_v62  ;;  %v10282_v36 = vld [vmem:[#allocation165_spill] sm:$0xff]  ;;  %v10283_v51 = vld [vmem:[#allocation220_spill] sm:$0xff]  ;;  %v10284_v0 = vld [vmem:[#allocation166_spill] sm:$0xff] }
0x11b4   :  { %v1691_v43 = vadd.f32 %v10282_v36, %v1531_v12  ;;  %v2333_v2 = vadd.f32 %v10283_v51, %v2173_v40  ;;  %4745 = vperm.xlu1 %5750, %v8716_v30   ;;  %v1699_v35 = vadd.f32 %v10284_v0, %v1539_v54  ;;  %v10285_v39 = vld [vmem:[#allocation167_spill] sm:$0xff]  ;;  %v10286_v53 = vld [vmem:[#allocation222_spill] sm:$0xff]  ;;  %v10288_v63 = vld [vmem:[#allocation168_spill] sm:$0xff] }
0x11b5   :  { %v1695_v3 = vadd.f32 %v10285_v39, %v1535_v38  ;;  %v2328_v14 = vadd.f32 %v10286_v53, %v2168_v6  ;;  %v10287_v55 = vld [vmem:[#allocation279_spill] sm:$0xff]  ;;  %v1694_v23 = vadd.f32 %v10288_v63, %v1534_v13  ;;  %v10289_v7 = vld [vmem:[#allocation169_spill] sm:$0xff]  ;;  %v10293_v52 = vld [vmem:[#allocation180_spill] sm:$0xff] }
0x11b6   :  { %v2965_v45 = vadd.f32 %v10287_v55, %v2805_v25  ;;  %v1698_v59 = vadd.f32 %v10289_v7, %v1538_v5  ;;  %v10290_v20 = vld [vmem:[#allocation177_spill] sm:$0xff]  ;;  %v10291_v46 = vld [vmem:[#allocation235_spill] sm:$0xff]  ;;  %v1859_v4 = vadd.f32 %v10293_v52, %v1699_v35  ;;  %v10294_v36 = vld [vmem:[#allocation236_spill] sm:$0xff] }
0x11b7   :  { %v1856_v62 = vadd.f32 %v10290_v20, %v1696_v19  ;;  %v2493_v12 = vadd.f32 %v10291_v46, %v2333_v2  ;;  %v10292_v50 = vld [vmem:[#allocation179_spill] sm:$0xff]  ;;  %v2488_v54 = vadd.f32 %v10294_v36, %v2328_v14  ;;  %v10295_v51 = vld [vmem:[#allocation293_spill] sm:$0xff]  ;;  %v10296_v0 = vld [vmem:[#allocation182_spill] sm:$0xff] }
0x11b8   :  { %v1851_v40 = vadd.f32 %v10292_v50, %v1691_v43  ;;  %v3125_v38 = vadd.f32 %v10295_v51, %v2965_v45  ;;  %v1854_v6 = vadd.f32 %v10296_v0, %v1694_v23  ;;  %v10297_v39 = vld [vmem:[#allocation181_spill] sm:$0xff]  ;;  %v10299_v55 = vld [vmem:[#allocation250_spill] sm:$0xff]  ;;  %v10300_v63 = vld [vmem:[#allocation183_spill] sm:$0xff] }
0x11b9   :  { %v1852_v25 = vadd.f32 %v10297_v39, %v1692_v37  ;;  %v10298_v53 = vld [vmem:[#allocation193_spill] sm:$0xff]  ;;  %v2653_v5 = vadd.f32 %v10299_v55, %v2493_v12  ;;  %v1855_v19 = vadd.f32 %v10300_v63, %v1695_v3  ;;  %v10301_v7 = vld [vmem:[#allocation195_spill] sm:$0xff]  ;;  %v10302_v20 = vld [vmem:[#allocation252_spill] sm:$0xff]  ;;  %v9059_v50 = vpop.permute.xlu2 %4676 }
0x11ba   :  { %v2016_v13 = vadd.f32 %v10298_v53, %v1856_v62  ;;  %v2011_v2 = vadd.f32 %v10301_v7, %v1851_v40  ;;  %v2648_v43 = vadd.f32 %v10302_v20, %v2488_v54  ;;  %v10303_v46 = vld [vmem:[#allocation309_spill] sm:$0xff]  ;;  %v10304_v14 = vld [vmem:[#allocation184_spill] sm:$0xff]  ;;  %v10305_v52 = vld [vmem:[#allocation194_spill] sm:$0xff] }
0x11bb   :  { %v3285_v35 = vadd.f32 %v10303_v46, %v3125_v38  ;;  %v1858_v45 = vadd.f32 %v10304_v14, %v1698_v59  ;;  %v2012_v23 = vadd.f32 %v10305_v52, %v1852_v25  ;;  %v10306_v36 = vld [vmem:[#allocation207_spill] sm:$0xff]  ;;  %v10307_v51 = vld [vmem:[#allocation265_spill] sm:$0xff]  ;;  %v10308_v0 = vld [vmem:[#allocation196_spill] sm:$0xff]  ;;  %5751 = vset.pattern.permute.xlu2 %v10240_v1 }
0x11bc   :  { %v2176_v37 = vadd.f32 %v10306_v36, %v2016_v13  ;;  %v2813_v62 = vadd.f32 %v10307_v51, %v2653_v5  ;;  %v2019_v12 = vadd.f32 %v10308_v0, %v1859_v4  ;;  %v10309_v39 = vld [vmem:[#allocation209_spill] sm:$0xff]  ;;  %v10310_v53 = vld [vmem:[#allocation266_spill] sm:$0xff]  ;;  %v10311_v55 = vld [vmem:[#allocation323_spill] sm:$0xff]  ;;  %5752 = vset.pattern.permute.xlu1 %v10244_v48  ;;  %4901 = vperm.xlu2 %5751, %v8723_v44  }
0x11bd   :  { %v2171_v3 = vadd.f32 %v10309_v39, %v2011_v2  ;;  %v2808_v40 = vadd.f32 %v10310_v53, %v2648_v43  ;;  %v3445_v54 = vadd.f32 %v10311_v55, %v3285_v35  ;;  %v10312_v38 = vld [vmem:[#allocation197_spill] sm:$0xff]  ;;  %v10313_v7 = vld [vmem:[#allocation223_spill] sm:$0xff]  ;;  %v10314_v20 = vld [vmem:[#allocation280_spill] sm:$0xff]  ;;  %5061 = vperm.xlu1 %5752, %v8723_v44  }
0x11be   :  { %v2015_v63 = vadd.f32 %v10312_v38, %v1855_v19  ;;  %v2336_v59 = vadd.f32 %v10313_v7, %v2176_v37  ;;  %v2973_v25 = vadd.f32 %v10314_v20, %v2813_v62  ;;  %v10315_v13 = vld [vmem:[#allocation198_spill] sm:$0xff]  ;;  %v10316_v5 = vld [vmem:[#allocation225_spill] sm:$0xff]  ;;  %v10318_v14 = vld [vmem:[#allocation340_spill] sm:$0xff] }
0x11bf   :  { %v2014_v4 = vadd.f32 %v10315_v13, %v1854_v6  ;;  %v2331_v2 = vadd.f32 %v10316_v5, %v2171_v3  ;;  %v10317_v46 = vld [vmem:[#allocation282_spill] sm:$0xff]  ;;  %v3605_v35 = vadd.f32 %v10318_v14, %v3445_v54  ;;  %v10319_v52 = vld [vmem:[#allocation199_spill] sm:$0xff]  ;;  %v10321_v51 = vld [vmem:[#allocation237_spill] sm:$0xff] }
0x11c0   :  { %v2968_v43 = vadd.f32 %v10317_v46, %v2808_v40  ;;  %v2018_v19 = vadd.f32 %v10319_v52, %v1858_v45  ;;  %v10320_v36 = vld [vmem:[#allocation210_spill] sm:$0xff]  ;;  %v2496_v62 = vadd.f32 %v10321_v51, %v2336_v59  ;;  %v10322_v0 = vld [vmem:[#allocation295_spill] sm:$0xff]  ;;  %v10325_v7 = vld [vmem:[#allocation296_spill] sm:$0xff] }
0x11c1   :  { %v2179_v37 = vadd.f32 %v10320_v36, %v2019_v12  ;;  %v3133_v39 = vadd.f32 %v10322_v0, %v2973_v25  ;;  %v10323_v53 = vld [vmem:[#allocation211_spill] sm:$0xff]  ;;  %v10327_v13 = vld [vmem:[#allocation212_spill] sm:$0xff]  ;;  %v10328_v5 = vld [vmem:[#allocation213_spill] sm:$0xff] }
0x11c2   :  { %v2172_v55 = vadd.f32 %v10323_v53, %v2012_v23  ;;  %v10324_v38 = vld [vmem:[#allocation239_spill] sm:$0xff]  ;;  %v3128_v3 = vadd.f32 %v10325_v7, %v2968_v43  ;;  %v2174_v54 = vadd.f32 %v10327_v13, %v2014_v4  ;;  %v2175_v46 = vadd.f32 %v10328_v5, %v2015_v63  ;;  %v10329_v14 = vld [vmem:[#allocation253_spill] sm:$0xff]  ;;  %v10330_v52 = vld [vmem:[#allocation310_spill] sm:$0xff]  ;;  %v9098_v43 = vpop.permute.xlu2 %4682 }
0x11c3   :  { %v2491_v6 = vadd.f32 %v10324_v38, %v2331_v2  ;;  %v10326_v20 = vld [vmem:[#allocation355_spill] sm:$0xff]  ;;  %v2656_v45 = vadd.f32 %v10329_v14, %v2496_v62  ;;  %v3293_v12 = vadd.f32 %v10330_v52, %v3133_v39  ;;  %v10331_v36 = vld [vmem:[#allocation214_spill] sm:$0xff]  ;;  %v10333_v23 = vld [vmem:[#allocation312_spill] sm:$0xff]  ;;  %10335 = vst [vmem:[#allocation334_spill] sm:$0xff] %v9098_v43 }
0x11c4   :  { %v3765_v40 = vadd.f32 %v10326_v20, %v3605_v35  ;;  %v9093_v59 = vadd.f32 %v10331_v36, %v2018_v19  ;;  %v10332_v25 = vld [vmem:[#allocation255_spill] sm:$0xff]  ;;  %v3288_v0 = vadd.f32 %v10333_v23, %v3128_v3  ;;  %v10334_v2 = vld [vmem:[#allocation372_spill] sm:$0xff]  ;;  %v10337_v4 = vld [vmem:[#allocation226_spill] sm:$0xff]  ;;  %5753 = vset.pattern.permute.xlu2 %v10244_v48 }
0x11c5   :  { %v2651_v51 = vadd.f32 %v10332_v25, %v2491_v6  ;;  %v10336_v35 = vld [vmem:[#allocation224_spill] sm:$0xff]  ;;  %v2339_v7 = vadd.f32 %v10337_v4, %v2179_v37  ;;  %v10338_v63 = vld [vmem:[#allocation267_spill] sm:$0xff]  ;;  %v10339_v62 = vld [vmem:[#allocation325_spill] sm:$0xff]  ;;  %5754 = vset.pattern.permute.xlu1 %v10204_v28  ;;  %5065 = vperm.xlu2 %5753, %v8716_v30  }
0x11c6   :  { %v3925_v53 = vadd.f32 %v10334_v2, %v3765_v40  ;;  %v2332_v38 = vadd.f32 %v10336_v35, %v2172_v55  ;;  %v2816_v20 = vadd.f32 %v10338_v63, %v2656_v45  ;;  %v3453_v13 = vadd.f32 %v10339_v62, %v3293_v12  ;;  %v10340_v39 = vld [vmem:[#allocation227_spill] sm:$0xff]  ;;  %v10341_v19 = vld [vmem:[#allocation269_spill] sm:$0xff]  ;;  %v10342_v52 = vld [vmem:[#allocation326_spill] sm:$0xff]  ;;  %4793 = vperm.xlu1 %5754, %v8799_v26  }
0x11c7   :  { %v2335_v5 = vadd.f32 %v10340_v39, %v2175_v46  ;;  %v2811_v14 = vadd.f32 %v10341_v19, %v2651_v51  ;;  %v3448_v6 = vadd.f32 %v10342_v52, %v3288_v0  ;;  %v10343_v36 = vld [vmem:[#allocation387_spill] sm:$0xff]  ;;  %v10344_v25 = vld [vmem:[#allocation228_spill] sm:$0xff]  ;;  %v10347_v35 = vld [vmem:[#allocation341_spill] sm:$0xff] }
0x11c8   :  { %v4085_v3 = vadd.f32 %v10343_v36, %v3925_v53  ;;  %v2334_v40 = vadd.f32 %v10344_v25, %v2174_v54  ;;  %v10345_v23 = vld [vmem:[#allocation240_spill] sm:$0xff]  ;;  %v10346_v43 = vld [vmem:[#allocation283_spill] sm:$0xff]  ;;  %v3613_v37 = vadd.f32 %v10347_v35, %v3453_v13  ;;  %v10348_v45 = vld [vmem:[#allocation285_spill] sm:$0xff] }
0x11c9   :  { %v2499_v2 = vadd.f32 %v10345_v23, %v2339_v7  ;;  %v2976_v55 = vadd.f32 %v10346_v43, %v2816_v20  ;;  %v2971_v12 = vadd.f32 %v10348_v45, %v2811_v14  ;;  %v10349_v4 = vld [vmem:[#allocation343_spill] sm:$0xff]  ;;  %v10350_v63 = vld [vmem:[#allocation404_spill] sm:$0xff]  ;;  %v10351_v0 = vld [vmem:[#allocation242_spill] sm:$0xff] }
0x11ca   :  { %v3608_v46 = vadd.f32 %v10349_v4, %v3448_v6  ;;  %v4245_v51 = vadd.f32 %v10350_v63, %v4085_v3  ;;  %v2494_v54 = vadd.f32 %v10351_v0, %v2334_v40  ;;  %v10352_v53 = vld [vmem:[#allocation241_spill] sm:$0xff]  ;;  %v10355_v39 = vld [vmem:[#allocation256_spill] sm:$0xff]  ;;  %v10356_v14 = vld [vmem:[#allocation299_spill] sm:$0xff] }
0x11cb   :  { %v2492_v7 = vadd.f32 %v10352_v53, %v2332_v38  ;;  %v10353_v62 = vld [vmem:[#allocation297_spill] sm:$0xff]  ;;  %v2659_v19 = vadd.f32 %v10355_v39, %v2499_v2  ;;  %v3131_v52 = vadd.f32 %v10356_v14, %v2971_v12  ;;  %v10357_v6 = vld [vmem:[#allocation358_spill] sm:$0xff]  ;;  %v10363_v63 = vld [vmem:[#allocation315_spill] sm:$0xff]  ;;  %v4679_v14 = vpop.permute.xlu0 %4678 }
0x11cc   :  { %v3136_v43 = vadd.f32 %v10353_v62, %v2976_v55  ;;  %v10354_v20 = vld [vmem:[#allocation357_spill] sm:$0xff]  ;;  %v3768_v36 = vadd.f32 %v10357_v6, %v3608_v46  ;;  %v4405_v3 = vadd.f32 %v8657_v16, %v4245_v51  ;;  %v10358_v25 = vld [vmem:[#allocation254_spill] sm:$0xff]  ;;  %v10364_v53 = vld [vmem:[#allocation375_spill] sm:$0xff]  ;;  %v9135_v62 = vpop.permute.xlu2 %4688 }
0x11cd   :  { %v3773_v13 = vadd.f32 %v10354_v20, %v3613_v37  ;;  %v2652_v30 = vadd.f32 %v10358_v25, %v2492_v7  ;;  %v10359_v23 = vld [vmem:[#allocation258_spill] sm:$0xff]  ;;  %v10360_v35 = vld [vmem:[#allocation313_spill] sm:$0xff]  ;;  %v3291_v0 = vadd.f32 %v10363_v63, %v3131_v52  ;;  %v10365_v46 = vld [vmem:[#allocation272_spill] sm:$0xff]  ;;  %5755 = vset.pattern.permute.xlu2 %v10240_v1 }
0x11ce   :  { %v2654_v40 = vadd.f32 %v10359_v23, %v2494_v54  ;;  %v3296_v38 = vadd.f32 %v10360_v35, %v3136_v43  ;;  %v10361_v45 = vld [vmem:[#allocation373_spill] sm:$0xff]  ;;  %v10362_v4 = vld [vmem:[#allocation270_spill] sm:$0xff]  ;;  %v3928_v2 = vadd.f32 %v10364_v53, %v3768_v36  ;;  %v4565_v12 = vadd.f32 %v8822_v47, %v4405_v3  ;;  %v10366_v51 = vld [vmem:[#allocation271_spill] sm:$0xff]  ;;  %5756 = vset.pattern.permute.xlu1 %v10240_v1 }
0x11cf   :  { %v3933_v55 = vadd.f32 %v10361_v45, %v3773_v13  ;;  %v2819_v37 = vadd.f32 %v10362_v4, %v2659_v19  ;;  %v2812_v7 = vadd.f32 %v10366_v51, %v2652_v30  ;;  %v10367_v20 = vld [vmem:[#allocation327_spill] sm:$0xff]  ;;  %v10368_v39 = vld [vmem:[#allocation389_spill] sm:$0xff]  ;;  %v10369_v13 = vld [vmem:[#allocation286_spill] sm:$0xff]  ;;  %4949 = vperm.xlu2 %5755, %v8775_v27   ;;  %4953 = vperm.xlu1 %5756, %v8799_v26  }
0x11d0   :  { %v2814_v16 = vadd.f32 %v10365_v46, %v2654_v40  ;;  %v3456_v54 = vadd.f32 %v10367_v20, %v3296_v38  ;;  %v10370_v19 = vld [vmem:[#allocation329_spill] sm:$0xff]  ;;  %v10371_v52 = vld [vmem:[#allocation390_spill] sm:$0xff]  ;;  %v9144_v36 = vadd.f32 %v4679_v14, %v4565_v12  ;;  %v10372_v47 = vld [vmem:[#allocation243_spill] sm:$0xff] }
0x11d1   :  { %v4093_v43 = vadd.f32 %v10368_v39, %v3933_v55  ;;  %v2979_v6 = vadd.f32 %v10369_v13, %v2819_v37  ;;  %v3451_v25 = vadd.f32 %v10370_v19, %v3291_v0  ;;  %v4088_v23 = vadd.f32 %v10371_v52, %v3928_v2  ;;  %v10373_v35 = vld [vmem:[#allocation284_spill] sm:$0xff]  ;;  %v10375_v30 = vld [vmem:[#allocation405_spill] sm:$0xff]  ;;  %v10378_v51 = vld [vmem:[#allocation346_spill] sm:$0xff] }
0x11d2   :  { %v2495_v3 = vadd.f32 %v10372_v47, %v2335_v5  ;;  %v2972_v45 = vadd.f32 %v10373_v35, %v2812_v7  ;;  %v10374_v40 = vld [vmem:[#allocation344_spill] sm:$0xff]  ;;  %v10379_v20 = vld [vmem:[#allocation407_spill] sm:$0xff]  ;;  %v10380_v2 = vld [vmem:[#allocation301_spill] sm:$0xff] }
0x11d3   :  { %v3616_v4 = vadd.f32 %v10374_v40, %v3456_v54  ;;  %v4253_v63 = vadd.f32 %v10375_v30, %v4093_v43  ;;  %v10376_v38 = vld [vmem:[#allocation288_spill] sm:$0xff]  ;;  %v3611_v37 = vadd.f32 %v10378_v51, %v3451_v25  ;;  %v4248_v0 = vadd.f32 %v10379_v20, %v4088_v23  ;;  %v10381_v39 = vld [vmem:[#allocation359_spill] sm:$0xff]  ;;  %v10382_v54 = vld [vmem:[#allocation257_spill] sm:$0xff] }
0x11d4   :  { %v2974_v53 = vadd.f32 %v10376_v38, %v2814_v16  ;;  %v10377_v55 = vld [vmem:[#allocation300_spill] sm:$0xff]  ;;  %v3132_v12 = vadd.f32 %v10380_v2, %v2972_v45  ;;  %v2655_v16 = vadd.f32 %v10382_v54, %v2495_v3  ;;  %v10383_v43 = vld [vmem:[#allocation302_spill] sm:$0xff]  ;;  %v10384_v13 = vld [vmem:[#allocation361_spill] sm:$0xff]  ;;  %v4685_v2 = vpop.permute.xlu0 %4684 }
0x11d5   :  { %v3139_v46 = vadd.f32 %v10377_v55, %v2979_v6  ;;  %v3776_v5 = vadd.f32 %v10381_v39, %v3616_v4  ;;  %v4413_v7 = vadd.f32 %v8661_v61, %v4253_v63  ;;  %v3771_v6 = vadd.f32 %v10384_v13, %v3611_v37  ;;  %v10385_v25 = vld [vmem:[#allocation314_spill] sm:$0xff]  ;;  %v10386_v23 = vld [vmem:[#allocation316_spill] sm:$0xff]  ;;  %v10388_v40 = vld [vmem:[#allocation273_spill] sm:$0xff]  ;;  %v9173_v55 = vpop.permute.xlu1 %4680 }
0x11d6   :  { %v3134_v14 = vadd.f32 %v10383_v43, %v2974_v53  ;;  %v4408_v19 = vadd.f32 %v8663_v60, %v4248_v0  ;;  %v3292_v52 = vadd.f32 %v10385_v25, %v3132_v12  ;;  %v10387_v35 = vld [vmem:[#allocation376_spill] sm:$0xff]  ;;  %v2815_v4 = vadd.f32 %v10388_v40, %v2655_v16  ;;  %v10389_v30 = vld [vmem:[#allocation318_spill] sm:$0xff]  ;;  %v4695_v60 = vpop.permute.xlu2 %4694  ;;  %v10392_v37 = vld [vmem:[#allocation331_spill] sm:$0xff] }
0x11d7   :  { %v3299_v47 = vadd.f32 %v10386_v23, %v3139_v46  ;;  %v3936_v61 = vadd.f32 %v10387_v35, %v3776_v5  ;;  %v4573_v45 = vadd.f32 %v8824_v56, %v4413_v7  ;;  %v10390_v63 = vld [vmem:[#allocation378_spill] sm:$0xff]  ;;  %v10393_v46 = vld [vmem:[#allocation391_spill] sm:$0xff]  ;;  %v10394_v56 = vld [vmem:[#allocation229_spill] sm:$0xff]  ;;  %5757 = vset.pattern.permute.xlu2 %v10244_v48  ;;  %5758 = vset.pattern.permute.xlu1 %v10204_v28 }
0x11d8   :  { %v3294_v3 = vadd.f32 %v10389_v30, %v3134_v14  ;;  %v3931_v38 = vadd.f32 %v10390_v63, %v3771_v6  ;;  %v4568_v53 = vadd.f32 %v8832_v58, %v4408_v19  ;;  %v10391_v26 = vld [vmem:[#allocation330_spill] sm:$0xff]  ;;  %v3452_v20 = vadd.f32 %v10392_v37, %v3292_v52  ;;  %v10395_v5 = vld [vmem:[#allocation332_spill] sm:$0xff]  ;;  %v10396_v54 = vld [vmem:[#allocation393_spill] sm:$0xff]  ;;  %5109 = vperm.xlu2 %5757, %v8775_v27  }
0x11d9   :  { %v3459_v51 = vadd.f32 %v10391_v26, %v3299_v47  ;;  %v4096_v0 = vadd.f32 %v10393_v46, %v3936_v61  ;;  %v9178_v12 = vadd.f32 %v4695_v60, %v4573_v45  ;;  %v2338_v39 = vadd.f32 %v10394_v56, %v9093_v59  ;;  %v10397_v43 = vld [vmem:[#allocation287_spill] sm:$0xff]  ;;  %v10398_v13 = vld [vmem:[#allocation345_spill] sm:$0xff]  ;;  %v10400_v52 = vld [vmem:[#allocation408_spill] sm:$0xff]  ;;  %4749 = vperm.xlu1 %5758, %v8739_v21  }
0x11da   :  { %v3454_v7 = vadd.f32 %v10395_v5, %v3294_v3  ;;  %v4091_v16 = vadd.f32 %v10396_v54, %v3931_v38  ;;  %v9184_v58 = vadd.f32 %v4685_v2, %v4568_v53  ;;  %v2975_v14 = vadd.f32 %v10397_v43, %v2815_v4  ;;  %v10399_v19 = vld [vmem:[#allocation347_spill] sm:$0xff]  ;;  %v10401_v47 = vld [vmem:[#allocation244_spill] sm:$0xff]  ;;  %v10402_v61 = vld [vmem:[#allocation349_spill] sm:$0xff] }
0x11db   :  { %v3612_v6 = vadd.f32 %v10398_v13, %v3452_v20  ;;  %v3619_v25 = vadd.f32 %v10399_v19, %v3459_v51  ;;  %v4256_v23 = vadd.f32 %v10400_v52, %v4096_v0  ;;  %v2498_v35 = vadd.f32 %v10401_v47, %v2338_v39  ;;  %v10403_v40 = vld [vmem:[#allocation410_spill] sm:$0xff]  ;;  %v10404_v30 = vld [vmem:[#allocation303_spill] sm:$0xff]  ;;  %v10408_v37 = vld [vmem:[#allocation364_spill] sm:$0xff] }
0x11dc   :  { %v3614_v45 = vadd.f32 %v10402_v61, %v3454_v7  ;;  %v4251_v59 = vadd.f32 %v10403_v40, %v4091_v16  ;;  %v3135_v3 = vadd.f32 %v10404_v30, %v2975_v14  ;;  %v10405_v63 = vld [vmem:[#allocation362_spill] sm:$0xff]  ;;  %v10406_v53 = vld [vmem:[#allocation363_spill] sm:$0xff]  ;;  %v10409_v0 = vld [vmem:[#allocation317_spill] sm:$0xff]  ;;  %v4691_v61 = vpop.permute.xlu0 %4690 }
0x11dd   :  { %v3779_v38 = vadd.f32 %v10405_v63, %v3619_v25  ;;  %v3772_v60 = vadd.f32 %v10406_v53, %v3612_v6  ;;  %v4416_v4 = vadd.f32 %v8665_v11, %v4256_v23  ;;  %v10407_v26 = vld [vmem:[#allocation259_spill] sm:$0xff]  ;;  %v10410_v56 = vld [vmem:[#allocation377_spill] sm:$0xff]  ;;  %v10412_v54 = vld [vmem:[#allocation274_spill] sm:$0xff]  ;;  %v9211_v6 = vpop.permute.xlu1 %4686 }
0x11de   :  { %v2658_v51 = vadd.f32 %v10407_v26, %v2498_v35  ;;  %v3774_v20 = vadd.f32 %v10408_v37, %v3614_v45  ;;  %v4411_v46 = vadd.f32 %v8669_v41, %v4251_v59  ;;  %v3295_v2 = vadd.f32 %v10409_v0, %v3135_v3  ;;  %v10411_v5 = vld [vmem:[#allocation379_spill] sm:$0xff]  ;;  %v10413_v43 = vld [vmem:[#allocation381_spill] sm:$0xff]  ;;  %v4701_v13 = vpop.permute.xlu2 %4700  ;;  %v10415_v52 = vld [vmem:[#allocation394_spill] sm:$0xff] }
0x11df   :  { %v3932_v39 = vadd.f32 %v10410_v56, %v3772_v60  ;;  %v3939_v7 = vadd.f32 %v10411_v5, %v3779_v38  ;;  %v4576_v11 = vadd.f32 %v8834_v29, %v4416_v4  ;;  %v10414_v19 = vld [vmem:[#allocation333_spill] sm:$0xff]  ;;  %v10416_v47 = vld [vmem:[#allocation395_spill] sm:$0xff]  ;;  %v10418_v59 = vld [vmem:[#allocation396_spill] sm:$0xff] }
0x11e0   :  { %v2818_v16 = vadd.f32 %v10412_v54, %v2658_v51  ;;  %v3934_v14 = vadd.f32 %v10413_v43, %v3774_v20  ;;  %v4571_v41 = vadd.f32 %v8842_v32, %v4411_v46  ;;  %v3455_v25 = vadd.f32 %v10414_v19, %v3295_v2  ;;  %v10417_v29 = vld [vmem:[#allocation289_spill] sm:$0xff]  ;;  %v10419_v63 = vld [vmem:[#allocation348_spill] sm:$0xff]  ;;  %v10421_v60 = vld [vmem:[#allocation411_spill] sm:$0xff]  ;;  %5759 = vset.pattern.permute.xlu2 %v10204_v28 }
0x11e1   :  { %v4099_v23 = vadd.f32 %v10415_v52, %v3939_v7  ;;  %v4092_v35 = vadd.f32 %v10416_v47, %v3932_v39  ;;  %v9216_v45 = vadd.f32 %v4701_v13, %v4576_v11  ;;  %v10420_v38 = vld [vmem:[#allocation409_spill] sm:$0xff]  ;;  %v10422_v26 = vld [vmem:[#allocation304_spill] sm:$0xff]  ;;  %v10425_v39 = vld [vmem:[#allocation319_spill] sm:$0xff]  ;;  %5760 = vset.pattern.permute.xlu1 %v10240_v1 }
0x11e2   :  { %v2978_v40 = vadd.f32 %v10417_v29, %v2818_v16  ;;  %v4094_v30 = vadd.f32 %v10418_v59, %v3934_v14  ;;  %v9220_v3 = vadd.f32 %v4691_v61, %v4571_v41  ;;  %v3615_v32 = vadd.f32 %v10419_v63, %v3455_v25  ;;  %v10423_v37 = vld [vmem:[#allocation413_spill] sm:$0xff]  ;;  %v10427_v54 = vld [vmem:[#allocation380_spill] sm:$0xff]  ;;  %4909 = vperm.xlu1 %5760, %v8739_v21   ;;  %v10429_v19 = vld [vmem:[#allocation335_spill] sm:$0xff] }
0x11e3   :  { %v4252_v53 = vadd.f32 %v10420_v38, %v4092_v35  ;;  %v4259_v4 = vadd.f32 %v10421_v60, %v4099_v23  ;;  %v10424_v46 = vld [vmem:[#allocation365_spill] sm:$0xff]  ;;  %v10428_v41 = vld [vmem:[#allocation424_spill] sm:$0xff]  ;;  %v10431_v61 = vld [vmem:[#allocation350_spill] sm:$0xff] }
0x11e4   :  { %v3138_v51 = vadd.f32 %v10422_v26, %v2978_v40  ;;  %v4254_v20 = vadd.f32 %v10423_v37, %v4094_v30  ;;  %v3775_v0 = vadd.f32 %v10424_v46, %v3615_v32  ;;  %v10426_v7 = vld [vmem:[#allocation421_spill] sm:$0xff]  ;;  %4753 = vperm.xlu2 %5759, %v10428_v41   ;;  %v4697_v47 = vpop.permute.xlu0 %4696  ;;  %v10432_v40 = vld [vmem:[#allocation412_spill] sm:$0xff]  ;;  %v10434_v63 = vld [vmem:[#allocation422_spill] sm:$0xff] }
0x11e5   :  { %v4419_v2 = vadd.f32 %v8671_v8, %v4259_v4  ;;  %v4412_v56 = vadd.f32 %v8673_v18, %v4252_v53  ;;  %v4693_v13 = vpop.permute.xlu1 %4692  ;;  %v10430_v52 = vld [vmem:[#allocation397_spill] sm:$0xff]  ;;  %v10435_v38 = vld [vmem:[#allocation382_spill] sm:$0xff] }
0x11e6   :  { %v3298_v5 = vadd.f32 %v10425_v39, %v3138_v51  ;;  %v4414_v11 = vadd.f32 %v10426_v7, %v4254_v20  ;;  %v3935_v16 = vadd.f32 %v10427_v54, %v3775_v0  ;;  %v4707_v18 = vpop.permute.xlu2 %4706  ;;  %v10436_v51 = vld [vmem:[#allocation399_spill] sm:$0xff] }
0x11e7   :  { %v4572_v43 = vadd.f32 %v8837_v24, %v4412_v56  ;;  %v4579_v14 = vadd.f32 %v8844_v49, %v4419_v2  ;;  %v10437_v56 = vld [vmem:[#allocation414_spill] sm:$0xff] }
0x11e8   :  { %v4574_v8 = vadd.f32 %v8852_v15, %v4414_v11  ;;  %v3458_v25 = vadd.f32 %v10429_v19, %v3298_v5  ;;  %v4095_v23 = vadd.f32 %v10430_v52, %v3935_v16  ;;  %v10433_v15 = vld [vmem:[#allocation367_spill] sm:$0xff] }
0x11e9   :  { %v9242_v35 = vadd.f32 %v4707_v18, %v4579_v14  ;;  %v9244_v24 = vadd.f32 %v4693_v13, %v4572_v43  ;;  %v10440_v19 = vld [vmem:[#allocation427_spill] sm:$0xff] }
0x11ea   :  { %v9246_v49 = vadd.f32 %v4697_v47, %v4574_v8  ;;  %v3618_v29 = vadd.f32 %v10431_v61, %v3458_v25  ;;  %v4255_v59 = vadd.f32 %v10432_v40, %v4095_v23  ;;  %v10441_v61 = vld [vmem:[#allocation425_spill] sm:$0xff]  ;;  %v5847_v40 = vld [vmem:[%s9699_s1 + $0x28] sm:$0xff] }
0x11ec   :  { %v3778_v30 = vadd.f32 %v10433_v15, %v3618_v29  ;;  %v4415_v32 = vadd.f32 %v10434_v63, %v4255_v59  ;;  %5761 = vset.pattern.permute.xlu2 %v10240_v1  ;;  %v4703_v20 = vpop.permute.xlu0 %4702 }
0x11ed   :  { %4913 = vperm.xlu2 %5761, %v10428_v41   ;;  %v4699_v26 = vpop.permute.xlu1 %4698  ;;  %v9261_v2 = vadd.f32 %v4703_v20, %v8862_v17 }
0x11ee   :  { %v3938_v53 = vadd.f32 %v10435_v38, %v3778_v30  ;;  %v4575_v60 = vadd.f32 %v8847_v31, %v4415_v32  ;;  %v4778_v4 = vpop.permute.xlu2 %4777  ;;  %v10438_v31 = vld [vmem:[#allocation423_spill] sm:$0xff]  ;;  %v5848_v38 = vld [vmem:[%s9699_s1 + $0x58] sm:$0xff] }
0x11ef   :  { %v4813_v46 = vmul.f32 %v4778_v4, %v6361_v10 }
0x11f0   :  { %v4098_v37 = vadd.f32 %v10436_v51, %v3938_v53  ;;  %v9258_v0 = vadd.f32 %v4699_v26, %v4575_v60  ;;  %v5849_v53 = vld [vmem:[%s9699_s1 + $0x20] sm:$0xff]  ;;  %v5850_v26 = vld [vmem:[%s9699_s1 + $0x8] sm:$0xff] }
0x11f1   :  { %4854 = vrot.lane.b32.xlu1 %v4813_v46, %s5966_s8 }
0x11f2   :  { %v4258_v39 = vadd.f32 %v10437_v56, %v4098_v37 }
0x11f4   :  { %v4418_v5 = vadd.f32 %v10438_v31, %v4258_v39  ;;  %v5094_v47 = vpop.permute.xlu0 %5093  ;;  %v9340_v31 = vld [vmem:[%s9699_s1 + $0x38] sm:$0xff] }
0x11f5   :  { %5762 = vset.pattern.permute.xlu2 %v10244_v48  ;;  %v4705_v11 = vpop.permute.xlu1 %4704 }
0x11f6   :  { %v4578_v7 = vadd.f32 %v8856_v22, %v4418_v5  ;;  %5069 = vperm.xlu2 %5762, %v8739_v21   ;;  %v4938_v16 = vpop.permute.xlu2 %4937  ;;  %v10439_v22 = vld [vmem:[#allocation426_spill] sm:$0xff] }
0x11f7   :  { %v4973_v17 = vmul.f32 %v4938_v16, %v6361_v10 }
0x11f8   :  { %v9268_v54 = vadd.f32 %v4705_v11, %v4578_v7 }
0x11fd   :  { %v4774_v43 = vpop.permute.xlu1 %4773 }
0x11fe   :  { %v4812_v14 = vmul.f32 %v4774_v43, %v6326_v42  ;;  %5014 = vrot.lane.b32.xlu2 %v4973_v17, %s5967_s9  ;;  %v4782_v8 = vpop.permute.xlu2 %4781 }
0x11ff   :  { %5764 = vset.pattern.permute.xlu2 %v10204_v28  ;;  %v4814_v15 = vmul.f32 %v4782_v8, %v6356_v9 }
0x1200   :  { %4852 = vrot.lane.b32.xlu0 %v4812_v14, %s5966_s8  ;;  %v5114_v14 = vpop.permute.xlu0 %5113 }
0x1205   :  { %v4934_v18 = vpop.permute.xlu1 %4933 }
0x1206   :  { %4797 = vperm.xlu2 %5764, %v10439_v22   ;;  %v4972_v13 = vmul.f32 %v4934_v18, %v6326_v42  ;;  %v4942_v21 = vpop.permute.xlu2 %4941 }
0x1207   :  { %v4974_v56 = vmul.f32 %v4942_v21, %v6356_v9 }
0x1208   :  { %5073 = vperm.xlu0 %5743, %v10428_v41   ;;  %5012 = vrot.lane.b32.xlu1 %v4972_v13, %s5967_s9  ;;  %v9365_v13 = vld [vmem:[%s9699_s1 + $0x30] sm:$0xff] }
0x120d   :  { %v5098_v25 = vpop.permute.xlu1 %5097 }
0x120e   :  { %5765 = vset.pattern.permute.xlu2 %v10240_v1  ;;  %v5133_v52 = vmul.f32 %v5098_v25, %v6361_v10  ;;  %v5106_v23 = vpop.permute.xlu2 %5105  ;;  %v5132_v10 = vmul.f32 %v5094_v47, %v6326_v42  ;;  %v5572_v25 = vld [vmem:[%s9702_s4] sm:$0xff] }
0x120f   :  { %4961 = vperm.xlu2 %5765, %v10440_v19   ;;  %v5135_v5 = vmul.f32 %v5106_v23, %v6345_v34 }
0x1210   :  { %5763 = vset.pattern.permute.xlu0 %v10204_v28  ;;  %5174 = vrot.lane.b32.xlu1 %v5133_v52, %s5968_s10  ;;  %v10442_v52 = vld [vmem:[#allocation32_spill] sm:$0xff] }
0x1211   :  { %4741 = vperm.xlu0 %5763, %v8723_v44  }
0x1215   :  { %v4786_v29 = vpop.permute.xlu1 %4785 }
0x1216   :  { %v4902_v41 = vpop.permute.xlu2 %4901 }
0x1217   :  { %5767 = vset.pattern.permute.xlu2 %v10244_v48 }
0x1218   :  { %5121 = vperm.xlu2 %5767, %v10440_v19   ;;  %4957 = vperm.xlu1 %5760, %v10439_v22  }
0x1219   :  { %4789 = vperm.xlu0 %5763, %v8775_v27   ;;  %v4815_v27 = vmul.f32 %v4786_v29, %v6345_v34 }
0x121d   :  { %v5102_v59 = vpop.permute.xlu1 %5101 }
0x121e   :  { %v5134_v63 = vmul.f32 %v5102_v59, %v6356_v9  ;;  %v4964_v9 = vmul.f32 %v4902_v41, %v6298_v57 }
0x121f   :  { %v5066_v44 = vpop.permute.xlu2 %5065 }
0x1220   :  { %5770 = vset.pattern.permute.xlu2 %v10240_v1  ;;  %5766 = vset.pattern.permute.xlu1 %v10244_v48  ;;  %v5125_v17 = vmul.f32 %v5066_v44, %v6304_v33  ;;  %v10444_v44 = vld [vmem:[#allocation33_spill] sm:$0xff] }
0x1221   :  { %4917 = vperm.xlu2 %5770, %v10441_v61   ;;  %5172 = vrot.lane.b32.xlu0 %v5132_v10, %s5968_s10 }
0x1222   :  { %5117 = vperm.xlu1 %5766, %v10439_v22   ;;  %v5573_v22 = vld [vmem:[%s9702_s4 + $0x8] sm:$0xff] }
0x1223   :  { %5582 = vmatpush.bf16.msra.mxu3 %v5573_v22  ;;  %5274 = vmatpush.bf16.msra.mxu0 %v5573_v22 }
0x1226   :  { %v4746_v32 = vpop.permute.xlu1 %4745 }
0x1227   :  { %v4805_v4 = vmul.f32 %v4746_v32, %v6304_v33  ;;  %5583 = vmatpush.bf16.msra.mxu3 %v5572_v25  ;;  %5275 = vmatpush.bf16.msra.mxu0 %v5572_v25  ;;  %v10446_v25 = vld [vmem:[#allocation28_spill] sm:$0xff] }
0x1229   :  { %4801 = vperm.xlu0 %5763, %v10440_v19   ;;  %4858 = vrot.lane.b32.xlu2 %v4815_v27, %s5966_s8  ;;  %v9301_v42 = vpop.permute.xlu2 %4949 }
0x122a   :  { %5772 = vset.pattern.permute.xlu2 %v10244_v48  ;;  %5769 = vset.pattern.permute.xlu1 %v10204_v28  ;;  %v4976_v29 = vmul.f32 %v9301_v42, %v10444_v44  ;;  %v10445_v42 = vld [vmem:[#allocation22_spill] sm:$0xff] }
0x122b   :  { %4761 = vperm.xlu1 %5769, %v5847_v40  }
0x122f   :  { %v5062_v51 = vpop.permute.xlu1 %5061 }
0x1230   :  { %v5124_v37 = vmul.f32 %v5062_v51, %v6298_v57 }
0x1231   :  { %4757 = vperm.xlu0 %5763, %v10441_v61   ;;  %5081 = vperm.xlu2 %5772, %v5847_v40   ;;  %v10443_v61 = vmov 0  }
0x1232   :  { %v9309_v30 = vpop.permute.xlu2 %5109 }
0x1233   :  { %4856 = vrot.lane.b32.xlu1 %v4814_v15, %s5966_s8 }
0x1234   :  { %5771 = vset.pattern.permute.xlu1 %v10244_v48 }
0x1238   :  { %v4794_v46 = vpop.permute.xlu1 %4793 }
0x1239   :  { %5768 = vset.pattern.permute.xlu0 %v10240_v1  ;;  %5176 = vrot.lane.b32.xlu2 %v5134_v63, %s5968_s10  ;;  %v4817_v23 = vmul.f32 %v4794_v46, %v10442_v52  ;;  %v5137_v63 = vmul.f32 %v5114_v14, %v10442_v52 }
0x123a   :  { %4945 = vperm.xlu0 %5768, %v5848_v38   ;;  %5774 = vset.pattern.permute.xlu2 %v10204_v28 }
0x123b   :  { %5077 = vperm.xlu1 %5771, %v5849_v53  }
0x123e   :  { %v9322_v60 = vpop.permute.xlu2 %4753 }
0x1241   :  { %4838 = vrot.lane.b32.xlu2 %v4805_v4, %s5966_s8 }
0x1242   :  { %4905 = vperm.xlu0 %5768, %v5850_v26  }
0x1243   :  { %5773 = vset.pattern.permute.xlu1 %v10204_v28  ;;  %v9344_v28 = vpop.permute.xlu1 %4953 }
0x1247   :  { %v9331_v20 = vpop.permute.xlu2 %4913 }
0x1249   :  { %5156 = vrot.lane.b32.xlu2 %v5124_v37, %s5968_s10 }
0x124a   :  { %4921 = vperm.xlu0 %5768, %v5847_v40  }
0x124b   :  { %v9352_v16 = vpop.permute.xlu1 %4749 }
0x1250   :  { %v9335_v39 = vpop.permute.xlu2 %5069 }
0x1251   :  { %4769 = vperm.xlu2 %5774, %v9340_v31  }
0x1252   :  { %5016 = vrot.lane.b32.xlu0 %v4974_v56, %s5967_s9 }
0x1254   :  { %v4910_v8 = vpop.permute.xlu1 %4909 }
0x1255   :  { %v4966_v51 = vmul.f32 %v4910_v8, %v10445_v42 }
0x1258   :  { %v5015_v7 = vpop.permute.xlu2 %5014 }
0x1259   :  { %5777 = vset.pattern.permute.xlu2 %v10244_v48 }
0x125a   :  { %5178 = vrot.lane.b32.xlu0 %v5135_v5, %s5968_s10 }
0x1260   :  { %v9350_v11 = vpop.permute.xlu2 %4797 }
0x1262   :  { %4996 = vrot.lane.b32.xlu0 %v4964_v9, %s5967_s9 }
0x1263   :  { %v4855_v19 = vpop.permute.xlu1 %4854 }
0x1264   :  { %v4893_v26 = vadd.f32 %v4855_v19, %v9178_v12 }
0x1266   :  { %v5053_v46 = vadd.f32 %v5015_v7, %v4893_v26  ;;  %v5136_v7 = vmul.f32 %v9309_v30, %v10444_v44 }
0x1269   :  { %v9356_v43 = vpop.permute.xlu2 %4961 }
0x126a   :  { %5158 = vrot.lane.b32.xlu0 %v5125_v17, %s5968_s10 }
0x1272   :  { %v5122_v18 = vpop.permute.xlu2 %5121  ;;  %4925 = vperm.xlu0 %5768, %v9365_v13   ;;  %v4853_v21 = vpop.permute.xlu0 %4852 }
0x1273   :  { %v4892_v37 = vadd.f32 %v4853_v21, %v9244_v24 }
0x127a   :  { %v5074_v41 = vpop.permute.xlu0 %5073  ;;  %4862 = vrot.lane.b32.xlu0 %v4817_v23, %s5966_s8  ;;  %v5013_v10 = vpop.permute.xlu1 %5012  ;;  %v10447_v23 = vld [vmem:[#allocation31_spill] sm:$0xff] }
0x127b   :  { %v4918_v47 = vpop.permute.xlu2 %4917  ;;  %5779 = vset.pattern.permute.xlu0 %v10443_v61  ;;  %v5127_v12 = vmul.f32 %v5074_v41, %v10446_v25 }
0x1282   :  { %5020 = vrot.lane.b32.xlu0 %v4976_v29, %s5967_s9  ;;  %v5175_v15 = vpop.permute.xlu1 %5174  ;;  %v4807_v29 = vmul.f32 %v9322_v60, %v10446_v25  ;;  %v10449_v60 = vld [vmem:[#allocation27_spill] sm:$0xff] }
0x1283   :  { %v4742_v27 = vpop.permute.xlu0 %4741  ;;  %v4859_v40 = vpop.permute.xlu2 %4858  ;;  %v5213_v9 = vadd.f32 %v5175_v15, %v5053_v46 }
0x1284   :  { %v9378_v59 = vadd.f32 %v4859_v40, %v9258_v0  ;;  %v5052_v0 = vadd.f32 %v5013_v10, %v4892_v37 }
0x128a   :  { %5182 = vrot.lane.b32.xlu0 %v5137_v63, %s5968_s10  ;;  %v4958_v4 = vpop.permute.xlu1 %4957 }
0x128b   :  { %v4790_v32 = vpop.permute.xlu0 %4789  ;;  %v5082_v38 = vpop.permute.xlu2 %5081  ;;  %v4978_v10 = vmul.f32 %v4958_v4, %v10447_v23 }
0x128c   :  { %v4816_v53 = vmul.f32 %v4790_v32, %v10444_v44  ;;  %v10448_v44 = vld [vmem:[#allocation34_spill] sm:$0xff]  ;;  %v4968_v32 = vmul.f32 %v4918_v47, %v10449_v60 }
0x128d   :  { %v5139_v40 = vmul.f32 %v5122_v18, %v10448_v44  ;;  %v4804_v18 = vmul.f32 %v4742_v27, %v6298_v57 }
0x128e   :  { %4860 = vrot.lane.b32.xlu2 %v4816_v53, %s5966_s8 }
0x1292   :  { %5000 = vrot.lane.b32.xlu0 %v4966_v51, %s5967_s9 }
0x1293   :  { %v5173_v56 = vpop.permute.xlu0 %5172  ;;  %v5177_v5 = vpop.permute.xlu2 %5176 }
0x1294   :  { %v5212_v17 = vadd.f32 %v5173_v56, %v5052_v0  ;;  %v5118_v14 = vpop.permute.xlu1 %5117 }
0x1296   :  { %v5224_v22 = vpack.c.bf16 %v5213_v9, %v5212_v17  ;;  %5089 = vperm.xlu2 %5777, %v9340_v31   ;;  %v10451_v17 = vld [vmem:[#allocation29_spill] sm:$0xff] }
0x1298   :  { %5533 = vmatmul.msk.bf16.vlgmr.msra.gmra.mxu3 %vm131_vm0, %v5224_v22 }
0x129a   :  { %5162 = vrot.lane.b32.xlu0 %v5127_v12, %s5968_s10  ;;  %v4977_v12 = vmul.f32 %v9344_v28, %v10442_v52 }
0x129b   :  { %v4802_v8 = vpop.permute.xlu0 %4801  ;;  %v4839_v24 = vpop.permute.xlu2 %4838 }
0x129c   :  { %v9395_v21 = vadd.f32 %v4839_v24, %v9144_v36  ;;  %v4806_v24 = vmul.f32 %v9352_v16, %v10445_v42  ;;  %v10454_v16 = vld [vmem:[#allocation35_spill] sm:$0xff] }
0x129d   :  { %v4762_v19 = vpop.permute.xlu1 %4761 }
0x129e   :  { %5180 = vrot.lane.b32.xlu2 %v5136_v7, %s5968_s10 }
0x129f   :  { %5778 = vset.pattern.permute.xlu2 %v10443_v61  ;;  %v5126_v61 = vmul.f32 %v9335_v39, %v10445_v42  ;;  %v10450_v39 = vld [vmem:[#allocation26_spill] sm:$0xff] }
0x12a0   :  { %v5129_v4 = vmul.f32 %v5082_v38, %v10450_v39  ;;  %v4809_v51 = vmul.f32 %v4762_v19, %v10450_v39  ;;  %v10453_v19 = vld [vmem:[#allocation14_spill] sm:$0xff] }
0x12a2   :  { %5024 = vrot.lane.b32.xlu0 %v4978_v10, %s5967_s9  ;;  %v228_v10 = vmul.f32 %v10453_v19, %v6298_v57  ;;  %v4979_v57 = vmul.f32 %v9356_v43, %v10448_v44  ;;  %v10466_v43 = vld [vmem:[#allocation215_spill] sm:$0xff] }
0x12a3   :  { %v9401_v41 = vpop.permute.xlu0 %4757  ;;  %v9428_v0 = vpop.permute.xlu2 %5156 }
0x12a5   :  { %v4857_v30 = vpop.permute.xlu1 %4856 }
0x12a6   :  { %4842 = vrot.lane.b32.xlu2 %v4807_v29, %s5966_s8  ;;  %v4894_v36 = vadd.f32 %v4857_v30, %v9246_v49  ;;  %v4819_v49 = vmul.f32 %v4802_v8, %v10448_v44  ;;  %v404_v29 = vadd.f32 %v10454_v16, %v228_v10  ;;  %v10455_v30 = vld [vmem:[#allocation50_spill] sm:$0xff]  ;;  %v10472_v10 = vld [vmem:[#allocation305_spill] sm:$0xff] }
0x12aa   :  { %5186 = vrot.lane.b32.xlu0 %v5139_v40, %s5968_s10  ;;  %v10456_v40 = vld [vmem:[#allocation65_spill] sm:$0xff] }
0x12ab   :  { %v4770_v9 = vpop.permute.xlu2 %4769 }
0x12ac   :  { %v4946_v15 = vpop.permute.xlu0 %4945 }
0x12ad   :  { %v4975_v63 = vmul.f32 %v4946_v15, %v6345_v34  ;;  %v5138_v34 = vmul.f32 %v5118_v14, %v10447_v23  ;;  %v5078_v46 = vpop.permute.xlu1 %5077  ;;  %v4811_v14 = vmul.f32 %v4770_v9, %v10451_v17  ;;  %v10465_v9 = vld [vmem:[#allocation200_spill] sm:$0xff] }
0x12ae   :  { %5160 = vrot.lane.b32.xlu2 %v5126_v61, %s5968_s10  ;;  %v5128_v56 = vmul.f32 %v5078_v46, %v10449_v60  ;;  %v10464_v46 = vld [vmem:[#allocation185_spill] sm:$0xff] }
0x12af   :  { %5018 = vrot.lane.b32.xlu1 %v4975_v63, %s5967_s9  ;;  %v10458_v63 = vld [vmem:[#allocation95_spill] sm:$0xff] }
0x12b2   :  { %5004 = vrot.lane.b32.xlu0 %v4968_v32, %s5967_s9 }
0x12b4   :  { %v4906_v53 = vpop.permute.xlu0 %4905 }
0x12b5   :  { %v4965_v47 = vmul.f32 %v4906_v53, %v6304_v33 }
0x12b6   :  { %4866 = vrot.lane.b32.xlu2 %v4819_v49, %s5966_s8  ;;  %v10459_v49 = vld [vmem:[#allocation110_spill] sm:$0xff] }
0x12b7   :  { %4836 = vrot.lane.b32.xlu1 %v4804_v18, %s5966_s8  ;;  %v10460_v18 = vld [vmem:[#allocation125_spill] sm:$0xff] }
0x12ba   :  { %5166 = vrot.lane.b32.xlu0 %v5129_v4, %s5968_s10 }
0x12bc   :  { %v4922_v26 = vpop.permute.xlu0 %4921 }
0x12be   :  { %5184 = vrot.lane.b32.xlu2 %v5138_v34, %s5968_s10  ;;  %v10461_v34 = vld [vmem:[#allocation140_spill] sm:$0xff] }
0x12bf   :  { %4998 = vrot.lane.b32.xlu1 %v4965_v47, %s5967_s9 }
0x12c4   :  { %v5017_v27 = vpop.permute.xlu0 %5016 }
0x12c5   :  { %v5054_v37 = vadd.f32 %v5017_v27, %v4894_v36  ;;  %v4818_v36 = vmul.f32 %v9350_v11, %v10447_v23  ;;  %v10462_v11 = vld [vmem:[#allocation155_spill] sm:$0xff] }
0x12c6   :  { %4846 = vrot.lane.b32.xlu2 %v4809_v51, %s5966_s8  ;;  %v10463_v51 = vld [vmem:[#allocation170_spill] sm:$0xff] }
0x12c7   :  { %v9430_v38 = vadd.f32 %v5177_v5, %v5054_v37  ;;  %4765 = vperm.xlu1 %5773, %v9365_v13   ;;  %v4808_v37 = vmul.f32 %v9401_v41, %v10449_v60  ;;  %v10471_v60 = vld [vmem:[#allocation290_spill] sm:$0xff] }
0x12cc   :  { %v5179_v33 = vpop.permute.xlu0 %5178 }
0x12ce   :  { %5164 = vrot.lane.b32.xlu2 %v5128_v56, %s5968_s10 }
0x12cf   :  { %5775 = vset.pattern.permute.xlu1 %v10240_v1 }
0x12d0   :  { %4929 = vperm.xlu1 %5775, %v9340_v31   ;;  %v10452_v31 = vld [vmem:[#allocation30_spill] sm:$0xff] }
0x12d4   :  { %v9438_v22 = vpop.permute.xlu0 %4996 }
0x12d6   :  { %4850 = vrot.lane.b32.xlu2 %v4811_v14, %s5966_s8 }
0x12d8   :  { %5776 = vset.pattern.permute.xlu1 %v10244_v48 }
0x12d9   :  { %5085 = vperm.xlu1 %5776, %v9365_v13   ;;  %v4967_v13 = vmul.f32 %v9331_v20, %v10446_v25  ;;  %v10457_v20 = vld [vmem:[#allocation80_spill] sm:$0xff] }
0x12dc   :  { %v9443_v5 = vpop.permute.xlu0 %5158 }
0x12e1   :  { %5022 = vrot.lane.b32.xlu1 %v4977_v12, %s5967_s9  ;;  %v10467_v12 = vld [vmem:[#allocation230_spill] sm:$0xff] }
0x12e4   :  { %v4926_v1 = vpop.permute.xlu0 %4925 }
0x12e5   :  { %v4970_v8 = vmul.f32 %v4926_v1, %v10452_v31 }
0x12e7   :  { %5008 = vrot.lane.b32.xlu0 %v4970_v8, %s5967_s9  ;;  %v4969_v8 = vmul.f32 %v4922_v26, %v10450_v39 }
0x12e8   :  { %v4861_v7 = vpop.permute.xlu2 %4860 }
0x12e9   :  { %v9453_v48 = vadd.f32 %v4861_v7, %v9216_v45  ;;  %4840 = vrot.lane.b32.xlu1 %v4806_v24, %s5966_s8  ;;  %v564_v45 = vadd.f32 %v10455_v30, %v404_v29  ;;  %v10468_v24 = vld [vmem:[#allocation245_spill] sm:$0xff]  ;;  %v10473_v29 = vld [vmem:[#allocation320_spill] sm:$0xff] }
0x12eb   :  { %v724_v61 = vadd.f32 %v10456_v40, %v564_v45  ;;  %v10474_v45 = vld [vmem:[#allocation336_spill] sm:$0xff] }
0x12ec   :  { %v10475_v40 = vld [vmem:[#allocation352_spill] sm:$0xff] }
0x12ed   :  { %v884_v15 = vadd.f32 %v10457_v20, %v724_v61  ;;  %v10476_v20 = vld [vmem:[#allocation368_spill] sm:$0xff] }
0x12ef   :  { %v1044_v32 = vadd.f32 %v10458_v63, %v884_v15  ;;  %v10477_v63 = vld [vmem:[#allocation384_spill] sm:$0xff] }
0x12f0   :  { %v5090_v28 = vpop.permute.xlu2 %5089 }
0x12f1   :  { %v5131_v52 = vmul.f32 %v5090_v28, %v10451_v17  ;;  %5002 = vrot.lane.b32.xlu1 %v4967_v13, %s5967_s9  ;;  %v1204_v53 = vadd.f32 %v10459_v49, %v1044_v32  ;;  %v10469_v13 = vld [vmem:[#allocation260_spill] sm:$0xff] }
0x12f3   :  { %5170 = vrot.lane.b32.xlu0 %v5131_v52, %s5968_s10  ;;  %v1364_v4 = vadd.f32 %v10460_v18, %v1204_v53  ;;  %v10470_v52 = vld [vmem:[#allocation275_spill] sm:$0xff]  ;;  %v10478_v53 = vld [vmem:[#allocation17_spill] sm:$0xff]  ;;  %v10479_v18 = vld [vmem:[#allocation400_spill] sm:$0xff] }
0x12f5   :  { %v1524_v47 = vadd.f32 %v10461_v34, %v1364_v4 }
0x12f7   :  { %v1684_v23 = vadd.f32 %v10462_v11, %v1524_v47  ;;  %v10480_v47 = vld [vmem:[#allocation38_spill] sm:$0xff] }
0x12f9   :  { %4864 = vrot.lane.b32.xlu1 %v4818_v36, %s5966_s8  ;;  %v1844_v27 = vadd.f32 %v10463_v51, %v1684_v23  ;;  %v10481_v23 = vld [vmem:[#allocation416_spill] sm:$0xff] }
0x12fb   :  { %v2004_v56 = vadd.f32 %v10464_v46, %v1844_v27 }
0x12fd   :  { %v2164_v14 = vadd.f32 %v10465_v9, %v2004_v56  ;;  %v10483_v56 = vld [vmem:[#allocation54_spill] sm:$0xff] }
0x12ff   :  { %v2324_v44 = vadd.f32 %v10466_v43, %v2164_v14  ;;  %v10484_v14 = vld [vmem:[#allocation428_spill] sm:$0xff] }
0x1301   :  { %5026 = vrot.lane.b32.xlu1 %v4979_v57, %s5967_s9  ;;  %v2484_v1 = vadd.f32 %v10467_v12, %v2324_v44  ;;  %v230_v57 = vmul.f32 %v10478_v53, %v10445_v42  ;;  %v10485_v42 = vld [vmem:[#allocation36_spill] sm:$0xff]  ;;  %v4863_v53 = vpop.permute.xlu0 %4862 }
0x1302   :  { %v10486_v12 = vld [vmem:[#allocation68_spill] sm:$0xff] }
0x1303   :  { %v2644_v7 = vadd.f32 %v10468_v24, %v2484_v1  ;;  %v406_v11 = vadd.f32 %v10480_v47, %v230_v57  ;;  %v10497_v57 = vld [vmem:[#allocation126_spill] sm:$0xff]  ;;  %v10499_v47 = vld [vmem:[#allocation141_spill] sm:$0xff] }
0x1305   :  { %v2804_v28 = vadd.f32 %v10469_v13, %v2644_v7  ;;  %v566_v9 = vadd.f32 %v10483_v56, %v406_v11  ;;  %v10488_v7 = vld [vmem:[#allocation84_spill] sm:$0xff] }
0x1307   :  { %v2964_v41 = vadd.f32 %v10470_v52, %v2804_v28  ;;  %v10489_v28 = vld [vmem:[#allocation66_spill] sm:$0xff] }
0x1308   :  { %v10490_v52 = vld [vmem:[#allocation98_spill] sm:$0xff] }
0x1309   :  { %4844 = vrot.lane.b32.xlu1 %v4808_v37, %s5966_s8  ;;  %v3124_v19 = vadd.f32 %v10471_v60, %v2964_v41  ;;  %v10482_v37 = vld [vmem:[#allocation16_spill] sm:$0xff]  ;;  %v10491_v60 = vld [vmem:[#allocation81_spill] sm:$0xff] }
0x130a   :  { %v231_v46 = vmul.f32 %v10482_v37, %v10446_v25 }
0x130b   :  { %v3284_v16 = vadd.f32 %v10472_v10, %v3124_v19  ;;  %v10492_v10 = vld [vmem:[#allocation114_spill] sm:$0xff] }
0x130c   :  { %v407_v44 = vadd.f32 %v10485_v42, %v231_v46  ;;  %v10502_v46 = vld [vmem:[#allocation188_spill] sm:$0xff] }
0x130d   :  { %v3444_v30 = vadd.f32 %v10473_v29, %v3284_v16 }
0x130f   :  { %v3604_v36 = vadd.f32 %v10474_v45, %v3444_v30  ;;  %v10493_v45 = vld [vmem:[#allocation96_spill] sm:$0xff] }
0x1311   :  { %5006 = vrot.lane.b32.xlu1 %v4969_v8, %s5967_s9  ;;  %v3764_v61 = vadd.f32 %v10475_v40, %v3604_v36  ;;  %v10487_v8 = vld [vmem:[#allocation51_spill] sm:$0xff]  ;;  %v10494_v40 = vld [vmem:[#allocation128_spill] sm:$0xff] }
0x1312   :  { %v567_v24 = vadd.f32 %v10487_v8, %v407_v44  ;;  %v10506_v44 = vld [vmem:[#allocation218_spill] sm:$0xff] }
0x1313   :  { %v3924_v26 = vadd.f32 %v10476_v20, %v3764_v61  ;;  %v10495_v20 = vld [vmem:[#allocation111_spill] sm:$0xff] }
0x1314   :  { %v727_v25 = vadd.f32 %v10489_v28, %v567_v24  ;;  %v10508_v24 = vld [vmem:[#allocation234_spill] sm:$0xff]  ;;  %v10510_v28 = vld [vmem:[#allocation248_spill] sm:$0xff] }
0x1315   :  { %v4084_v32 = vadd.f32 %v10477_v63, %v3924_v26 }
0x1316   :  { %v887_v19 = vadd.f32 %v10491_v60, %v727_v25  ;;  %v10511_v60 = vld [vmem:[#allocation231_spill] sm:$0xff] }
0x1317   :  { %v4244_v4 = vadd.f32 %v10479_v18, %v4084_v32 }
0x1318   :  { %v1047_v36 = vadd.f32 %v10493_v45, %v887_v19  ;;  %v10514_v45 = vld [vmem:[#allocation278_spill] sm:$0xff] }
0x1319   :  { %v4404_v51 = vadd.f32 %v10481_v23, %v4244_v4  ;;  %v10498_v4 = vld [vmem:[#allocation158_spill] sm:$0xff] }
0x131a   :  { %v1207_v26 = vadd.f32 %v10495_v20, %v1047_v36  ;;  %v10500_v23 = vld [vmem:[#allocation174_spill] sm:$0xff] }
0x131b   :  { %v4564_v43 = vadd.f32 %v10484_v14, %v4404_v51  ;;  %v10504_v14 = vld [vmem:[#allocation204_spill] sm:$0xff] }
0x131c   :  { %v1367_v18 = vadd.f32 %v10497_v57, %v1207_v26  ;;  %v10517_v26 = vld [vmem:[#allocation294_spill] sm:$0xff]  ;;  %v10519_v57 = vld [vmem:[#allocation276_spill] sm:$0xff] }
0x131d   :  { %v4724_v1 = vadd.f32 %v9059_v50, %v4564_v43 }
0x131e   :  { %v1527_v11 = vadd.f32 %v10499_v47, %v1367_v18 }
0x1321   :  { %v5019_v15 = vpop.permute.xlu1 %5018 }
0x1322   :  { %v5055_v49 = vadd.f32 %v5019_v15, %v9378_v59  ;;  %v10496_v15 = vld [vmem:[#allocation144_spill] sm:$0xff] }
0x1324   :  { %v5215_v34 = vadd.f32 %v5179_v33, %v5055_v49  ;;  %v726_v33 = vadd.f32 %v10486_v12, %v566_v9 }
0x1326   :  { %v5225_v27 = vpack.c.bf16 %v5215_v34, %v9430_v38  ;;  %v886_v38 = vadd.f32 %v10488_v7, %v726_v33  ;;  %v5021_v33 = vpop.permute.xlu0 %5020 }
0x1328   :  { %5534 = vmatmul.msk.bf16.gmra.mxu3 %vm131_vm0, %v5225_v27  ;;  %v1046_v41 = vadd.f32 %v10490_v52, %v886_v38  ;;  %v10501_v27 = vld [vmem:[#allocation156_spill] sm:$0xff] }
0x1329   :  { %v4837_v59 = vpop.permute.xlu1 %4836  ;;  %v1687_v37 = vadd.f32 %v10501_v27, %v1527_v11  ;;  %v10509_v38 = vld [vmem:[#allocation216_spill] sm:$0xff] }
0x132a   :  { %v4884_v13 = vadd.f32 %v4837_v59, %v4724_v1  ;;  %v1206_v16 = vadd.f32 %v10492_v10, %v1046_v41  ;;  %v10505_v59 = vld [vmem:[#allocation186_spill] sm:$0xff]  ;;  %v10507_v1 = vld [vmem:[#allocation201_spill] sm:$0xff]  ;;  %v10512_v10 = vld [vmem:[#allocation264_spill] sm:$0xff] }
0x132c   :  { %v5044_v29 = vadd.f32 %v9438_v22, %v4884_v13  ;;  %v1366_v50 = vadd.f32 %v10494_v40, %v1206_v16  ;;  %v10515_v40 = vld [vmem:[#allocation19_spill] sm:$0xff] }
0x132e   :  { %v1526_v63 = vadd.f32 %v10496_v15, %v1366_v50  ;;  %v5204_v32 = vadd.f32 %v9428_v0, %v5044_v29  ;;  %v10513_v29 = vld [vmem:[#allocation246_spill] sm:$0xff]  ;;  %v233_v50 = vmul.f32 %v10515_v40, %v10450_v39  ;;  %v10536_v40 = vld [vmem:[#allocation131_spill] sm:$0xff] }
0x1330   :  { %v1686_v22 = vadd.f32 %v10498_v4, %v1526_v63  ;;  %v5181_v63 = vpop.permute.xlu2 %5180  ;;  %v10520_v4 = vld [vmem:[#allocation308_spill] sm:$0xff] }
0x1331   :  { %v4999_v30 = vpop.permute.xlu1 %4998 }
0x1332   :  { %v5045_v61 = vadd.f32 %v4999_v30, %v9395_v21  ;;  %v1846_v51 = vadd.f32 %v10500_v23, %v1686_v22  ;;  %v10522_v23 = vld [vmem:[#allocation291_spill] sm:$0xff] }
0x1334   :  { %v5205_v49 = vadd.f32 %v9443_v5, %v5045_v61  ;;  %v2006_v56 = vadd.f32 %v10502_v46, %v1846_v51  ;;  %v10503_v5 = vld [vmem:[#allocation171_spill] sm:$0xff]  ;;  %v10516_v61 = vld [vmem:[#allocation261_spill] sm:$0xff] }
0x1335   :  { %v1847_v9 = vadd.f32 %v10503_v5, %v1687_v37  ;;  %v10524_v37 = vld [vmem:[#allocation71_spill] sm:$0xff] }
0x1336   :  { %v5220_v34 = vpack.c.bf16 %v5205_v49, %v5204_v32  ;;  %v2166_v43 = vadd.f32 %v10504_v14, %v2006_v56  ;;  %v10518_v32 = vld [vmem:[#allocation41_spill] sm:$0xff]  ;;  %v5183_v49 = vpop.permute.xlu0 %5182  ;;  %v10525_v56 = vld [vmem:[#allocation306_spill] sm:$0xff]  ;;  %v10526_v5 = vld [vmem:[#allocation339_spill] sm:$0xff] }
0x1337   :  { %v2007_v42 = vadd.f32 %v10505_v59, %v1847_v9  ;;  %v10527_v14 = vld [vmem:[#allocation88_spill] sm:$0xff]  ;;  %v10528_v59 = vld [vmem:[#allocation321_spill] sm:$0xff] }
0x1338   :  { %5529 = vmatmul.msk.bf16.vlgmr.msra.gmra.mxu0 %vm131_vm0, %v5220_v34  ;;  %v2326_v12 = vadd.f32 %v10506_v44, %v2166_v43  ;;  %v10521_v34 = vld [vmem:[#allocation58_spill] sm:$0xff]  ;;  %v10529_v44 = vld [vmem:[#allocation356_spill] sm:$0xff] }
0x1339   :  { %v4766_v21 = vpop.permute.xlu1 %4765  ;;  %v2167_v8 = vadd.f32 %v10507_v1, %v2007_v42  ;;  %v10530_v1 = vld [vmem:[#allocation101_spill] sm:$0xff] }
0x133a   :  { %v4810_v0 = vmul.f32 %v4766_v21, %v10452_v31  ;;  %v2486_v7 = vadd.f32 %v10508_v24, %v2326_v12  ;;  %v10523_v21 = vld [vmem:[#allocation324_spill] sm:$0xff]  ;;  %v10531_v24 = vld [vmem:[#allocation337_spill] sm:$0xff] }
0x133b   :  { %v2327_v13 = vadd.f32 %v10509_v38, %v2167_v8  ;;  %v10532_v38 = vld [vmem:[#allocation371_spill] sm:$0xff] }
0x133c   :  { %4848 = vrot.lane.b32.xlu1 %v4810_v0, %s5966_s8  ;;  %v2646_v25 = vadd.f32 %v10510_v28, %v2486_v7  ;;  %v4897_v28 = vadd.f32 %v4863_v53, %v9261_v2  ;;  %v10539_v53 = vld [vmem:[#allocation148_spill] sm:$0xff] }
0x133d   :  { %v2487_v19 = vadd.f32 %v10511_v60, %v2327_v13 }
0x133e   :  { %v2806_v16 = vadd.f32 %v10512_v10, %v2646_v25  ;;  %v4843_v25 = vpop.permute.xlu2 %4842  ;;  %v5001_v60 = vpop.permute.xlu0 %5000  ;;  %v10534_v10 = vld [vmem:[#allocation353_spill] sm:$0xff] }
0x133f   :  { %v2647_v30 = vadd.f32 %v10513_v29, %v2487_v19  ;;  %v10535_v29 = vld [vmem:[#allocation388_spill] sm:$0xff] }
0x1340   :  { %v2966_v36 = vadd.f32 %v10514_v45, %v2806_v16  ;;  %v5056_v45 = vadd.f32 %v5021_v33, %v9453_v48  ;;  %v10544_v33 = vld [vmem:[#allocation431_spill] sm:$0xff] }
0x1341   :  { %v2807_v20 = vadd.f32 %v10516_v61, %v2647_v30  ;;  %v10537_v61 = vld [vmem:[#allocation369_spill] sm:$0xff] }
0x1342   :  { %v4930_v52 = vpop.permute.xlu1 %4929  ;;  %v3126_v15 = vadd.f32 %v10517_v26, %v2966_v36  ;;  %v10538_v26 = vld [vmem:[#allocation403_spill] sm:$0xff] }
0x1343   :  { %v4971_v41 = vmul.f32 %v4930_v52, %v10451_v17  ;;  %v409_v17 = vadd.f32 %v10518_v32, %v233_v50  ;;  %v2967_v18 = vadd.f32 %v10519_v57, %v2807_v20  ;;  %v10533_v52 = vld [vmem:[#allocation118_spill] sm:$0xff]  ;;  %v5216_v32 = vadd.f32 %v5181_v63, %v5056_v45  ;;  %v10540_v57 = vld [vmem:[#allocation385_spill] sm:$0xff] }
0x1344   :  { %v3286_v22 = vadd.f32 %v10520_v4, %v3126_v15  ;;  %v10541_v4 = vld [vmem:[#allocation419_spill] sm:$0xff]  ;;  %v10546_v63 = vld [vmem:[#allocation417_spill] sm:$0xff] }
0x1345   :  { %5010 = vrot.lane.b32.xlu1 %v4971_v41, %s5967_s9  ;;  %v569_v47 = vadd.f32 %v10521_v34, %v409_v17  ;;  %v3127_v51 = vadd.f32 %v10522_v23, %v2967_v18  ;;  %v10543_v23 = vld [vmem:[#allocation401_spill] sm:$0xff] }
0x1346   :  { %v3446_v27 = vadd.f32 %v10523_v21, %v3286_v22 }
0x1347   :  { %v729_v46 = vadd.f32 %v10524_v37, %v569_v47  ;;  %v3287_v0 = vadd.f32 %v10525_v56, %v3127_v51  ;;  %v10542_v47 = vld [vmem:[#allocation161_spill] sm:$0xff]  ;;  %v5163_v56 = vpop.permute.xlu0 %5162 }
0x1348   :  { %v3606_v9 = vadd.f32 %v10526_v5, %v3446_v27  ;;  %v10545_v27 = vld [vmem:[#allocation178_spill] sm:$0xff] }
0x1349   :  { %v889_v43 = vadd.f32 %v10527_v14, %v729_v46  ;;  %v3447_v42 = vadd.f32 %v10528_v59, %v3287_v0  ;;  %v5161_v46 = vpop.permute.xlu2 %5160  ;;  %v10547_v0 = vld [vmem:[#allocation191_spill] sm:$0xff]  ;;  %v10549_v59 = vld [vmem:[#allocation208_spill] sm:$0xff] }
0x134a   :  { %v3766_v12 = vadd.f32 %v10529_v44, %v3606_v9  ;;  %v10548_v9 = vld [vmem:[#allocation429_spill] sm:$0xff]  ;;  %v10550_v44 = vld [vmem:[#allocation334_spill] sm:$0xff] }
0x134b   :  { %v5086_v11 = vpop.permute.xlu1 %5085  ;;  %v1049_v8 = vadd.f32 %v10530_v1, %v889_v43  ;;  %v3607_v7 = vadd.f32 %v10531_v24, %v3447_v42  ;;  %v10551_v1 = vld [vmem:[#allocation221_spill] sm:$0xff] }
0x134c   :  { %v5130_v39 = vmul.f32 %v5086_v11, %v10452_v31  ;;  %v3926_v13 = vadd.f32 %v10532_v38, %v3766_v12 }
0x134d   :  { %v1209_v41 = vadd.f32 %v10533_v52, %v1049_v8  ;;  %v3767_v16 = vadd.f32 %v10534_v10, %v3607_v7 }
0x134e   :  { %5168 = vrot.lane.b32.xlu2 %v5130_v39, %s5968_s10  ;;  %v4086_v30 = vadd.f32 %v10535_v29, %v3926_v13  ;;  %v10552_v13 = vld [vmem:[#allocation238_spill] sm:$0xff] }
0x134f   :  { %v1369_v50 = vadd.f32 %v10536_v40, %v1209_v41  ;;  %v3927_v20 = vadd.f32 %v10537_v61, %v3767_v16  ;;  %v5025_v29 = vpop.permute.xlu0 %5024  ;;  %v10555_v40 = vld [vmem:[#allocation281_spill] sm:$0xff] }
0x1350   :  { %v4246_v15 = vadd.f32 %v10538_v26, %v4086_v30  ;;  %v10554_v30 = vld [vmem:[#allocation268_spill] sm:$0xff] }
0x1351   :  { %v1529_v17 = vadd.f32 %v10539_v53, %v1369_v50  ;;  %v4087_v18 = vadd.f32 %v10540_v57, %v3927_v20  ;;  %v10557_v20 = vld [vmem:[#allocation311_spill] sm:$0xff]  ;;  %v10559_v57 = vld [vmem:[#allocation342_spill] sm:$0xff] }
0x1352   :  { %v4406_v22 = vadd.f32 %v10541_v4, %v4246_v15 }
0x1353   :  { %v5023_v19 = vpop.permute.xlu1 %5022  ;;  %v1689_v11 = vadd.f32 %v10542_v47, %v1529_v17  ;;  %v4247_v48 = vadd.f32 %v10543_v23, %v4087_v18  ;;  %v10560_v47 = vld [vmem:[#allocation360_spill] sm:$0xff] }
0x1354   :  { %v5057_v36 = vadd.f32 %v5023_v19, %v4897_v28  ;;  %v4566_v51 = vadd.f32 %v10544_v33, %v4406_v22  ;;  %v4867_v19 = vpop.permute.xlu2 %4866 }
0x1355   :  { %v1849_v39 = vadd.f32 %v10545_v27, %v1689_v11  ;;  %v4899_v4 = vadd.f32 %v4867_v19, %v9242_v35  ;;  %v10562_v27 = vld [vmem:[#allocation12_spill] sm:$0xff] }
0x1356   :  { %v5217_v2 = vadd.f32 %v5183_v49, %v5057_v36  ;;  %v4407_v49 = vadd.f32 %v10546_v63, %v4247_v48  ;;  %v4726_v37 = vadd.f32 %v9173_v55, %v4566_v51  ;;  %v10553_v55 = vld [vmem:[#allocation251_spill] sm:$0xff]  ;;  %v10561_v48 = vld [vmem:[#allocation374_spill] sm:$0xff]  ;;  %v10572_v19 = vld [vmem:[#allocation112_spill] sm:$0xff] }
0x1357   :  { %v2009_v5 = vadd.f32 %v10547_v0, %v1849_v39  ;;  %v5187_v17 = vpop.permute.xlu0 %5186  ;;  %v10563_v39 = vld [vmem:[#allocation392_spill] sm:$0xff] }
0x1358   :  { %v5226_v34 = vpack.c.bf16 %v5217_v2, %v5216_v32  ;;  %v4567_v14 = vadd.f32 %v10548_v9, %v4407_v49  ;;  %v10558_v32 = vld [vmem:[#allocation328_spill] sm:$0xff] }
0x1359   :  { %v2169_v42 = vadd.f32 %v10549_v59, %v2009_v5  ;;  %v10567_v59 = vld [vmem:[#allocation420_spill] sm:$0xff] }
0x135a   :  { %5535 = vmatmul.msk.bf16.gmra.mxu3 %vm131_vm0, %v5226_v34  ;;  %v4727_v12 = vadd.f32 %v10550_v44, %v4567_v14  ;;  %v10566_v14 = vld [vmem:[#allocation52_spill] sm:$0xff]  ;;  %v10568_v44 = vld [vmem:[#allocation67_spill] sm:$0xff] }
0x135b   :  { %v4841_v21 = vpop.permute.xlu1 %4840  ;;  %v2329_v8 = vadd.f32 %v10551_v1, %v2169_v42  ;;  %v10569_v1 = vld [vmem:[#allocation432_spill] sm:$0xff] }
0x135c   :  { %v4886_v43 = vadd.f32 %v4841_v21, %v4726_v37  ;;  %v4887_v24 = vadd.f32 %v4843_v25, %v4727_v12  ;;  %v10556_v25 = vld [vmem:[#allocation298_spill] sm:$0xff]  ;;  %v5185_v53 = vpop.permute.xlu2 %5184  ;;  %v10564_v37 = vld [vmem:[#allocation37_spill] sm:$0xff] }
0x135d   :  { %v2489_v28 = vadd.f32 %v10552_v13, %v2329_v8  ;;  %v10571_v13 = vld [vmem:[#allocation97_spill] sm:$0xff] }
0x135e   :  { %v5046_v7 = vadd.f32 %v5001_v60, %v4886_v43 }
0x135f   :  { %v2649_v41 = vadd.f32 %v10553_v55, %v2489_v28  ;;  %v5005_v5 = vpop.permute.xlu0 %5004 }
0x1360   :  { %v5206_v10 = vadd.f32 %v5161_v46, %v5046_v7 }
0x1361   :  { %v2809_v45 = vadd.f32 %v10554_v30, %v2649_v41 }
0x1363   :  { %v5003_v38 = vpop.permute.xlu1 %5002  ;;  %v2969_v50 = vadd.f32 %v10555_v40, %v2809_v45  ;;  %v10573_v45 = vld [vmem:[#allocation127_spill] sm:$0xff] }
0x1364   :  { %v5047_v52 = vadd.f32 %v5003_v38, %v4887_v24  ;;  %v4847_v35 = vpop.permute.xlu2 %4846  ;;  %v10570_v24 = vld [vmem:[#allocation82_spill] sm:$0xff] }
0x1365   :  { %v3129_v60 = vadd.f32 %v10556_v25, %v2969_v50 }
0x1366   :  { %v5207_v16 = vadd.f32 %v5163_v56, %v5047_v52  ;;  %v10565_v56 = vld [vmem:[#allocation406_spill] sm:$0xff] }
0x1367   :  { %v3289_v26 = vadd.f32 %v10557_v20, %v3129_v60  ;;  %v5167_v30 = vpop.permute.xlu0 %5166  ;;  %v10575_v60 = vld [vmem:[#allocation157_spill] sm:$0xff] }
0x1368   :  { %v5221_v36 = vpack.c.bf16 %v5207_v16, %v5206_v10 }
0x1369   :  { %v3449_v2 = vadd.f32 %v10558_v32, %v3289_v26 }
0x136a   :  { %5530 = vmatmul.msk.bf16.gmra.mxu0 %vm131_vm0, %v5221_v36 }
0x136b   :  { %v4865_v61 = vpop.permute.xlu1 %4864  ;;  %v3609_v18 = vadd.f32 %v10559_v57, %v3449_v2  ;;  %v10578_v2 = vld [vmem:[#allocation202_spill] sm:$0xff] }
0x136c   :  { %v4898_v15 = vadd.f32 %v4865_v61, %v9268_v54  ;;  %v234_v54 = vmul.f32 %v10562_v27, %v10452_v31  ;;  %v10574_v61 = vld [vmem:[#allocation142_spill] sm:$0xff] }
0x136d   :  { %v3769_v11 = vadd.f32 %v10560_v47, %v3609_v18  ;;  %v10580_v18 = vld [vmem:[#allocation232_spill] sm:$0xff]  ;;  %v10582_v47 = vld [vmem:[#allocation262_spill] sm:$0xff] }
0x136e   :  { %v5058_v22 = vadd.f32 %v5025_v29, %v4898_v15  ;;  %v410_v46 = vadd.f32 %v10564_v37, %v234_v54  ;;  %v5165_v29 = vpop.permute.xlu2 %5164  ;;  %v10577_v15 = vld [vmem:[#allocation187_spill] sm:$0xff]  ;;  %v5318_v54 = vlaneseq }
0x136f   :  { %v3929_v33 = vadd.f32 %v10561_v48, %v3769_v11 }
0x1370   :  { %v5218_v51 = vadd.f32 %v5185_v53, %v5058_v22  ;;  %v570_v43 = vadd.f32 %v10566_v14, %v410_v46  ;;  %v10581_v22 = vld [vmem:[#allocation247_spill] sm:$0xff]  ;;  %v9643_v46 = vshrl.u32 %v5318_v54, 7  ;;  %v10589_v14 = vld [vmem:[#allocation370_spill] sm:$0xff] }
0x1371   :  { %v4089_v63 = vadd.f32 %v10563_v39, %v3929_v33  ;;  %v10584_v33 = vld [vmem:[#allocation292_spill] sm:$0xff]  ;;  %v9639_v39 = vld [vmem:[%s9698_s0] ss:$0 sm:$0xff] }
0x1372   :  { %v730_v12 = vadd.f32 %v10568_v44, %v570_v43  ;;  %vm5324_vm2 = vcmp.eq.s32.totalorder %v9643_v46, %v9639_v39  ;;  %v10591_v44 = vld [vmem:[#allocation402_spill] sm:$0xff] }
0x1373   :  { %v5027_v34 = vpop.permute.xlu1 %5026  ;;  %v4249_v0 = vadd.f32 %v10565_v56, %v4089_v63  ;;  %v5969_v63 = vmov 0.0   ;;  %v10587_v56 = vld [vmem:[#allocation338_spill] sm:$0xff]  ;;  %vm5538_vm8 = vmpackc.low %vm5324_vm2, %vm5324_vm2 }
0x1374   :  { %v5059_v23 = vadd.f32 %v5027_v34, %v4899_v4  ;;  %v890_v7 = vadd.f32 %v10570_v24, %v730_v12  ;;  %34 = vst.msk [vmem:[#allocation3] sm:$0xff] %vm33_vm1, %v5969_v63 }
0x1375   :  { %v4409_v42 = vadd.f32 %v10567_v59, %v4249_v0  ;;  %v10590_v59 = vld [vmem:[#allocation386_spill] sm:$0xff] }
0x1376   :  { %v5219_v21 = vadd.f32 %v5187_v17, %v5059_v23  ;;  %v1050_v28 = vadd.f32 %v10571_v13, %v890_v7  ;;  %v10579_v17 = vld [vmem:[#allocation217_spill] sm:$0xff]  ;;  %v4851_v13 = vpop.permute.xlu2 %4850 }
0x1377   :  { %v4569_v31 = vadd.f32 %v10569_v1, %v4409_v42  ;;  %v10583_v23 = vld [vmem:[#allocation277_spill] sm:$0xff]  ;;  %v10592_v1 = vld [vmem:[#allocation418_spill] sm:$0xff] }
0x1378   :  { %v5227_v49 = vpack.c.bf16 %v5219_v21, %v5218_v51  ;;  %v1210_v10 = vadd.f32 %v10572_v19, %v1050_v28  ;;  %v10585_v21 = vld [vmem:[#allocation307_spill] sm:$0xff]  ;;  %v5009_v28 = vpop.permute.xlu0 %5008 }
0x1379   :  { %v4729_v38 = vadd.f32 %v9211_v6, %v4569_v31  ;;  %v10576_v6 = vld [vmem:[#allocation172_spill] sm:$0xff] }
0x137a   :  { %5536 = vmatmul.msk.bf16.gmra.mxu3 %vm131_vm0, %v5227_v49  ;;  %v1370_v36 = vadd.f32 %v10573_v45, %v1210_v10  ;;  %v10586_v49 = vld [vmem:[#allocation322_spill] sm:$0xff] }
0x137b   :  { %v4845_v9 = vpop.permute.xlu1 %4844  ;;  %v4889_v52 = vadd.f32 %v4847_v35, %v4729_v38  ;;  %v5537_v35 = vsel %vm5324_vm2, 1.0, %v5969_v63 }
0x137c   :  { %v4888_v8 = vadd.f32 %v4845_v9, %v9184_v58  ;;  %v1530_v58 = vadd.f32 %v10574_v61, %v1370_v36  ;;  %5353 = vadd.xlane.f32.xlu1 %v5537_v35 }
0x137e   :  { %v5048_v55 = vadd.f32 %v5005_v5, %v4888_v8  ;;  %v1690_v20 = vadd.f32 %v10575_v60, %v1530_v58  ;;  %v10588_v5 = vld [vmem:[#allocation354_spill] sm:$0xff]  ;;  %v5580_v60 = vld [vmem:[%s9703_s5 + $0x30] sm:$0xff] }
0x137f   :  { %v10593_v8 = vld [vmem:[#allocation430_spill] sm:$0xff] }
0x1380   :  { %v5208_v40 = vadd.f32 %v5165_v29, %v5048_v55  ;;  %v1850_v26 = vadd.f32 %v10576_v6, %v1690_v20  ;;  %v4891_v55 = vadd.f32 %v4851_v13, %v9220_v3  ;;  %v5579_v20 = vld [vmem:[%s9703_s5 + $0x28] sm:$0xff]  ;;  %v5970_v13 = vmov 1.0|1.0  }
0x1382   :  { %v2010_v32 = vadd.f32 %v10577_v15, %v1850_v26  ;;  %v5578_v26 = vld [vmem:[%s9703_s5 + $0x20] sm:$0xff]  ;;  %v5577_v15 = vld [vmem:[%s9703_s5 + $0x18] sm:$0xff] }
0x1383   :  { %v5007_v41 = vpop.permute.xlu1 %5006 }
0x1384   :  { %v5049_v16 = vadd.f32 %v5007_v41, %v4889_v52  ;;  %v2170_v53 = vadd.f32 %v10578_v2, %v2010_v32 }
0x1386   :  { %v5209_v50 = vadd.f32 %v5167_v30, %v5049_v16  ;;  %v2330_v57 = vadd.f32 %v10579_v17, %v2170_v53  ;;  %v5171_v16 = vpop.permute.xlu0 %5170 }
0x1388   :  { %v5222_v25 = vpack.c.bf16 %v5209_v50, %v5208_v40  ;;  %v2490_v4 = vadd.f32 %v10580_v18, %v2330_v57  ;;  %v5297_v40 = vpop.f32.mrf.mxu3 }
0x138a   :  { %5531 = vmatmul.msk.bf16.gmra.mxu0 %vm131_vm0, %v5222_v25  ;;  %v2650_v34 = vadd.f32 %v10581_v22, %v2490_v4  ;;  %v5581_v25 = vld [vmem:[%s9703_s5 + $0x38] sm:$0xff] }
0x138b   :  { %5445 = vmatpush.bf16.msra.mxu2 %v5581_v25 }
0x138c   :  { %v2810_v11 = vadd.f32 %v10582_v47, %v2650_v34  ;;  %v5576_v34 = vld [vmem:[%s9703_s5 + $0x10] sm:$0xff]  ;;  %v5575_v47 = vld [vmem:[%s9703_s5 + $0x8] sm:$0xff] }
0x138e   :  { %v2970_v48 = vadd.f32 %v10583_v23, %v2810_v11  ;;  %v5574_v23 = vld [vmem:[%s9703_s5] sm:$0xff] }
0x138f   :  { %5446 = vmatpush.bf16.msra.mxu2 %v5580_v60 }
0x1390   :  { %v3130_v51 = vadd.f32 %v10584_v33, %v2970_v48  ;;  %v5299_v50 = vpop.f32.mrf.mxu3  ;;  %v5352_v33 = vld [vmem:[#allocation3] sm:$0xff] }
0x1391   :  { %v5333_v4 = vpack.c.bf16 %v5299_v50, %v5297_v40 }
0x1392   :  { %v3290_v27 = vadd.f32 %v10585_v21, %v3130_v51  ;;  %v5379_v51 = vld [vmem:[%s9701_s3] sm:$0xff]  ;;  %s5971_s3 = smov [#allocation4]  }
0x1393   :  { %5447 = vmatpush.bf16.msra.mxu2 %v5579_v20  ;;  %s5494_s5 = sshll.u32 %s5971_s3, 4  ;;  %s5495_s5 = int_to_ptr.vmem [resolvable:$true] %s5494_s5 }
0x1394   :  { %v3450_v37 = vadd.f32 %v10586_v49, %v3290_v27  ;;  %v5380_v27 = vpack.c.bf16 %v5379_v51, %v5379_v51 }
0x1396   :  { %v3610_v0 = vadd.f32 %v10587_v56, %v3450_v37 }
0x1397   :  { %5448 = vmatpush.bf16.msra.mxu2 %v5578_v26 }
0x1398   :  { %v3770_v9 = vadd.f32 %v10588_v5, %v3610_v0 }
0x139a   :  { %v3930_v43 = vadd.f32 %v10589_v14, %v3770_v9 }
0x139b   :  { %5449 = vmatpush.bf16.msra.mxu2 %v5577_v15 }
0x139c   :  { %v4090_v42 = vadd.f32 %v10590_v59, %v3930_v43 }
0x139e   :  { %v4250_v12 = vadd.f32 %v10591_v44, %v4090_v42 }
0x139f   :  { %5450 = vmatpush.bf16.msra.mxu2 %v5576_v34 }
0x13a0   :  { %v4410_v31 = vadd.f32 %v10592_v1, %v4250_v12 }
0x13a2   :  { %v4570_v24 = vadd.f32 %v10593_v8, %v4410_v31 }
0x13a3   :  { %5451 = vmatpush.bf16.msra.mxu2 %v5575_v47 }
0x13a4   :  { %v4730_v38 = vadd.f32 %v9135_v62, %v4570_v24 }
0x13a7   :  { %5452 = vmatpush.bf16.msra.mxu2 %v5574_v23 }
0x13a8   :  { %v5169_v29 = vpop.permute.xlu2 %5168 }
0x13aa   :  { %5453 = vmatmul.bf16.vlgmr.msra.gmra.mxu2 %v5380_v27 }
0x13ab   :  { %v5302_v61 = vpop.f32.mrf.mxu3 }
0x13ae   :  { %v4849_v7 = vpop.permute.xlu1 %4848 }
0x13af   :  { %v4890_v52 = vadd.f32 %v4849_v7, %v4730_v38 }
0x13b1   :  { %v5050_v41 = vadd.f32 %v5009_v28, %v4890_v52 }
0x13b3   :  { %v5210_v30 = vadd.f32 %v5169_v29, %v5050_v41  ;;  %v5304_v58 = vpop.f32.mrf.mxu3 }
0x13b4   :  { %v5334_v57 = vpack.c.bf16 %v5304_v58, %v5302_v61 }
0x13b5   :  { %v5277_v32 = vpop.f32.mrf.mxu0 }
0x13b7   :  { %v5011_v19 = vpop.permute.xlu1 %5010 }
0x13b8   :  { %v5051_v10 = vadd.f32 %v5011_v19, %v4891_v55 }
0x13ba   :  { %v5211_v45 = vadd.f32 %v5171_v16, %v5051_v10 }
0x13bc   :  { %v5223_v36 = vpack.c.bf16 %v5211_v45, %v5210_v30 }
0x13bd   :  { %v5279_v18 = vpop.f32.mrf.mxu0 }
0x13be   :  { %5532 = vmatmul.msk.bf16.gmra.mxu0 %vm131_vm0, %v5223_v36  ;;  %v5329_v38 = vpack.c.bf16 %v5279_v18, %v5277_v32 }
0x13dd   :  { %v5307_v62 = vpop.f32.mrf.mxu3 }
0x13e5   :  { %v5309_v3 = vpop.f32.mrf.mxu3 }
0x13e6   :  { %v5335_v17 = vpack.c.bf16 %v5309_v3, %v5307_v62 }
0x13e7   :  { %v5282_v22 = vpop.f32.mrf.mxu0 }
0x13ef   :  { %v5284_v11 = vpop.f32.mrf.mxu0  ;;  %v5354_v48 = vpop.xlane.xlu1 %5353 }
0x13f0   :  { %v5355_v21 = vadd.f32 %v5354_v48, %v5352_v33  ;;  %v5330_v7 = vpack.c.bf16 %v5284_v11, %v5282_v22 }
0x13f2   :  { %5357 = vst.msk [vmem:[#allocation3] sm:$0xff] %vm33_vm1, %v5355_v21 }
0x13f9   :  { %v5361_v63 = vld [vmem:[#allocation3] sm:$0xff] }
0x13fa   :  { %v5363_v37 = vmax.f32 %v5361_v63, 1.0  ;;  %vm5362_vm7 = vcmp.gt.f32.partialorder %v5361_v63, 0.0 }
0x13fc   :  { %5781 = vrcp.f32 %v5363_v37  ;;  %v5375_v5 = vand.u32 2147483648, %v5363_v37  ;;  %vm5369_vm3 = vweird.f32 %v5363_v37  ;;  %v5373_v14 = vand.u32 2147483647, %v5363_v37 }
0x13fd   :  { %v5312_v6 = vpop.f32.mrf.mxu3 }
0x13fe   :  { %v5376_v59 = vor.u32 1.1754944e-38, %v5375_v5  ;;  %vm5374_vm6 = vcmp.eq.f32.partialorder %v5373_v14, 8.507059e+37 }
0x1402   :  { %v5782_v56 = vpop.eup %5781 }
0x1403   :  { %v5365_v35 = vmul.f32 %v5782_v56, %v5363_v37  ;;  %vm5370_vm4 = vweird.f32 %v5782_v56 }
0x1404   :  { %vm5371_vm5 = vmor %vm5369_vm3, %vm5370_vm4 }
0x1405   :  { %v5314_v2 = vpop.f32.mrf.mxu3  ;;  %v5366_v9 = vsub.f32 1.0, %v5365_v35 }
0x1406   :  { %v5336_v53 = vpack.c.bf16 %v5314_v2, %v5312_v6 }
0x1407   :  { %v5287_v54 = vpop.f32.mrf.mxu0  ;;  %v5367_v43 = vmul.f32 %v5782_v56, %v5366_v9 }
0x1408   :  { %5337 = vmatpush.bf16.msra.mxu1 %v5336_v53 }
0x1409   :  { %v5368_v42 = vadd.f32 %v5782_v56, %v5367_v43 }
0x140b   :  { %v5372_v1 = vsel %vm5371_vm5, %v5782_v56, %v5368_v42 }
0x140c   :  { %5338 = vmatpush.bf16.msra.mxu1 %v5335_v17  ;;  %v5377_v31 = vsel %vm5374_vm6, %v5376_v59, %v5372_v1 }
0x140d   :  { %v5378_v8 = vsel %vm5362_vm7, %v5377_v31, 0.0 }
0x140e   :  { %5461 = vperm.xlu2 %5778, %v5378_v8  }
0x140f   :  { %v5289_v49 = vpop.f32.mrf.mxu0 }
0x1410   :  { %5339 = vmatpush.bf16.msra.mxu1 %v5334_v57  ;;  %v5331_v24 = vpack.c.bf16 %v5289_v49, %v5287_v54 }
0x1414   :  { %5340 = vmatpush.bf16.msra.mxu1 %v5333_v4 }
0x142d   :  { %v5454_v28 = vpop.f32.mrf.mxu2 }
0x1435   :  { %v5456_v52 = vpop.f32.mrf.mxu2 }
0x143b   :  { %v5292_v0 = vpop.f32.mrf.mxu0 }
0x1443   :  { %v5294_v44 = vpop.f32.mrf.mxu0 }
0x1444   :  { %v5332_v12 = vpack.c.bf16 %v5294_v44, %v5292_v0 }
0x1446   :  { %5341 = vmatpush.bf16.msra.mxu1 %v5332_v12 }
0x144a   :  { %5342 = vmatpush.bf16.msra.mxu1 %v5331_v24 }
0x144e   :  { %5343 = vmatpush.bf16.msra.mxu1 %v5330_v7 }
0x1452   :  { %5344 = vmatpush.bf16.msra.mxu1 %v5329_v38 }
0x1455   :  { %5539 = vmatmul.msk.bf16.vlgmr.msra.gmra.mxu1 %vm5538_vm8, %v5970_v13 }
0x1468   :  { %v5462_v55 = vpop.permute.xlu2 %5461 }
0x14d2   :  { %v5346_v41 = vpop.f32.mrf.mxu1 }
0x14d3   :  { %v5464_v19 = vmul.f32 %v5462_v55, %v5346_v41 }
0x14d5   :  { %v5465_v10 = vadd.f32 %v5464_v19, %v5454_v28 }
0x14d7   :  { %v5471_v16 = vrot.slane %v5465_v10, 4  ;;  %v5477_v39 = vmul.f32 %v5465_v10, %v5465_v10  ;;  %5466 = vst [vmem:[#allocation4] sm:$0xff] %v5465_v10 }
0x14d8   :  { %5499 = dma.vmem_to_hbm [thread:$0]  %s5495_s5, 128, %s5497_s30, [#allocation5]  }
0x14d9   :  { %v5472_v46 = vadd.f32 %v5471_v16, %v5465_v10  ;;  %v5478_v29 = vrot.slane %v5477_v39, 4 }
0x14da   :  { %v5348_v30 = vpop.f32.mrf.mxu1 }
0x14db   :  { %v5473_v45 = vrot.slane %v5472_v46, 2  ;;  %v5479_v36 = vadd.f32 %v5478_v29, %v5477_v39 }
0x14dd   :  { %v5474_v40 = vadd.f32 %v5473_v45, %v5472_v46  ;;  %v5480_v50 = vrot.slane %v5479_v36, 2 }
0x14df   :  { %v5475_v61 = vrot.slane %v5474_v40, 1  ;;  %v5481_v58 = vadd.f32 %v5480_v50, %v5479_v36 }
0x14e1   :  { %v5482_v62 = vrot.slane %v5481_v58, 1  ;;  %v5476_v25 = vadd.f32 %v5475_v61, %v5474_v40 }
0x14e3   :  { %v5483_v3 = vadd.f32 %v5482_v62, %v5481_v58 }
0x14e5   :  { %v5485_v60 = vsel %vm5484_vm9, %v5476_v25, %v5483_v3 }
0x14e6   :  { %v5487_v20 = vsel %vm5486_vm10, %v5485_v60, 0.0 }
0x14e7   :  { %5488 = vst [vmem:[#allocation6] sm:$0xff] %v5487_v20 }
0x14e8   :  { %5510 = dma.vmem_to_hbm [thread:$0]  %s5506_s21, 128, %s5508_s24, [#allocation7]  }
0x14e9   :  { %5901 = dma.done.wait [#allocation5], 128  }
0x14ea   :  { %5902 = vsyncadd [#allocation5], 4294967168 }
0x14eb   :  { %5903 = dma.done.wait [#allocation7], 128  }
0x14ec   :  { %5904 = vsyncadd [#allocation7], 4294967168 }
0x14ed   :  { %5519 = vsyncpa [#allocation5], 1 }
0x14ee   :  { %5520 = vsyncpa [#allocation7], 1 }

</bundles_post_ra>
